<compile_context>
chip_gen: v7x
topology: tpu7x:2x2x1
jax: 0.10.0
libtpu: 0.0.40
codegen_flags: <defaults>
</compile_context>

<pallas_src>
import jax
import jax.numpy as jnp
from jax.experimental import pallas as pl
from jax.experimental.pallas import tpu as pltpu


_BN_EPS = 1e-5
_TM_MAX, _TN_MAX, _TK_MAX = 256, 256, 512


def _round_up(x, m):
    return (x + m - 1) // m * m


# ----------------------------- Pallas kernels ------------------------------

def _make_gemm_kernel(relu, has_residual, multi_k):
    """Tiled GEMM with fused bias(+residual)(+ReLU) epilogue."""

    def epilogue(acc_f32, b_ref, r_ref):
        out = acc_f32 + b_ref[...]
        if r_ref is not None:
            out = out + r_ref[...].astype(jnp.float32)
        if relu:
            out = jnp.maximum(out, 0.0)
        return out

    if multi_k:
        if has_residual:
            def kernel(a_ref, w_ref, b_ref, r_ref, o_ref, acc_ref):
                k = pl.program_id(2)

                @pl.when(k == 0)
                def _():
                    acc_ref[...] = jnp.zeros_like(acc_ref)

                acc_ref[...] += jnp.dot(a_ref[...], w_ref[...],
                                        preferred_element_type=jnp.float32)

                @pl.when(k == pl.num_programs(2) - 1)
                def _():
                    o_ref[...] = epilogue(acc_ref[...], b_ref,
                                          r_ref).astype(o_ref.dtype)
        else:
            def kernel(a_ref, w_ref, b_ref, o_ref, acc_ref):
                k = pl.program_id(2)

                @pl.when(k == 0)
                def _():
                    acc_ref[...] = jnp.zeros_like(acc_ref)

                acc_ref[...] += jnp.dot(a_ref[...], w_ref[...],
                                        preferred_element_type=jnp.float32)

                @pl.when(k == pl.num_programs(2) - 1)
                def _():
                    o_ref[...] = epilogue(acc_ref[...], b_ref,
                                          None).astype(o_ref.dtype)
    else:
        if has_residual:
            def kernel(a_ref, w_ref, b_ref, r_ref, o_ref):
                acc = jnp.dot(a_ref[...], w_ref[...],
                              preferred_element_type=jnp.float32)
                o_ref[...] = epilogue(acc, b_ref, r_ref).astype(o_ref.dtype)
        else:
            def kernel(a_ref, w_ref, b_ref, o_ref):
                acc = jnp.dot(a_ref[...], w_ref[...],
                              preferred_element_type=jnp.float32)
                o_ref[...] = epilogue(acc, b_ref, None).astype(o_ref.dtype)
    return kernel


def _max_reduce_kernel(p_ref, o_ref):
    # p_ref: (KK, tm, C) -> elementwise max over the KK window taps (VPU only).
    o_ref[...] = jnp.max(p_ref[...], axis=0)


def _pool_fc_kernel(x_ref, w_ref, b_ref, o_ref):
    # x_ref: (Nb, HW, C) -> spatial mean -> (Nb, C) @ (C, Ncls) + bias.
    pooled = jnp.mean(x_ref[...].astype(jnp.float32), axis=1)
    out = jnp.dot(pooled.astype(jnp.bfloat16), w_ref[...],
                  preferred_element_type=jnp.float32)
    o_ref[...] = out + b_ref[...]


# ------------------------------ GEMM wrapper --------------------------------

def matmul_bias_act(a, w, bias, residual=None, relu=False,
                    out_dtype=jnp.bfloat16):
    """out = act(a @ w + bias [+ residual]); bf16 operands, f32 accumulation."""
    M, K = a.shape
    K2, N = w.shape
    assert K == K2

    tm = min(_TM_MAX, _round_up(M, 8))
    tn = min(_TN_MAX, _round_up(N, 128))
    tk = min(_TK_MAX, _round_up(K, 128))
    Mp, Np, Kp = _round_up(M, tm), _round_up(N, tn), _round_up(K, tk)
    kgrid = Kp // tk
    multi_k = kgrid > 1

    a_p = jnp.pad(a.astype(jnp.bfloat16), ((0, Mp - M), (0, Kp - K)))
    w_p = jnp.pad(w.astype(jnp.bfloat16), ((0, Kp - K), (0, Np - N)))
    b_p = jnp.pad(bias.astype(jnp.float32), (0, Np - N)).reshape(1, Np)
    operands = [a_p, w_p, b_p]

    if multi_k:
        grid = (Mp // tm, Np // tn, kgrid)
        in_specs = [
            pl.BlockSpec((tm, tk), lambda i, j, k: (i, k)),
            pl.BlockSpec((tk, tn), lambda i, j, k: (k, j)),
            pl.BlockSpec((1, tn), lambda i, j, k: (0, j)),
        ]
        res_spec = pl.BlockSpec((tm, tn), lambda i, j, k: (i, j))
        out_spec = pl.BlockSpec((tm, tn), lambda i, j, k: (i, j))
        scratch = [pltpu.VMEM((tm, tn), jnp.float32)]
        dims = ("parallel", "parallel", "arbitrary")
    else:
        grid = (Mp // tm, Np // tn)
        in_specs = [
            pl.BlockSpec((tm, tk), lambda i, j: (i, 0)),
            pl.BlockSpec((tk, tn), lambda i, j: (0, j)),
            pl.BlockSpec((1, tn), lambda i, j: (0, j)),
        ]
        res_spec = pl.BlockSpec((tm, tn), lambda i, j: (i, j))
        out_spec = pl.BlockSpec((tm, tn), lambda i, j: (i, j))
        scratch = []
        dims = ("parallel", "parallel")

    if residual is not None:
        r_p = jnp.pad(residual.astype(jnp.bfloat16),
                      ((0, Mp - M), (0, Np - N)))
        in_specs.append(res_spec)
        operands.append(r_p)

    kernel = _make_gemm_kernel(relu, residual is not None, multi_k)
    out = pl.pallas_call(
        kernel,
        out_shape=jax.ShapeDtypeStruct((Mp, Np), out_dtype),
        grid_spec=pltpu.PrefetchScalarGridSpec(
            num_scalar_prefetch=0,
            grid=grid,
            in_specs=in_specs,
            out_specs=out_spec,
            scratch_shapes=scratch,
        ),
        compiler_params=pltpu.CompilerParams(dimension_semantics=dims),
        cost_estimate=pl.CostEstimate(
            flops=2 * Mp * Kp * Np,
            transcendentals=0,
            bytes_accessed=2 * (Mp * Kp + Kp * Np + 2 * Mp * Np) + 4 * Np),
    )(*operands)
    return out[:M, :N]


# ------------------------------ JAX glue ops --------------------------------

def _window_taps(x, ksize, stride, padding, pad_value=0.0):
    """x: (N, H, W, C) -> list of ksize*ksize shifted views (N, Ho, Wo, C)."""
    n, h, w, c = x.shape
    ho = (h + 2 * padding - ksize) // stride + 1
    wo = (w + 2 * padding - ksize) // stride + 1
    xp = jnp.pad(
        x,
        ((0, 0), (padding, padding), (padding, padding), (0, 0)),
        constant_values=pad_value,
    )
    taps = []
    for kh in range(ksize):
        for kw in range(ksize):
            taps.append(xp[
                :,
                kh: kh + stride * (ho - 1) + 1: stride,
                kw: kw + stride * (wo - 1) + 1: stride,
                :,
            ])
    return taps, ho, wo


def conv_bn_act(x, w_oihw, bn, stride, padding, relu, residual=None):
    """Conv2d (no bias) + inference BN (folded into weights) + opt residual/ReLU."""
    cout, cin, kh, kw = w_oihw.shape
    n = x.shape[0]
    taps, ho, wo = _window_taps(x.astype(jnp.bfloat16), kh, stride, padding)
    m = n * ho * wo
    if len(taps) == 1:                       # 1x1 conv: pure reshape
        a = taps[0].reshape(m, cin)
    else:
        a = jnp.stack(taps, axis=3).reshape(m, kh * kw * cin)
    wm = jnp.transpose(w_oihw, (2, 3, 1, 0)).reshape(kh * kw * cin, cout)
    # BN: y = gamma * (x - mean) / sqrt(var + eps) + beta ; fold scale into W.
    scale = bn["g"] * jax.lax.rsqrt(bn["var"] + _BN_EPS)
    bias = bn["b"] - bn["mean"] * scale
    wm = wm * scale[None, :]
    res = residual.reshape(m, cout) if residual is not None else None
    out = matmul_bias_act(a, wm, bias, residual=res, relu=relu,
                          out_dtype=jnp.bfloat16)
    return out.reshape(n, ho, wo, cout)


def maxpool2d(x, ksize=3, stride=2, padding=1):
    assert padding < ksize  # every window contains at least one real element
    x = x.astype(jnp.bfloat16)
    neg = jnp.finfo(jnp.bfloat16).min
    taps, ho, wo = _window_taps(x, ksize, stride, padding, pad_value=neg)
    n, c = x.shape[0], x.shape[3]
    kk = ksize * ksize
    m = n * ho * wo
    # tap-major stack lands directly in (KK, M, C) layout -> no HBM transpose
    p = jnp.stack(taps, axis=0).reshape(kk, m, c)
    tm = min(512, _round_up(m, 8))
    mp = _round_up(m, tm)
    p = jnp.pad(p, ((0, 0), (0, mp - m), (0, 0)))
    out = pl.pallas_call(
        _max_reduce_kernel,
        out_shape=jax.ShapeDtypeStruct((mp, c), jnp.bfloat16),
        grid=(mp // tm,),
        in_specs=[pl.BlockSpec((kk, tm, c), lambda i: (0, i, 0))],
        out_specs=pl.BlockSpec((tm, c), lambda i: (i, 0)),
        compiler_params=pltpu.CompilerParams(
            dimension_semantics=("parallel",)),
    )(p)
    return out[:m].reshape(n, ho, wo, c)


def global_pool_fc(x, fc_w, fc_b):
    """Fused global average pool + final Linear.  x: (N,H,W,C), fc_w: (ncls,C)."""
    n, h, w, c = x.shape
    ncls = fc_w.shape[0]
    nb = _round_up(n, 8)
    nclsp = _round_up(ncls, 128)
    x_p = jnp.pad(x.astype(jnp.bfloat16).reshape(n, h * w, c),
                  ((0, nb - n), (0, 0), (0, 0)))
    w_p = jnp.pad(jnp.transpose(fc_w).astype(jnp.bfloat16),
                  ((0, 0), (0, nclsp - ncls)))
    b_p = jnp.pad(fc_b.astype(jnp.float32), (0, nclsp - ncls)).reshape(1, nclsp)
    out = pl.pallas_call(
        _pool_fc_kernel,
        out_shape=jax.ShapeDtypeStruct((nb, nclsp), jnp.float32),
        grid=(1,),
        in_specs=[pl.BlockSpec((nb, h * w, c), lambda i: (0, 0, 0)),
                  pl.BlockSpec((c, nclsp), lambda i: (0, 0)),
                  pl.BlockSpec((1, nclsp), lambda i: (0, 0))],
        out_specs=pl.BlockSpec((nb, nclsp), lambda i: (0, 0)),
    )(x_p, w_p, b_p)
    return out[:n, :ncls]


# ------------------------------- ResNet model -------------------------------

def basic_block(x, blk):
    """BasicBlock: conv3x3-BN/ReLU -> conv3x3-BN (+residual, ReLU fused)."""
    stride = blk["stride"]
    if "down_w" in blk:
        residual = conv_bn_act(x, blk["down_w"], blk["down_bn"],
                               stride=stride, padding=0, relu=False)
    else:
        residual = x
    out = conv_bn_act(x, blk["conv1_w"], blk["bn1"],
                      stride=stride, padding=1, relu=True)
    # residual add + final ReLU fused into the conv2 GEMM epilogue
    out = conv_bn_act(out, blk["conv2_w"], blk["bn2"],
                      stride=1, padding=1, relu=True, residual=residual)
    return out


def resnet_forward(x_nchw, params):
    # NCHW (PyTorch convention) -> NHWC internal layout
    x = jnp.transpose(x_nchw, (0, 2, 3, 1))

    # stem: 7x7 conv s2 p3 + BN/ReLU, then maxpool 3x3 s2 p1
    x = conv_bn_act(x, params["conv1_w"], params["bn1"],
                    stride=2, padding=3, relu=True)
    x = maxpool2d(x, ksize=3, stride=2, padding=1)

    for lname in ("layer1", "layer2", "layer3", "layer4"):
        for blk in params[lname]:
            x = basic_block(x, blk)

    # global avg pool + dropout(p=0.0, identity) + last_linear, fused
    logits = global_pool_fc(x, params["fc_w"], params["fc_b"])
    return logits


# ------------------------------ parameter init ------------------------------

def _bn_params(c, gamma=1.0):
    return {"g": jnp.full((c,), gamma, jnp.float32),
            "b": jnp.zeros((c,), jnp.float32),
            "mean": jnp.zeros((c,), jnp.float32),
            "var": jnp.ones((c,), jnp.float32)}


def kaiming_conv(key, cout, cin, k):
    # kaiming_normal_, mode='fan_out', nonlinearity='relu'
    fan_out = cout * k * k
    std = (2.0 / fan_out) ** 0.5
    return jax.random.normal(key, (cout, cin, k, k), jnp.float32) * std


def make_params(key, num_classes=10, in_channels=3, layers=(1, 1, 1, 1),
                init_bn0=True):
    params = {}
    keys = iter(jax.random.split(key, 128))
    stem_width = 64
    expansion = 1  # BasicBlock.expansion

    params["conv1_w"] = kaiming_conv(next(keys), stem_width, in_channels, 7)
    params["bn1"] = _bn_params(stem_width)

    inplanes = stem_width
    plan = [(64, layers[0], 1), (128, layers[1], 2),
            (256, layers[2], 2), (512, layers[3], 2)]
    for li, (planes, nblocks, first_stride) in enumerate(plan, start=1):
        blocks = []
        for bi in range(nblocks):
            s = first_stride if bi == 0 else 1
            blk = {"stride": s}
            blk["conv1_w"] = kaiming_conv(next(keys), planes, inplanes, 3)
            blk["bn1"] = _bn_params(planes)
            outp = planes * expansion
            blk["conv2_w"] = kaiming_conv(next(keys), outp, planes, 3)
            # init_bn0 zero-inits the last BN of every residual branch
            blk["bn2"] = _bn_params(outp, gamma=0.0 if init_bn0 else 1.0)
            if s != 1 or inplanes != outp:
                blk["down_w"] = kaiming_conv(next(keys), outp, inplanes, 1)
                blk["down_bn"] = _bn_params(outp)
            blocks.append(blk)
            inplanes = outp
        params[f"layer{li}"] = blocks

    num_features = 512 * expansion
    bound = 1.0 / num_features ** 0.5
    params["fc_w"] = jax.random.uniform(next(keys),
                                        (num_classes, num_features),
                                        jnp.float32, -bound, bound)
    params["fc_b"] = jnp.zeros((num_classes,), jnp.float32)
    return params


# ---------------------------------- main -------------------------------------

if __name__ == "__main__":
    key = jax.random.PRNGKey(0)
    kx, kp = jax.random.split(key)

    # small shapes: batch=2, in_channels=3, spatial=32, num_classes=10
    x = jax.random.normal(kx, (2, 3, 32, 32), jnp.float32)
    params = make_params(kp, num_classes=10, in_channels=3,
                         layers=(1, 1, 1, 1), init_bn0=True)

    fwd = jax.jit(lambda inp: resnet_forward(inp, params))
    out = jax.block_until_ready(fwd(x))

    assert out.shape == (2, 10), out.shape
    assert bool(jnp.all(jnp.isfinite(out)))
    print("KERNEL_OK")
</pallas_src>

<mosaic_0001>
module attributes {stable_mosaic.version = 11 : i64} {
  func.func @kernel(%arg0: i32, %arg1: i32, %arg2: memref<256x256xbf16, #tpu.memory_space<vmem>>, %arg3: memref<256x128xbf16, #tpu.memory_space<vmem>>, %arg4: memref<1x128xf32, #tpu.memory_space<vmem>>, %arg5: memref<256x128xbf16, #tpu.memory_space<vmem>>) attributes {dimension_semantics = [#tpu.dimension_semantics<parallel>, #tpu.dimension_semantics<parallel>], iteration_bounds = array<i64: 2, 1>, scalar_prefetch = 0 : i64, scratch_operands = 0 : i64, tpu.core_type = #tpu.core_type<tc>, window_params = [{transform_indices = @transform_0, window_bounds = array<i64: 256, 256>}, {transform_indices = @transform_1, window_bounds = array<i64: 256, 128>}, {transform_indices = @transform_2, window_bounds = array<i64: 1, 128>}, {transform_indices = @transform_3, window_bounds = array<i64: 256, 128>}]} {
    %c0 = arith.constant 0 : index
    %c0_0 = arith.constant 0 : index
    %0 = vector.load %arg2[%c0, %c0_0] : memref<256x256xbf16, #tpu.memory_space<vmem>>, vector<256x256xbf16>
    %c0_1 = arith.constant 0 : index
    %c0_2 = arith.constant 0 : index
    %1 = vector.load %arg3[%c0_1, %c0_2] : memref<256x128xbf16, #tpu.memory_space<vmem>>, vector<256x128xbf16>
    %cst = arith.constant dense<0.000000e+00> : vector<256x128xf32>
    %2 = tpu.matmul %0, %1, %cst {dimension_numbers = #tpu.dot_dimension_numbers<[1], [0], [0], [1], [0, 0, 1, 1], [], []>} : vector<256x256xbf16>, vector<256x128xbf16>, vector<256x128xf32> -> vector<256x128xf32>
    %c0_3 = arith.constant 0 : index
    %c0_4 = arith.constant 0 : index
    %3 = vector.load %arg4[%c0_3, %c0_4] : memref<1x128xf32, #tpu.memory_space<vmem>>, vector<1x128xf32>
    %4 = vector.broadcast %3 : vector<1x128xf32> to vector<256x128xf32>
    %5 = arith.addf %2, %4 : vector<256x128xf32>
    %cst_5 = arith.constant 0.000000e+00 : f32
    %6 = vector.broadcast %cst_5 : f32 to vector<256x128xf32>
    %7 = arith.maximumf %5, %6 : vector<256x128xf32>
    %8 = arith.truncf %7 : vector<256x128xf32> to vector<256x128xbf16>
    %c0_6 = arith.constant 0 : index
    %c0_7 = arith.constant 0 : index
    %9 = vector.load %arg5[%c0_6, %c0_7] : memref<256x128xbf16, #tpu.memory_space<vmem>>, vector<256x128xbf16>
    tpu.vector_store %arg5[%c0_6, %c0_7], %8 {strides = array<i32>} : memref<256x128xbf16, #tpu.memory_space<vmem>>, vector<256x128xbf16>,
    return
  }
  func.func @transform_0(%arg0: i32, %arg1: i32) -> (i32, i32) {
    %c0_i32 = arith.constant 0 : i32
    %c0_i32_0 = arith.constant 0 : i32
    return %arg0, %c0_i32 : i32, i32
  }
  func.func @transform_1(%arg0: i32, %arg1: i32) -> (i32, i32) {
    %c0_i32 = arith.constant 0 : i32
    %c0_i32_0 = arith.constant 0 : i32
    return %c0_i32, %arg1 : i32, i32
  }
  func.func @transform_2(%arg0: i32, %arg1: i32) -> (i32, i32) {
    %c0_i32 = arith.constant 0 : i32
    %c0_i32_0 = arith.constant 0 : i32
    return %c0_i32, %arg1 : i32, i32
  }
  func.func @transform_3(%arg0: i32, %arg1: i32) -> (i32, i32) {
    %c0_i32 = arith.constant 0 : i32
    return %arg0, %arg1 : i32, i32
  }
}

module attributes {stable_mosaic.version = 11 : i64} {
  func.func @_max_reduce_kernel(%arg0: i32, %arg1: memref<9x128x64xbf16, #tpu.memory_space<vmem>>, %arg2: memref<128x64xbf16, #tpu.memory_space<vmem>>) attributes {dimension_semantics = [#tpu.dimension_semantics<parallel>], iteration_bounds = array<i64: 1>, scalar_prefetch = 0 : i64, scratch_operands = 0 : i64, tpu.core_type = #tpu.core_type<tc>, window_params = [{transform_indices = @transform_0, window_bounds = array<i64: 9, 128, 64>}, {transform_indices = @transform_1, window_bounds = array<i64: 128, 64>}]} {
    %c0 = arith.constant 0 : index
    %c0_0 = arith.constant 0 : index
    %c0_1 = arith.constant 0 : index
    %0 = vector.load %arg1[%c0, %c0_0, %c0_1] : memref<9x128x64xbf16, #tpu.memory_space<vmem>>, vector<9x128x64xbf16>
    %cst = arith.constant dense<0xFF80> : vector<128x64xbf16>
    %1 = vector.multi_reduction <maximumf>, %0, %cst [0] : vector<9x128x64xbf16> to vector<128x64xbf16>
    %c0_2 = arith.constant 0 : index
    %c0_3 = arith.constant 0 : index
    %2 = vector.load %arg2[%c0_2, %c0_3] : memref<128x64xbf16, #tpu.memory_space<vmem>>, vector<128x64xbf16>
    tpu.vector_store %arg2[%c0_2, %c0_3], %1 {strides = array<i32>} : memref<128x64xbf16, #tpu.memory_space<vmem>>, vector<128x64xbf16>,
    return
  }
  func.func @transform_0(%arg0: i32) -> (i32, i32, i32) {
    %c0_i32 = arith.constant 0 : i32
    %c0_i32_0 = arith.constant 0 : i32
    %c0_i32_1 = arith.constant 0 : i32
    return %c0_i32, %arg0, %c0_i32_0 : i32, i32, i32
  }
  func.func @transform_1(%arg0: i32) -> (i32, i32) {
    %c0_i32 = arith.constant 0 : i32
    %c0_i32_0 = arith.constant 0 : i32
    return %arg0, %c0_i32 : i32, i32
  }
}

module attributes {stable_mosaic.version = 11 : i64} {
  func.func @kernel(%arg0: i32, %arg1: i32, %arg2: i32, %arg3: memref<128x512xbf16, #tpu.memory_space<vmem>>, %arg4: memref<512x128xbf16, #tpu.memory_space<vmem>>, %arg5: memref<1x128xf32, #tpu.memory_space<vmem>>, %arg6: memref<128x128xbf16, #tpu.memory_space<vmem>>, %arg7: memref<128x128xf32, #tpu.memory_space<vmem>>) attributes {dimension_semantics = [#tpu.dimension_semantics<parallel>, #tpu.dimension_semantics<parallel>, #tpu.dimension_semantics<arbitrary>], iteration_bounds = array<i64: 1, 1, 2>, scalar_prefetch = 0 : i64, scratch_operands = 1 : i64, tpu.core_type = #tpu.core_type<tc>, window_params = [{transform_indices = @transform_0, window_bounds = array<i64: 128, 512>}, {transform_indices = @transform_1, window_bounds = array<i64: 512, 128>}, {transform_indices = @transform_2, window_bounds = array<i64: 1, 128>}, {transform_indices = @transform_3, window_bounds = array<i64: 128, 128>}]} {
    %c0_i32 = arith.constant 0 : i32
    %0 = arith.cmpi eq, %arg2, %c0_i32 : i32
    %1 = arith.extui %0 : i1 to i32
    %c0_i32_0 = arith.constant 0 : i32
    %2 = arith.cmpi ne, %1, %c0_i32_0 : i32
    scf.if %2 {
      %cst_9 = arith.constant 0.000000e+00 : f32
      %12 = vector.broadcast %cst_9 : f32 to vector<128x128xf32>
      %c0_10 = arith.constant 0 : index
      %c0_11 = arith.constant 0 : index
      %13 = vector.load %arg7[%c0_10, %c0_11] : memref<128x128xf32, #tpu.memory_space<vmem>>, vector<128x128xf32>
      tpu.vector_store %arg7[%c0_10, %c0_11], %12 {strides = array<i32>} : memref<128x128xf32, #tpu.memory_space<vmem>>, vector<128x128xf32>,
    } else {
    }
    %c0 = arith.constant 0 : index
    %c0_1 = arith.constant 0 : index
    %3 = vector.load %arg7[%c0, %c0_1] : memref<128x128xf32, #tpu.memory_space<vmem>>, vector<128x128xf32>
    %c0_2 = arith.constant 0 : index
    %c0_3 = arith.constant 0 : index
    %4 = vector.load %arg3[%c0_2, %c0_3] : memref<128x512xbf16, #tpu.memory_space<vmem>>, vector<128x512xbf16>
    %c0_4 = arith.constant 0 : index
    %c0_5 = arith.constant 0 : index
    %5 = vector.load %arg4[%c0_4, %c0_5] : memref<512x128xbf16, #tpu.memory_space<vmem>>, vector<512x128xbf16>
    %cst = arith.constant dense<0.000000e+00> : vector<128x128xf32>
    %6 = tpu.matmul %4, %5, %cst {dimension_numbers = #tpu.dot_dimension_numbers<[1], [0], [0], [1], [0, 0, 1, 1], [], []>} : vector<128x512xbf16>, vector<512x128xbf16>, vector<128x128xf32> -> vector<128x128xf32>
    %7 = arith.addf %3, %6 : vector<128x128xf32>
    %c0_6 = arith.constant 0 : index
    %c0_7 = arith.constant 0 : index
    %8 = vector.load %arg7[%c0_6, %c0_7] : memref<128x128xf32, #tpu.memory_space<vmem>>, vector<128x128xf32>
    tpu.vector_store %arg7[%c0_6, %c0_7], %7 {strides = array<i32>} : memref<128x128xf32, #tpu.memory_space<vmem>>, vector<128x128xf32>,
    %c1_i32 = arith.constant 1 : i32
    %9 = arith.cmpi eq, %arg2, %c1_i32 : i32
    %10 = arith.extui %9 : i1 to i32
    %c0_i32_8 = arith.constant 0 : i32
    %11 = arith.cmpi ne, %10, %c0_i32_8 : i32
    scf.if %11 {
      %c0_9 = arith.constant 0 : index
      %c0_10 = arith.constant 0 : index
      %12 = vector.load %arg7[%c0_9, %c0_10] : memref<128x128xf32, #tpu.memory_space<vmem>>, vector<128x128xf32>
      %c0_11 = arith.constant 0 : index
      %c0_12 = arith.constant 0 : index
      %13 = vector.load %arg5[%c0_11, %c0_12] : memref<1x128xf32, #tpu.memory_space<vmem>>, vector<1x128xf32>
      %14 = vector.broadcast %13 : vector<1x128xf32> to vector<128x128xf32>
      %15 = arith.addf %12, %14 : vector<128x128xf32>
      %cst_13 = arith.constant 0.000000e+00 : f32
      %16 = vector.broadcast %cst_13 : f32 to vector<128x128xf32>
      %17 = arith.maximumf %15, %16 : vector<128x128xf32>
      %18 = arith.truncf %17 : vector<128x128xf32> to vector<128x128xbf16>
      %c0_14 = arith.constant 0 : index
      %c0_15 = arith.constant 0 : index
      %19 = vector.load %arg6[%c0_14, %c0_15] : memref<128x128xbf16, #tpu.memory_space<vmem>>, vector<128x128xbf16>
      tpu.vector_store %arg6[%c0_14, %c0_15], %18 {strides = array<i32>} : memref<128x128xbf16, #tpu.memory_space<vmem>>, vector<128x128xbf16>,
    } else {
    }
    return
  }
  func.func @transform_0(%arg0: i32, %arg1: i32, %arg2: i32) -> (i32, i32) {
    %c0_i32 = arith.constant 0 : i32
    return %arg0, %arg2 : i32, i32
  }
  func.func @transform_1(%arg0: i32, %arg1: i32, %arg2: i32) -> (i32, i32) {
    %c0_i32 = arith.constant 0 : i32
    return %arg2, %arg1 : i32, i32
  }
  func.func @transform_2(%arg0: i32, %arg1: i32, %arg2: i32) -> (i32, i32) {
    %c0_i32 = arith.constant 0 : i32
    %c0_i32_0 = arith.constant 0 : i32
    return %c0_i32, %arg1 : i32, i32
  }
  func.func @transform_3(%arg0: i32, %arg1: i32, %arg2: i32) -> (i32, i32) {
    %c0_i32 = arith.constant 0 : i32
    return %arg0, %arg1 : i32, i32
  }
}

module attributes {stable_mosaic.version = 11 : i64} {
  func.func @kernel(%arg0: i32, %arg1: i32, %arg2: i32, %arg3: memref<128x512xbf16, #tpu.memory_space<vmem>>, %arg4: memref<512x128xbf16, #tpu.memory_space<vmem>>, %arg5: memref<1x128xf32, #tpu.memory_space<vmem>>, %arg6: memref<128x128xbf16, #tpu.memory_space<vmem>>, %arg7: memref<128x128xbf16, #tpu.memory_space<vmem>>, %arg8: memref<128x128xf32, #tpu.memory_space<vmem>>) attributes {dimension_semantics = [#tpu.dimension_semantics<parallel>, #tpu.dimension_semantics<parallel>, #tpu.dimension_semantics<arbitrary>], iteration_bounds = array<i64: 1, 1, 2>, scalar_prefetch = 0 : i64, scratch_operands = 1 : i64, tpu.core_type = #tpu.core_type<tc>, window_params = [{transform_indices = @transform_0, window_bounds = array<i64: 128, 512>}, {transform_indices = @transform_1, window_bounds = array<i64: 512, 128>}, {transform_indices = @transform_2, window_bounds = array<i64: 1, 128>}, {transform_indices = @transform_3, window_bounds = array<i64: 128, 128>}, {transform_indices = @transform_4, window_bounds = array<i64: 128, 128>}]} {
    %c0_i32 = arith.constant 0 : i32
    %0 = arith.cmpi eq, %arg2, %c0_i32 : i32
    %1 = arith.extui %0 : i1 to i32
    %c0_i32_0 = arith.constant 0 : i32
    %2 = arith.cmpi ne, %1, %c0_i32_0 : i32
    scf.if %2 {
      %cst_9 = arith.constant 0.000000e+00 : f32
      %12 = vector.broadcast %cst_9 : f32 to vector<128x128xf32>
      %c0_10 = arith.constant 0 : index
      %c0_11 = arith.constant 0 : index
      %13 = vector.load %arg8[%c0_10, %c0_11] : memref<128x128xf32, #tpu.memory_space<vmem>>, vector<128x128xf32>
      tpu.vector_store %arg8[%c0_10, %c0_11], %12 {strides = array<i32>} : memref<128x128xf32, #tpu.memory_space<vmem>>, vector<128x128xf32>,
    } else {
    }
    %c0 = arith.constant 0 : index
    %c0_1 = arith.constant 0 : index
    %3 = vector.load %arg8[%c0, %c0_1] : memref<128x128xf32, #tpu.memory_space<vmem>>, vector<128x128xf32>
    %c0_2 = arith.constant 0 : index
    %c0_3 = arith.constant 0 : index
    %4 = vector.load %arg3[%c0_2, %c0_3] : memref<128x512xbf16, #tpu.memory_space<vmem>>, vector<128x512xbf16>
    %c0_4 = arith.constant 0 : index
    %c0_5 = arith.constant 0 : index
    %5 = vector.load %arg4[%c0_4, %c0_5] : memref<512x128xbf16, #tpu.memory_space<vmem>>, vector<512x128xbf16>
    %cst = arith.constant dense<0.000000e+00> : vector<128x128xf32>
    %6 = tpu.matmul %4, %5, %cst {dimension_numbers = #tpu.dot_dimension_numbers<[1], [0], [0], [1], [0, 0, 1, 1], [], []>} : vector<128x512xbf16>, vector<512x128xbf16>, vector<128x128xf32> -> vector<128x128xf32>
    %7 = arith.addf %3, %6 : vector<128x128xf32>
    %c0_6 = arith.constant 0 : index
    %c0_7 = arith.constant 0 : index
    %8 = vector.load %arg8[%c0_6, %c0_7] : memref<128x128xf32, #tpu.memory_space<vmem>>, vector<128x128xf32>
    tpu.vector_store %arg8[%c0_6, %c0_7], %7 {strides = array<i32>} : memref<128x128xf32, #tpu.memory_space<vmem>>, vector<128x128xf32>,
    %c1_i32 = arith.constant 1 : i32
    %9 = arith.cmpi eq, %arg2, %c1_i32 : i32
    %10 = arith.extui %9 : i1 to i32
    %c0_i32_8 = arith.constant 0 : i32
    %11 = arith.cmpi ne, %10, %c0_i32_8 : i32
    scf.if %11 {
      %c0_9 = arith.constant 0 : index
      %c0_10 = arith.constant 0 : index
      %12 = vector.load %arg8[%c0_9, %c0_10] : memref<128x128xf32, #tpu.memory_space<vmem>>, vector<128x128xf32>
      %c0_11 = arith.constant 0 : index
      %c0_12 = arith.constant 0 : index
      %13 = vector.load %arg5[%c0_11, %c0_12] : memref<1x128xf32, #tpu.memory_space<vmem>>, vector<1x128xf32>
      %14 = vector.broadcast %13 : vector<1x128xf32> to vector<128x128xf32>
      %15 = arith.addf %12, %14 : vector<128x128xf32>
      %c0_13 = arith.constant 0 : index
      %c0_14 = arith.constant 0 : index
      %16 = vector.load %arg6[%c0_13, %c0_14] : memref<128x128xbf16, #tpu.memory_space<vmem>>, vector<128x128xbf16>
      %17 = arith.extf %16 : vector<128x128xbf16> to vector<128x128xf32>
      %18 = arith.addf %15, %17 : vector<128x128xf32>
      %cst_15 = arith.constant 0.000000e+00 : f32
      %19 = vector.broadcast %cst_15 : f32 to vector<128x128xf32>
      %20 = arith.maximumf %18, %19 : vector<128x128xf32>
      %21 = arith.truncf %20 : vector<128x128xf32> to vector<128x128xbf16>
      %c0_16 = arith.constant 0 : index
      %c0_17 = arith.constant 0 : index
      %22 = vector.load %arg7[%c0_16, %c0_17] : memref<128x128xbf16, #tpu.memory_space<vmem>>, vector<128x128xbf16>
      tpu.vector_store %arg7[%c0_16, %c0_17], %21 {strides = array<i32>} : memref<128x128xbf16, #tpu.memory_space<vmem>>, vector<128x128xbf16>,
    } else {
    }
    return
  }
  func.func @transform_0(%arg0: i32, %arg1: i32, %arg2: i32) -> (i32, i32) {
    %c0_i32 = arith.constant 0 : i32
    return %arg0, %arg2 : i32, i32
  }
  func.func @transform_1(%arg0: i32, %arg1: i32, %arg2: i32) -> (i32, i32) {
    %c0_i32 = arith.constant 0 : i32
    return %arg2, %arg1 : i32, i32
  }
  func.func @transform_2(%arg0: i32, %arg1: i32, %arg2: i32) -> (i32, i32) {
    %c0_i32 = arith.constant 0 : i32
    %c0_i32_0 = arith.constant 0 : i32
    return %c0_i32, %arg1 : i32, i32
  }
  func.func @transform_3(%arg0: i32, %arg1: i32, %arg2: i32) -> (i32, i32) {
    %c0_i32 = arith.constant 0 : i32
    return %arg0, %arg1 : i32, i32
  }
  func.func @transform_4(%arg0: i32, %arg1: i32, %arg2: i32) -> (i32, i32) {
    %c0_i32 = arith.constant 0 : i32
    return %arg0, %arg1 : i32, i32
  }
}

module attributes {stable_mosaic.version = 11 : i64} {
  func.func @kernel(%arg0: i32, %arg1: i32, %arg2: i32, %arg3: memref<32x512xbf16, #tpu.memory_space<vmem>>, %arg4: memref<512x128xbf16, #tpu.memory_space<vmem>>, %arg5: memref<1x128xf32, #tpu.memory_space<vmem>>, %arg6: memref<32x128xbf16, #tpu.memory_space<vmem>>, %arg7: memref<32x128xf32, #tpu.memory_space<vmem>>) attributes {dimension_semantics = [#tpu.dimension_semantics<parallel>, #tpu.dimension_semantics<parallel>, #tpu.dimension_semantics<arbitrary>], iteration_bounds = array<i64: 1, 1, 2>, scalar_prefetch = 0 : i64, scratch_operands = 1 : i64, tpu.core_type = #tpu.core_type<tc>, window_params = [{transform_indices = @transform_0, window_bounds = array<i64: 32, 512>}, {transform_indices = @transform_1, window_bounds = array<i64: 512, 128>}, {transform_indices = @transform_2, window_bounds = array<i64: 1, 128>}, {transform_indices = @transform_3, window_bounds = array<i64: 32, 128>}]} {
    %c0_i32 = arith.constant 0 : i32
    %0 = arith.cmpi eq, %arg2, %c0_i32 : i32
    %1 = arith.extui %0 : i1 to i32
    %c0_i32_0 = arith.constant 0 : i32
    %2 = arith.cmpi ne, %1, %c0_i32_0 : i32
    scf.if %2 {
      %cst_9 = arith.constant 0.000000e+00 : f32
      %12 = vector.broadcast %cst_9 : f32 to vector<32x128xf32>
      %c0_10 = arith.constant 0 : index
      %c0_11 = arith.constant 0 : index
      %13 = vector.load %arg7[%c0_10, %c0_11] : memref<32x128xf32, #tpu.memory_space<vmem>>, vector<32x128xf32>
      tpu.vector_store %arg7[%c0_10, %c0_11], %12 {strides = array<i32>} : memref<32x128xf32, #tpu.memory_space<vmem>>, vector<32x128xf32>,
    } else {
    }
    %c0 = arith.constant 0 : index
    %c0_1 = arith.constant 0 : index
    %3 = vector.load %arg7[%c0, %c0_1] : memref<32x128xf32, #tpu.memory_space<vmem>>, vector<32x128xf32>
    %c0_2 = arith.constant 0 : index
    %c0_3 = arith.constant 0 : index
    %4 = vector.load %arg3[%c0_2, %c0_3] : memref<32x512xbf16, #tpu.memory_space<vmem>>, vector<32x512xbf16>
    %c0_4 = arith.constant 0 : index
    %c0_5 = arith.constant 0 : index
    %5 = vector.load %arg4[%c0_4, %c0_5] : memref<512x128xbf16, #tpu.memory_space<vmem>>, vector<512x128xbf16>
    %cst = arith.constant dense<0.000000e+00> : vector<32x128xf32>
    %6 = tpu.matmul %4, %5, %cst {dimension_numbers = #tpu.dot_dimension_numbers<[1], [0], [0], [1], [0, 0, 1, 1], [], []>} : vector<32x512xbf16>, vector<512x128xbf16>, vector<32x128xf32> -> vector<32x128xf32>
    %7 = arith.addf %3, %6 : vector<32x128xf32>
    %c0_6 = arith.constant 0 : index
    %c0_7 = arith.constant 0 : index
    %8 = vector.load %arg7[%c0_6, %c0_7] : memref<32x128xf32, #tpu.memory_space<vmem>>, vector<32x128xf32>
    tpu.vector_store %arg7[%c0_6, %c0_7], %7 {strides = array<i32>} : memref<32x128xf32, #tpu.memory_space<vmem>>, vector<32x128xf32>,
    %c1_i32 = arith.constant 1 : i32
    %9 = arith.cmpi eq, %arg2, %c1_i32 : i32
    %10 = arith.extui %9 : i1 to i32
    %c0_i32_8 = arith.constant 0 : i32
    %11 = arith.cmpi ne, %10, %c0_i32_8 : i32
    scf.if %11 {
      %c0_9 = arith.constant 0 : index
      %c0_10 = arith.constant 0 : index
      %12 = vector.load %arg7[%c0_9, %c0_10] : memref<32x128xf32, #tpu.memory_space<vmem>>, vector<32x128xf32>
      %c0_11 = arith.constant 0 : index
      %c0_12 = arith.constant 0 : index
      %13 = vector.load %arg5[%c0_11, %c0_12] : memref<1x128xf32, #tpu.memory_space<vmem>>, vector<1x128xf32>
      %14 = vector.broadcast %13 : vector<1x128xf32> to vector<32x128xf32>
      %15 = arith.addf %12, %14 : vector<32x128xf32>
      %cst_13 = arith.constant 0.000000e+00 : f32
      %16 = vector.broadcast %cst_13 : f32 to vector<32x128xf32>
      %17 = arith.maximumf %15, %16 : vector<32x128xf32>
      %18 = arith.truncf %17 : vector<32x128xf32> to vector<32x128xbf16>
      %c0_14 = arith.constant 0 : index
      %c0_15 = arith.constant 0 : index
      %19 = vector.load %arg6[%c0_14, %c0_15] : memref<32x128xbf16, #tpu.memory_space<vmem>>, vector<32x128xbf16>
      tpu.vector_store %arg6[%c0_14, %c0_15], %18 {strides = array<i32>} : memref<32x128xbf16, #tpu.memory_space<vmem>>, vector<32x128xbf16>,
    } else {
    }
    return
  }
  func.func @transform_0(%arg0: i32, %arg1: i32, %arg2: i32) -> (i32, i32) {
    %c0_i32 = arith.constant 0 : i32
    return %arg0, %arg2 : i32, i32
  }
  func.func @transform_1(%arg0: i32, %arg1: i32, %arg2: i32) -> (i32, i32) {
    %c0_i32 = arith.constant 0 : i32
    return %arg2, %arg1 : i32, i32
  }
  func.func @transform_2(%arg0: i32, %arg1: i32, %arg2: i32) -> (i32, i32) {
    %c0_i32 = arith.constant 0 : i32
    %c0_i32_0 = arith.constant 0 : i32
    return %c0_i32, %arg1 : i32, i32
  }
  func.func @transform_3(%arg0: i32, %arg1: i32, %arg2: i32) -> (i32, i32) {
    %c0_i32 = arith.constant 0 : i32
    return %arg0, %arg1 : i32, i32
  }
}

module attributes {stable_mosaic.version = 11 : i64} {
  func.func @kernel(%arg0: i32, %arg1: i32, %arg2: memref<32x128xbf16, #tpu.memory_space<vmem>>, %arg3: memref<128x128xbf16, #tpu.memory_space<vmem>>, %arg4: memref<1x128xf32, #tpu.memory_space<vmem>>, %arg5: memref<32x128xbf16, #tpu.memory_space<vmem>>) attributes {dimension_semantics = [#tpu.dimension_semantics<parallel>, #tpu.dimension_semantics<parallel>], iteration_bounds = array<i64: 1, 1>, scalar_prefetch = 0 : i64, scratch_operands = 0 : i64, tpu.core_type = #tpu.core_type<tc>, window_params = [{transform_indices = @transform_0, window_bounds = array<i64: 32, 128>}, {transform_indices = @transform_1, window_bounds = array<i64: 128, 128>}, {transform_indices = @transform_2, window_bounds = array<i64: 1, 128>}, {transform_indices = @transform_3, window_bounds = array<i64: 32, 128>}]} {
    %c0 = arith.constant 0 : index
    %c0_0 = arith.constant 0 : index
    %0 = vector.load %arg2[%c0, %c0_0] : memref<32x128xbf16, #tpu.memory_space<vmem>>, vector<32x128xbf16>
    %c0_1 = arith.constant 0 : index
    %c0_2 = arith.constant 0 : index
    %1 = vector.load %arg3[%c0_1, %c0_2] : memref<128x128xbf16, #tpu.memory_space<vmem>>, vector<128x128xbf16>
    %cst = arith.constant dense<0.000000e+00> : vector<32x128xf32>
    %2 = tpu.matmul %0, %1, %cst {dimension_numbers = #tpu.dot_dimension_numbers<[1], [0], [0], [1], [0, 0, 1, 1], [], []>} : vector<32x128xbf16>, vector<128x128xbf16>, vector<32x128xf32> -> vector<32x128xf32>
    %c0_3 = arith.constant 0 : index
    %c0_4 = arith.constant 0 : index
    %3 = vector.load %arg4[%c0_3, %c0_4] : memref<1x128xf32, #tpu.memory_space<vmem>>, vector<1x128xf32>
    %4 = vector.broadcast %3 : vector<1x128xf32> to vector<32x128xf32>
    %5 = arith.addf %2, %4 : vector<32x128xf32>
    %6 = arith.truncf %5 : vector<32x128xf32> to vector<32x128xbf16>
    %c0_5 = arith.constant 0 : index
    %c0_6 = arith.constant 0 : index
    %7 = vector.load %arg5[%c0_5, %c0_6] : memref<32x128xbf16, #tpu.memory_space<vmem>>, vector<32x128xbf16>
    tpu.vector_store %arg5[%c0_5, %c0_6], %6 {strides = array<i32>} : memref<32x128xbf16, #tpu.memory_space<vmem>>, vector<32x128xbf16>,
    return
  }
  func.func @transform_0(%arg0: i32, %arg1: i32) -> (i32, i32) {
    %c0_i32 = arith.constant 0 : i32
    %c0_i32_0 = arith.constant 0 : i32
    return %arg0, %c0_i32 : i32, i32
  }
  func.func @transform_1(%arg0: i32, %arg1: i32) -> (i32, i32) {
    %c0_i32 = arith.constant 0 : i32
    %c0_i32_0 = arith.constant 0 : i32
    return %c0_i32, %arg1 : i32, i32
  }
  func.func @transform_2(%arg0: i32, %arg1: i32) -> (i32, i32) {
    %c0_i32 = arith.constant 0 : i32
    %c0_i32_0 = arith.constant 0 : i32
    return %c0_i32, %arg1 : i32, i32
  }
  func.func @transform_3(%arg0: i32, %arg1: i32) -> (i32, i32) {
    %c0_i32 = arith.constant 0 : i32
    return %arg0, %arg1 : i32, i32
  }
}

module attributes {stable_mosaic.version = 11 : i64} {
  func.func @kernel(%arg0: i32, %arg1: i32, %arg2: i32, %arg3: memref<32x512xbf16, #tpu.memory_space<vmem>>, %arg4: memref<512x128xbf16, #tpu.memory_space<vmem>>, %arg5: memref<1x128xf32, #tpu.memory_space<vmem>>, %arg6: memref<32x128xbf16, #tpu.memory_space<vmem>>, %arg7: memref<32x128xbf16, #tpu.memory_space<vmem>>, %arg8: memref<32x128xf32, #tpu.memory_space<vmem>>) attributes {dimension_semantics = [#tpu.dimension_semantics<parallel>, #tpu.dimension_semantics<parallel>, #tpu.dimension_semantics<arbitrary>], iteration_bounds = array<i64: 1, 1, 3>, scalar_prefetch = 0 : i64, scratch_operands = 1 : i64, tpu.core_type = #tpu.core_type<tc>, window_params = [{transform_indices = @transform_0, window_bounds = array<i64: 32, 512>}, {transform_indices = @transform_1, window_bounds = array<i64: 512, 128>}, {transform_indices = @transform_2, window_bounds = array<i64: 1, 128>}, {transform_indices = @transform_3, window_bounds = array<i64: 32, 128>}, {transform_indices = @transform_4, window_bounds = array<i64: 32, 128>}]} {
    %c0_i32 = arith.constant 0 : i32
    %0 = arith.cmpi eq, %arg2, %c0_i32 : i32
    %1 = arith.extui %0 : i1 to i32
    %c0_i32_0 = arith.constant 0 : i32
    %2 = arith.cmpi ne, %1, %c0_i32_0 : i32
    scf.if %2 {
      %cst_9 = arith.constant 0.000000e+00 : f32
      %12 = vector.broadcast %cst_9 : f32 to vector<32x128xf32>
      %c0_10 = arith.constant 0 : index
      %c0_11 = arith.constant 0 : index
      %13 = vector.load %arg8[%c0_10, %c0_11] : memref<32x128xf32, #tpu.memory_space<vmem>>, vector<32x128xf32>
      tpu.vector_store %arg8[%c0_10, %c0_11], %12 {strides = array<i32>} : memref<32x128xf32, #tpu.memory_space<vmem>>, vector<32x128xf32>,
    } else {
    }
    %c0 = arith.constant 0 : index
    %c0_1 = arith.constant 0 : index
    %3 = vector.load %arg8[%c0, %c0_1] : memref<32x128xf32, #tpu.memory_space<vmem>>, vector<32x128xf32>
    %c0_2 = arith.constant 0 : index
    %c0_3 = arith.constant 0 : index
    %4 = vector.load %arg3[%c0_2, %c0_3] : memref<32x512xbf16, #tpu.memory_space<vmem>>, vector<32x512xbf16>
    %c0_4 = arith.constant 0 : index
    %c0_5 = arith.constant 0 : index
    %5 = vector.load %arg4[%c0_4, %c0_5] : memref<512x128xbf16, #tpu.memory_space<vmem>>, vector<512x128xbf16>
    %cst = arith.constant dense<0.000000e+00> : vector<32x128xf32>
    %6 = tpu.matmul %4, %5, %cst {dimension_numbers = #tpu.dot_dimension_numbers<[1], [0], [0], [1], [0, 0, 1, 1], [], []>} : vector<32x512xbf16>, vector<512x128xbf16>, vector<32x128xf32> -> vector<32x128xf32>
    %7 = arith.addf %3, %6 : vector<32x128xf32>
    %c0_6 = arith.constant 0 : index
    %c0_7 = arith.constant 0 : index
    %8 = vector.load %arg8[%c0_6, %c0_7] : memref<32x128xf32, #tpu.memory_space<vmem>>, vector<32x128xf32>
    tpu.vector_store %arg8[%c0_6, %c0_7], %7 {strides = array<i32>} : memref<32x128xf32, #tpu.memory_space<vmem>>, vector<32x128xf32>,
    %c2_i32 = arith.constant 2 : i32
    %9 = arith.cmpi eq, %arg2, %c2_i32 : i32
    %10 = arith.extui %9 : i1 to i32
    %c0_i32_8 = arith.constant 0 : i32
    %11 = arith.cmpi ne, %10, %c0_i32_8 : i32
    scf.if %11 {
      %c0_9 = arith.constant 0 : index
      %c0_10 = arith.constant 0 : index
      %12 = vector.load %arg8[%c0_9, %c0_10] : memref<32x128xf32, #tpu.memory_space<vmem>>, vector<32x128xf32>
      %c0_11 = arith.constant 0 : index
      %c0_12 = arith.constant 0 : index
      %13 = vector.load %arg5[%c0_11, %c0_12] : memref<1x128xf32, #tpu.memory_space<vmem>>, vector<1x128xf32>
      %14 = vector.broadcast %13 : vector<1x128xf32> to vector<32x128xf32>
      %15 = arith.addf %12, %14 : vector<32x128xf32>
      %c0_13 = arith.constant 0 : index
      %c0_14 = arith.constant 0 : index
      %16 = vector.load %arg6[%c0_13, %c0_14] : memref<32x128xbf16, #tpu.memory_space<vmem>>, vector<32x128xbf16>
      %17 = arith.extf %16 : vector<32x128xbf16> to vector<32x128xf32>
      %18 = arith.addf %15, %17 : vector<32x128xf32>
      %cst_15 = arith.constant 0.000000e+00 : f32
      %19 = vector.broadcast %cst_15 : f32 to vector<32x128xf32>
      %20 = arith.maximumf %18, %19 : vector<32x128xf32>
      %21 = arith.truncf %20 : vector<32x128xf32> to vector<32x128xbf16>
      %c0_16 = arith.constant 0 : index
      %c0_17 = arith.constant 0 : index
      %22 = vector.load %arg7[%c0_16, %c0_17] : memref<32x128xbf16, #tpu.memory_space<vmem>>, vector<32x128xbf16>
      tpu.vector_store %arg7[%c0_16, %c0_17], %21 {strides = array<i32>} : memref<32x128xbf16, #tpu.memory_space<vmem>>, vector<32x128xbf16>,
    } else {
    }
    return
  }
  func.func @transform_0(%arg0: i32, %arg1: i32, %arg2: i32) -> (i32, i32) {
    %c0_i32 = arith.constant 0 : i32
    return %arg0, %arg2 : i32, i32
  }
  func.func @transform_1(%arg0: i32, %arg1: i32, %arg2: i32) -> (i32, i32) {
    %c0_i32 = arith.constant 0 : i32
    return %arg2, %arg1 : i32, i32
  }
  func.func @transform_2(%arg0: i32, %arg1: i32, %arg2: i32) -> (i32, i32) {
    %c0_i32 = arith.constant 0 : i32
    %c0_i32_0 = arith.constant 0 : i32
    return %c0_i32, %arg1 : i32, i32
  }
  func.func @transform_3(%arg0: i32, %arg1: i32, %arg2: i32) -> (i32, i32) {
    %c0_i32 = arith.constant 0 : i32
    return %arg0, %arg1 : i32, i32
  }
  func.func @transform_4(%arg0: i32, %arg1: i32, %arg2: i32) -> (i32, i32) {
    %c0_i32 = arith.constant 0 : i32
    return %arg0, %arg1 : i32, i32
  }
}

module attributes {stable_mosaic.version = 11 : i64} {
  func.func @kernel(%arg0: i32, %arg1: i32, %arg2: i32, %arg3: memref<8x512xbf16, #tpu.memory_space<vmem>>, %arg4: memref<512x256xbf16, #tpu.memory_space<vmem>>, %arg5: memref<1x256xf32, #tpu.memory_space<vmem>>, %arg6: memref<8x256xbf16, #tpu.memory_space<vmem>>, %arg7: memref<8x256xf32, #tpu.memory_space<vmem>>) attributes {dimension_semantics = [#tpu.dimension_semantics<parallel>, #tpu.dimension_semantics<parallel>, #tpu.dimension_semantics<arbitrary>], iteration_bounds = array<i64: 1, 1, 3>, scalar_prefetch = 0 : i64, scratch_operands = 1 : i64, tpu.core_type = #tpu.core_type<tc>, window_params = [{transform_indices = @transform_0, window_bounds = array<i64: 8, 512>}, {transform_indices = @transform_1, window_bounds = array<i64: 512, 256>}, {transform_indices = @transform_2, window_bounds = array<i64: 1, 256>}, {transform_indices = @transform_3, window_bounds = array<i64: 8, 256>}]} {
    %c0_i32 = arith.constant 0 : i32
    %0 = arith.cmpi eq, %arg2, %c0_i32 : i32
    %1 = arith.extui %0 : i1 to i32
    %c0_i32_0 = arith.constant 0 : i32
    %2 = arith.cmpi ne, %1, %c0_i32_0 : i32
    scf.if %2 {
      %cst_9 = arith.constant 0.000000e+00 : f32
      %12 = vector.broadcast %cst_9 : f32 to vector<8x256xf32>
      %c0_10 = arith.constant 0 : index
      %c0_11 = arith.constant 0 : index
      %13 = vector.load %arg7[%c0_10, %c0_11] : memref<8x256xf32, #tpu.memory_space<vmem>>, vector<8x256xf32>
      tpu.vector_store %arg7[%c0_10, %c0_11], %12 {strides = array<i32>} : memref<8x256xf32, #tpu.memory_space<vmem>>, vector<8x256xf32>,
    } else {
    }
    %c0 = arith.constant 0 : index
    %c0_1 = arith.constant 0 : index
    %3 = vector.load %arg7[%c0, %c0_1] : memref<8x256xf32, #tpu.memory_space<vmem>>, vector<8x256xf32>
    %c0_2 = arith.constant 0 : index
    %c0_3 = arith.constant 0 : index
    %4 = vector.load %arg3[%c0_2, %c0_3] : memref<8x512xbf16, #tpu.memory_space<vmem>>, vector<8x512xbf16>
    %c0_4 = arith.constant 0 : index
    %c0_5 = arith.constant 0 : index
    %5 = vector.load %arg4[%c0_4, %c0_5] : memref<512x256xbf16, #tpu.memory_space<vmem>>, vector<512x256xbf16>
    %cst = arith.constant dense<0.000000e+00> : vector<8x256xf32>
    %6 = tpu.matmul %4, %5, %cst {dimension_numbers = #tpu.dot_dimension_numbers<[1], [0], [0], [1], [0, 0, 1, 1], [], []>} : vector<8x512xbf16>, vector<512x256xbf16>, vector<8x256xf32> -> vector<8x256xf32>
    %7 = arith.addf %3, %6 : vector<8x256xf32>
    %c0_6 = arith.constant 0 : index
    %c0_7 = arith.constant 0 : index
    %8 = vector.load %arg7[%c0_6, %c0_7] : memref<8x256xf32, #tpu.memory_space<vmem>>, vector<8x256xf32>
    tpu.vector_store %arg7[%c0_6, %c0_7], %7 {strides = array<i32>} : memref<8x256xf32, #tpu.memory_space<vmem>>, vector<8x256xf32>,
    %c2_i32 = arith.constant 2 : i32
    %9 = arith.cmpi eq, %arg2, %c2_i32 : i32
    %10 = arith.extui %9 : i1 to i32
    %c0_i32_8 = arith.constant 0 : i32
    %11 = arith.cmpi ne, %10, %c0_i32_8 : i32
    scf.if %11 {
      %c0_9 = arith.constant 0 : index
      %c0_10 = arith.constant 0 : index
      %12 = vector.load %arg7[%c0_9, %c0_10] : memref<8x256xf32, #tpu.memory_space<vmem>>, vector<8x256xf32>
      %c0_11 = arith.constant 0 : index
      %c0_12 = arith.constant 0 : index
      %13 = vector.load %arg5[%c0_11, %c0_12] : memref<1x256xf32, #tpu.memory_space<vmem>>, vector<1x256xf32>
      %14 = vector.broadcast %13 : vector<1x256xf32> to vector<8x256xf32>
      %15 = arith.addf %12, %14 : vector<8x256xf32>
      %cst_13 = arith.constant 0.000000e+00 : f32
      %16 = vector.broadcast %cst_13 : f32 to vector<8x256xf32>
      %17 = arith.maximumf %15, %16 : vector<8x256xf32>
      %18 = arith.truncf %17 : vector<8x256xf32> to vector<8x256xbf16>
      %c0_14 = arith.constant 0 : index
      %c0_15 = arith.constant 0 : index
      %19 = vector.load %arg6[%c0_14, %c0_15] : memref<8x256xbf16, #tpu.memory_space<vmem>>, vector<8x256xbf16>
      tpu.vector_store %arg6[%c0_14, %c0_15], %18 {strides = array<i32>} : memref<8x256xbf16, #tpu.memory_space<vmem>>, vector<8x256xbf16>,
    } else {
    }
    return
  }
  func.func @transform_0(%arg0: i32, %arg1: i32, %arg2: i32) -> (i32, i32) {
    %c0_i32 = arith.constant 0 : i32
    return %arg0, %arg2 : i32, i32
  }
  func.func @transform_1(%arg0: i32, %arg1: i32, %arg2: i32) -> (i32, i32) {
    %c0_i32 = arith.constant 0 : i32
    return %arg2, %arg1 : i32, i32
  }
  func.func @transform_2(%arg0: i32, %arg1: i32, %arg2: i32) -> (i32, i32) {
    %c0_i32 = arith.constant 0 : i32
    %c0_i32_0 = arith.constant 0 : i32
    return %c0_i32, %arg1 : i32, i32
  }
  func.func @transform_3(%arg0: i32, %arg1: i32, %arg2: i32) -> (i32, i32) {
    %c0_i32 = arith.constant 0 : i32
    return %arg0, %arg1 : i32, i32
  }
}

module attributes {stable_mosaic.version = 11 : i64} {
  func.func @kernel(%arg0: i32, %arg1: i32, %arg2: i32, %arg3: memref<8x512xbf16, #tpu.memory_space<vmem>>, %arg4: memref<512x256xbf16, #tpu.memory_space<vmem>>, %arg5: memref<1x256xf32, #tpu.memory_space<vmem>>, %arg6: memref<8x256xbf16, #tpu.memory_space<vmem>>, %arg7: memref<8x256xbf16, #tpu.memory_space<vmem>>, %arg8: memref<8x256xf32, #tpu.memory_space<vmem>>) attributes {dimension_semantics = [#tpu.dimension_semantics<parallel>, #tpu.dimension_semantics<parallel>, #tpu.dimension_semantics<arbitrary>], iteration_bounds = array<i64: 1, 1, 5>, scalar_prefetch = 0 : i64, scratch_operands = 1 : i64, tpu.core_type = #tpu.core_type<tc>, window_params = [{transform_indices = @transform_0, window_bounds = array<i64: 8, 512>}, {transform_indices = @transform_1, window_bounds = array<i64: 512, 256>}, {transform_indices = @transform_2, window_bounds = array<i64: 1, 256>}, {transform_indices = @transform_3, window_bounds = array<i64: 8, 256>}, {transform_indices = @transform_4, window_bounds = array<i64: 8, 256>}]} {
    %c0_i32 = arith.constant 0 : i32
    %0 = arith.cmpi eq, %arg2, %c0_i32 : i32
    %1 = arith.extui %0 : i1 to i32
    %c0_i32_0 = arith.constant 0 : i32
    %2 = arith.cmpi ne, %1, %c0_i32_0 : i32
    scf.if %2 {
      %cst_9 = arith.constant 0.000000e+00 : f32
      %12 = vector.broadcast %cst_9 : f32 to vector<8x256xf32>
      %c0_10 = arith.constant 0 : index
      %c0_11 = arith.constant 0 : index
      %13 = vector.load %arg8[%c0_10, %c0_11] : memref<8x256xf32, #tpu.memory_space<vmem>>, vector<8x256xf32>
      tpu.vector_store %arg8[%c0_10, %c0_11], %12 {strides = array<i32>} : memref<8x256xf32, #tpu.memory_space<vmem>>, vector<8x256xf32>,
    } else {
    }
    %c0 = arith.constant 0 : index
    %c0_1 = arith.constant 0 : index
    %3 = vector.load %arg8[%c0, %c0_1] : memref<8x256xf32, #tpu.memory_space<vmem>>, vector<8x256xf32>
    %c0_2 = arith.constant 0 : index
    %c0_3 = arith.constant 0 : index
    %4 = vector.load %arg3[%c0_2, %c0_3] : memref<8x512xbf16, #tpu.memory_space<vmem>>, vector<8x512xbf16>
    %c0_4 = arith.constant 0 : index
    %c0_5 = arith.constant 0 : index
    %5 = vector.load %arg4[%c0_4, %c0_5] : memref<512x256xbf16, #tpu.memory_space<vmem>>, vector<512x256xbf16>
    %cst = arith.constant dense<0.000000e+00> : vector<8x256xf32>
    %6 = tpu.matmul %4, %5, %cst {dimension_numbers = #tpu.dot_dimension_numbers<[1], [0], [0], [1], [0, 0, 1, 1], [], []>} : vector<8x512xbf16>, vector<512x256xbf16>, vector<8x256xf32> -> vector<8x256xf32>
    %7 = arith.addf %3, %6 : vector<8x256xf32>
    %c0_6 = arith.constant 0 : index
    %c0_7 = arith.constant 0 : index
    %8 = vector.load %arg8[%c0_6, %c0_7] : memref<8x256xf32, #tpu.memory_space<vmem>>, vector<8x256xf32>
    tpu.vector_store %arg8[%c0_6, %c0_7], %7 {strides = array<i32>} : memref<8x256xf32, #tpu.memory_space<vmem>>, vector<8x256xf32>,
    %c4_i32 = arith.constant 4 : i32
    %9 = arith.cmpi eq, %arg2, %c4_i32 : i32
    %10 = arith.extui %9 : i1 to i32
    %c0_i32_8 = arith.constant 0 : i32
    %11 = arith.cmpi ne, %10, %c0_i32_8 : i32
    scf.if %11 {
      %c0_9 = arith.constant 0 : index
      %c0_10 = arith.constant 0 : index
      %12 = vector.load %arg8[%c0_9, %c0_10] : memref<8x256xf32, #tpu.memory_space<vmem>>, vector<8x256xf32>
      %c0_11 = arith.constant 0 : index
      %c0_12 = arith.constant 0 : index
      %13 = vector.load %arg5[%c0_11, %c0_12] : memref<1x256xf32, #tpu.memory_space<vmem>>, vector<1x256xf32>
      %14 = vector.broadcast %13 : vector<1x256xf32> to vector<8x256xf32>
      %15 = arith.addf %12, %14 : vector<8x256xf32>
      %c0_13 = arith.constant 0 : index
      %c0_14 = arith.constant 0 : index
      %16 = vector.load %arg6[%c0_13, %c0_14] : memref<8x256xbf16, #tpu.memory_space<vmem>>, vector<8x256xbf16>
      %17 = arith.extf %16 : vector<8x256xbf16> to vector<8x256xf32>
      %18 = arith.addf %15, %17 : vector<8x256xf32>
      %cst_15 = arith.constant 0.000000e+00 : f32
      %19 = vector.broadcast %cst_15 : f32 to vector<8x256xf32>
      %20 = arith.maximumf %18, %19 : vector<8x256xf32>
      %21 = arith.truncf %20 : vector<8x256xf32> to vector<8x256xbf16>
      %c0_16 = arith.constant 0 : index
      %c0_17 = arith.constant 0 : index
      %22 = vector.load %arg7[%c0_16, %c0_17] : memref<8x256xbf16, #tpu.memory_space<vmem>>, vector<8x256xbf16>
      tpu.vector_store %arg7[%c0_16, %c0_17], %21 {strides = array<i32>} : memref<8x256xbf16, #tpu.memory_space<vmem>>, vector<8x256xbf16>,
    } else {
    }
    return
  }
  func.func @transform_0(%arg0: i32, %arg1: i32, %arg2: i32) -> (i32, i32) {
    %c0_i32 = arith.constant 0 : i32
    return %arg0, %arg2 : i32, i32
  }
  func.func @transform_1(%arg0: i32, %arg1: i32, %arg2: i32) -> (i32, i32) {
    %c0_i32 = arith.constant 0 : i32
    return %arg2, %arg1 : i32, i32
  }
  func.func @transform_2(%arg0: i32, %arg1: i32, %arg2: i32) -> (i32, i32) {
    %c0_i32 = arith.constant 0 : i32
    %c0_i32_0 = arith.constant 0 : i32
    return %c0_i32, %arg1 : i32, i32
  }
  func.func @transform_3(%arg0: i32, %arg1: i32, %arg2: i32) -> (i32, i32) {
    %c0_i32 = arith.constant 0 : i32
    return %arg0, %arg1 : i32, i32
  }
  func.func @transform_4(%arg0: i32, %arg1: i32, %arg2: i32) -> (i32, i32) {
    %c0_i32 = arith.constant 0 : i32
    return %arg0, %arg1 : i32, i32
  }
}

module attributes {stable_mosaic.version = 11 : i64} {
  func.func @kernel(%arg0: i32, %arg1: i32, %arg2: memref<8x128xbf16, #tpu.memory_space<vmem>>, %arg3: memref<128x256xbf16, #tpu.memory_space<vmem>>, %arg4: memref<1x256xf32, #tpu.memory_space<vmem>>, %arg5: memref<8x256xbf16, #tpu.memory_space<vmem>>) attributes {dimension_semantics = [#tpu.dimension_semantics<parallel>, #tpu.dimension_semantics<parallel>], iteration_bounds = array<i64: 1, 1>, scalar_prefetch = 0 : i64, scratch_operands = 0 : i64, tpu.core_type = #tpu.core_type<tc>, window_params = [{transform_indices = @transform_0, window_bounds = array<i64: 8, 128>}, {transform_indices = @transform_1, window_bounds = array<i64: 128, 256>}, {transform_indices = @transform_2, window_bounds = array<i64: 1, 256>}, {transform_indices = @transform_3, window_bounds = array<i64: 8, 256>}]} {
    %c0 = arith.constant 0 : index
    %c0_0 = arith.constant 0 : index
    %0 = vector.load %arg2[%c0, %c0_0] : memref<8x128xbf16, #tpu.memory_space<vmem>>, vector<8x128xbf16>
    %c0_1 = arith.constant 0 : index
    %c0_2 = arith.constant 0 : index
    %1 = vector.load %arg3[%c0_1, %c0_2] : memref<128x256xbf16, #tpu.memory_space<vmem>>, vector<128x256xbf16>
    %cst = arith.constant dense<0.000000e+00> : vector<8x256xf32>
    %2 = tpu.matmul %0, %1, %cst {dimension_numbers = #tpu.dot_dimension_numbers<[1], [0], [0], [1], [0, 0, 1, 1], [], []>} : vector<8x128xbf16>, vector<128x256xbf16>, vector<8x256xf32> -> vector<8x256xf32>
    %c0_3 = arith.constant 0 : index
    %c0_4 = arith.constant 0 : index
    %3 = vector.load %arg4[%c0_3, %c0_4] : memref<1x256xf32, #tpu.memory_space<vmem>>, vector<1x256xf32>
    %4 = vector.broadcast %3 : vector<1x256xf32> to vector<8x256xf32>
    %5 = arith.addf %2, %4 : vector<8x256xf32>
    %6 = arith.truncf %5 : vector<8x256xf32> to vector<8x256xbf16>
    %c0_5 = arith.constant 0 : index
    %c0_6 = arith.constant 0 : index
    %7 = vector.load %arg5[%c0_5, %c0_6] : memref<8x256xbf16, #tpu.memory_space<vmem>>, vector<8x256xbf16>
    tpu.vector_store %arg5[%c0_5, %c0_6], %6 {strides = array<i32>} : memref<8x256xbf16, #tpu.memory_space<vmem>>, vector<8x256xbf16>,
    return
  }
  func.func @transform_0(%arg0: i32, %arg1: i32) -> (i32, i32) {
    %c0_i32 = arith.constant 0 : i32
    %c0_i32_0 = arith.constant 0 : i32
    return %arg0, %c0_i32 : i32, i32
  }
  func.func @transform_1(%arg0: i32, %arg1: i32) -> (i32, i32) {
    %c0_i32 = arith.constant 0 : i32
    %c0_i32_0 = arith.constant 0 : i32
    return %c0_i32, %arg1 : i32, i32
  }
  func.func @transform_2(%arg0: i32, %arg1: i32) -> (i32, i32) {
    %c0_i32 = arith.constant 0 : i32
    %c0_i32_0 = arith.constant 0 : i32
    return %c0_i32, %arg1 : i32, i32
  }
  func.func @transform_3(%arg0: i32, %arg1: i32) -> (i32, i32) {
    %c0_i32 = arith.constant 0 : i32
    return %arg0, %arg1 : i32, i32
  }
}

module attributes {stable_mosaic.version = 11 : i64} {
  func.func @kernel(%arg0: i32, %arg1: i32, %arg2: i32, %arg3: memref<8x512xbf16, #tpu.memory_space<vmem>>, %arg4: memref<512x256xbf16, #tpu.memory_space<vmem>>, %arg5: memref<1x256xf32, #tpu.memory_space<vmem>>, %arg6: memref<8x256xbf16, #tpu.memory_space<vmem>>, %arg7: memref<8x256xf32, #tpu.memory_space<vmem>>) attributes {dimension_semantics = [#tpu.dimension_semantics<parallel>, #tpu.dimension_semantics<parallel>, #tpu.dimension_semantics<arbitrary>], iteration_bounds = array<i64: 1, 2, 5>, scalar_prefetch = 0 : i64, scratch_operands = 1 : i64, tpu.core_type = #tpu.core_type<tc>, window_params = [{transform_indices = @transform_0, window_bounds = array<i64: 8, 512>}, {transform_indices = @transform_1, window_bounds = array<i64: 512, 256>}, {transform_indices = @transform_2, window_bounds = array<i64: 1, 256>}, {transform_indices = @transform_3, window_bounds = array<i64: 8, 256>}]} {
    %c0_i32 = arith.constant 0 : i32
    %0 = arith.cmpi eq, %arg2, %c0_i32 : i32
    %1 = arith.extui %0 : i1 to i32
    %c0_i32_0 = arith.constant 0 : i32
    %2 = arith.cmpi ne, %1, %c0_i32_0 : i32
    scf.if %2 {
      %cst_9 = arith.constant 0.000000e+00 : f32
      %12 = vector.broadcast %cst_9 : f32 to vector<8x256xf32>
      %c0_10 = arith.constant 0 : index
      %c0_11 = arith.constant 0 : index
      %13 = vector.load %arg7[%c0_10, %c0_11] : memref<8x256xf32, #tpu.memory_space<vmem>>, vector<8x256xf32>
      tpu.vector_store %arg7[%c0_10, %c0_11], %12 {strides = array<i32>} : memref<8x256xf32, #tpu.memory_space<vmem>>, vector<8x256xf32>,
    } else {
    }
    %c0 = arith.constant 0 : index
    %c0_1 = arith.constant 0 : index
    %3 = vector.load %arg7[%c0, %c0_1] : memref<8x256xf32, #tpu.memory_space<vmem>>, vector<8x256xf32>
    %c0_2 = arith.constant 0 : index
    %c0_3 = arith.constant 0 : index
    %4 = vector.load %arg3[%c0_2, %c0_3] : memref<8x512xbf16, #tpu.memory_space<vmem>>, vector<8x512xbf16>
    %c0_4 = arith.constant 0 : index
    %c0_5 = arith.constant 0 : index
    %5 = vector.load %arg4[%c0_4, %c0_5] : memref<512x256xbf16, #tpu.memory_space<vmem>>, vector<512x256xbf16>
    %cst = arith.constant dense<0.000000e+00> : vector<8x256xf32>
    %6 = tpu.matmul %4, %5, %cst {dimension_numbers = #tpu.dot_dimension_numbers<[1], [0], [0], [1], [0, 0, 1, 1], [], []>} : vector<8x512xbf16>, vector<512x256xbf16>, vector<8x256xf32> -> vector<8x256xf32>
    %7 = arith.addf %3, %6 : vector<8x256xf32>
    %c0_6 = arith.constant 0 : index
    %c0_7 = arith.constant 0 : index
    %8 = vector.load %arg7[%c0_6, %c0_7] : memref<8x256xf32, #tpu.memory_space<vmem>>, vector<8x256xf32>
    tpu.vector_store %arg7[%c0_6, %c0_7], %7 {strides = array<i32>} : memref<8x256xf32, #tpu.memory_space<vmem>>, vector<8x256xf32>,
    %c4_i32 = arith.constant 4 : i32
    %9 = arith.cmpi eq, %arg2, %c4_i32 : i32
    %10 = arith.extui %9 : i1 to i32
    %c0_i32_8 = arith.constant 0 : i32
    %11 = arith.cmpi ne, %10, %c0_i32_8 : i32
    scf.if %11 {
      %c0_9 = arith.constant 0 : index
      %c0_10 = arith.constant 0 : index
      %12 = vector.load %arg7[%c0_9, %c0_10] : memref<8x256xf32, #tpu.memory_space<vmem>>, vector<8x256xf32>
      %c0_11 = arith.constant 0 : index
      %c0_12 = arith.constant 0 : index
      %13 = vector.load %arg5[%c0_11, %c0_12] : memref<1x256xf32, #tpu.memory_space<vmem>>, vector<1x256xf32>
      %14 = vector.broadcast %13 : vector<1x256xf32> to vector<8x256xf32>
      %15 = arith.addf %12, %14 : vector<8x256xf32>
      %cst_13 = arith.constant 0.000000e+00 : f32
      %16 = vector.broadcast %cst_13 : f32 to vector<8x256xf32>
      %17 = arith.maximumf %15, %16 : vector<8x256xf32>
      %18 = arith.truncf %17 : vector<8x256xf32> to vector<8x256xbf16>
      %c0_14 = arith.constant 0 : index
      %c0_15 = arith.constant 0 : index
      %19 = vector.load %arg6[%c0_14, %c0_15] : memref<8x256xbf16, #tpu.memory_space<vmem>>, vector<8x256xbf16>
      tpu.vector_store %arg6[%c0_14, %c0_15], %18 {strides = array<i32>} : memref<8x256xbf16, #tpu.memory_space<vmem>>, vector<8x256xbf16>,
    } else {
    }
    return
  }
  func.func @transform_0(%arg0: i32, %arg1: i32, %arg2: i32) -> (i32, i32) {
    %c0_i32 = arith.constant 0 : i32
    return %arg0, %arg2 : i32, i32
  }
  func.func @transform_1(%arg0: i32, %arg1: i32, %arg2: i32) -> (i32, i32) {
    %c0_i32 = arith.constant 0 : i32
    return %arg2, %arg1 : i32, i32
  }
  func.func @transform_2(%arg0: i32, %arg1: i32, %arg2: i32) -> (i32, i32) {
    %c0_i32 = arith.constant 0 : i32
    %c0_i32_0 = arith.constant 0 : i32
    return %c0_i32, %arg1 : i32, i32
  }
  func.func @transform_3(%arg0: i32, %arg1: i32, %arg2: i32) -> (i32, i32) {
    %c0_i32 = arith.constant 0 : i32
    return %arg0, %arg1 : i32, i32
  }
}

module attributes {stable_mosaic.version = 11 : i64} {
  func.func @kernel(%arg0: i32, %arg1: i32, %arg2: memref<8x256xbf16, #tpu.memory_space<vmem>>, %arg3: memref<256x256xbf16, #tpu.memory_space<vmem>>, %arg4: memref<1x256xf32, #tpu.memory_space<vmem>>, %arg5: memref<8x256xbf16, #tpu.memory_space<vmem>>) attributes {dimension_semantics = [#tpu.dimension_semantics<parallel>, #tpu.dimension_semantics<parallel>], iteration_bounds = array<i64: 1, 2>, scalar_prefetch = 0 : i64, scratch_operands = 0 : i64, tpu.core_type = #tpu.core_type<tc>, window_params = [{transform_indices = @transform_0, window_bounds = array<i64: 8, 256>}, {transform_indices = @transform_1, window_bounds = array<i64: 256, 256>}, {transform_indices = @transform_2, window_bounds = array<i64: 1, 256>}, {transform_indices = @transform_3, window_bounds = array<i64: 8, 256>}]} {
    %c0 = arith.constant 0 : index
    %c0_0 = arith.constant 0 : index
    %0 = vector.load %arg2[%c0, %c0_0] : memref<8x256xbf16, #tpu.memory_space<vmem>>, vector<8x256xbf16>
    %c0_1 = arith.constant 0 : index
    %c0_2 = arith.constant 0 : index
    %1 = vector.load %arg3[%c0_1, %c0_2] : memref<256x256xbf16, #tpu.memory_space<vmem>>, vector<256x256xbf16>
    %cst = arith.constant dense<0.000000e+00> : vector<8x256xf32>
    %2 = tpu.matmul %0, %1, %cst {dimension_numbers = #tpu.dot_dimension_numbers<[1], [0], [0], [1], [0, 0, 1, 1], [], []>} : vector<8x256xbf16>, vector<256x256xbf16>, vector<8x256xf32> -> vector<8x256xf32>
    %c0_3 = arith.constant 0 : index
    %c0_4 = arith.constant 0 : index
    %3 = vector.load %arg4[%c0_3, %c0_4] : memref<1x256xf32, #tpu.memory_space<vmem>>, vector<1x256xf32>
    %4 = vector.broadcast %3 : vector<1x256xf32> to vector<8x256xf32>
    %5 = arith.addf %2, %4 : vector<8x256xf32>
    %6 = arith.truncf %5 : vector<8x256xf32> to vector<8x256xbf16>
    %c0_5 = arith.constant 0 : index
    %c0_6 = arith.constant 0 : index
    %7 = vector.load %arg5[%c0_5, %c0_6] : memref<8x256xbf16, #tpu.memory_space<vmem>>, vector<8x256xbf16>
    tpu.vector_store %arg5[%c0_5, %c0_6], %6 {strides = array<i32>} : memref<8x256xbf16, #tpu.memory_space<vmem>>, vector<8x256xbf16>,
    return
  }
  func.func @transform_0(%arg0: i32, %arg1: i32) -> (i32, i32) {
    %c0_i32 = arith.constant 0 : i32
    %c0_i32_0 = arith.constant 0 : i32
    return %arg0, %c0_i32 : i32, i32
  }
  func.func @transform_1(%arg0: i32, %arg1: i32) -> (i32, i32) {
    %c0_i32 = arith.constant 0 : i32
    %c0_i32_0 = arith.constant 0 : i32
    return %c0_i32, %arg1 : i32, i32
  }
  func.func @transform_2(%arg0: i32, %arg1: i32) -> (i32, i32) {
    %c0_i32 = arith.constant 0 : i32
    %c0_i32_0 = arith.constant 0 : i32
    return %c0_i32, %arg1 : i32, i32
  }
  func.func @transform_3(%arg0: i32, %arg1: i32) -> (i32, i32) {
    %c0_i32 = arith.constant 0 : i32
    return %arg0, %arg1 : i32, i32
  }
}

module attributes {stable_mosaic.version = 11 : i64} {
  func.func @kernel(%arg0: i32, %arg1: i32, %arg2: i32, %arg3: memref<8x512xbf16, #tpu.memory_space<vmem>>, %arg4: memref<512x256xbf16, #tpu.memory_space<vmem>>, %arg5: memref<1x256xf32, #tpu.memory_space<vmem>>, %arg6: memref<8x256xbf16, #tpu.memory_space<vmem>>, %arg7: memref<8x256xbf16, #tpu.memory_space<vmem>>, %arg8: memref<8x256xf32, #tpu.memory_space<vmem>>) attributes {dimension_semantics = [#tpu.dimension_semantics<parallel>, #tpu.dimension_semantics<parallel>, #tpu.dimension_semantics<arbitrary>], iteration_bounds = array<i64: 1, 2, 9>, scalar_prefetch = 0 : i64, scratch_operands = 1 : i64, tpu.core_type = #tpu.core_type<tc>, window_params = [{transform_indices = @transform_0, window_bounds = array<i64: 8, 512>}, {transform_indices = @transform_1, window_bounds = array<i64: 512, 256>}, {transform_indices = @transform_2, window_bounds = array<i64: 1, 256>}, {transform_indices = @transform_3, window_bounds = array<i64: 8, 256>}, {transform_indices = @transform_4, window_bounds = array<i64: 8, 256>}]} {
    %c0_i32 = arith.constant 0 : i32
    %0 = arith.cmpi eq, %arg2, %c0_i32 : i32
    %1 = arith.extui %0 : i1 to i32
    %c0_i32_0 = arith.constant 0 : i32
    %2 = arith.cmpi ne, %1, %c0_i32_0 : i32
    scf.if %2 {
      %cst_9 = arith.constant 0.000000e+00 : f32
      %12 = vector.broadcast %cst_9 : f32 to vector<8x256xf32>
      %c0_10 = arith.constant 0 : index
      %c0_11 = arith.constant 0 : index
      %13 = vector.load %arg8[%c0_10, %c0_11] : memref<8x256xf32, #tpu.memory_space<vmem>>, vector<8x256xf32>
      tpu.vector_store %arg8[%c0_10, %c0_11], %12 {strides = array<i32>} : memref<8x256xf32, #tpu.memory_space<vmem>>, vector<8x256xf32>,
    } else {
    }
    %c0 = arith.constant 0 : index
    %c0_1 = arith.constant 0 : index
    %3 = vector.load %arg8[%c0, %c0_1] : memref<8x256xf32, #tpu.memory_space<vmem>>, vector<8x256xf32>
    %c0_2 = arith.constant 0 : index
    %c0_3 = arith.constant 0 : index
    %4 = vector.load %arg3[%c0_2, %c0_3] : memref<8x512xbf16, #tpu.memory_space<vmem>>, vector<8x512xbf16>
    %c0_4 = arith.constant 0 : index
    %c0_5 = arith.constant 0 : index
    %5 = vector.load %arg4[%c0_4, %c0_5] : memref<512x256xbf16, #tpu.memory_space<vmem>>, vector<512x256xbf16>
    %cst = arith.constant dense<0.000000e+00> : vector<8x256xf32>
    %6 = tpu.matmul %4, %5, %cst {dimension_numbers = #tpu.dot_dimension_numbers<[1], [0], [0], [1], [0, 0, 1, 1], [], []>} : vector<8x512xbf16>, vector<512x256xbf16>, vector<8x256xf32> -> vector<8x256xf32>
    %7 = arith.addf %3, %6 : vector<8x256xf32>
    %c0_6 = arith.constant 0 : index
    %c0_7 = arith.constant 0 : index
    %8 = vector.load %arg8[%c0_6, %c0_7] : memref<8x256xf32, #tpu.memory_space<vmem>>, vector<8x256xf32>
    tpu.vector_store %arg8[%c0_6, %c0_7], %7 {strides = array<i32>} : memref<8x256xf32, #tpu.memory_space<vmem>>, vector<8x256xf32>,
    %c8_i32 = arith.constant 8 : i32
    %9 = arith.cmpi eq, %arg2, %c8_i32 : i32
    %10 = arith.extui %9 : i1 to i32
    %c0_i32_8 = arith.constant 0 : i32
    %11 = arith.cmpi ne, %10, %c0_i32_8 : i32
    scf.if %11 {
      %c0_9 = arith.constant 0 : index
      %c0_10 = arith.constant 0 : index
      %12 = vector.load %arg8[%c0_9, %c0_10] : memref<8x256xf32, #tpu.memory_space<vmem>>, vector<8x256xf32>
      %c0_11 = arith.constant 0 : index
      %c0_12 = arith.constant 0 : index
      %13 = vector.load %arg5[%c0_11, %c0_12] : memref<1x256xf32, #tpu.memory_space<vmem>>, vector<1x256xf32>
      %14 = vector.broadcast %13 : vector<1x256xf32> to vector<8x256xf32>
      %15 = arith.addf %12, %14 : vector<8x256xf32>
      %c0_13 = arith.constant 0 : index
      %c0_14 = arith.constant 0 : index
      %16 = vector.load %arg6[%c0_13, %c0_14] : memref<8x256xbf16, #tpu.memory_space<vmem>>, vector<8x256xbf16>
      %17 = arith.extf %16 : vector<8x256xbf16> to vector<8x256xf32>
      %18 = arith.addf %15, %17 : vector<8x256xf32>
      %cst_15 = arith.constant 0.000000e+00 : f32
      %19 = vector.broadcast %cst_15 : f32 to vector<8x256xf32>
      %20 = arith.maximumf %18, %19 : vector<8x256xf32>
      %21 = arith.truncf %20 : vector<8x256xf32> to vector<8x256xbf16>
      %c0_16 = arith.constant 0 : index
      %c0_17 = arith.constant 0 : index
      %22 = vector.load %arg7[%c0_16, %c0_17] : memref<8x256xbf16, #tpu.memory_space<vmem>>, vector<8x256xbf16>
      tpu.vector_store %arg7[%c0_16, %c0_17], %21 {strides = array<i32>} : memref<8x256xbf16, #tpu.memory_space<vmem>>, vector<8x256xbf16>,
    } else {
    }
    return
  }
  func.func @transform_0(%arg0: i32, %arg1: i32, %arg2: i32) -> (i32, i32) {
    %c0_i32 = arith.constant 0 : i32
    return %arg0, %arg2 : i32, i32
  }
  func.func @transform_1(%arg0: i32, %arg1: i32, %arg2: i32) -> (i32, i32) {
    %c0_i32 = arith.constant 0 : i32
    return %arg2, %arg1 : i32, i32
  }
  func.func @transform_2(%arg0: i32, %arg1: i32, %arg2: i32) -> (i32, i32) {
    %c0_i32 = arith.constant 0 : i32
    %c0_i32_0 = arith.constant 0 : i32
    return %c0_i32, %arg1 : i32, i32
  }
  func.func @transform_3(%arg0: i32, %arg1: i32, %arg2: i32) -> (i32, i32) {
    %c0_i32 = arith.constant 0 : i32
    return %arg0, %arg1 : i32, i32
  }
  func.func @transform_4(%arg0: i32, %arg1: i32, %arg2: i32) -> (i32, i32) {
    %c0_i32 = arith.constant 0 : i32
    return %arg0, %arg1 : i32, i32
  }
}

module attributes {stable_mosaic.version = 11 : i64} {
  func.func @_pool_fc_kernel(%arg0: i32, %arg1: memref<8x1x512xbf16, #tpu.memory_space<vmem>>, %arg2: memref<512x128xbf16, #tpu.memory_space<vmem>>, %arg3: memref<1x128xf32, #tpu.memory_space<vmem>>, %arg4: memref<8x128xf32, #tpu.memory_space<vmem>>) attributes {dimension_semantics = [#tpu.dimension_semantics<arbitrary>], iteration_bounds = array<i64: 1>, scalar_prefetch = 0 : i64, scratch_operands = 0 : i64, tpu.core_type = #tpu.core_type<tc>, window_params = [{pipeline_mode = #tpu.pipeline_mode<synchronous>, transform_indices = @transform_0, window_bounds = array<i64: 8, 1, 512>}, {pipeline_mode = #tpu.pipeline_mode<synchronous>, transform_indices = @transform_1, window_bounds = array<i64: 512, 128>}, {pipeline_mode = #tpu.pipeline_mode<synchronous>, transform_indices = @transform_2, window_bounds = array<i64: 1, 128>}, {pipeline_mode = #tpu.pipeline_mode<synchronous>, transform_indices = @transform_3, window_bounds = array<i64: 8, 128>}]} {
    %c0 = arith.constant 0 : index
    %c0_0 = arith.constant 0 : index
    %c0_1 = arith.constant 0 : index
    %0 = vector.load %arg1[%c0, %c0_0, %c0_1] : memref<8x1x512xbf16, #tpu.memory_space<vmem>>, vector<8x1x512xbf16>
    %1 = arith.extf %0 : vector<8x1x512xbf16> to vector<8x1x512xf32>
    %cst = arith.constant dense<0.000000e+00> : vector<8x512xf32>
    %2 = vector.multi_reduction <add>, %1, %cst [1] : vector<8x1x512xf32> to vector<8x512xf32>
    %cst_2 = arith.constant 1.000000e+00 : f32
    %3 = vector.broadcast %cst_2 : f32 to vector<8x512xf32>
    %4 = arith.divf %2, %3 : vector<8x512xf32>
    %5 = arith.truncf %4 : vector<8x512xf32> to vector<8x512xbf16>
    %c0_3 = arith.constant 0 : index
    %c0_4 = arith.constant 0 : index
    %6 = vector.load %arg2[%c0_3, %c0_4] : memref<512x128xbf16, #tpu.memory_space<vmem>>, vector<512x128xbf16>
    %cst_5 = arith.constant dense<0.000000e+00> : vector<8x128xf32>
    %7 = tpu.matmul %5, %6, %cst_5 {dimension_numbers = #tpu.dot_dimension_numbers<[1], [0], [0], [1], [0, 0, 1, 1], [], []>} : vector<8x512xbf16>, vector<512x128xbf16>, vector<8x128xf32> -> vector<8x128xf32>
    %c0_6 = arith.constant 0 : index
    %c0_7 = arith.constant 0 : index
    %8 = vector.load %arg3[%c0_6, %c0_7] : memref<1x128xf32, #tpu.memory_space<vmem>>, vector<1x128xf32>
    %9 = vector.broadcast %8 : vector<1x128xf32> to vector<8x128xf32>
    %10 = arith.addf %7, %9 : vector<8x128xf32>
    %c0_8 = arith.constant 0 : index
    %c0_9 = arith.constant 0 : index
    %11 = vector.load %arg4[%c0_8, %c0_9] : memref<8x128xf32, #tpu.memory_space<vmem>>, vector<8x128xf32>
    tpu.vector_store %arg4[%c0_8, %c0_9], %10 {strides = array<i32>} : memref<8x128xf32, #tpu.memory_space<vmem>>, vector<8x128xf32>,
    return
  }
  func.func @transform_0(%arg0: i32) -> (i32, i32, i32) {
    %c0_i32 = arith.constant 0 : i32
    %c0_i32_0 = arith.constant 0 : i32
    %c0_i32_1 = arith.constant 0 : i32
    %c0_i32_2 = arith.constant 0 : i32
    return %c0_i32, %c0_i32_0, %c0_i32_1 : i32, i32, i32
  }
  func.func @transform_1(%arg0: i32) -> (i32, i32) {
    %c0_i32 = arith.constant 0 : i32
    %c0_i32_0 = arith.constant 0 : i32
    %c0_i32_1 = arith.constant 0 : i32
    return %c0_i32, %c0_i32_0 : i32, i32
  }
  func.func @transform_2(%arg0: i32) -> (i32, i32) {
    %c0_i32 = arith.constant 0 : i32
    %c0_i32_0 = arith.constant 0 : i32
    %c0_i32_1 = arith.constant 0 : i32
    return %c0_i32, %c0_i32_0 : i32, i32
  }
  func.func @transform_3(%arg0: i32) -> (i32, i32) {
    %c0_i32 = arith.constant 0 : i32
    %c0_i32_0 = arith.constant 0 : i32
    %c0_i32_1 = arith.constant 0 : i32
    return %c0_i32, %c0_i32_0 : i32, i32
  }
}

</mosaic_0001>

<bundles_post_ra>
// kernel: _lambda_.14
= control target key start
LH: loop header
LB: loop body
LE: loop exit
PB: predicated region body
PF: predicated region fallthrough
CT: control target
= control target key end

     0   :  { %s1494_s12 = smov 0   ;;  %s1496_s13 = smov 0   ;;  %s1668_s0 = inlined_call_operand.vmem [shape: bf16[512,256], index: 0, kind: input, shape index: {}]   ;;  %s1669_s1 = inlined_call_operand.vmem [shape: bf16[256,128], index: 1, kind: input, shape index: {}]   ;;  %s1670_s2 = inlined_call_operand.vmem [shape: f32[1,128], index: 2, kind: input, shape index: {}]   ;;  %s1671_s3 = inlined_call_operand.vmem [shape: bf16[512,128], index: 3, kind: output, shape index: {}]  }
   0x1   :  { %s1498_s14 = smov 0  }
   0x2 LB: > { %s25_s15 = sadd.s32 1, %s1468_s13  ;;  %p1017_p0 = scmp.ge.s32.totalorder %s1472_s14, 1  ;;  %s1472_s14 = sphi %s1498_s14, %s13_s14   ;;  %s1468_s13 = sphi %s1496_s13, %s1673_s13   ;;  %s1464_s12 = sphi %s1494_s12, %s1672_s12  }
   0x3   : > { %p27_p1 = scmp.ge.s32.totalorder %s25_s15, 2  ;;  %p170_p2 = scmp.lt.s32.totalorder %s1472_s14, 3 }
   0x5   : > { %s1675_s15 = smov (%p27_p1, %s25_s15), 0  ;;  %p171_p3 = pnand %p1017_p0, %p170_p2 }
   0x6   : > { %v1386_v0 = vld [vmem:[%s1669_s1 + $0x40] sm:$0xff] (!%p171_p3)   ;;  %s1018_s18 = sshll.u32 (!%p171_p3), %s1464_s12, 5  ;;  %v1388_v2 = vld [vmem:[%s1669_s1 + $0x48] sm:$0xff] (!%p171_p3)   ;;  %v1390_v4 = vld [vmem:[%s1669_s1 + $0x50] sm:$0xff] (!%p171_p3)  }
   0x7   : > { %174 = sbr.rel (%p171_p3) target bundleno = 320 (0x140), region = 32  ;;  %v1387_v1 = vld [vmem:[%s1669_s1] sm:$0xff] (!%p171_p3)   ;;  %1234 = vmatprep.subr.bf16.mxu0 (!%p171_p3), %v1386_v0  ;;  %1346 = vmatprep.subr.bf16.mxu1 (!%p171_p3), %v1386_v0  ;;  %v1389_v3 = vld [vmem:[%s1669_s1 + $0x8] sm:$0xff] (!%p171_p3)   ;;  %p206_p4 = scmp.lt.s32.totalorder (!%p171_p3), %s1018_s18, 63  ;;  %v1391_v5 = vld [vmem:[%s1669_s1 + $0x10] sm:$0xff] (!%p171_p3)  }
   0x8   : > { %1235 = vmatpush3.bf16.msra.mxu0 (!%p171_p3), %v1387_v1  ;;  %1354 = vmatpush3.bf16.msra.mxu1 (!%p171_p3), %v1387_v1  ;;  %v1392_v6 = vld [vmem:[%s1669_s1 + $0x58] sm:$0xff] (!%p171_p3)   ;;  %v1394_v8 = vld [vmem:[%s1669_s1 + $0x60] sm:$0xff] (!%p171_p3)   ;;  %v1396_v10 = vld [vmem:[%s1669_s1 + $0x68] sm:$0xff] (!%p171_p3)  }
   0x9   : > { %1236 = vmatprep.subr.bf16.mxu0 (!%p171_p3), %v1388_v2  ;;  %1347 = vmatprep.subr.bf16.mxu1 (!%p171_p3), %v1388_v2  ;;  %v1393_v7 = vld [vmem:[%s1669_s1 + $0x18] sm:$0xff] (!%p171_p3)   ;;  %v1395_v9 = vld [vmem:[%s1669_s1 + $0x20] sm:$0xff] (!%p171_p3)   ;;  %v1397_v13 = vld [vmem:[%s1669_s1 + $0x28] sm:$0xff] (!%p171_p3)  }
   0xa   : > { %v1398_v14 = vld [vmem:[%s1669_s1 + $0x70] sm:$0xff] (!%p171_p3)   ;;  %v1400_v16 = vld [vmem:[%s1669_s1 + $0x78] sm:$0xff] (!%p171_p3)   ;;  %v1603_v50 = vld [vmem:[%s1670_s2] ss:$0 sm:$0xff] (!%p171_p3) }
   0xb   : > { %v1399_v15 = vld [vmem:[%s1669_s1 + $0x30] sm:$0xff] (!%p171_p3)   ;;  %v1401_v17 = vld [vmem:[%s1669_s1 + $0x38] sm:$0xff] (!%p171_p3)  }
   0xc   : > { %1237 = vmatpush3.bf16.msra.mxu0 (!%p171_p3), %v1389_v3  ;;  %1355 = vmatpush3.bf16.msra.mxu1 (!%p171_p3), %v1389_v3 }
   0xd   : > { %1238 = vmatprep.subr.bf16.mxu0 (!%p171_p3), %v1390_v4  ;;  %1348 = vmatprep.subr.bf16.mxu1 (!%p171_p3), %v1390_v4 }
   0xe   : > { %s1677_s18 = smov (!%p206_p4, %s1018_s18), 63 }
   0xf   : > { %s1106_s6 = sshll.u32 %s1677_s18, 3  ;;  %s1022_s5 = sshll.u32 %s1677_s18, 2 }
  0x10   : > { %1239 = vmatpush3.bf16.msra.mxu0 %v1391_v5  ;;  %1356 = vmatpush3.bf16.msra.mxu1 %v1391_v5  ;;  %s1545_s11 = scalar_lea.vmem %s1668_s0, %s1106_s6  ;;  %s1613_s8 = scalar_lea.vmem %s1671_s3, %s1022_s5 }
  0x11   : > { %1240 = vmatprep.subr.bf16.mxu0 %v1392_v6  ;;  %1349 = vmatprep.subr.bf16.mxu1 %v1392_v6  ;;  %v1404_v11 = vld [vmem:[%s1545_s11 + $0x4] ss:$8 sps:$4 sm:$0xff]   ;;  %v1402_v18 = vld [vmem:[%s1545_s11] ss:$8 sps:$4 sm:$0xff]   ;;  %v1408_v20 = vld [vmem:[%s1545_s11 + $0x14] ss:$8 sps:$4 sm:$0xff]  }
  0x12   : > { %v1407_v12 = vld [vmem:[%s1545_s11 + $0x84] ss:$8 sps:$4 sm:$0xff]   ;;  %588 = vmatprep.mubr.bf16.mxu0 %v1404_v11  ;;  %v1405_v19 = vld [vmem:[%s1545_s11 + $0x80] ss:$8 sps:$4 sm:$0xff]   ;;  %v1410_v21 = vld [vmem:[%s1545_s11 + $0x94] ss:$8 sps:$4 sm:$0xff]  }
  0x13   : > { %652 = vmatprep.mubr.bf16.mxu1 %v1407_v12  ;;  %v1412_v22 = vld [vmem:[%s1545_s11 + $0x10] ss:$8 sps:$4 sm:$0xff]   ;;  %v1414_v24 = vld [vmem:[%s1545_s11 + $0x24] ss:$8 sps:$4 sm:$0xff]   ;;  %v1418_v26 = vld [vmem:[%s1545_s11 + $0x20] ss:$8 sps:$4 sm:$0xff]  }
  0x14   : > { %1241 = vmatpush3.bf16.msra.mxu0 %v1393_v7  ;;  %1357 = vmatpush3.bf16.msra.mxu1 %v1393_v7  ;;  %v1413_v23 = vld [vmem:[%s1545_s11 + $0x90] ss:$8 sps:$4 sm:$0xff]   ;;  %v1416_v25 = vld [vmem:[%s1545_s11 + $0xa4] ss:$8 sps:$4 sm:$0xff]   ;;  %v1419_v27 = vld [vmem:[%s1545_s11 + $0xa0] ss:$8 sps:$4 sm:$0xff]  }
  0x15   : > { %1242 = vmatprep.subr.bf16.mxu0 %v1394_v8  ;;  %1350 = vmatprep.subr.bf16.mxu1 %v1394_v8  ;;  %v1420_v28 = vld [vmem:[%s1545_s11 + $0x34] ss:$8 sps:$4 sm:$0xff]   ;;  %v1424_v30 = vld [vmem:[%s1545_s11 + $0x30] ss:$8 sps:$4 sm:$0xff]   ;;  %v1426_v32 = vld [vmem:[%s1545_s11 + $0x44] ss:$8 sps:$4 sm:$0xff]  }
  0x16   : > { %v1422_v29 = vld [vmem:[%s1545_s11 + $0xb4] ss:$8 sps:$4 sm:$0xff]   ;;  %v1425_v31 = vld [vmem:[%s1545_s11 + $0xb0] ss:$8 sps:$4 sm:$0xff]   ;;  %v1428_v33 = vld [vmem:[%s1545_s11 + $0xc4] ss:$8 sps:$4 sm:$0xff]  }
  0x17   : > { %v1430_v34 = vld [vmem:[%s1545_s11 + $0x40] ss:$8 sps:$4 sm:$0xff]   ;;  %v1432_v36 = vld [vmem:[%s1545_s11 + $0x54] ss:$8 sps:$4 sm:$0xff]   ;;  %v1436_v38 = vld [vmem:[%s1545_s11 + $0x50] ss:$8 sps:$4 sm:$0xff]  }
  0x18   : > { %1243 = vmatpush3.bf16.msra.mxu0 %v1395_v9  ;;  %1358 = vmatpush3.bf16.msra.mxu1 %v1395_v9  ;;  %v1431_v35 = vld [vmem:[%s1545_s11 + $0xc0] ss:$8 sps:$4 sm:$0xff]   ;;  %v1434_v37 = vld [vmem:[%s1545_s11 + $0xd4] ss:$8 sps:$4 sm:$0xff]   ;;  %v1437_v39 = vld [vmem:[%s1545_s11 + $0xd0] ss:$8 sps:$4 sm:$0xff]  }
  0x19   : > { %1244 = vmatprep.subr.bf16.mxu0 %v1396_v10  ;;  %1351 = vmatprep.subr.bf16.mxu1 %v1396_v10  ;;  %v1438_v40 = vld [vmem:[%s1545_s11 + $0x64] ss:$8 sps:$4 sm:$0xff]   ;;  %v1442_v42 = vld [vmem:[%s1545_s11 + $0x60] ss:$8 sps:$4 sm:$0xff]   ;;  %v1444_v44 = vld [vmem:[%s1545_s11 + $0x74] ss:$8 sps:$4 sm:$0xff]  }
  0x1a   : > { %v1440_v41 = vld [vmem:[%s1545_s11 + $0xe4] ss:$8 sps:$4 sm:$0xff]   ;;  %v1443_v43 = vld [vmem:[%s1545_s11 + $0xe0] ss:$8 sps:$4 sm:$0xff]   ;;  %v1446_v45 = vld [vmem:[%s1545_s11 + $0xf4] ss:$8 sps:$4 sm:$0xff]  }
  0x1b   : > { %v1448_v46 = vld [vmem:[%s1545_s11 + $0x70] ss:$8 sps:$4 sm:$0xff]  }
  0x1c   : > { %1245 = vmatpush3.bf16.msra.mxu0 %v1397_v13  ;;  %1359 = vmatpush3.bf16.msra.mxu1 %v1397_v13  ;;  %v1449_v47 = vld [vmem:[%s1545_s11 + $0xf0] ss:$8 sps:$4 sm:$0xff]  }
  0x1d   : > { %1246 = vmatprep.subr.bf16.mxu0 %v1398_v14  ;;  %1352 = vmatprep.subr.bf16.mxu1 %v1398_v14 }
  0x20   : > { %1247 = vmatpush3.bf16.msra.mxu0 %v1399_v15  ;;  %1360 = vmatpush3.bf16.msra.mxu1 %v1399_v15 }
  0x21   : > { %1248 = vmatprep.subr.bf16.mxu0 %v1400_v16  ;;  %1353 = vmatprep.subr.bf16.mxu1 %v1400_v16 }
  0x24   : > { %1249 = vmatpush3.bf16.msra.mxu0 %v1401_v17  ;;  %1361 = vmatpush3.bf16.msra.mxu1 %v1401_v17 }
  0x27   : > { %589 = vmatmul.mubr.bf16.vlgmr.msra.gmra.mrb[0].mxu0 %v1402_v18  ;;  %653 = vmatmul.mubr.bf16.vlgmr.msra.gmra.mrb[0].mxu1 %v1405_v19 }
  0x28   : > { %596 = vmatprep.mubr.bf16.mxu0 %v1408_v20  ;;  %660 = vmatprep.mubr.bf16.mxu1 %v1410_v21 }
  0x2f   : > { %597 = vmatmul.mubr.bf16.gmra.mrb[4].mxu0 %v1412_v22  ;;  %661 = vmatmul.mubr.bf16.gmra.mrb[4].mxu1 %v1413_v23 }
  0x30   : > { %604 = vmatprep.mubr.bf16.mxu0 %v1414_v24  ;;  %668 = vmatprep.mubr.bf16.mxu1 %v1416_v25 }
  0x37   : > { %605 = vmatmul.mubr.bf16.gmra.mrb[8].mxu0 %v1418_v26  ;;  %669 = vmatmul.mubr.bf16.gmra.mrb[8].mxu1 %v1419_v27 }
  0x38   : > { %612 = vmatprep.mubr.bf16.mxu0 %v1420_v28  ;;  %676 = vmatprep.mubr.bf16.mxu1 %v1422_v29 }
  0x3f   : > { %613 = vmatmul.mubr.bf16.gmra.mrb[12].mxu0 %v1424_v30  ;;  %677 = vmatmul.mubr.bf16.gmra.mrb[12].mxu1 %v1425_v31 }
  0x40   : > { %620 = vmatprep.mubr.bf16.mxu0 %v1426_v32  ;;  %684 = vmatprep.mubr.bf16.mxu1 %v1428_v33 }
  0x47   : > { %621 = vmatmul.mubr.bf16.gmra.mrb[16].mxu0 %v1430_v34  ;;  %685 = vmatmul.mubr.bf16.gmra.mrb[16].mxu1 %v1431_v35 }
  0x48   : > { %628 = vmatprep.mubr.bf16.mxu0 %v1432_v36  ;;  %692 = vmatprep.mubr.bf16.mxu1 %v1434_v37 }
  0x4f   : > { %629 = vmatmul.mubr.bf16.gmra.mrb[20].mxu0 %v1436_v38  ;;  %693 = vmatmul.mubr.bf16.gmra.mrb[20].mxu1 %v1437_v39 }
  0x50   : > { %636 = vmatprep.mubr.bf16.mxu0 %v1438_v40  ;;  %700 = vmatprep.mubr.bf16.mxu1 %v1440_v41 }
  0x57   : > { %637 = vmatmul.mubr.bf16.gmra.mrb[24].mxu0 %v1442_v42  ;;  %701 = vmatmul.mubr.bf16.gmra.mrb[24].mxu1 %v1443_v43 }
  0x58   : > { %644 = vmatprep.mubr.bf16.mxu0 %v1444_v44  ;;  %708 = vmatprep.mubr.bf16.mxu1 %v1446_v45 }
  0x5f   : > { %645 = vmatmul.mubr.bf16.gmra.mrb[28].mxu0 %v1448_v46  ;;  %709 = vmatmul.mubr.bf16.gmra.mrb[28].mxu1 %v1449_v47 }
  0xfa   : > { %v1250_v48 = vpop.f32.mrb[0].mxu0  ;;  %v1298_v49 = vpop.f32.mrb[0].mxu1 }
  0xfb   : > { %v1251_v51 = vpop.f32.mrb[1].mxu0  ;;  %v1299_v52 = vpop.f32.mrb[1].mxu1 }
  0xfc   : > { %v1252_v53 = vadd.f32 %v1251_v51, %v1250_v48  ;;  %v1300_v54 = vadd.f32 %v1299_v52, %v1298_v49  ;;  %v1253_v55 = vpop.f32.mrb[2].mxu0  ;;  %v1301_v56 = vpop.f32.mrb[2].mxu1 }
  0xfd   : > { %v1254_v57 = vpop.f32.mrb[3].mxu0  ;;  %v1302_v58 = vpop.f32.mrb[3].mxu1 }
  0xfe   : > { %v591_v59 = vadd.f32 %v1252_v53, %v1603_v50  ;;  %v655_v60 = vadd.f32 %v1300_v54, %v1603_v50  ;;  %v1255_v61 = vadd.f32 %v1254_v57, %v1253_v55  ;;  %v1303_v62 = vadd.f32 %v1302_v58, %v1301_v56 }
 0x100   : > { %v594_v63 = vadd.f32 %v1255_v61, %v1603_v50  ;;  %v658_v0 = vadd.f32 %v1303_v62, %v1603_v50  ;;  %v717_v1 = vmax.f32 %v591_v59, 0.0  ;;  %v733_v2 = vmax.f32 %v655_v60, 0.0 }
 0x102   : > { %v718_v3 = vmax.f32 %v594_v63, 0.0  ;;  %v734_v4 = vmax.f32 %v658_v0, 0.0  ;;  %v1256_v5 = vpop.f32.mrb[4].mxu0  ;;  %v1304_v6 = vpop.f32.mrb[4].mxu1 }
 0x103   : > { %v1257_v7 = vpop.f32.mrb[5].mxu0  ;;  %v1305_v8 = vpop.f32.mrb[5].mxu1 }
 0x104   : > { %v1142_v9 = vpack.c.bf16 %v718_v3, %v717_v1  ;;  %v1182_v10 = vpack.c.bf16 %v734_v4, %v733_v2  ;;  %v1258_v11 = vadd.f32 %v1257_v7, %v1256_v5  ;;  %v1306_v12 = vadd.f32 %v1305_v8, %v1304_v6  ;;  %v1259_v13 = vpop.f32.mrb[6].mxu0  ;;  %v1307_v14 = vpop.f32.mrb[6].mxu1 }
 0x105   : > { %v1260_v15 = vpop.f32.mrb[7].mxu0  ;;  %v1308_v16 = vpop.f32.mrb[7].mxu1 }
 0x106   : > { %1143 = vst [vmem:[%s1613_s8] sm:$0xff] %v1142_v9   ;;  %1226 = vst [vmem:[%s1613_s8 + $0x40] sm:$0xff] %v1182_v10   ;;  %v599_v17 = vadd.f32 %v1258_v11, %v1603_v50  ;;  %v663_v18 = vadd.f32 %v1306_v12, %v1603_v50  ;;  %v1261_v19 = vadd.f32 %v1260_v15, %v1259_v13 }
 0x107   : > { %v1309_v20 = vadd.f32 %v1308_v16, %v1307_v14 }
 0x108   : > { %v602_v21 = vadd.f32 %v1261_v19, %v1603_v50  ;;  %v719_v23 = vmax.f32 %v599_v17, 0.0  ;;  %v735_v24 = vmax.f32 %v663_v18, 0.0 }
 0x109   : > { %v666_v22 = vadd.f32 %v1309_v20, %v1603_v50 }
 0x10a   : > { %v720_v25 = vmax.f32 %v602_v21, 0.0  ;;  %v1262_v27 = vpop.f32.mrb[8].mxu0  ;;  %v1310_v28 = vpop.f32.mrb[8].mxu1 }
 0x10b   : > { %v736_v26 = vmax.f32 %v666_v22, 0.0  ;;  %v1263_v29 = vpop.f32.mrb[9].mxu0  ;;  %v1311_v30 = vpop.f32.mrb[9].mxu1 }
 0x10c   : > { %v1147_v31 = vpack.c.bf16 %v720_v25, %v719_v23  ;;  %v1264_v33 = vadd.f32 %v1263_v29, %v1262_v27  ;;  %v1312_v34 = vadd.f32 %v1311_v30, %v1310_v28  ;;  %v1265_v35 = vpop.f32.mrb[10].mxu0  ;;  %v1313_v36 = vpop.f32.mrb[10].mxu1 }
 0x10d   : > { %v1187_v32 = vpack.c.bf16 %v736_v26, %v735_v24  ;;  %v1266_v37 = vpop.f32.mrb[11].mxu0  ;;  %v1314_v38 = vpop.f32.mrb[11].mxu1 }
 0x10e   : > { %1219 = vst [vmem:[%s1613_s8 + $0x8] sm:$0xff] %v1147_v31   ;;  %v607_v39 = vadd.f32 %v1264_v33, %v1603_v50  ;;  %v671_v40 = vadd.f32 %v1312_v34, %v1603_v50  ;;  %v1267_v41 = vadd.f32 %v1266_v37, %v1265_v35  ;;  %v1315_v42 = vadd.f32 %v1314_v38, %v1313_v36 }
 0x10f   : > { %1227 = vst [vmem:[%s1613_s8 + $0x48] sm:$0xff] %v1187_v32  }
 0x110   : > { %v610_v43 = vadd.f32 %v1267_v41, %v1603_v50  ;;  %v674_v44 = vadd.f32 %v1315_v42, %v1603_v50  ;;  %v721_v45 = vmax.f32 %v607_v39, 0.0  ;;  %v737_v46 = vmax.f32 %v671_v40, 0.0 }
 0x112   : > { %v722_v47 = vmax.f32 %v610_v43, 0.0  ;;  %v738_v48 = vmax.f32 %v674_v44, 0.0  ;;  %v1268_v49 = vpop.f32.mrb[12].mxu0  ;;  %v1316_v51 = vpop.f32.mrb[12].mxu1 }
 0x113   : > { %v1269_v52 = vpop.f32.mrb[13].mxu0  ;;  %v1317_v53 = vpop.f32.mrb[13].mxu1 }
 0x114   : > { %v1152_v54 = vpack.c.bf16 %v722_v47, %v721_v45  ;;  %v1192_v55 = vpack.c.bf16 %v738_v48, %v737_v46  ;;  %v1270_v56 = vadd.f32 %v1269_v52, %v1268_v49  ;;  %v1318_v57 = vadd.f32 %v1317_v53, %v1316_v51  ;;  %v1271_v58 = vpop.f32.mrb[14].mxu0  ;;  %v1319_v59 = vpop.f32.mrb[14].mxu1 }
 0x115   : > { %v1272_v60 = vpop.f32.mrb[15].mxu0  ;;  %v1320_v61 = vpop.f32.mrb[15].mxu1 }
 0x116   : > { %1220 = vst [vmem:[%s1613_s8 + $0x10] sm:$0xff] %v1152_v54   ;;  %1228 = vst [vmem:[%s1613_s8 + $0x50] sm:$0xff] %v1192_v55   ;;  %v615_v62 = vadd.f32 %v1270_v56, %v1603_v50  ;;  %v679_v63 = vadd.f32 %v1318_v57, %v1603_v50  ;;  %v1273_v0 = vadd.f32 %v1272_v60, %v1271_v58 }
 0x117   : > { %v1321_v1 = vadd.f32 %v1320_v61, %v1319_v59 }
 0x118   : > { %v618_v2 = vadd.f32 %v1273_v0, %v1603_v50  ;;  %v723_v4 = vmax.f32 %v615_v62, 0.0  ;;  %v739_v5 = vmax.f32 %v679_v63, 0.0 }
 0x119   : > { %v682_v3 = vadd.f32 %v1321_v1, %v1603_v50 }
 0x11a   : > { %v724_v6 = vmax.f32 %v618_v2, 0.0  ;;  %v1274_v8 = vpop.f32.mrb[16].mxu0  ;;  %v1322_v9 = vpop.f32.mrb[16].mxu1 }
 0x11b   : > { %v740_v7 = vmax.f32 %v682_v3, 0.0  ;;  %v1275_v10 = vpop.f32.mrb[17].mxu0  ;;  %v1323_v11 = vpop.f32.mrb[17].mxu1 }
 0x11c   : > { %v1157_v12 = vpack.c.bf16 %v724_v6, %v723_v4  ;;  %v1276_v14 = vadd.f32 %v1275_v10, %v1274_v8  ;;  %v1324_v15 = vadd.f32 %v1323_v11, %v1322_v9  ;;  %v1277_v16 = vpop.f32.mrb[18].mxu0  ;;  %v1325_v17 = vpop.f32.mrb[18].mxu1 }
 0x11d   : > { %v1197_v13 = vpack.c.bf16 %v740_v7, %v739_v5  ;;  %v1278_v18 = vpop.f32.mrb[19].mxu0  ;;  %v1326_v19 = vpop.f32.mrb[19].mxu1 }
 0x11e   : > { %1221 = vst [vmem:[%s1613_s8 + $0x18] sm:$0xff] %v1157_v12   ;;  %v623_v20 = vadd.f32 %v1276_v14, %v1603_v50  ;;  %v687_v21 = vadd.f32 %v1324_v15, %v1603_v50  ;;  %v1279_v22 = vadd.f32 %v1278_v18, %v1277_v16  ;;  %v1327_v23 = vadd.f32 %v1326_v19, %v1325_v17 }
 0x11f   : > { %1229 = vst [vmem:[%s1613_s8 + $0x58] sm:$0xff] %v1197_v13  }
 0x120   : > { %v626_v24 = vadd.f32 %v1279_v22, %v1603_v50  ;;  %v690_v25 = vadd.f32 %v1327_v23, %v1603_v50  ;;  %v725_v26 = vmax.f32 %v623_v20, 0.0  ;;  %v741_v27 = vmax.f32 %v687_v21, 0.0 }
 0x122   : > { %v726_v28 = vmax.f32 %v626_v24, 0.0  ;;  %v742_v29 = vmax.f32 %v690_v25, 0.0  ;;  %v1280_v30 = vpop.f32.mrb[20].mxu0  ;;  %v1328_v31 = vpop.f32.mrb[20].mxu1 }
 0x123   : > { %v1281_v32 = vpop.f32.mrb[21].mxu0  ;;  %v1329_v33 = vpop.f32.mrb[21].mxu1 }
 0x124   : > { %v1162_v34 = vpack.c.bf16 %v726_v28, %v725_v26  ;;  %v1202_v35 = vpack.c.bf16 %v742_v29, %v741_v27  ;;  %v1282_v36 = vadd.f32 %v1281_v32, %v1280_v30  ;;  %v1330_v37 = vadd.f32 %v1329_v33, %v1328_v31  ;;  %v1283_v38 = vpop.f32.mrb[22].mxu0  ;;  %v1331_v39 = vpop.f32.mrb[22].mxu1 }
 0x125   : > { %v1284_v40 = vpop.f32.mrb[23].mxu0  ;;  %v1332_v41 = vpop.f32.mrb[23].mxu1 }
 0x126   : > { %1222 = vst [vmem:[%s1613_s8 + $0x20] sm:$0xff] %v1162_v34   ;;  %1230 = vst [vmem:[%s1613_s8 + $0x60] sm:$0xff] %v1202_v35   ;;  %v631_v42 = vadd.f32 %v1282_v36, %v1603_v50  ;;  %v695_v43 = vadd.f32 %v1330_v37, %v1603_v50  ;;  %v1285_v44 = vadd.f32 %v1284_v40, %v1283_v38 }
 0x127   : > { %v1333_v45 = vadd.f32 %v1332_v41, %v1331_v39 }
 0x128   : > { %v634_v46 = vadd.f32 %v1285_v44, %v1603_v50  ;;  %v727_v48 = vmax.f32 %v631_v42, 0.0  ;;  %v743_v49 = vmax.f32 %v695_v43, 0.0 }
 0x129   : > { %v698_v47 = vadd.f32 %v1333_v45, %v1603_v50 }
 0x12a   : > { %v728_v51 = vmax.f32 %v634_v46, 0.0  ;;  %v1286_v53 = vpop.f32.mrb[24].mxu0  ;;  %v1334_v54 = vpop.f32.mrb[24].mxu1 }
 0x12b   : > { %v744_v52 = vmax.f32 %v698_v47, 0.0  ;;  %v1287_v55 = vpop.f32.mrb[25].mxu0  ;;  %v1335_v56 = vpop.f32.mrb[25].mxu1 }
 0x12c   : > { %v1167_v57 = vpack.c.bf16 %v728_v51, %v727_v48  ;;  %v1288_v59 = vadd.f32 %v1287_v55, %v1286_v53  ;;  %v1336_v60 = vadd.f32 %v1335_v56, %v1334_v54  ;;  %v1289_v61 = vpop.f32.mrb[26].mxu0  ;;  %v1337_v62 = vpop.f32.mrb[26].mxu1 }
 0x12d   : > { %v1207_v58 = vpack.c.bf16 %v744_v52, %v743_v49  ;;  %v1290_v63 = vpop.f32.mrb[27].mxu0  ;;  %v1338_v0 = vpop.f32.mrb[27].mxu1 }
 0x12e   : > { %1223 = vst [vmem:[%s1613_s8 + $0x28] sm:$0xff] %v1167_v57   ;;  %v639_v1 = vadd.f32 %v1288_v59, %v1603_v50  ;;  %v703_v2 = vadd.f32 %v1336_v60, %v1603_v50  ;;  %v1291_v3 = vadd.f32 %v1290_v63, %v1289_v61  ;;  %v1339_v4 = vadd.f32 %v1338_v0, %v1337_v62 }
 0x12f   : > { %1231 = vst [vmem:[%s1613_s8 + $0x68] sm:$0xff] %v1207_v58  }
 0x130   : > { %v642_v5 = vadd.f32 %v1291_v3, %v1603_v50  ;;  %v706_v6 = vadd.f32 %v1339_v4, %v1603_v50  ;;  %v729_v7 = vmax.f32 %v639_v1, 0.0  ;;  %v745_v8 = vmax.f32 %v703_v2, 0.0 }
 0x132   : > { %v730_v9 = vmax.f32 %v642_v5, 0.0  ;;  %v746_v10 = vmax.f32 %v706_v6, 0.0  ;;  %v1292_v11 = vpop.f32.mrb[28].mxu0  ;;  %v1340_v12 = vpop.f32.mrb[28].mxu1 }
 0x133   : > { %v1293_v13 = vpop.f32.mrb[29].mxu0  ;;  %v1341_v14 = vpop.f32.mrb[29].mxu1 }
 0x134   : > { %v1172_v15 = vpack.c.bf16 %v730_v9, %v729_v7  ;;  %v1212_v16 = vpack.c.bf16 %v746_v10, %v745_v8  ;;  %v1294_v17 = vadd.f32 %v1293_v13, %v1292_v11  ;;  %v1342_v18 = vadd.f32 %v1341_v14, %v1340_v12  ;;  %v1295_v19 = vpop.f32.mrb[30].mxu0  ;;  %v1343_v20 = vpop.f32.mrb[30].mxu1 }
 0x135   : > { %v1296_v21 = vpop.f32.mrb[31].mxu0  ;;  %v1344_v22 = vpop.f32.mrb[31].mxu1 }
 0x136   : > { %1224 = vst [vmem:[%s1613_s8 + $0x30] sm:$0xff] %v1172_v15   ;;  %1232 = vst [vmem:[%s1613_s8 + $0x70] sm:$0xff] %v1212_v16   ;;  %v647_v23 = vadd.f32 %v1294_v17, %v1603_v50  ;;  %v711_v24 = vadd.f32 %v1342_v18, %v1603_v50  ;;  %v1297_v25 = vadd.f32 %v1296_v21, %v1295_v19 }
 0x137   : > { %v1345_v26 = vadd.f32 %v1344_v22, %v1343_v20 }
 0x138   : > { %v650_v27 = vadd.f32 %v1297_v25, %v1603_v50  ;;  %v731_v29 = vmax.f32 %v647_v23, 0.0  ;;  %v747_v30 = vmax.f32 %v711_v24, 0.0 }
 0x139   : > { %v714_v28 = vadd.f32 %v1345_v26, %v1603_v50 }
 0x13a   : > { %v732_v31 = vmax.f32 %v650_v27, 0.0 }
 0x13b   : > { %v748_v32 = vmax.f32 %v714_v28, 0.0 }
 0x13c   : > { %v1177_v33 = vpack.c.bf16 %v732_v31, %v731_v29 }
 0x13d   : > { %v1217_v34 = vpack.c.bf16 %v748_v32, %v747_v30 }
 0x13e   : > { %1225 = vst [vmem:[%s1613_s8 + $0x38] sm:$0xff] %v1177_v33  }
 0x13f   : > { %1233 = vst [vmem:[%s1613_s8 + $0x78] sm:$0xff] %v1217_v34  }
 0x140 PF: > { %s13_s14 = sadd.s32 1, %s1472_s14   ;;  %s1672_s12 = smov %s1468_s13 }
 0x141   : > { %p10_p5 = scmp.ge.s32.totalorder %s13_s14, 4   ;;  %s1673_s13 = smov %s1675_s15 }
 0x143   :  { %12 = sbr.rel (!%p10_p5) target bundleno = 2 (0x2), region = 68 }

// kernel: _lambda_.15
= control target key start
LH: loop header
LB: loop body
LE: loop exit
PB: predicated region body
PF: predicated region fallthrough
CT: control target
= control target key end

     0   :  { %vm153_vm0 = vcmask 519168   ;;  %s1385_s0 = inlined_call_operand.vmem [shape: bf16[9,128,64], index: 0, kind: input, shape index: {}]   ;;  %s1386_s1 = inlined_call_operand.vmem [shape: bf16[128,64], index: 1, kind: output, shape index: {}]  }
   0x1   :  { %v9_v0 = vld [vmem:[%s1385_s0] sm:$0xf]  ;;  %v10_v12 = vld [vmem:[%s1385_s0 + $0x4] sm:$0xf]  ;;  %v11_v33 = vld [vmem:[%s1385_s0 + $0x8] sm:$0xf] }
   0x2   :  { %v25_v1 = vld [vmem:[%s1385_s0 + $0x40] sm:$0xf]  ;;  %v156_v4 = vsel %vm153_vm0, %v9_v0, 4286644096  ;;  %v26_v13 = vld [vmem:[%s1385_s0 + $0x44] sm:$0xf] }
   0x3   :  { %v41_v2 = vld [vmem:[%s1385_s0 + $0x80] sm:$0xf]  ;;  %v159_v5 = vsel %vm153_vm0, %v25_v1, 4286644096  ;;  %v42_v14 = vld [vmem:[%s1385_s0 + $0x84] sm:$0xf] }
   0x4   :  { %v57_v3 = vld [vmem:[%s1385_s0 + $0xc0] sm:$0xf]  ;;  %v163_v6 = vsel %vm153_vm0, %v41_v2, 4286644096  ;;  %v161_v8 = vmax.bf16 %v159_v5, %v156_v4  ;;  %v58_v19 = vld [vmem:[%s1385_s0 + $0xc4] sm:$0xf] }
   0x5   :  { %v73_v7 = vld [vmem:[%s1385_s0 + $0x100] sm:$0xf]  ;;  %v167_v10 = vsel %vm153_vm0, %v57_v3, 4286644096  ;;  %v191_v20 = vsel %vm153_vm0, %v10_v12, 4286644096 }
   0x6   :  { %v89_v9 = vld [vmem:[%s1385_s0 + $0x140] sm:$0xf]  ;;  %v165_v11 = vmax.bf16 %v163_v6, %v161_v8  ;;  %v171_v15 = vsel %vm153_vm0, %v73_v7, 4286644096  ;;  %v194_v21 = vsel %vm153_vm0, %v26_v13, 4286644096 }
   0x7   :  { %v105_v16 = vld [vmem:[%s1385_s0 + $0x180] sm:$0xf]  ;;  %v175_v18 = vsel %vm153_vm0, %v89_v9, 4286644096  ;;  %v198_v22 = vsel %vm153_vm0, %v42_v14, 4286644096  ;;  %v196_v27 = vmax.bf16 %v194_v21, %v191_v20 }
   0x8   :  { %v169_v17 = vmax.bf16 %v167_v10, %v165_v11  ;;  %v121_v23 = vld [vmem:[%s1385_s0 + $0x1c0] sm:$0xf]  ;;  %v74_v26 = vld [vmem:[%s1385_s0 + $0x104] sm:$0xf]  ;;  %v179_v28 = vsel %vm153_vm0, %v105_v16, 4286644096 }
   0x9   :  { %v137_v24 = vld [vmem:[%s1385_s0 + $0x200] sm:$0xf]  ;;  %v90_v29 = vld [vmem:[%s1385_s0 + $0x144] sm:$0xf]  ;;  %v202_v30 = vsel %vm153_vm0, %v58_v19, 4286644096  ;;  %v200_v32 = vmax.bf16 %v198_v22, %v196_v27 }
   0xa   :  { %v173_v25 = vmax.bf16 %v171_v15, %v169_v17  ;;  %v27_v34 = vld [vmem:[%s1385_s0 + $0x48] sm:$0xf]  ;;  %v183_v36 = vsel %vm153_vm0, %v121_v23, 4286644096  ;;  %v187_v37 = vsel %vm153_vm0, %v137_v24, 4286644096 }
   0xb   :  { %v43_v35 = vld [vmem:[%s1385_s0 + $0x88] sm:$0xf]  ;;  %v206_v38 = vsel %vm153_vm0, %v74_v26, 4286644096  ;;  %v106_v40 = vld [vmem:[%s1385_s0 + $0x184] sm:$0xf]  ;;  %v204_v41 = vmax.bf16 %v202_v30, %v200_v32 }
   0xc   :  { %v177_v31 = vmax.bf16 %v175_v18, %v173_v25  ;;  %v210_v42 = vsel %vm153_vm0, %v90_v29, 4286644096  ;;  %v59_v43 = vld [vmem:[%s1385_s0 + $0xc8] sm:$0xf]  ;;  %v226_v44 = vsel %vm153_vm0, %v11_v33, 4286644096 }
   0xd   :  { %v229_v45 = vsel %vm153_vm0, %v27_v34, 4286644096  ;;  %v233_v46 = vsel %vm153_vm0, %v43_v35, 4286644096  ;;  %v122_v48 = vld [vmem:[%s1385_s0 + $0x1c4] sm:$0xf]  ;;  %v208_v50 = vmax.bf16 %v206_v38, %v204_v41 }
   0xe   :  { %v181_v39 = vmax.bf16 %v179_v28, %v177_v31  ;;  %v138_v49 = vld [vmem:[%s1385_s0 + $0x204] sm:$0xf]  ;;  %v75_v51 = vld [vmem:[%s1385_s0 + $0x108] sm:$0xf]  ;;  %v231_v52 = vmax.bf16 %v229_v45, %v226_v44  ;;  %v214_v53 = vsel %vm153_vm0, %v106_v40, 4286644096 }
   0xf   :  { %v91_v54 = vld [vmem:[%s1385_s0 + $0x148] sm:$0xf]  ;;  %v237_v55 = vsel %vm153_vm0, %v59_v43, 4286644096  ;;  %v212_v57 = vmax.bf16 %v210_v42, %v208_v50  ;;  %v12_v59 = vld [vmem:[%s1385_s0 + $0xc] sm:$0xf] }
  0x10   :  { %v185_v47 = vmax.bf16 %v183_v36, %v181_v39  ;;  %v235_v58 = vmax.bf16 %v233_v46, %v231_v52  ;;  %v28_v60 = vld [vmem:[%s1385_s0 + $0x4c] sm:$0xf]  ;;  %v218_v62 = vsel %vm153_vm0, %v122_v48, 4286644096  ;;  %v222_v63 = vsel %vm153_vm0, %v138_v49, 4286644096 }
  0x11   :  { %v44_v61 = vld [vmem:[%s1385_s0 + $0x8c] sm:$0xf]  ;;  %v241_v0 = vsel %vm153_vm0, %v75_v51, 4286644096  ;;  %v216_v1 = vmax.bf16 %v214_v53, %v212_v57  ;;  %v107_v2 = vld [vmem:[%s1385_s0 + $0x188] sm:$0xf] }
  0x12   :  { %v189_v56 = vmax.bf16 %v187_v37, %v185_v47  ;;  %v239_v3 = vmax.bf16 %v237_v55, %v235_v58  ;;  %v245_v4 = vsel %vm153_vm0, %v91_v54, 4286644096  ;;  %v60_v5 = vld [vmem:[%s1385_s0 + $0xcc] sm:$0xf]  ;;  %v261_v6 = vsel %vm153_vm0, %v12_v59, 4286644096 }
  0x13   :  { %v264_v7 = vsel %vm153_vm0, %v28_v60, 4286644096  ;;  %v268_v8 = vsel %vm153_vm0, %v44_v61, 4286644096  ;;  %v220_v9 = vmax.bf16 %v218_v62, %v216_v1  ;;  %v123_v10 = vld [vmem:[%s1385_s0 + $0x1c8] sm:$0xf] }
  0x14   :  { %715 = vst.msk [vmem:[%s1386_s1] sm:$0xf] %vm153_vm0, %v189_v56  ;;  %v139_v11 = vld [vmem:[%s1385_s0 + $0x208] sm:$0xf]  ;;  %v243_v12 = vmax.bf16 %v241_v0, %v239_v3  ;;  %v76_v13 = vld [vmem:[%s1385_s0 + $0x10c] sm:$0xf]  ;;  %v266_v14 = vmax.bf16 %v264_v7, %v261_v6 }
  0x15   :  { %v249_v15 = vsel %vm153_vm0, %v107_v2, 4286644096  ;;  %v92_v16 = vld [vmem:[%s1385_s0 + $0x14c] sm:$0xf]  ;;  %v272_v17 = vsel %vm153_vm0, %v60_v5, 4286644096  ;;  %v224_v18 = vmax.bf16 %v222_v63, %v220_v9 }
  0x16   :  { %v247_v19 = vmax.bf16 %v245_v4, %v243_v12  ;;  %v270_v20 = vmax.bf16 %v268_v8, %v266_v14  ;;  %v13_v21 = vld [vmem:[%s1385_s0 + $0x10] sm:$0xf]  ;;  %v253_v24 = vsel %vm153_vm0, %v123_v10, 4286644096  ;;  %v257_v25 = vsel %vm153_vm0, %v139_v11, 4286644096 }
  0x17   :  { %v29_v22 = vld [vmem:[%s1385_s0 + $0x50] sm:$0xf]  ;;  %v276_v26 = vsel %vm153_vm0, %v76_v13, 4286644096  ;;  %716 = vst.msk [vmem:[%s1386_s1 + $0x4] sm:$0xf] %vm153_vm0, %v224_v18 }
  0x18   :  { %v45_v23 = vld [vmem:[%s1385_s0 + $0x90] sm:$0xf]  ;;  %v251_v27 = vmax.bf16 %v249_v15, %v247_v19  ;;  %v108_v28 = vld [vmem:[%s1385_s0 + $0x18c] sm:$0xf]  ;;  %v274_v29 = vmax.bf16 %v272_v17, %v270_v20  ;;  %v280_v30 = vsel %vm153_vm0, %v92_v16, 4286644096 }
  0x19   :  { %v61_v31 = vld [vmem:[%s1385_s0 + $0xd0] sm:$0xf]  ;;  %v296_v32 = vsel %vm153_vm0, %v13_v21, 4286644096  ;;  %v299_v33 = vsel %vm153_vm0, %v29_v22, 4286644096 }
  0x1a   :  { %v303_v34 = vsel %vm153_vm0, %v45_v23, 4286644096  ;;  %v255_v35 = vmax.bf16 %v253_v24, %v251_v27  ;;  %v124_v36 = vld [vmem:[%s1385_s0 + $0x1cc] sm:$0xf]  ;;  %v278_v38 = vmax.bf16 %v276_v26, %v274_v29  ;;  %v77_v39 = vld [vmem:[%s1385_s0 + $0x110] sm:$0xf]  ;;  %v301_v40 = vmax.bf16 %v299_v33, %v296_v32 }
  0x1b   :  { %v140_v37 = vld [vmem:[%s1385_s0 + $0x20c] sm:$0xf]  ;;  %v284_v41 = vsel %vm153_vm0, %v108_v28, 4286644096  ;;  %v93_v42 = vld [vmem:[%s1385_s0 + $0x150] sm:$0xf] }
  0x1c   :  { %v307_v43 = vsel %vm153_vm0, %v61_v31, 4286644096  ;;  %v259_v44 = vmax.bf16 %v257_v25, %v255_v35  ;;  %v282_v45 = vmax.bf16 %v280_v30, %v278_v38  ;;  %v305_v46 = vmax.bf16 %v303_v34, %v301_v40  ;;  %v14_v47 = vld [vmem:[%s1385_s0 + $0x14] sm:$0xf]  ;;  %v109_v54 = vld [vmem:[%s1385_s0 + $0x190] sm:$0xf] }
  0x1d   :  { %v30_v48 = vld [vmem:[%s1385_s0 + $0x54] sm:$0xf]  ;;  %v288_v50 = vsel %vm153_vm0, %v124_v36, 4286644096  ;;  %v292_v51 = vsel %vm153_vm0, %v140_v37, 4286644096 }
  0x1e   :  { %v46_v49 = vld [vmem:[%s1385_s0 + $0x94] sm:$0xf]  ;;  %v311_v52 = vsel %vm153_vm0, %v77_v39, 4286644096  ;;  %717 = vst.msk [vmem:[%s1386_s1 + $0x8] sm:$0xf] %vm153_vm0, %v259_v44  ;;  %v286_v53 = vmax.bf16 %v284_v41, %v282_v45  ;;  %v309_v55 = vmax.bf16 %v307_v43, %v305_v46 }
  0x1f   :  { %v315_v56 = vsel %vm153_vm0, %v93_v42, 4286644096  ;;  %v62_v57 = vld [vmem:[%s1385_s0 + $0xd4] sm:$0xf]  ;;  %v331_v58 = vsel %vm153_vm0, %v14_v47, 4286644096 }
  0x20   :  { %v334_v59 = vsel %vm153_vm0, %v30_v48, 4286644096  ;;  %v338_v60 = vsel %vm153_vm0, %v46_v49, 4286644096  ;;  %v290_v61 = vmax.bf16 %v288_v50, %v286_v53  ;;  %v125_v62 = vld [vmem:[%s1385_s0 + $0x1d0] sm:$0xf]  ;;  %v313_v0 = vmax.bf16 %v311_v52, %v309_v55 }
  0x21   :  { %v141_v63 = vld [vmem:[%s1385_s0 + $0x210] sm:$0xf]  ;;  %v78_v1 = vld [vmem:[%s1385_s0 + $0x114] sm:$0xf]  ;;  %v336_v2 = vmax.bf16 %v334_v59, %v331_v58  ;;  %v319_v3 = vsel %vm153_vm0, %v109_v54, 4286644096 }
  0x22   :  { %v94_v4 = vld [vmem:[%s1385_s0 + $0x154] sm:$0xf]  ;;  %v342_v5 = vsel %vm153_vm0, %v62_v57, 4286644096  ;;  %v294_v6 = vmax.bf16 %v292_v51, %v290_v61  ;;  %v317_v7 = vmax.bf16 %v315_v56, %v313_v0  ;;  %v15_v9 = vld [vmem:[%s1385_s0 + $0x18] sm:$0xf] }
  0x23   :  { %v340_v8 = vmax.bf16 %v338_v60, %v336_v2  ;;  %v31_v10 = vld [vmem:[%s1385_s0 + $0x58] sm:$0xf]  ;;  %v323_v12 = vsel %vm153_vm0, %v125_v62, 4286644096  ;;  %v327_v13 = vsel %vm153_vm0, %v141_v63, 4286644096 }
  0x24   :  { %v47_v11 = vld [vmem:[%s1385_s0 + $0x98] sm:$0xf]  ;;  %v346_v14 = vsel %vm153_vm0, %v78_v1, 4286644096  ;;  %718 = vst.msk [vmem:[%s1386_s1 + $0xc] sm:$0xf] %vm153_vm0, %v294_v6  ;;  %v321_v15 = vmax.bf16 %v319_v3, %v317_v7 }
  0x25   :  { %v110_v16 = vld [vmem:[%s1385_s0 + $0x194] sm:$0xf]  ;;  %v344_v17 = vmax.bf16 %v342_v5, %v340_v8  ;;  %v350_v18 = vsel %vm153_vm0, %v94_v4, 4286644096  ;;  %v63_v19 = vld [vmem:[%s1385_s0 + $0xd8] sm:$0xf] }
  0x26   :  { %v366_v20 = vsel %vm153_vm0, %v15_v9, 4286644096  ;;  %v369_v21 = vsel %vm153_vm0, %v31_v10, 4286644096  ;;  %v373_v22 = vsel %vm153_vm0, %v47_v11, 4286644096  ;;  %v325_v23 = vmax.bf16 %v323_v12, %v321_v15 }
  0x27   :  { %v126_v24 = vld [vmem:[%s1385_s0 + $0x1d4] sm:$0xf]  ;;  %v348_v26 = vmax.bf16 %v346_v14, %v344_v17  ;;  %v79_v27 = vld [vmem:[%s1385_s0 + $0x118] sm:$0xf]  ;;  %v371_v28 = vmax.bf16 %v369_v21, %v366_v20  ;;  %v354_v29 = vsel %vm153_vm0, %v110_v16, 4286644096 }
  0x28   :  { %v142_v25 = vld [vmem:[%s1385_s0 + $0x214] sm:$0xf]  ;;  %v95_v30 = vld [vmem:[%s1385_s0 + $0x158] sm:$0xf]  ;;  %v377_v31 = vsel %vm153_vm0, %v63_v19, 4286644096  ;;  %v329_v32 = vmax.bf16 %v327_v13, %v325_v23 }
  0x29   :  { %v352_v33 = vmax.bf16 %v350_v18, %v348_v26  ;;  %v375_v34 = vmax.bf16 %v373_v22, %v371_v28  ;;  %v16_v35 = vld [vmem:[%s1385_s0 + $0x1c] sm:$0xf]  ;;  %v358_v38 = vsel %vm153_vm0, %v126_v24, 4286644096  ;;  %v362_v39 = vsel %vm153_vm0, %v142_v25, 4286644096 }
  0x2a   :  { %v32_v36 = vld [vmem:[%s1385_s0 + $0x5c] sm:$0xf]  ;;  %v381_v40 = vsel %vm153_vm0, %v79_v27, 4286644096  ;;  %719 = vst.msk [vmem:[%s1386_s1 + $0x10] sm:$0xf] %vm153_vm0, %v329_v32 }
  0x2b   :  { %v48_v37 = vld [vmem:[%s1385_s0 + $0x9c] sm:$0xf]  ;;  %v356_v41 = vmax.bf16 %v354_v29, %v352_v33  ;;  %v111_v42 = vld [vmem:[%s1385_s0 + $0x198] sm:$0xf]  ;;  %v379_v43 = vmax.bf16 %v377_v31, %v375_v34  ;;  %v385_v44 = vsel %vm153_vm0, %v95_v30, 4286644096 }
  0x2c   :  { %v64_v45 = vld [vmem:[%s1385_s0 + $0xdc] sm:$0xf]  ;;  %v401_v46 = vsel %vm153_vm0, %v16_v35, 4286644096  ;;  %v404_v47 = vsel %vm153_vm0, %v32_v36, 4286644096 }
  0x2d   :  { %v408_v48 = vsel %vm153_vm0, %v48_v37, 4286644096  ;;  %v360_v49 = vmax.bf16 %v358_v38, %v356_v41  ;;  %v127_v50 = vld [vmem:[%s1385_s0 + $0x1d8] sm:$0xf]  ;;  %v383_v52 = vmax.bf16 %v381_v40, %v379_v43  ;;  %v80_v53 = vld [vmem:[%s1385_s0 + $0x11c] sm:$0xf]  ;;  %v406_v54 = vmax.bf16 %v404_v47, %v401_v46 }
  0x2e   :  { %v143_v51 = vld [vmem:[%s1385_s0 + $0x218] sm:$0xf]  ;;  %v389_v55 = vsel %vm153_vm0, %v111_v42, 4286644096  ;;  %v96_v56 = vld [vmem:[%s1385_s0 + $0x15c] sm:$0xf] }
  0x2f   :  { %v412_v57 = vsel %vm153_vm0, %v64_v45, 4286644096  ;;  %v364_v58 = vmax.bf16 %v362_v39, %v360_v49  ;;  %v387_v59 = vmax.bf16 %v385_v44, %v383_v52  ;;  %v410_v60 = vmax.bf16 %v408_v48, %v406_v54  ;;  %v17_v61 = vld [vmem:[%s1385_s0 + $0x20] sm:$0xf]  ;;  %v112_v4 = vld [vmem:[%s1385_s0 + $0x19c] sm:$0xf] }
  0x30   :  { %v33_v62 = vld [vmem:[%s1385_s0 + $0x60] sm:$0xf]  ;;  %v393_v0 = vsel %vm153_vm0, %v127_v50, 4286644096  ;;  %v397_v1 = vsel %vm153_vm0, %v143_v51, 4286644096 }
  0x31   :  { %v49_v63 = vld [vmem:[%s1385_s0 + $0xa0] sm:$0xf]  ;;  %v416_v2 = vsel %vm153_vm0, %v80_v53, 4286644096  ;;  %720 = vst.msk [vmem:[%s1386_s1 + $0x14] sm:$0xf] %vm153_vm0, %v364_v58  ;;  %v391_v3 = vmax.bf16 %v389_v55, %v387_v59  ;;  %v414_v5 = vmax.bf16 %v412_v57, %v410_v60 }
  0x32   :  { %v420_v6 = vsel %vm153_vm0, %v96_v56, 4286644096  ;;  %v65_v7 = vld [vmem:[%s1385_s0 + $0xe0] sm:$0xf]  ;;  %v436_v8 = vsel %vm153_vm0, %v17_v61, 4286644096 }
  0x33   :  { %v439_v9 = vsel %vm153_vm0, %v33_v62, 4286644096  ;;  %v443_v10 = vsel %vm153_vm0, %v49_v63, 4286644096  ;;  %v395_v11 = vmax.bf16 %v393_v0, %v391_v3  ;;  %v128_v12 = vld [vmem:[%s1385_s0 + $0x1dc] sm:$0xf]  ;;  %v418_v14 = vmax.bf16 %v416_v2, %v414_v5 }
  0x34   :  { %v144_v13 = vld [vmem:[%s1385_s0 + $0x21c] sm:$0xf]  ;;  %v81_v15 = vld [vmem:[%s1385_s0 + $0x120] sm:$0xf]  ;;  %v441_v16 = vmax.bf16 %v439_v9, %v436_v8  ;;  %v424_v17 = vsel %vm153_vm0, %v112_v4, 4286644096 }
  0x35   :  { %v97_v18 = vld [vmem:[%s1385_s0 + $0x160] sm:$0xf]  ;;  %v447_v19 = vsel %vm153_vm0, %v65_v7, 4286644096  ;;  %v399_v20 = vmax.bf16 %v397_v1, %v395_v11  ;;  %v422_v21 = vmax.bf16 %v420_v6, %v418_v14  ;;  %v18_v23 = vld [vmem:[%s1385_s0 + $0x24] sm:$0xf] }
  0x36   :  { %v445_v22 = vmax.bf16 %v443_v10, %v441_v16  ;;  %v34_v24 = vld [vmem:[%s1385_s0 + $0x64] sm:$0xf]  ;;  %v428_v26 = vsel %vm153_vm0, %v128_v12, 4286644096  ;;  %v432_v27 = vsel %vm153_vm0, %v144_v13, 4286644096 }
  0x37   :  { %v50_v25 = vld [vmem:[%s1385_s0 + $0xa4] sm:$0xf]  ;;  %v451_v28 = vsel %vm153_vm0, %v81_v15, 4286644096  ;;  %721 = vst.msk [vmem:[%s1386_s1 + $0x18] sm:$0xf] %vm153_vm0, %v399_v20  ;;  %v426_v29 = vmax.bf16 %v424_v17, %v422_v21 }
  0x38   :  { %v113_v30 = vld [vmem:[%s1385_s0 + $0x1a0] sm:$0xf]  ;;  %v449_v31 = vmax.bf16 %v447_v19, %v445_v22  ;;  %v455_v32 = vsel %vm153_vm0, %v97_v18, 4286644096  ;;  %v66_v33 = vld [vmem:[%s1385_s0 + $0xe4] sm:$0xf] }
  0x39   :  { %v471_v34 = vsel %vm153_vm0, %v18_v23, 4286644096  ;;  %v474_v35 = vsel %vm153_vm0, %v34_v24, 4286644096  ;;  %v478_v36 = vsel %vm153_vm0, %v50_v25, 4286644096  ;;  %v430_v37 = vmax.bf16 %v428_v26, %v426_v29 }
  0x3a   :  { %v129_v38 = vld [vmem:[%s1385_s0 + $0x1e0] sm:$0xf]  ;;  %v453_v40 = vmax.bf16 %v451_v28, %v449_v31  ;;  %v82_v41 = vld [vmem:[%s1385_s0 + $0x124] sm:$0xf]  ;;  %v476_v42 = vmax.bf16 %v474_v35, %v471_v34  ;;  %v459_v43 = vsel %vm153_vm0, %v113_v30, 4286644096 }
  0x3b   :  { %v145_v39 = vld [vmem:[%s1385_s0 + $0x220] sm:$0xf]  ;;  %v98_v44 = vld [vmem:[%s1385_s0 + $0x164] sm:$0xf]  ;;  %v482_v45 = vsel %vm153_vm0, %v66_v33, 4286644096  ;;  %v434_v46 = vmax.bf16 %v432_v27, %v430_v37 }
  0x3c   :  { %v457_v47 = vmax.bf16 %v455_v32, %v453_v40  ;;  %v480_v48 = vmax.bf16 %v478_v36, %v476_v42  ;;  %v19_v49 = vld [vmem:[%s1385_s0 + $0x28] sm:$0xf]  ;;  %v463_v52 = vsel %vm153_vm0, %v129_v38, 4286644096  ;;  %v467_v53 = vsel %vm153_vm0, %v145_v39, 4286644096 }
  0x3d   :  { %v35_v50 = vld [vmem:[%s1385_s0 + $0x68] sm:$0xf]  ;;  %v486_v54 = vsel %vm153_vm0, %v82_v41, 4286644096  ;;  %722 = vst.msk [vmem:[%s1386_s1 + $0x1c] sm:$0xf] %vm153_vm0, %v434_v46 }
  0x3e   :  { %v51_v51 = vld [vmem:[%s1385_s0 + $0xa8] sm:$0xf]  ;;  %v461_v55 = vmax.bf16 %v459_v43, %v457_v47  ;;  %v114_v56 = vld [vmem:[%s1385_s0 + $0x1a4] sm:$0xf]  ;;  %v484_v57 = vmax.bf16 %v482_v45, %v480_v48  ;;  %v490_v58 = vsel %vm153_vm0, %v98_v44, 4286644096 }
  0x3f   :  { %v67_v59 = vld [vmem:[%s1385_s0 + $0xe8] sm:$0xf]  ;;  %v506_v60 = vsel %vm153_vm0, %v19_v49, 4286644096  ;;  %v509_v61 = vsel %vm153_vm0, %v35_v50, 4286644096 }
  0x40   :  { %v513_v62 = vsel %vm153_vm0, %v51_v51, 4286644096  ;;  %v465_v63 = vmax.bf16 %v463_v52, %v461_v55  ;;  %v130_v0 = vld [vmem:[%s1385_s0 + $0x1e4] sm:$0xf]  ;;  %v488_v2 = vmax.bf16 %v486_v54, %v484_v57  ;;  %v83_v3 = vld [vmem:[%s1385_s0 + $0x128] sm:$0xf]  ;;  %v511_v4 = vmax.bf16 %v509_v61, %v506_v60 }
  0x41   :  { %v146_v1 = vld [vmem:[%s1385_s0 + $0x224] sm:$0xf]  ;;  %v494_v5 = vsel %vm153_vm0, %v114_v56, 4286644096  ;;  %v99_v6 = vld [vmem:[%s1385_s0 + $0x168] sm:$0xf] }
  0x42   :  { %v517_v7 = vsel %vm153_vm0, %v67_v59, 4286644096  ;;  %v469_v8 = vmax.bf16 %v467_v53, %v465_v63  ;;  %v492_v9 = vmax.bf16 %v490_v58, %v488_v2  ;;  %v515_v10 = vmax.bf16 %v513_v62, %v511_v4  ;;  %v20_v11 = vld [vmem:[%s1385_s0 + $0x2c] sm:$0xf]  ;;  %v115_v18 = vld [vmem:[%s1385_s0 + $0x1a8] sm:$0xf] }
  0x43   :  { %v36_v12 = vld [vmem:[%s1385_s0 + $0x6c] sm:$0xf]  ;;  %v498_v14 = vsel %vm153_vm0, %v130_v0, 4286644096  ;;  %v502_v15 = vsel %vm153_vm0, %v146_v1, 4286644096 }
  0x44   :  { %v52_v13 = vld [vmem:[%s1385_s0 + $0xac] sm:$0xf]  ;;  %v521_v16 = vsel %vm153_vm0, %v83_v3, 4286644096  ;;  %723 = vst.msk [vmem:[%s1386_s1 + $0x20] sm:$0xf] %vm153_vm0, %v469_v8  ;;  %v496_v17 = vmax.bf16 %v494_v5, %v492_v9  ;;  %v519_v19 = vmax.bf16 %v517_v7, %v515_v10 }
  0x45   :  { %v525_v20 = vsel %vm153_vm0, %v99_v6, 4286644096  ;;  %v68_v21 = vld [vmem:[%s1385_s0 + $0xec] sm:$0xf]  ;;  %v541_v22 = vsel %vm153_vm0, %v20_v11, 4286644096 }
  0x46   :  { %v544_v23 = vsel %vm153_vm0, %v36_v12, 4286644096  ;;  %v548_v24 = vsel %vm153_vm0, %v52_v13, 4286644096  ;;  %v500_v25 = vmax.bf16 %v498_v14, %v496_v17  ;;  %v131_v26 = vld [vmem:[%s1385_s0 + $0x1e8] sm:$0xf]  ;;  %v523_v28 = vmax.bf16 %v521_v16, %v519_v19 }
  0x47   :  { %v147_v27 = vld [vmem:[%s1385_s0 + $0x228] sm:$0xf]  ;;  %v84_v29 = vld [vmem:[%s1385_s0 + $0x12c] sm:$0xf]  ;;  %v546_v30 = vmax.bf16 %v544_v23, %v541_v22  ;;  %v529_v31 = vsel %vm153_vm0, %v115_v18, 4286644096 }
  0x48   :  { %v100_v32 = vld [vmem:[%s1385_s0 + $0x16c] sm:$0xf]  ;;  %v552_v33 = vsel %vm153_vm0, %v68_v21, 4286644096  ;;  %v504_v34 = vmax.bf16 %v502_v15, %v500_v25  ;;  %v527_v35 = vmax.bf16 %v525_v20, %v523_v28  ;;  %v21_v37 = vld [vmem:[%s1385_s0 + $0x30] sm:$0xf] }
  0x49   :  { %v550_v36 = vmax.bf16 %v548_v24, %v546_v30  ;;  %v37_v38 = vld [vmem:[%s1385_s0 + $0x70] sm:$0xf]  ;;  %v533_v40 = vsel %vm153_vm0, %v131_v26, 4286644096  ;;  %v537_v41 = vsel %vm153_vm0, %v147_v27, 4286644096 }
  0x4a   :  { %v53_v39 = vld [vmem:[%s1385_s0 + $0xb0] sm:$0xf]  ;;  %v556_v42 = vsel %vm153_vm0, %v84_v29, 4286644096  ;;  %724 = vst.msk [vmem:[%s1386_s1 + $0x24] sm:$0xf] %vm153_vm0, %v504_v34  ;;  %v531_v43 = vmax.bf16 %v529_v31, %v527_v35 }
  0x4b   :  { %v116_v44 = vld [vmem:[%s1385_s0 + $0x1ac] sm:$0xf]  ;;  %v554_v45 = vmax.bf16 %v552_v33, %v550_v36  ;;  %v560_v46 = vsel %vm153_vm0, %v100_v32, 4286644096  ;;  %v69_v47 = vld [vmem:[%s1385_s0 + $0xf0] sm:$0xf] }
  0x4c   :  { %v576_v48 = vsel %vm153_vm0, %v21_v37, 4286644096  ;;  %v579_v49 = vsel %vm153_vm0, %v37_v38, 4286644096  ;;  %v583_v50 = vsel %vm153_vm0, %v53_v39, 4286644096  ;;  %v535_v51 = vmax.bf16 %v533_v40, %v531_v43 }
  0x4d   :  { %v132_v52 = vld [vmem:[%s1385_s0 + $0x1ec] sm:$0xf]  ;;  %v558_v54 = vmax.bf16 %v556_v42, %v554_v45  ;;  %v85_v55 = vld [vmem:[%s1385_s0 + $0x130] sm:$0xf]  ;;  %v581_v56 = vmax.bf16 %v579_v49, %v576_v48  ;;  %v564_v57 = vsel %vm153_vm0, %v116_v44, 4286644096 }
  0x4e   :  { %v148_v53 = vld [vmem:[%s1385_s0 + $0x22c] sm:$0xf]  ;;  %v101_v58 = vld [vmem:[%s1385_s0 + $0x170] sm:$0xf]  ;;  %v587_v59 = vsel %vm153_vm0, %v69_v47, 4286644096  ;;  %v539_v60 = vmax.bf16 %v537_v41, %v535_v51 }
  0x4f   :  { %v562_v61 = vmax.bf16 %v560_v46, %v558_v54  ;;  %v585_v62 = vmax.bf16 %v583_v50, %v581_v56  ;;  %v22_v63 = vld [vmem:[%s1385_s0 + $0x34] sm:$0xf]  ;;  %v568_v2 = vsel %vm153_vm0, %v132_v52, 4286644096  ;;  %v572_v3 = vsel %vm153_vm0, %v148_v53, 4286644096 }
  0x50   :  { %v38_v0 = vld [vmem:[%s1385_s0 + $0x74] sm:$0xf]  ;;  %v591_v4 = vsel %vm153_vm0, %v85_v55, 4286644096  ;;  %725 = vst.msk [vmem:[%s1386_s1 + $0x28] sm:$0xf] %vm153_vm0, %v539_v60 }
  0x51   :  { %v54_v1 = vld [vmem:[%s1385_s0 + $0xb4] sm:$0xf]  ;;  %v566_v5 = vmax.bf16 %v564_v57, %v562_v61  ;;  %v117_v6 = vld [vmem:[%s1385_s0 + $0x1b0] sm:$0xf]  ;;  %v589_v7 = vmax.bf16 %v587_v59, %v585_v62  ;;  %v595_v8 = vsel %vm153_vm0, %v101_v58, 4286644096 }
  0x52   :  { %v70_v9 = vld [vmem:[%s1385_s0 + $0xf4] sm:$0xf]  ;;  %v611_v10 = vsel %vm153_vm0, %v22_v63, 4286644096  ;;  %v614_v11 = vsel %vm153_vm0, %v38_v0, 4286644096 }
  0x53   :  { %v618_v12 = vsel %vm153_vm0, %v54_v1, 4286644096  ;;  %v570_v13 = vmax.bf16 %v568_v2, %v566_v5  ;;  %v133_v14 = vld [vmem:[%s1385_s0 + $0x1f0] sm:$0xf]  ;;  %v593_v16 = vmax.bf16 %v591_v4, %v589_v7  ;;  %v86_v17 = vld [vmem:[%s1385_s0 + $0x134] sm:$0xf]  ;;  %v616_v18 = vmax.bf16 %v614_v11, %v611_v10 }
  0x54   :  { %v149_v15 = vld [vmem:[%s1385_s0 + $0x230] sm:$0xf]  ;;  %v599_v19 = vsel %vm153_vm0, %v117_v6, 4286644096  ;;  %v102_v20 = vld [vmem:[%s1385_s0 + $0x174] sm:$0xf] }
  0x55   :  { %v622_v21 = vsel %vm153_vm0, %v70_v9, 4286644096  ;;  %v574_v22 = vmax.bf16 %v572_v3, %v570_v13  ;;  %v597_v23 = vmax.bf16 %v595_v8, %v593_v16  ;;  %v620_v24 = vmax.bf16 %v618_v12, %v616_v18  ;;  %v23_v25 = vld [vmem:[%s1385_s0 + $0x38] sm:$0xf]  ;;  %v118_v32 = vld [vmem:[%s1385_s0 + $0x1b4] sm:$0xf] }
  0x56   :  { %v39_v26 = vld [vmem:[%s1385_s0 + $0x78] sm:$0xf]  ;;  %v603_v28 = vsel %vm153_vm0, %v133_v14, 4286644096  ;;  %v607_v29 = vsel %vm153_vm0, %v149_v15, 4286644096 }
  0x57   :  { %v55_v27 = vld [vmem:[%s1385_s0 + $0xb8] sm:$0xf]  ;;  %v626_v30 = vsel %vm153_vm0, %v86_v17, 4286644096  ;;  %726 = vst.msk [vmem:[%s1386_s1 + $0x2c] sm:$0xf] %vm153_vm0, %v574_v22  ;;  %v601_v31 = vmax.bf16 %v599_v19, %v597_v23  ;;  %v624_v33 = vmax.bf16 %v622_v21, %v620_v24 }
  0x58   :  { %v630_v34 = vsel %vm153_vm0, %v102_v20, 4286644096  ;;  %v71_v35 = vld [vmem:[%s1385_s0 + $0xf8] sm:$0xf]  ;;  %v646_v36 = vsel %vm153_vm0, %v23_v25, 4286644096 }
  0x59   :  { %v649_v37 = vsel %vm153_vm0, %v39_v26, 4286644096  ;;  %v653_v38 = vsel %vm153_vm0, %v55_v27, 4286644096  ;;  %v605_v39 = vmax.bf16 %v603_v28, %v601_v31  ;;  %v134_v40 = vld [vmem:[%s1385_s0 + $0x1f4] sm:$0xf]  ;;  %v628_v42 = vmax.bf16 %v626_v30, %v624_v33 }
  0x5a   :  { %v150_v41 = vld [vmem:[%s1385_s0 + $0x234] sm:$0xf]  ;;  %v87_v43 = vld [vmem:[%s1385_s0 + $0x138] sm:$0xf]  ;;  %v651_v44 = vmax.bf16 %v649_v37, %v646_v36  ;;  %v634_v45 = vsel %vm153_vm0, %v118_v32, 4286644096 }
  0x5b   :  { %v103_v46 = vld [vmem:[%s1385_s0 + $0x178] sm:$0xf]  ;;  %v657_v47 = vsel %vm153_vm0, %v71_v35, 4286644096  ;;  %v609_v48 = vmax.bf16 %v607_v29, %v605_v39  ;;  %v632_v49 = vmax.bf16 %v630_v34, %v628_v42  ;;  %v24_v51 = vld [vmem:[%s1385_s0 + $0x3c] sm:$0xf] }
  0x5c   :  { %v655_v50 = vmax.bf16 %v653_v38, %v651_v44  ;;  %v40_v52 = vld [vmem:[%s1385_s0 + $0x7c] sm:$0xf]  ;;  %v638_v54 = vsel %vm153_vm0, %v134_v40, 4286644096  ;;  %v642_v55 = vsel %vm153_vm0, %v150_v41, 4286644096 }
  0x5d   :  { %v56_v53 = vld [vmem:[%s1385_s0 + $0xbc] sm:$0xf]  ;;  %v661_v56 = vsel %vm153_vm0, %v87_v43, 4286644096  ;;  %727 = vst.msk [vmem:[%s1386_s1 + $0x30] sm:$0xf] %vm153_vm0, %v609_v48  ;;  %v636_v57 = vmax.bf16 %v634_v45, %v632_v49 }
  0x5e   :  { %v119_v58 = vld [vmem:[%s1385_s0 + $0x1b8] sm:$0xf]  ;;  %v659_v59 = vmax.bf16 %v657_v47, %v655_v50  ;;  %v665_v60 = vsel %vm153_vm0, %v103_v46, 4286644096  ;;  %v72_v61 = vld [vmem:[%s1385_s0 + $0xfc] sm:$0xf] }
  0x5f   :  { %v681_v62 = vsel %vm153_vm0, %v24_v51, 4286644096  ;;  %v684_v63 = vsel %vm153_vm0, %v40_v52, 4286644096  ;;  %v688_v0 = vsel %vm153_vm0, %v56_v53, 4286644096  ;;  %v640_v1 = vmax.bf16 %v638_v54, %v636_v57 }
  0x60   :  { %v135_v2 = vld [vmem:[%s1385_s0 + $0x1f8] sm:$0xf]  ;;  %v663_v3 = vmax.bf16 %v661_v56, %v659_v59  ;;  %v88_v4 = vld [vmem:[%s1385_s0 + $0x13c] sm:$0xf]  ;;  %v686_v5 = vmax.bf16 %v684_v63, %v681_v62  ;;  %v669_v6 = vsel %vm153_vm0, %v119_v58, 4286644096 }
  0x61   :  { %v692_v7 = vsel %vm153_vm0, %v72_v61, 4286644096  ;;  %v644_v8 = vmax.bf16 %v642_v55, %v640_v1  ;;  %v151_v9 = vld [vmem:[%s1385_s0 + $0x238] sm:$0xf]  ;;  %v104_v11 = vld [vmem:[%s1385_s0 + $0x17c] sm:$0xf] }
  0x62   :  { %v667_v10 = vmax.bf16 %v665_v60, %v663_v3  ;;  %v690_v12 = vmax.bf16 %v688_v0, %v686_v5  ;;  %v673_v13 = vsel %vm153_vm0, %v135_v2, 4286644096  ;;  %v696_v14 = vsel %vm153_vm0, %v88_v4, 4286644096  ;;  %v120_v16 = vld [vmem:[%s1385_s0 + $0x1bc] sm:$0xf] }
  0x63   :  { %728 = vst.msk [vmem:[%s1386_s1 + $0x34] sm:$0xf] %vm153_vm0, %v644_v8  ;;  %v677_v18 = vsel %vm153_vm0, %v151_v9, 4286644096  ;;  %v700_v19 = vsel %vm153_vm0, %v104_v11, 4286644096 }
  0x64   :  { %v671_v15 = vmax.bf16 %v669_v6, %v667_v10  ;;  %v694_v17 = vmax.bf16 %v692_v7, %v690_v12  ;;  %v136_v21 = vld [vmem:[%s1385_s0 + $0x1fc] sm:$0xf]  ;;  %v704_v23 = vsel %vm153_vm0, %v120_v16, 4286644096 }
  0x65   :  { %v152_v25 = vld [vmem:[%s1385_s0 + $0x23c] sm:$0xf]  ;;  %v708_v27 = vsel %vm153_vm0, %v136_v21, 4286644096 }
  0x66   :  { %v675_v20 = vmax.bf16 %v673_v13, %v671_v15  ;;  %v698_v22 = vmax.bf16 %v696_v14, %v694_v17  ;;  %v712_v29 = vsel %vm153_vm0, %v152_v25, 4286644096 }
  0x68   :  { %v679_v24 = vmax.bf16 %v677_v18, %v675_v20  ;;  %v702_v26 = vmax.bf16 %v700_v19, %v698_v22 }
  0x6a   :  { %729 = vst.msk [vmem:[%s1386_s1 + $0x38] sm:$0xf] %vm153_vm0, %v679_v24  ;;  %v706_v28 = vmax.bf16 %v704_v23, %v702_v26 }
  0x6c   :  { %v710_v30 = vmax.bf16 %v708_v27, %v706_v28 }
  0x6e   :  { %v714_v31 = vmax.bf16 %v712_v29, %v710_v30 }
  0x70   :  { %730 = vst.msk [vmem:[%s1386_s1 + $0x3c] sm:$0xf] %vm153_vm0, %v714_v31 }

// kernel: _lambda_.16
= control target key start
LH: loop header
LB: loop body
LE: loop exit
PB: predicated region body
PF: predicated region fallthrough
CT: control target
= control target key end

     0   :  { %s1768_s12 = smov 0   ;;  %s1770_s13 = smov 0   ;;  %s1998_s0 = inlined_call_operand.vmem [shape: bf16[128,1024], index: 0, kind: input, shape index: {}]   ;;  %s1999_s1 = inlined_call_operand.vmem [shape: bf16[1024,128], index: 1, kind: input, shape index: {}]   ;;  %s2000_s2 = inlined_call_operand.vmem [shape: f32[1,128], index: 2, kind: input, shape index: {}]   ;;  %s2001_s3 = inlined_call_operand.vmem [shape: bf16[128,128], index: 3, kind: output, shape index: {}]  }
   0x1   :  { %s1772_s14 = smov 0   ;;  %s1774_s15 = smov 0  }
   0x2   :  { %s1776_s16 = smov 0  }
   0x3 LB: > { %s25_s17 = sadd.s32 1, %s1741_s15  ;;  %p48_p1 = scmp.ne.s32.totalorder %s1733_s13, %s1729_s12  ;;  %s1745_s16 = sphi %s1776_s16, %s13_s16   ;;  %s1741_s15 = sphi %s1774_s15, %s2005_s15   ;;  %s1737_s14 = sphi %s1772_s14, %s2004_s14   ;;  %s1733_s13 = sphi %s1770_s13, %s2003_s13   ;;  %s1729_s12 = sphi %s1768_s12, %s2002_s12  }
   0x4   : > { %p26_p0 = scmp.ge.s32.totalorder %s25_s17, 2  ;;  %p49_p2 = scmp.eq.s32.totalorder %s1745_s16, 0 }
   0x5   : > { %s41_s19 = sadd.s32 1, %s1733_s13  ;;  %p1299_p5 = scmp.ge.s32.totalorder %s1745_s16, 2 }
   0x6   : > { %s2007_s17 = smov (%p26_p0, %s25_s17), 0  ;;  %p50_p3 = por %p49_p2, %p48_p1 }
   0x7   : > { %s37_s18 = ssub.s32 %s1741_s15, %s2007_s17  ;;  %162 = sbr.rel (%p1299_p5) target bundleno = 34 (0x22), region = 20 }
   0x8   : > { %p39_p4 = scmp.eq.s32.totalorder %s37_s18, 0 }
   0xa   : > { %s1803_s20 = scalar_select %p39_p4, %s1733_s13, %s41_s19  }
   0xe   : > { %165 = sbr.rel (!%p50_p3) target bundleno = 34 (0x22), region = 24  ;;  %s167_s21 = sand.u32 (%p50_p3), 1, %s1733_s13  }
   0xf   : > { %s1394_s22 = sshll.u32 (%p50_p3), %s1741_s15, 4  ;;  %s1300_s23 = sshll.u32 (%p50_p3), %s167_s21, 8 }
  0x10   : > { %s1811_s26 = scalar_lea.vmem (%p50_p3), %s1998_s0, %s1394_s22  ;;  %s1816_s27 = scalar_lea.vmem (%p50_p3), [#allocation3], %s1300_s23 }
  0x11   : > { %v188_v0 = vld [vmem:[%s1811_s26] sm:$0xff] (%p50_p3)  ;;  %v190_v1 = vld [vmem:[%s1811_s26 + $0x8] sm:$0xff] (%p50_p3) }
  0x12   : > { %v192_v2 = vld [vmem:[%s1811_s26 + $0x20] sm:$0xff] (%p50_p3)  ;;  %189 = vst [vmem:[%s1816_s27] sm:$0xff] (%p50_p3), %v188_v0  ;;  %191 = vst [vmem:[%s1816_s27 + $0x8] sm:$0xff] (%p50_p3), %v190_v1  ;;  %v194_v3 = vld [vmem:[%s1811_s26 + $0x28] sm:$0xff] (%p50_p3) }
  0x13   : > { %193 = vst [vmem:[%s1816_s27 + $0x10] sm:$0xff] (%p50_p3), %v192_v2  ;;  %v196_v4 = vld [vmem:[%s1811_s26 + $0x40] sm:$0xff] (%p50_p3)  ;;  %v198_v5 = vld [vmem:[%s1811_s26 + $0x48] sm:$0xff] (%p50_p3)  ;;  %195 = vst [vmem:[%s1816_s27 + $0x18] sm:$0xff] (%p50_p3), %v194_v3 }
  0x14   : > { %197 = vst [vmem:[%s1816_s27 + $0x20] sm:$0xff] (%p50_p3), %v196_v4  ;;  %199 = vst [vmem:[%s1816_s27 + $0x28] sm:$0xff] (%p50_p3), %v198_v5  ;;  %v200_v6 = vld [vmem:[%s1811_s26 + $0x60] sm:$0xff] (%p50_p3)  ;;  %v202_v7 = vld [vmem:[%s1811_s26 + $0x68] sm:$0xff] (%p50_p3) }
  0x15   : > { %v204_v8 = vld [vmem:[%s1811_s26 + $0x80] sm:$0xff]  ;;  %201 = vst [vmem:[%s1816_s27 + $0x30] sm:$0xff] %v200_v6  ;;  %203 = vst [vmem:[%s1816_s27 + $0x38] sm:$0xff] %v202_v7  ;;  %v206_v9 = vld [vmem:[%s1811_s26 + $0x88] sm:$0xff] }
  0x16   : > { %205 = vst [vmem:[%s1816_s27 + $0x40] sm:$0xff] %v204_v8  ;;  %v208_v10 = vld [vmem:[%s1811_s26 + $0xa0] sm:$0xff]  ;;  %v210_v11 = vld [vmem:[%s1811_s26 + $0xa8] sm:$0xff]  ;;  %207 = vst [vmem:[%s1816_s27 + $0x48] sm:$0xff] %v206_v9 }
  0x17   : > { %209 = vst [vmem:[%s1816_s27 + $0x50] sm:$0xff] %v208_v10  ;;  %211 = vst [vmem:[%s1816_s27 + $0x58] sm:$0xff] %v210_v11  ;;  %v212_v12 = vld [vmem:[%s1811_s26 + $0xc0] sm:$0xff]  ;;  %v214_v13 = vld [vmem:[%s1811_s26 + $0xc8] sm:$0xff] }
  0x18   : > { %v216_v14 = vld [vmem:[%s1811_s26 + $0xe0] sm:$0xff]  ;;  %213 = vst [vmem:[%s1816_s27 + $0x60] sm:$0xff] %v212_v12  ;;  %215 = vst [vmem:[%s1816_s27 + $0x68] sm:$0xff] %v214_v13  ;;  %v218_v15 = vld [vmem:[%s1811_s26 + $0xe8] sm:$0xff] }
  0x19   : > { %217 = vst [vmem:[%s1816_s27 + $0x70] sm:$0xff] %v216_v14  ;;  %v220_v16 = vld [vmem:[%s1811_s26 + $0x100] sm:$0xff]  ;;  %v222_v17 = vld [vmem:[%s1811_s26 + $0x108] sm:$0xff]  ;;  %219 = vst [vmem:[%s1816_s27 + $0x78] sm:$0xff] %v218_v15 }
  0x1a   : > { %221 = vst [vmem:[%s1816_s27 + $0x80] sm:$0xff] %v220_v16  ;;  %223 = vst [vmem:[%s1816_s27 + $0x88] sm:$0xff] %v222_v17  ;;  %v224_v18 = vld [vmem:[%s1811_s26 + $0x120] sm:$0xff]  ;;  %v226_v19 = vld [vmem:[%s1811_s26 + $0x128] sm:$0xff] }
  0x1b   : > { %v228_v20 = vld [vmem:[%s1811_s26 + $0x140] sm:$0xff]  ;;  %225 = vst [vmem:[%s1816_s27 + $0x90] sm:$0xff] %v224_v18  ;;  %227 = vst [vmem:[%s1816_s27 + $0x98] sm:$0xff] %v226_v19  ;;  %v230_v21 = vld [vmem:[%s1811_s26 + $0x148] sm:$0xff] }
  0x1c   : > { %229 = vst [vmem:[%s1816_s27 + $0xa0] sm:$0xff] %v228_v20  ;;  %v232_v22 = vld [vmem:[%s1811_s26 + $0x160] sm:$0xff]  ;;  %v234_v23 = vld [vmem:[%s1811_s26 + $0x168] sm:$0xff]  ;;  %231 = vst [vmem:[%s1816_s27 + $0xa8] sm:$0xff] %v230_v21 }
  0x1d   : > { %233 = vst [vmem:[%s1816_s27 + $0xb0] sm:$0xff] %v232_v22  ;;  %235 = vst [vmem:[%s1816_s27 + $0xb8] sm:$0xff] %v234_v23  ;;  %v236_v24 = vld [vmem:[%s1811_s26 + $0x180] sm:$0xff]  ;;  %v238_v25 = vld [vmem:[%s1811_s26 + $0x188] sm:$0xff] }
  0x1e   : > { %v240_v26 = vld [vmem:[%s1811_s26 + $0x1a0] sm:$0xff]  ;;  %237 = vst [vmem:[%s1816_s27 + $0xc0] sm:$0xff] %v236_v24  ;;  %239 = vst [vmem:[%s1816_s27 + $0xc8] sm:$0xff] %v238_v25  ;;  %v242_v27 = vld [vmem:[%s1811_s26 + $0x1a8] sm:$0xff] }
  0x1f   : > { %241 = vst [vmem:[%s1816_s27 + $0xd0] sm:$0xff] %v240_v26  ;;  %v244_v28 = vld [vmem:[%s1811_s26 + $0x1c0] sm:$0xff]  ;;  %v246_v29 = vld [vmem:[%s1811_s26 + $0x1c8] sm:$0xff]  ;;  %243 = vst [vmem:[%s1816_s27 + $0xd8] sm:$0xff] %v242_v27 }
  0x20   : > { %245 = vst [vmem:[%s1816_s27 + $0xe0] sm:$0xff] %v244_v28  ;;  %247 = vst [vmem:[%s1816_s27 + $0xe8] sm:$0xff] %v246_v29  ;;  %v248_v30 = vld [vmem:[%s1811_s26 + $0x1e0] sm:$0xff]  ;;  %v250_v31 = vld [vmem:[%s1811_s26 + $0x1e8] sm:$0xff] }
  0x21   : > { %249 = vst [vmem:[%s1816_s27 + $0xf0] sm:$0xff] %v248_v30  ;;  %251 = vst [vmem:[%s1816_s27 + $0xf8] sm:$0xff] %v250_v31 }
  0x22 PF: > { %p1303_p6 = scmp.ge.s32.totalorder %s1745_s16, 1  ;;  %p268_p7 = scmp.lt.s32.totalorder %s1745_s16, 3 }
  0x24   : > { %p269_p8 = pnand %p1303_p6, %p268_p7 }
  0x25   : > { %s275_s28 = sand.u32 (!%p269_p8), 1, %s1729_s12   ;;  %s1305_s29 = sshll.u32 (!%p269_p8), %s1737_s14, 6 }
  0x26   : > { %272 = sbr.rel (%p269_p8) target bundleno = 382 (0x17e), region = 51  ;;  %s1304_s30 = sshll.u32 (!%p269_p8), %s275_s28, 8 }
  0x27   : > { %p315_p9 = scmp.lt.s32.totalorder (!%p269_p8), %s1305_s29, 127  ;;  %s1888_s8 = scalar_lea.vmem (!%p269_p8), [#allocation3], %s1304_s30 }
  0x28   : > { %p1307_p10 = scmp.ne.s32.totalorder (!%p269_p8), %s1737_s14, 0 }
  0x2d   : > { %s2009_s29 = smov (!%p315_p9, %s1305_s29), 127  ;;  %339 = sbr.rel (%p1307_p10) target bundleno = 55 (0x37), region = 59 }
  0x2e   : > { %s1306_s4 = sshll.u32 %s2009_s29, 2  ;;  %v1747_v32 = vmov (!%p1307_p10), 0.0  }
  0x2f   : > { %s1886_s7 = scalar_lea.vmem %s1999_s1, %s1306_s4  ;;  %340 = vst [vmem:[#allocation2] sm:$0xff] (!%p1307_p10), %v1747_v32  ;;  %341 = vst [vmem:[#allocation2 + $0x8] sm:$0xff] (!%p1307_p10), %v1747_v32 }
  0x30   : > { %342 = vst [vmem:[#allocation2 + $0x10] sm:$0xff] (!%p1307_p10), %v1747_v32  ;;  %343 = vst [vmem:[#allocation2 + $0x18] sm:$0xff] (!%p1307_p10), %v1747_v32 }
  0x31   : > { %344 = vst [vmem:[#allocation2 + $0x20] sm:$0xff] (!%p1307_p10), %v1747_v32  ;;  %345 = vst [vmem:[#allocation2 + $0x28] sm:$0xff] (!%p1307_p10), %v1747_v32 }
  0x32   : > { %346 = vst [vmem:[#allocation2 + $0x30] sm:$0xff] (!%p1307_p10), %v1747_v32  ;;  %347 = vst [vmem:[#allocation2 + $0x38] sm:$0xff] (!%p1307_p10), %v1747_v32 }
  0x33   : > { %348 = vst [vmem:[#allocation2 + $0x40] sm:$0xff] (!%p1307_p10), %v1747_v32  ;;  %349 = vst [vmem:[#allocation2 + $0x48] sm:$0xff] (!%p1307_p10), %v1747_v32 }
  0x34   : > { %350 = vst [vmem:[#allocation2 + $0x50] sm:$0xff] %v1747_v32  ;;  %351 = vst [vmem:[#allocation2 + $0x58] sm:$0xff] %v1747_v32 }
  0x35   : > { %352 = vst [vmem:[#allocation2 + $0x60] sm:$0xff] %v1747_v32  ;;  %353 = vst [vmem:[#allocation2 + $0x68] sm:$0xff] %v1747_v32 }
  0x36   : > { %354 = vst [vmem:[#allocation2 + $0x70] sm:$0xff] %v1747_v32  ;;  %355 = vst [vmem:[#allocation2 + $0x78] sm:$0xff] %v1747_v32 }
  0x37 PF: > { %v1627_v33 = vld [vmem:[%s1886_s7 + $0x40] sm:$0xff]   ;;  %v1631_v37 = vld [vmem:[%s1886_s7 + $0x48] sm:$0xff]   ;;  %v1635_v41 = vld [vmem:[%s1886_s7 + $0x50] sm:$0xff]   ;;  %p1372_p11 = scmp.ne.s32.totalorder %s1737_s14, 1 }
  0x38   : > { %v1628_v34 = vld [vmem:[%s1886_s7 + $0xc0] sm:$0xff]   ;;  %1458 = vmatprep.subr.bf16.mxu0 %v1627_v33  ;;  %v1632_v38 = vld [vmem:[%s1886_s7 + $0xc8] sm:$0xff]   ;;  %v1636_v42 = vld [vmem:[%s1886_s7 + $0xd0] sm:$0xff]  }
  0x39   : > { %v1629_v35 = vld [vmem:[%s1886_s7] sm:$0xff]   ;;  %1522 = vmatprep.subr.bf16.mxu1 %v1628_v34  ;;  %v1633_v39 = vld [vmem:[%s1886_s7 + $0x8] sm:$0xff]   ;;  %v1637_v43 = vld [vmem:[%s1886_s7 + $0x10] sm:$0xff]  }
  0x3a   : > { %v1630_v36 = vld [vmem:[%s1886_s7 + $0x80] sm:$0xff]   ;;  %1459 = vmatpush3.bf16.msra.mxu0 %v1629_v35  ;;  %v1634_v40 = vld [vmem:[%s1886_s7 + $0x88] sm:$0xff]   ;;  %v1638_v44 = vld [vmem:[%s1886_s7 + $0x90] sm:$0xff]  }
  0x3b   : > { %1523 = vmatpush3.bf16.msra.mxu1 %v1630_v36  ;;  %1460 = vmatprep.subr.bf16.mxu0 %v1631_v37  ;;  %v1639_v45 = vld [vmem:[%s1886_s7 + $0x58] sm:$0xff]   ;;  %v1643_v49 = vld [vmem:[%s1886_s7 + $0x60] sm:$0xff]   ;;  %v1647_v53 = vld [vmem:[%s1886_s7 + $0x68] sm:$0xff]  }
  0x3c   : > { %1524 = vmatprep.subr.bf16.mxu1 %v1632_v38  ;;  %v1640_v46 = vld [vmem:[%s1886_s7 + $0xd8] sm:$0xff]   ;;  %v1644_v50 = vld [vmem:[%s1886_s7 + $0xe0] sm:$0xff]   ;;  %v1648_v54 = vld [vmem:[%s1886_s7 + $0xe8] sm:$0xff]  }
  0x3d   : > { %v1641_v47 = vld [vmem:[%s1886_s7 + $0x18] sm:$0xff]   ;;  %v1645_v51 = vld [vmem:[%s1886_s7 + $0x20] sm:$0xff]   ;;  %v1649_v55 = vld [vmem:[%s1886_s7 + $0x28] sm:$0xff]  }
  0x3e   : > { %1461 = vmatpush3.bf16.msra.mxu0 %v1633_v39  ;;  %v1642_v48 = vld [vmem:[%s1886_s7 + $0x98] sm:$0xff]   ;;  %v1646_v52 = vld [vmem:[%s1886_s7 + $0xa0] sm:$0xff]   ;;  %v1650_v56 = vld [vmem:[%s1886_s7 + $0xa8] sm:$0xff]  }
  0x3f   : > { %1525 = vmatpush3.bf16.msra.mxu1 %v1634_v40  ;;  %1462 = vmatprep.subr.bf16.mxu0 %v1635_v41  ;;  %v1651_v57 = vld [vmem:[%s1886_s7 + $0x70] sm:$0xff]   ;;  %v1655_v61 = vld [vmem:[%s1886_s7 + $0x78] sm:$0xff]  }
  0x40   : > { %1526 = vmatprep.subr.bf16.mxu1 %v1636_v42  ;;  %v1652_v58 = vld [vmem:[%s1886_s7 + $0xf0] sm:$0xff]   ;;  %v1656_v62 = vld [vmem:[%s1886_s7 + $0xf8] sm:$0xff]   ;;  %v356_v42 = vld [vmem:[#allocation2] sm:$0xff] }
  0x41   : > { %v1653_v59 = vld [vmem:[%s1886_s7 + $0x30] sm:$0xff]   ;;  %v1657_v63 = vld [vmem:[%s1886_s7 + $0x38] sm:$0xff]  }
  0x42   : > { %1463 = vmatpush3.bf16.msra.mxu0 %v1637_v43  ;;  %v1654_v60 = vld [vmem:[%s1886_s7 + $0xb0] sm:$0xff]   ;;  %v1658_v0 = vld [vmem:[%s1886_s7 + $0xb8] sm:$0xff]  }
  0x43   : > { %1527 = vmatpush3.bf16.msra.mxu1 %v1638_v44  ;;  %1464 = vmatprep.subr.bf16.mxu0 %v1639_v45  ;;  %v1659_v1 = vld [vmem:[%s1888_s8] ss:$16 sps:$4 sm:$0xff]   ;;  %v1661_v2 = vld [vmem:[%s1888_s8 + $0x4] ss:$16 sps:$4 sm:$0xff]   ;;  %v1662_v3 = vld [vmem:[%s1888_s8 + $0x8] ss:$16 sps:$4 sm:$0xff]  }
  0x44   : > { %1528 = vmatprep.subr.bf16.mxu1 %v1640_v46  ;;  %v1664_v4 = vld [vmem:[%s1888_s8 + $0xc] ss:$16 sps:$4 sm:$0xff]   ;;  %852 = vmatprep.mubr.bf16.mxu0 %v1661_v2  ;;  %v1665_v5 = vld [vmem:[%s1888_s8 + $0x24] ss:$16 sps:$4 sm:$0xff]   ;;  %v1669_v7 = vld [vmem:[%s1888_s8 + $0x20] ss:$16 sps:$4 sm:$0xff]  }
  0x45   : > { %949 = vmatprep.mubr.bf16.mxu1 %v1664_v4  ;;  %v1667_v6 = vld [vmem:[%s1888_s8 + $0x2c] ss:$16 sps:$4 sm:$0xff]   ;;  %v1670_v8 = vld [vmem:[%s1888_s8 + $0x28] ss:$16 sps:$4 sm:$0xff]   ;;  %v1671_v9 = vld [vmem:[%s1888_s8 + $0x44] ss:$16 sps:$4 sm:$0xff]  }
  0x46   : > { %1465 = vmatpush3.bf16.msra.mxu0 %v1641_v47  ;;  %v1673_v10 = vld [vmem:[%s1888_s8 + $0x4c] ss:$16 sps:$4 sm:$0xff]   ;;  %v1675_v11 = vld [vmem:[%s1888_s8 + $0x40] ss:$16 sps:$4 sm:$0xff]   ;;  %v1676_v12 = vld [vmem:[%s1888_s8 + $0x48] ss:$16 sps:$4 sm:$0xff]  }
  0x47   : > { %1529 = vmatpush3.bf16.msra.mxu1 %v1642_v48  ;;  %1466 = vmatprep.subr.bf16.mxu0 %v1643_v49  ;;  %v1677_v13 = vld [vmem:[%s1888_s8 + $0x64] ss:$16 sps:$4 sm:$0xff]   ;;  %v1679_v14 = vld [vmem:[%s1888_s8 + $0x6c] ss:$16 sps:$4 sm:$0xff]   ;;  %v1681_v15 = vld [vmem:[%s1888_s8 + $0x60] ss:$16 sps:$4 sm:$0xff]  }
  0x48   : > { %1530 = vmatprep.subr.bf16.mxu1 %v1644_v50  ;;  %v1682_v16 = vld [vmem:[%s1888_s8 + $0x68] ss:$16 sps:$4 sm:$0xff]   ;;  %v1683_v17 = vld [vmem:[%s1888_s8 + $0x84] ss:$16 sps:$4 sm:$0xff]   ;;  %v1685_v18 = vld [vmem:[%s1888_s8 + $0x8c] ss:$16 sps:$4 sm:$0xff]  }
  0x49   : > { %v1687_v19 = vld [vmem:[%s1888_s8 + $0x80] ss:$16 sps:$4 sm:$0xff]   ;;  %v1688_v20 = vld [vmem:[%s1888_s8 + $0x88] ss:$16 sps:$4 sm:$0xff]   ;;  %v1689_v21 = vld [vmem:[%s1888_s8 + $0xa4] ss:$16 sps:$4 sm:$0xff]  }
  0x4a   : > { %1467 = vmatpush3.bf16.msra.mxu0 %v1645_v51  ;;  %v1691_v22 = vld [vmem:[%s1888_s8 + $0xac] ss:$16 sps:$4 sm:$0xff]   ;;  %v1693_v23 = vld [vmem:[%s1888_s8 + $0xa0] ss:$16 sps:$4 sm:$0xff]   ;;  %v1694_v24 = vld [vmem:[%s1888_s8 + $0xa8] ss:$16 sps:$4 sm:$0xff]  }
  0x4b   : > { %1531 = vmatpush3.bf16.msra.mxu1 %v1646_v52  ;;  %1468 = vmatprep.subr.bf16.mxu0 %v1647_v53  ;;  %v1695_v25 = vld [vmem:[%s1888_s8 + $0xc4] ss:$16 sps:$4 sm:$0xff]   ;;  %v1697_v26 = vld [vmem:[%s1888_s8 + $0xcc] ss:$16 sps:$4 sm:$0xff]   ;;  %v1699_v27 = vld [vmem:[%s1888_s8 + $0xc0] ss:$16 sps:$4 sm:$0xff]  }
  0x4c   : > { %1532 = vmatprep.subr.bf16.mxu1 %v1648_v54  ;;  %v1700_v28 = vld [vmem:[%s1888_s8 + $0xc8] ss:$16 sps:$4 sm:$0xff]   ;;  %v1701_v29 = vld [vmem:[%s1888_s8 + $0xe4] ss:$16 sps:$4 sm:$0xff]   ;;  %v1703_v30 = vld [vmem:[%s1888_s8 + $0xec] ss:$16 sps:$4 sm:$0xff]  }
  0x4d   : > { %v1705_v31 = vld [vmem:[%s1888_s8 + $0xe0] ss:$16 sps:$4 sm:$0xff]   ;;  %v1706_v32 = vld [vmem:[%s1888_s8 + $0xe8] ss:$16 sps:$4 sm:$0xff]  }
  0x4e   : > { %1469 = vmatpush3.bf16.msra.mxu0 %v1649_v55  ;;  %v357_v47 = vld [vmem:[#allocation2 + $0x8] sm:$0xff] }
  0x4f   : > { %1533 = vmatpush3.bf16.msra.mxu1 %v1650_v56  ;;  %1470 = vmatprep.subr.bf16.mxu0 %v1651_v57 }
  0x50   : > { %1534 = vmatprep.subr.bf16.mxu1 %v1652_v58 }
  0x52   : > { %1471 = vmatpush3.bf16.msra.mxu0 %v1653_v59 }
  0x53   : > { %1535 = vmatpush3.bf16.msra.mxu1 %v1654_v60  ;;  %1472 = vmatprep.subr.bf16.mxu0 %v1655_v61  ;;  %v358_v60 = vld [vmem:[#allocation2 + $0x10] sm:$0xff] }
  0x54   : > { %1536 = vmatprep.subr.bf16.mxu1 %v1656_v62 }
  0x56   : > { %1473 = vmatpush3.bf16.msra.mxu0 %v1657_v63 }
  0x57   : > { %1537 = vmatpush3.bf16.msra.mxu1 %v1658_v0 }
  0x59   : > { %853 = vmatmul.mubr.bf16.vlgmr.msra.gmra.mrb[0].mxu0 %v1659_v1  ;;  %v359_v1 = vld [vmem:[#allocation2 + $0x18] sm:$0xff] }
  0x5a   : > { %950 = vmatmul.mubr.bf16.vlgmr.msra.gmra.mrb[0].mxu1 %v1662_v3  ;;  %860 = vmatprep.mubr.bf16.mxu0 %v1665_v5 }
  0x5b   : > { %957 = vmatprep.mubr.bf16.mxu1 %v1667_v6 }
  0x61   : > { %861 = vmatmul.mubr.bf16.gmra.mrb[4].mxu0 %v1669_v7 }
  0x62   : > { %958 = vmatmul.mubr.bf16.gmra.mrb[4].mxu1 %v1670_v8  ;;  %868 = vmatprep.mubr.bf16.mxu0 %v1671_v9 }
  0x63   : > { %965 = vmatprep.mubr.bf16.mxu1 %v1673_v10 }
  0x69   : > { %869 = vmatmul.mubr.bf16.gmra.mrb[8].mxu0 %v1675_v11 }
  0x6a   : > { %966 = vmatmul.mubr.bf16.gmra.mrb[8].mxu1 %v1676_v12  ;;  %876 = vmatprep.mubr.bf16.mxu0 %v1677_v13 }
  0x6b   : > { %973 = vmatprep.mubr.bf16.mxu1 %v1679_v14  ;;  %v360_v14 = vld [vmem:[#allocation2 + $0x20] sm:$0xff] }
  0x71   : > { %877 = vmatmul.mubr.bf16.gmra.mrb[12].mxu0 %v1681_v15 }
  0x72   : > { %974 = vmatmul.mubr.bf16.gmra.mrb[12].mxu1 %v1682_v16  ;;  %884 = vmatprep.mubr.bf16.mxu0 %v1683_v17 }
  0x73   : > { %981 = vmatprep.mubr.bf16.mxu1 %v1685_v18 }
  0x79   : > { %885 = vmatmul.mubr.bf16.gmra.mrb[16].mxu0 %v1687_v19  ;;  %v361_v19 = vld [vmem:[#allocation2 + $0x28] sm:$0xff] }
  0x7a   : > { %982 = vmatmul.mubr.bf16.gmra.mrb[16].mxu1 %v1688_v20  ;;  %892 = vmatprep.mubr.bf16.mxu0 %v1689_v21 }
  0x7b   : > { %989 = vmatprep.mubr.bf16.mxu1 %v1691_v22 }
  0x81   : > { %893 = vmatmul.mubr.bf16.gmra.mrb[20].mxu0 %v1693_v23 }
  0x82   : > { %990 = vmatmul.mubr.bf16.gmra.mrb[20].mxu1 %v1694_v24  ;;  %900 = vmatprep.mubr.bf16.mxu0 %v1695_v25 }
  0x83   : > { %997 = vmatprep.mubr.bf16.mxu1 %v1697_v26 }
  0x89   : > { %901 = vmatmul.mubr.bf16.gmra.mrb[24].mxu0 %v1699_v27 }
  0x8a   : > { %998 = vmatmul.mubr.bf16.gmra.mrb[24].mxu1 %v1700_v28  ;;  %908 = vmatprep.mubr.bf16.mxu0 %v1701_v29 }
  0x8b   : > { %1005 = vmatprep.mubr.bf16.mxu1 %v1703_v30 }
  0x91   : > { %909 = vmatmul.mubr.bf16.gmra.mrb[28].mxu0 %v1705_v31 }
  0x92   : > { %1006 = vmatmul.mubr.bf16.gmra.mrb[28].mxu1 %v1706_v32  ;;  %v362_v32 = vld [vmem:[#allocation2 + $0x30] sm:$0xff] }
 0x12c   : > { %v1474_v33 = vpop.f32.mrb[0].mxu0 }
 0x12d   : > { %v1538_v34 = vpop.f32.mrb[0].mxu1  ;;  %v1475_v35 = vpop.f32.mrb[1].mxu0 }
 0x12e   : > { %v1476_v36 = vadd.f32 %v1475_v35, %v1474_v33  ;;  %v1539_v37 = vpop.f32.mrb[1].mxu1  ;;  %v1477_v38 = vpop.f32.mrb[2].mxu0 }
 0x12f   : > { %v1540_v39 = vadd.f32 %v1539_v37, %v1538_v34  ;;  %v1541_v40 = vpop.f32.mrb[2].mxu1  ;;  %v1478_v41 = vpop.f32.mrb[3].mxu0  ;;  %v363_v37 = vld [vmem:[#allocation2 + $0x38] sm:$0xff] }
 0x130   : > { %v1479_v43 = vadd.f32 %v1478_v41, %v1477_v38  ;;  %v1542_v44 = vpop.f32.mrb[3].mxu1 }
 0x131   : > { %v952_v45 = vadd.f32 %v1540_v39, %v1476_v36  ;;  %v1543_v46 = vadd.f32 %v1542_v44, %v1541_v40 }
 0x133   : > { %v1014_v48 = vadd.f32 %v952_v45, %v356_v42  ;;  %v955_v49 = vadd.f32 %v1543_v46, %v1479_v43 }
 0x134   : > { %v1480_v50 = vpop.f32.mrb[4].mxu0 }
 0x135   : > { %1030 = vst [vmem:[#allocation2] sm:$0xff] %v1014_v48  ;;  %v1015_v51 = vadd.f32 %v955_v49, %v357_v47  ;;  %v1544_v52 = vpop.f32.mrb[4].mxu1  ;;  %v1481_v53 = vpop.f32.mrb[5].mxu0 }
 0x136   : > { %v1482_v54 = vadd.f32 %v1481_v53, %v1480_v50  ;;  %v1545_v55 = vpop.f32.mrb[5].mxu1  ;;  %v1483_v56 = vpop.f32.mrb[6].mxu0  ;;  %v364_v50 = vld [vmem:[#allocation2 + $0x40] sm:$0xff] }
 0x137   : > { %1031 = vst [vmem:[#allocation2 + $0x8] sm:$0xff] %v1015_v51  ;;  %v1546_v57 = vadd.f32 %v1545_v55, %v1544_v52  ;;  %v1547_v58 = vpop.f32.mrb[6].mxu1  ;;  %v1484_v59 = vpop.f32.mrb[7].mxu0  ;;  %v365_v55 = vld [vmem:[#allocation2 + $0x48] sm:$0xff] }
 0x138   : > { %v1485_v61 = vadd.f32 %v1484_v59, %v1483_v56  ;;  %v1548_v62 = vpop.f32.mrb[7].mxu1 }
 0x139   : > { %v960_v63 = vadd.f32 %v1546_v57, %v1482_v54  ;;  %v1549_v0 = vadd.f32 %v1548_v62, %v1547_v58 }
 0x13b   : > { %v1016_v2 = vadd.f32 %v960_v63, %v358_v60  ;;  %v963_v3 = vadd.f32 %v1549_v0, %v1485_v61 }
 0x13c   : > { %v1486_v4 = vpop.f32.mrb[8].mxu0 }
 0x13d   : > { %1032 = vst [vmem:[#allocation2 + $0x10] sm:$0xff] %v1016_v2  ;;  %v1017_v5 = vadd.f32 %v963_v3, %v359_v1  ;;  %v1550_v6 = vpop.f32.mrb[8].mxu1  ;;  %v1487_v7 = vpop.f32.mrb[9].mxu0 }
 0x13e   : > { %v1488_v8 = vadd.f32 %v1487_v7, %v1486_v4  ;;  %v1551_v9 = vpop.f32.mrb[9].mxu1  ;;  %v1489_v10 = vpop.f32.mrb[10].mxu0  ;;  %v366_v4 = vld [vmem:[#allocation2 + $0x50] sm:$0xff] }
 0x13f   : > { %1033 = vst [vmem:[#allocation2 + $0x18] sm:$0xff] %v1017_v5  ;;  %v1552_v11 = vadd.f32 %v1551_v9, %v1550_v6  ;;  %v1553_v12 = vpop.f32.mrb[10].mxu1  ;;  %v1490_v13 = vpop.f32.mrb[11].mxu0  ;;  %v367_v9 = vld [vmem:[#allocation2 + $0x58] sm:$0xff] }
 0x140   : > { %v1491_v15 = vadd.f32 %v1490_v13, %v1489_v10  ;;  %v1554_v16 = vpop.f32.mrb[11].mxu1 }
 0x141   : > { %v968_v17 = vadd.f32 %v1552_v11, %v1488_v8  ;;  %v1555_v18 = vadd.f32 %v1554_v16, %v1553_v12 }
 0x143   : > { %v1018_v20 = vadd.f32 %v968_v17, %v360_v14  ;;  %v971_v21 = vadd.f32 %v1555_v18, %v1491_v15 }
 0x144   : > { %v1492_v22 = vpop.f32.mrb[12].mxu0 }
 0x145   : > { %1034 = vst [vmem:[#allocation2 + $0x20] sm:$0xff] %v1018_v20  ;;  %v1019_v23 = vadd.f32 %v971_v21, %v361_v19  ;;  %v1556_v24 = vpop.f32.mrb[12].mxu1  ;;  %v1493_v25 = vpop.f32.mrb[13].mxu0 }
 0x146   : > { %v1494_v26 = vadd.f32 %v1493_v25, %v1492_v22  ;;  %v1557_v27 = vpop.f32.mrb[13].mxu1  ;;  %v1495_v28 = vpop.f32.mrb[14].mxu0  ;;  %v368_v22 = vld [vmem:[#allocation2 + $0x60] sm:$0xff] }
 0x147   : > { %1035 = vst [vmem:[#allocation2 + $0x28] sm:$0xff] %v1019_v23  ;;  %v1558_v29 = vadd.f32 %v1557_v27, %v1556_v24  ;;  %v1559_v30 = vpop.f32.mrb[14].mxu1  ;;  %v1496_v31 = vpop.f32.mrb[15].mxu0  ;;  %v369_v27 = vld [vmem:[#allocation2 + $0x68] sm:$0xff] }
 0x148   : > { %v1497_v33 = vadd.f32 %v1496_v31, %v1495_v28  ;;  %v1560_v34 = vpop.f32.mrb[15].mxu1 }
 0x149   : > { %v976_v35 = vadd.f32 %v1558_v29, %v1494_v26  ;;  %v1561_v36 = vadd.f32 %v1560_v34, %v1559_v30 }
 0x14b   : > { %v1020_v38 = vadd.f32 %v976_v35, %v362_v32  ;;  %v979_v39 = vadd.f32 %v1561_v36, %v1497_v33 }
 0x14c   : > { %v1498_v40 = vpop.f32.mrb[16].mxu0 }
 0x14d   : > { %1036 = vst [vmem:[#allocation2 + $0x30] sm:$0xff] %v1020_v38  ;;  %v1021_v41 = vadd.f32 %v979_v39, %v363_v37  ;;  %v1562_v42 = vpop.f32.mrb[16].mxu1  ;;  %v1499_v43 = vpop.f32.mrb[17].mxu0 }
 0x14e   : > { %v1500_v44 = vadd.f32 %v1499_v43, %v1498_v40  ;;  %v1563_v45 = vpop.f32.mrb[17].mxu1  ;;  %v1501_v46 = vpop.f32.mrb[18].mxu0  ;;  %v370_v40 = vld [vmem:[#allocation2 + $0x70] sm:$0xff] }
 0x14f   : > { %1037 = vst [vmem:[#allocation2 + $0x38] sm:$0xff] %v1021_v41  ;;  %v1564_v47 = vadd.f32 %v1563_v45, %v1562_v42  ;;  %v1565_v48 = vpop.f32.mrb[18].mxu1  ;;  %v1502_v49 = vpop.f32.mrb[19].mxu0  ;;  %v371_v45 = vld [vmem:[#allocation2 + $0x78] sm:$0xff] }
 0x150   : > { %v1503_v51 = vadd.f32 %v1502_v49, %v1501_v46  ;;  %v1566_v52 = vpop.f32.mrb[19].mxu1  ;;  %v1050_v49 = vld [vmem:[#allocation2] sm:$0xff] (!%p1372_p11) }
 0x151   : > { %v984_v53 = vadd.f32 %v1564_v47, %v1500_v44  ;;  %v1567_v54 = vadd.f32 %v1566_v52, %v1565_v48 }
 0x153   : > { %v1022_v56 = vadd.f32 %v984_v53, %v364_v50  ;;  %v987_v57 = vadd.f32 %v1567_v54, %v1503_v51  ;;  %v1051_v50 = vld [vmem:[#allocation2 + $0x8] sm:$0xff] (!%p1372_p11)  ;;  %v1373_v51 = vld [vmem:[%s2000_s2] ss:$0 sm:$0xff] (!%p1372_p11)  ;;  %v1052_v54 = vld [vmem:[#allocation2 + $0x10] sm:$0xff] (!%p1372_p11) }
 0x154   : > { %v1504_v58 = vpop.f32.mrb[20].mxu0  ;;  %v1073_v52 = vadd.f32 (!%p1372_p11), %v1373_v51, %v1050_v49  ;;  %v1074_v53 = vadd.f32 (!%p1372_p11), %v1373_v51, %v1051_v50 }
 0x155   : > { %1038 = vst [vmem:[#allocation2 + $0x40] sm:$0xff] %v1022_v56  ;;  %v1023_v59 = vadd.f32 %v987_v57, %v365_v55  ;;  %v1568_v60 = vpop.f32.mrb[20].mxu1  ;;  %v1505_v61 = vpop.f32.mrb[21].mxu0  ;;  %v1053_v55 = vld [vmem:[#allocation2 + $0x18] sm:$0xff] (!%p1372_p11)  ;;  %v1054_v56 = vld [vmem:[#allocation2 + $0x20] sm:$0xff] (!%p1372_p11)  ;;  %v1075_v57 = vadd.f32 (!%p1372_p11), %v1373_v51, %v1052_v54 }
 0x156   : > { %v1506_v62 = vadd.f32 %v1505_v61, %v1504_v58  ;;  %v1569_v63 = vpop.f32.mrb[21].mxu1  ;;  %v1507_v0 = vpop.f32.mrb[22].mxu0  ;;  %v1076_v58 = vadd.f32 (!%p1372_p11), %v1373_v51, %v1053_v55  ;;  %v1056_v61 = vld [vmem:[#allocation2 + $0x30] sm:$0xff] (!%p1372_p11) }
 0x157   : > { %1039 = vst [vmem:[#allocation2 + $0x48] sm:$0xff] %v1023_v59  ;;  %v1570_v1 = vadd.f32 %v1569_v63, %v1568_v60  ;;  %v1571_v2 = vpop.f32.mrb[22].mxu1  ;;  %v1508_v3 = vpop.f32.mrb[23].mxu0  ;;  %v1055_v59 = vld [vmem:[#allocation2 + $0x28] sm:$0xff] (!%p1372_p11)  ;;  %v1077_v60 = vadd.f32 (!%p1372_p11), %v1373_v51, %v1054_v56  ;;  %v1089_v63 = vmax.f32 (!%p1372_p11), %v1073_v52, 0.0 }
 0x158   : > { %v1509_v5 = vadd.f32 %v1508_v3, %v1507_v0  ;;  %v1572_v6 = vpop.f32.mrb[23].mxu1  ;;  %v1090_v0 = vmax.f32 (!%p1372_p11), %v1074_v53, 0.0 }
 0x159   : > { %v992_v7 = vadd.f32 %v1570_v1, %v1506_v62  ;;  %v1573_v8 = vadd.f32 %v1572_v6, %v1571_v2  ;;  %v1057_v62 = vld [vmem:[#allocation2 + $0x38] sm:$0xff] (!%p1372_p11)  ;;  %v1078_v1 = vadd.f32 (!%p1372_p11), %v1373_v51, %v1055_v59  ;;  %v1079_v2 = vadd.f32 (!%p1372_p11), %v1373_v51, %v1056_v61 }
 0x15a   : > { %v1091_v6 = vmax.f32 (!%p1372_p11), %v1075_v57, 0.0 }
 0x15b   : > { %v1024_v10 = vadd.f32 %v992_v7, %v366_v4  ;;  %v995_v11 = vadd.f32 %v1573_v8, %v1509_v5  ;;  %v1092_v7 = vmax.f32 (!%p1372_p11), %v1076_v58, 0.0  ;;  %v1093_v8 = vmax.f32 (!%p1372_p11), %v1077_v60, 0.0 }
 0x15c   : > { %v1510_v12 = vpop.f32.mrb[24].mxu0  ;;  %v1058_v3 = vld [vmem:[#allocation2 + $0x40] sm:$0xff] (!%p1372_p11) }
 0x15d   : > { %1040 = vst [vmem:[#allocation2 + $0x50] sm:$0xff] %v1024_v10  ;;  %v1025_v13 = vadd.f32 %v995_v11, %v367_v9  ;;  %v1574_v14 = vpop.f32.mrb[24].mxu1  ;;  %v1511_v15 = vpop.f32.mrb[25].mxu0  ;;  %v1080_v9 = vadd.f32 (!%p1372_p11), %v1373_v51, %v1057_v62 }
 0x15e   : > { %v1512_v16 = vadd.f32 %v1511_v15, %v1510_v12  ;;  %v1575_v17 = vpop.f32.mrb[25].mxu1  ;;  %v1513_v18 = vpop.f32.mrb[26].mxu0  ;;  %v1059_v4 = vld [vmem:[#allocation2 + $0x48] sm:$0xff] (!%p1372_p11)  ;;  %v1414_v12 = vpack.c.bf16 (!%p1372_p11), %v1090_v0, %v1089_v63  ;;  %v1081_v15 = vadd.f32 (!%p1372_p11), %v1373_v51, %v1058_v3 }
 0x15f   : > { %1041 = vst [vmem:[#allocation2 + $0x58] sm:$0xff] %v1025_v13  ;;  %v1576_v19 = vadd.f32 %v1575_v17, %v1574_v14  ;;  %v1577_v20 = vpop.f32.mrb[26].mxu1  ;;  %v1514_v21 = vpop.f32.mrb[27].mxu0  ;;  %v1094_v13 = vmax.f32 (!%p1372_p11), %v1078_v1, 0.0  ;;  %v1095_v14 = vmax.f32 (!%p1372_p11), %v1079_v2, 0.0  ;;  %v1419_v17 = vpack.c.bf16 (!%p1372_p11), %v1092_v7, %v1091_v6 }
 0x160   : > { %v1515_v23 = vadd.f32 %v1514_v21, %v1513_v18  ;;  %v1578_v24 = vpop.f32.mrb[27].mxu1  ;;  %v1096_v18 = vmax.f32 (!%p1372_p11), %v1080_v9, 0.0  ;;  %1415 = vst [vmem:[%s2001_s3] sm:$0xff] (!%p1372_p11), %v1414_v12  }
 0x161   : > { %v1000_v25 = vadd.f32 %v1576_v19, %v1512_v16  ;;  %v1579_v26 = vadd.f32 %v1578_v24, %v1577_v20  ;;  %v1082_v19 = vadd.f32 (!%p1372_p11), %v1373_v51, %v1059_v4  ;;  %v1097_v24 = vmax.f32 (!%p1372_p11), %v1081_v15, 0.0  ;;  %1451 = vst [vmem:[%s2001_s3 + $0x8] sm:$0xff] (!%p1372_p11), %v1419_v17  }
 0x163   : > { %v1026_v28 = vadd.f32 %v1000_v25, %v368_v22  ;;  %v1003_v29 = vadd.f32 %v1579_v26, %v1515_v23  ;;  %v1424_v23 = vpack.c.bf16 (!%p1372_p11), %v1094_v13, %v1093_v8 }
 0x164   : > { %v1516_v30 = vpop.f32.mrb[28].mxu0  ;;  %v1060_v5 = vld [vmem:[#allocation2 + $0x50] sm:$0xff] (!%p1372_p11) }
 0x165   : > { %1042 = vst [vmem:[#allocation2 + $0x60] sm:$0xff] %v1026_v28  ;;  %v1027_v31 = vadd.f32 %v1003_v29, %v369_v27  ;;  %v1580_v32 = vpop.f32.mrb[28].mxu1  ;;  %v1517_v33 = vpop.f32.mrb[29].mxu0  ;;  %v1083_v20 = vadd.f32 (!%p1372_p11), %v1373_v51, %v1060_v5  ;;  %v1429_v27 = vpack.c.bf16 (!%p1372_p11), %v1096_v18, %v1095_v14  ;;  %v1098_v28 = vmax.f32 (!%p1372_p11), %v1082_v19, 0.0  ;;  %1452 = vst [vmem:[%s2001_s3 + $0x10] sm:$0xff] (!%p1372_p11), %v1424_v23  }
 0x166   : > { %v1518_v34 = vadd.f32 %v1517_v33, %v1516_v30  ;;  %v1581_v35 = vpop.f32.mrb[29].mxu1  ;;  %v1519_v36 = vpop.f32.mrb[30].mxu0  ;;  %v1061_v10 = vld [vmem:[#allocation2 + $0x58] sm:$0xff] (!%p1372_p11) }
 0x167   : > { %1043 = vst [vmem:[#allocation2 + $0x68] sm:$0xff] %v1027_v31  ;;  %v1582_v37 = vadd.f32 %v1581_v35, %v1580_v32  ;;  %v1583_v38 = vpop.f32.mrb[30].mxu1  ;;  %v1520_v39 = vpop.f32.mrb[31].mxu0  ;;  %v1084_v25 = vadd.f32 (!%p1372_p11), %v1373_v51, %v1061_v10  ;;  %v1099_v29 = vmax.f32 (!%p1372_p11), %v1083_v20, 0.0  ;;  %1453 = vst [vmem:[%s2001_s3 + $0x18] sm:$0xff] (!%p1372_p11), %v1429_v27   ;;  %v1434_v35 = vpack.c.bf16 (!%p1372_p11), %v1098_v28, %v1097_v24 }
 0x168   : > { %v1521_v41 = vadd.f32 %v1520_v39, %v1519_v36  ;;  %v1584_v42 = vpop.f32.mrb[31].mxu1 }
 0x169   : > { %v1008_v43 = vadd.f32 %v1582_v37, %v1518_v34  ;;  %v1585_v44 = vadd.f32 %v1584_v42, %v1583_v38  ;;  %1049 = sbr.rel (%p1372_p11) target bundleno = 382 (0x17e), region = 63  ;;  %v1100_v31 = vmax.f32 (!%p1372_p11), %v1084_v25, 0.0  ;;  %1454 = vst [vmem:[%s2001_s3 + $0x20] sm:$0xff] (!%p1372_p11), %v1434_v35  }
 0x16b   : > { %v1028_v46 = vadd.f32 %v1008_v43, %v370_v40  ;;  %v1011_v47 = vadd.f32 %v1585_v44, %v1521_v41  ;;  %v1439_v37 = vpack.c.bf16 (!%p1372_p11), %v1100_v31, %v1099_v29 }
 0x16c   : > { %v1062_v11 = vld [vmem:[#allocation2 + $0x60] sm:$0xff] (!%p1372_p11) }
 0x16d   : > { %1044 = vst [vmem:[#allocation2 + $0x70] sm:$0xff] %v1028_v46  ;;  %v1029_v48 = vadd.f32 %v1011_v47, %v371_v45  ;;  %v1085_v26 = vadd.f32 (!%p1372_p11), %v1373_v51, %v1062_v11  ;;  %1455 = vst [vmem:[%s2001_s3 + $0x28] sm:$0xff] (!%p1372_p11), %v1439_v37  }
 0x16e   : > { %v1063_v16 = vld [vmem:[#allocation2 + $0x68] sm:$0xff] (!%p1372_p11) }
 0x16f   : > { %1045 = vst [vmem:[#allocation2 + $0x78] sm:$0xff] %v1029_v48  ;;  %v1086_v30 = vadd.f32 (!%p1372_p11), %v1373_v51, %v1063_v16  ;;  %v1101_v32 = vmax.f32 (!%p1372_p11), %v1085_v26, 0.0 }
 0x171   : > { %v1102_v36 = vmax.f32 %v1086_v30, 0.0 }
 0x173   : > { %v1444_v40 = vpack.c.bf16 %v1102_v36, %v1101_v32 }
 0x174   : > { %v1064_v21 = vld [vmem:[#allocation2 + $0x70] sm:$0xff] }
 0x175   : > { %v1087_v33 = vadd.f32 %v1373_v51, %v1064_v21  ;;  %1456 = vst [vmem:[%s2001_s3 + $0x30] sm:$0xff] %v1444_v40  }
 0x176   : > { %v1065_v22 = vld [vmem:[#allocation2 + $0x78] sm:$0xff] }
 0x177   : > { %v1088_v34 = vadd.f32 %v1373_v51, %v1065_v22  ;;  %v1103_v38 = vmax.f32 %v1087_v33, 0.0 }
 0x179   : > { %v1104_v39 = vmax.f32 %v1088_v34, 0.0 }
 0x17b   : > { %v1449_v41 = vpack.c.bf16 %v1104_v39, %v1103_v38 }
 0x17d   : > { %1457 = vst [vmem:[%s2001_s3 + $0x38] sm:$0xff] %v1449_v41  }
 0x17e PF: > { %s13_s16 = sadd.s32 1, %s1745_s16   ;;  %s2002_s12 = smov %s1733_s13 }
 0x17f   : > { %p10_p12 = scmp.ge.s32.totalorder %s13_s16, 4   ;;  %s2003_s13 = smov %s1803_s20 }
 0x180   : > { %s2004_s14 = smov %s1741_s15  ;;  %s2005_s15 = smov %s2007_s17 }
 0x181   :  { %12 = sbr.rel (!%p10_p12) target bundleno = 3 (0x3), region = 104 }

// kernel: _lambda_.17
= control target key start
LH: loop header
LB: loop body
LE: loop exit
PB: predicated region body
PF: predicated region fallthrough
CT: control target
= control target key end

     0   :  { %s1939_s15 = smov 0   ;;  %s1941_s16 = smov 0   ;;  %s2211_s0 = inlined_call_operand.vmem [shape: bf16[128,1024], index: 0, kind: input, shape index: {}]   ;;  %s2212_s1 = inlined_call_operand.vmem [shape: bf16[1024,128], index: 1, kind: input, shape index: {}]   ;;  %s2213_s2 = inlined_call_operand.vmem [shape: f32[1,128], index: 2, kind: input, shape index: {}]   ;;  %s2214_s3 = inlined_call_operand.vmem [shape: bf16[128,128], index: 3, kind: input, shape index: {}]   ;;  %s2215_s4 = inlined_call_operand.vmem [shape: bf16[128,128], index: 4, kind: output, shape index: {}]  }
   0x1   :  { %s1943_s17 = smov 0   ;;  %s1945_s18 = smov 0  }
   0x2   :  { %s1947_s19 = smov 0  }
   0x3 LB: > { %s26_s20 = sadd.s32 1, %s1907_s18  ;;  %p49_p1 = scmp.ne.s32.totalorder %s1899_s16, %s1895_s15  ;;  %s1911_s19 = sphi %s1947_s19, %s14_s19   ;;  %s1907_s18 = sphi %s1945_s18, %s2219_s18   ;;  %s1903_s17 = sphi %s1943_s17, %s2218_s17   ;;  %s1899_s16 = sphi %s1941_s16, %s2217_s16   ;;  %s1895_s15 = sphi %s1939_s15, %s2216_s15  }
   0x4   : > { %p27_p0 = scmp.ge.s32.totalorder %s26_s20, 2  ;;  %p50_p2 = scmp.eq.s32.totalorder %s1911_s19, 0 }
   0x5   : > { %s42_s22 = sadd.s32 1, %s1899_s16  ;;  %p1426_p5 = scmp.ge.s32.totalorder %s1911_s19, 2 }
   0x6   : > { %s2221_s20 = smov (%p27_p0, %s26_s20), 0  ;;  %p51_p3 = por %p50_p2, %p49_p1 }
   0x7   : > { %s38_s21 = ssub.s32 %s1907_s18, %s2221_s20  ;;  %203 = sbr.rel (%p1426_p5) target bundleno = 34 (0x22), region = 24 }
   0x8   : > { %p40_p4 = scmp.eq.s32.totalorder %s38_s21, 0 }
   0xa   : > { %s1974_s23 = scalar_select %p40_p4, %s1899_s16, %s42_s22  }
   0xe   : > { %206 = sbr.rel (!%p51_p3) target bundleno = 34 (0x22), region = 28  ;;  %s208_s24 = sand.u32 (%p51_p3), 1, %s1899_s16  }
   0xf   : > { %s1521_s25 = sshll.u32 (%p51_p3), %s1907_s18, 4  ;;  %s1427_s26 = sshll.u32 (%p51_p3), %s208_s24, 8 }
  0x10   : > { %s1982_s29 = scalar_lea.vmem (%p51_p3), %s2211_s0, %s1521_s25  ;;  %s1987_s30 = scalar_lea.vmem (%p51_p3), [#allocation3], %s1427_s26 }
  0x11   : > { %v229_v0 = vld [vmem:[%s1982_s29] sm:$0xff] (%p51_p3)  ;;  %v231_v1 = vld [vmem:[%s1982_s29 + $0x8] sm:$0xff] (%p51_p3) }
  0x12   : > { %v233_v2 = vld [vmem:[%s1982_s29 + $0x20] sm:$0xff] (%p51_p3)  ;;  %230 = vst [vmem:[%s1987_s30] sm:$0xff] (%p51_p3), %v229_v0  ;;  %232 = vst [vmem:[%s1987_s30 + $0x8] sm:$0xff] (%p51_p3), %v231_v1  ;;  %v235_v3 = vld [vmem:[%s1982_s29 + $0x28] sm:$0xff] (%p51_p3) }
  0x13   : > { %234 = vst [vmem:[%s1987_s30 + $0x10] sm:$0xff] (%p51_p3), %v233_v2  ;;  %v237_v4 = vld [vmem:[%s1982_s29 + $0x40] sm:$0xff] (%p51_p3)  ;;  %v239_v5 = vld [vmem:[%s1982_s29 + $0x48] sm:$0xff] (%p51_p3)  ;;  %236 = vst [vmem:[%s1987_s30 + $0x18] sm:$0xff] (%p51_p3), %v235_v3 }
  0x14   : > { %238 = vst [vmem:[%s1987_s30 + $0x20] sm:$0xff] (%p51_p3), %v237_v4  ;;  %240 = vst [vmem:[%s1987_s30 + $0x28] sm:$0xff] (%p51_p3), %v239_v5  ;;  %v241_v6 = vld [vmem:[%s1982_s29 + $0x60] sm:$0xff] (%p51_p3)  ;;  %v243_v7 = vld [vmem:[%s1982_s29 + $0x68] sm:$0xff] (%p51_p3) }
  0x15   : > { %v245_v8 = vld [vmem:[%s1982_s29 + $0x80] sm:$0xff]  ;;  %242 = vst [vmem:[%s1987_s30 + $0x30] sm:$0xff] %v241_v6  ;;  %244 = vst [vmem:[%s1987_s30 + $0x38] sm:$0xff] %v243_v7  ;;  %v247_v9 = vld [vmem:[%s1982_s29 + $0x88] sm:$0xff] }
  0x16   : > { %246 = vst [vmem:[%s1987_s30 + $0x40] sm:$0xff] %v245_v8  ;;  %v249_v10 = vld [vmem:[%s1982_s29 + $0xa0] sm:$0xff]  ;;  %v251_v11 = vld [vmem:[%s1982_s29 + $0xa8] sm:$0xff]  ;;  %248 = vst [vmem:[%s1987_s30 + $0x48] sm:$0xff] %v247_v9 }
  0x17   : > { %250 = vst [vmem:[%s1987_s30 + $0x50] sm:$0xff] %v249_v10  ;;  %252 = vst [vmem:[%s1987_s30 + $0x58] sm:$0xff] %v251_v11  ;;  %v253_v12 = vld [vmem:[%s1982_s29 + $0xc0] sm:$0xff]  ;;  %v255_v13 = vld [vmem:[%s1982_s29 + $0xc8] sm:$0xff] }
  0x18   : > { %v257_v14 = vld [vmem:[%s1982_s29 + $0xe0] sm:$0xff]  ;;  %254 = vst [vmem:[%s1987_s30 + $0x60] sm:$0xff] %v253_v12  ;;  %256 = vst [vmem:[%s1987_s30 + $0x68] sm:$0xff] %v255_v13  ;;  %v259_v15 = vld [vmem:[%s1982_s29 + $0xe8] sm:$0xff] }
  0x19   : > { %258 = vst [vmem:[%s1987_s30 + $0x70] sm:$0xff] %v257_v14  ;;  %v261_v16 = vld [vmem:[%s1982_s29 + $0x100] sm:$0xff]  ;;  %v263_v17 = vld [vmem:[%s1982_s29 + $0x108] sm:$0xff]  ;;  %260 = vst [vmem:[%s1987_s30 + $0x78] sm:$0xff] %v259_v15 }
  0x1a   : > { %262 = vst [vmem:[%s1987_s30 + $0x80] sm:$0xff] %v261_v16  ;;  %264 = vst [vmem:[%s1987_s30 + $0x88] sm:$0xff] %v263_v17  ;;  %v265_v18 = vld [vmem:[%s1982_s29 + $0x120] sm:$0xff]  ;;  %v267_v19 = vld [vmem:[%s1982_s29 + $0x128] sm:$0xff] }
  0x1b   : > { %v269_v20 = vld [vmem:[%s1982_s29 + $0x140] sm:$0xff]  ;;  %266 = vst [vmem:[%s1987_s30 + $0x90] sm:$0xff] %v265_v18  ;;  %268 = vst [vmem:[%s1987_s30 + $0x98] sm:$0xff] %v267_v19  ;;  %v271_v21 = vld [vmem:[%s1982_s29 + $0x148] sm:$0xff] }
  0x1c   : > { %270 = vst [vmem:[%s1987_s30 + $0xa0] sm:$0xff] %v269_v20  ;;  %v273_v22 = vld [vmem:[%s1982_s29 + $0x160] sm:$0xff]  ;;  %v275_v23 = vld [vmem:[%s1982_s29 + $0x168] sm:$0xff]  ;;  %272 = vst [vmem:[%s1987_s30 + $0xa8] sm:$0xff] %v271_v21 }
  0x1d   : > { %274 = vst [vmem:[%s1987_s30 + $0xb0] sm:$0xff] %v273_v22  ;;  %276 = vst [vmem:[%s1987_s30 + $0xb8] sm:$0xff] %v275_v23  ;;  %v277_v24 = vld [vmem:[%s1982_s29 + $0x180] sm:$0xff]  ;;  %v279_v25 = vld [vmem:[%s1982_s29 + $0x188] sm:$0xff] }
  0x1e   : > { %v281_v26 = vld [vmem:[%s1982_s29 + $0x1a0] sm:$0xff]  ;;  %278 = vst [vmem:[%s1987_s30 + $0xc0] sm:$0xff] %v277_v24  ;;  %280 = vst [vmem:[%s1987_s30 + $0xc8] sm:$0xff] %v279_v25  ;;  %v283_v27 = vld [vmem:[%s1982_s29 + $0x1a8] sm:$0xff] }
  0x1f   : > { %282 = vst [vmem:[%s1987_s30 + $0xd0] sm:$0xff] %v281_v26  ;;  %v285_v28 = vld [vmem:[%s1982_s29 + $0x1c0] sm:$0xff]  ;;  %v287_v29 = vld [vmem:[%s1982_s29 + $0x1c8] sm:$0xff]  ;;  %284 = vst [vmem:[%s1987_s30 + $0xd8] sm:$0xff] %v283_v27 }
  0x20   : > { %286 = vst [vmem:[%s1987_s30 + $0xe0] sm:$0xff] %v285_v28  ;;  %288 = vst [vmem:[%s1987_s30 + $0xe8] sm:$0xff] %v287_v29  ;;  %v289_v30 = vld [vmem:[%s1982_s29 + $0x1e0] sm:$0xff]  ;;  %v291_v31 = vld [vmem:[%s1982_s29 + $0x1e8] sm:$0xff] }
  0x21   : > { %290 = vst [vmem:[%s1987_s30 + $0xf0] sm:$0xff] %v289_v30  ;;  %292 = vst [vmem:[%s1987_s30 + $0xf8] sm:$0xff] %v291_v31 }
  0x22 PF: > { %p1430_p6 = scmp.ge.s32.totalorder %s1911_s19, 1  ;;  %p309_p7 = scmp.lt.s32.totalorder %s1911_s19, 3 }
  0x24   : > { %p310_p8 = pnand %p1430_p6, %p309_p7 }
  0x25   : > { %s316_s5 = sand.u32 (!%p310_p8), 1, %s1895_s15   ;;  %s1432_s6 = sshll.u32 (!%p310_p8), %s1903_s17, 6 }
  0x26   : > { %313 = sbr.rel (%p310_p8) target bundleno = 384 (0x180), region = 55  ;;  %s1431_s7 = sshll.u32 (!%p310_p8), %s316_s5, 8 }
  0x27   : > { %p366_p9 = scmp.lt.s32.totalorder (!%p310_p8), %s1432_s6, 127  ;;  %s2059_s12 = scalar_lea.vmem (!%p310_p8), [#allocation3], %s1431_s7 }
  0x28   : > { %p1434_p10 = scmp.ne.s32.totalorder (!%p310_p8), %s1903_s17, 0 }
  0x2d   : > { %s2223_s6 = smov (!%p366_p9, %s1432_s6), 127  ;;  %399 = sbr.rel (%p1434_p10) target bundleno = 55 (0x37), region = 63 }
  0x2e   : > { %s1433_s8 = sshll.u32 %s2223_s6, 2  ;;  %v1913_v32 = vmov (!%p1434_p10), 0.0  }
  0x2f   : > { %s2057_s11 = scalar_lea.vmem %s2212_s1, %s1433_s8  ;;  %400 = vst [vmem:[#allocation2] sm:$0xff] (!%p1434_p10), %v1913_v32  ;;  %401 = vst [vmem:[#allocation2 + $0x8] sm:$0xff] (!%p1434_p10), %v1913_v32 }
  0x30   : > { %402 = vst [vmem:[#allocation2 + $0x10] sm:$0xff] (!%p1434_p10), %v1913_v32  ;;  %403 = vst [vmem:[#allocation2 + $0x18] sm:$0xff] (!%p1434_p10), %v1913_v32 }
  0x31   : > { %404 = vst [vmem:[#allocation2 + $0x20] sm:$0xff] (!%p1434_p10), %v1913_v32  ;;  %405 = vst [vmem:[#allocation2 + $0x28] sm:$0xff] (!%p1434_p10), %v1913_v32 }
  0x32   : > { %406 = vst [vmem:[#allocation2 + $0x30] sm:$0xff] (!%p1434_p10), %v1913_v32  ;;  %407 = vst [vmem:[#allocation2 + $0x38] sm:$0xff] (!%p1434_p10), %v1913_v32 }
  0x33   : > { %408 = vst [vmem:[#allocation2 + $0x40] sm:$0xff] (!%p1434_p10), %v1913_v32  ;;  %409 = vst [vmem:[#allocation2 + $0x48] sm:$0xff] (!%p1434_p10), %v1913_v32 }
  0x34   : > { %410 = vst [vmem:[#allocation2 + $0x50] sm:$0xff] %v1913_v32  ;;  %411 = vst [vmem:[#allocation2 + $0x58] sm:$0xff] %v1913_v32 }
  0x35   : > { %412 = vst [vmem:[#allocation2 + $0x60] sm:$0xff] %v1913_v32  ;;  %413 = vst [vmem:[#allocation2 + $0x68] sm:$0xff] %v1913_v32 }
  0x36   : > { %414 = vst [vmem:[#allocation2 + $0x70] sm:$0xff] %v1913_v32  ;;  %415 = vst [vmem:[#allocation2 + $0x78] sm:$0xff] %v1913_v32 }
  0x37 PF: > { %v1793_v33 = vld [vmem:[%s2057_s11 + $0x40] sm:$0xff]   ;;  %v1797_v37 = vld [vmem:[%s2057_s11 + $0x48] sm:$0xff]   ;;  %v1801_v41 = vld [vmem:[%s2057_s11 + $0x50] sm:$0xff]   ;;  %p1499_p11 = scmp.ne.s32.totalorder %s1903_s17, 1 }
  0x38   : > { %v1794_v34 = vld [vmem:[%s2057_s11 + $0xc0] sm:$0xff]   ;;  %1624 = vmatprep.subr.bf16.mxu0 %v1793_v33  ;;  %v1798_v38 = vld [vmem:[%s2057_s11 + $0xc8] sm:$0xff]   ;;  %v1802_v42 = vld [vmem:[%s2057_s11 + $0xd0] sm:$0xff]  }
  0x39   : > { %v1795_v35 = vld [vmem:[%s2057_s11] sm:$0xff]   ;;  %1688 = vmatprep.subr.bf16.mxu1 %v1794_v34  ;;  %v1799_v39 = vld [vmem:[%s2057_s11 + $0x8] sm:$0xff]   ;;  %v1803_v43 = vld [vmem:[%s2057_s11 + $0x10] sm:$0xff]  }
  0x3a   : > { %v1796_v36 = vld [vmem:[%s2057_s11 + $0x80] sm:$0xff]   ;;  %1625 = vmatpush3.bf16.msra.mxu0 %v1795_v35  ;;  %v1800_v40 = vld [vmem:[%s2057_s11 + $0x88] sm:$0xff]   ;;  %v1804_v44 = vld [vmem:[%s2057_s11 + $0x90] sm:$0xff]  }
  0x3b   : > { %1689 = vmatpush3.bf16.msra.mxu1 %v1796_v36  ;;  %1626 = vmatprep.subr.bf16.mxu0 %v1797_v37  ;;  %v1805_v45 = vld [vmem:[%s2057_s11 + $0x58] sm:$0xff]   ;;  %v1809_v49 = vld [vmem:[%s2057_s11 + $0x60] sm:$0xff]   ;;  %v1813_v53 = vld [vmem:[%s2057_s11 + $0x68] sm:$0xff]  }
  0x3c   : > { %1690 = vmatprep.subr.bf16.mxu1 %v1798_v38  ;;  %v1806_v46 = vld [vmem:[%s2057_s11 + $0xd8] sm:$0xff]   ;;  %v1810_v50 = vld [vmem:[%s2057_s11 + $0xe0] sm:$0xff]   ;;  %v1814_v54 = vld [vmem:[%s2057_s11 + $0xe8] sm:$0xff]  }
  0x3d   : > { %v1807_v47 = vld [vmem:[%s2057_s11 + $0x18] sm:$0xff]   ;;  %v1811_v51 = vld [vmem:[%s2057_s11 + $0x20] sm:$0xff]   ;;  %v1815_v55 = vld [vmem:[%s2057_s11 + $0x28] sm:$0xff]  }
  0x3e   : > { %1627 = vmatpush3.bf16.msra.mxu0 %v1799_v39  ;;  %v1808_v48 = vld [vmem:[%s2057_s11 + $0x98] sm:$0xff]   ;;  %v1812_v52 = vld [vmem:[%s2057_s11 + $0xa0] sm:$0xff]   ;;  %v1816_v56 = vld [vmem:[%s2057_s11 + $0xa8] sm:$0xff]  }
  0x3f   : > { %1691 = vmatpush3.bf16.msra.mxu1 %v1800_v40  ;;  %1628 = vmatprep.subr.bf16.mxu0 %v1801_v41  ;;  %v1817_v57 = vld [vmem:[%s2057_s11 + $0x70] sm:$0xff]   ;;  %v1821_v61 = vld [vmem:[%s2057_s11 + $0x78] sm:$0xff]  }
  0x40   : > { %1692 = vmatprep.subr.bf16.mxu1 %v1802_v42  ;;  %v1818_v58 = vld [vmem:[%s2057_s11 + $0xf0] sm:$0xff]   ;;  %v1822_v62 = vld [vmem:[%s2057_s11 + $0xf8] sm:$0xff]   ;;  %v416_v42 = vld [vmem:[#allocation2] sm:$0xff] }
  0x41   : > { %v1819_v59 = vld [vmem:[%s2057_s11 + $0x30] sm:$0xff]   ;;  %v1823_v63 = vld [vmem:[%s2057_s11 + $0x38] sm:$0xff]  }
  0x42   : > { %1629 = vmatpush3.bf16.msra.mxu0 %v1803_v43  ;;  %v1820_v60 = vld [vmem:[%s2057_s11 + $0xb0] sm:$0xff]   ;;  %v1824_v0 = vld [vmem:[%s2057_s11 + $0xb8] sm:$0xff]  }
  0x43   : > { %1693 = vmatpush3.bf16.msra.mxu1 %v1804_v44  ;;  %1630 = vmatprep.subr.bf16.mxu0 %v1805_v45  ;;  %v1825_v1 = vld [vmem:[%s2059_s12] ss:$16 sps:$4 sm:$0xff]   ;;  %v1827_v2 = vld [vmem:[%s2059_s12 + $0x4] ss:$16 sps:$4 sm:$0xff]   ;;  %v1828_v3 = vld [vmem:[%s2059_s12 + $0x8] ss:$16 sps:$4 sm:$0xff]  }
  0x44   : > { %1694 = vmatprep.subr.bf16.mxu1 %v1806_v46  ;;  %v1830_v4 = vld [vmem:[%s2059_s12 + $0xc] ss:$16 sps:$4 sm:$0xff]   ;;  %912 = vmatprep.mubr.bf16.mxu0 %v1827_v2  ;;  %v1831_v5 = vld [vmem:[%s2059_s12 + $0x24] ss:$16 sps:$4 sm:$0xff]   ;;  %v1835_v7 = vld [vmem:[%s2059_s12 + $0x20] ss:$16 sps:$4 sm:$0xff]  }
  0x45   : > { %1009 = vmatprep.mubr.bf16.mxu1 %v1830_v4  ;;  %v1833_v6 = vld [vmem:[%s2059_s12 + $0x2c] ss:$16 sps:$4 sm:$0xff]   ;;  %v1836_v8 = vld [vmem:[%s2059_s12 + $0x28] ss:$16 sps:$4 sm:$0xff]   ;;  %v1837_v9 = vld [vmem:[%s2059_s12 + $0x44] ss:$16 sps:$4 sm:$0xff]  }
  0x46   : > { %1631 = vmatpush3.bf16.msra.mxu0 %v1807_v47  ;;  %v1839_v10 = vld [vmem:[%s2059_s12 + $0x4c] ss:$16 sps:$4 sm:$0xff]   ;;  %v1841_v11 = vld [vmem:[%s2059_s12 + $0x40] ss:$16 sps:$4 sm:$0xff]   ;;  %v1842_v12 = vld [vmem:[%s2059_s12 + $0x48] ss:$16 sps:$4 sm:$0xff]  }
  0x47   : > { %1695 = vmatpush3.bf16.msra.mxu1 %v1808_v48  ;;  %1632 = vmatprep.subr.bf16.mxu0 %v1809_v49  ;;  %v1843_v13 = vld [vmem:[%s2059_s12 + $0x64] ss:$16 sps:$4 sm:$0xff]   ;;  %v1845_v14 = vld [vmem:[%s2059_s12 + $0x6c] ss:$16 sps:$4 sm:$0xff]   ;;  %v1847_v15 = vld [vmem:[%s2059_s12 + $0x60] ss:$16 sps:$4 sm:$0xff]  }
  0x48   : > { %1696 = vmatprep.subr.bf16.mxu1 %v1810_v50  ;;  %v1848_v16 = vld [vmem:[%s2059_s12 + $0x68] ss:$16 sps:$4 sm:$0xff]   ;;  %v1849_v17 = vld [vmem:[%s2059_s12 + $0x84] ss:$16 sps:$4 sm:$0xff]   ;;  %v1851_v18 = vld [vmem:[%s2059_s12 + $0x8c] ss:$16 sps:$4 sm:$0xff]  }
  0x49   : > { %v1853_v19 = vld [vmem:[%s2059_s12 + $0x80] ss:$16 sps:$4 sm:$0xff]   ;;  %v1854_v20 = vld [vmem:[%s2059_s12 + $0x88] ss:$16 sps:$4 sm:$0xff]   ;;  %v1855_v21 = vld [vmem:[%s2059_s12 + $0xa4] ss:$16 sps:$4 sm:$0xff]  }
  0x4a   : > { %1633 = vmatpush3.bf16.msra.mxu0 %v1811_v51  ;;  %v1857_v22 = vld [vmem:[%s2059_s12 + $0xac] ss:$16 sps:$4 sm:$0xff]   ;;  %v1859_v23 = vld [vmem:[%s2059_s12 + $0xa0] ss:$16 sps:$4 sm:$0xff]   ;;  %v1860_v24 = vld [vmem:[%s2059_s12 + $0xa8] ss:$16 sps:$4 sm:$0xff]  }
  0x4b   : > { %1697 = vmatpush3.bf16.msra.mxu1 %v1812_v52  ;;  %1634 = vmatprep.subr.bf16.mxu0 %v1813_v53  ;;  %v1861_v25 = vld [vmem:[%s2059_s12 + $0xc4] ss:$16 sps:$4 sm:$0xff]   ;;  %v1863_v26 = vld [vmem:[%s2059_s12 + $0xcc] ss:$16 sps:$4 sm:$0xff]   ;;  %v1865_v27 = vld [vmem:[%s2059_s12 + $0xc0] ss:$16 sps:$4 sm:$0xff]  }
  0x4c   : > { %1698 = vmatprep.subr.bf16.mxu1 %v1814_v54  ;;  %v1866_v28 = vld [vmem:[%s2059_s12 + $0xc8] ss:$16 sps:$4 sm:$0xff]   ;;  %v1867_v29 = vld [vmem:[%s2059_s12 + $0xe4] ss:$16 sps:$4 sm:$0xff]   ;;  %v1869_v30 = vld [vmem:[%s2059_s12 + $0xec] ss:$16 sps:$4 sm:$0xff]  }
  0x4d   : > { %v1871_v31 = vld [vmem:[%s2059_s12 + $0xe0] ss:$16 sps:$4 sm:$0xff]   ;;  %v1872_v32 = vld [vmem:[%s2059_s12 + $0xe8] ss:$16 sps:$4 sm:$0xff]  }
  0x4e   : > { %1635 = vmatpush3.bf16.msra.mxu0 %v1815_v55  ;;  %v417_v47 = vld [vmem:[#allocation2 + $0x8] sm:$0xff] }
  0x4f   : > { %1699 = vmatpush3.bf16.msra.mxu1 %v1816_v56  ;;  %1636 = vmatprep.subr.bf16.mxu0 %v1817_v57 }
  0x50   : > { %1700 = vmatprep.subr.bf16.mxu1 %v1818_v58 }
  0x52   : > { %1637 = vmatpush3.bf16.msra.mxu0 %v1819_v59 }
  0x53   : > { %1701 = vmatpush3.bf16.msra.mxu1 %v1820_v60  ;;  %1638 = vmatprep.subr.bf16.mxu0 %v1821_v61  ;;  %v418_v60 = vld [vmem:[#allocation2 + $0x10] sm:$0xff] }
  0x54   : > { %1702 = vmatprep.subr.bf16.mxu1 %v1822_v62 }
  0x56   : > { %1639 = vmatpush3.bf16.msra.mxu0 %v1823_v63 }
  0x57   : > { %1703 = vmatpush3.bf16.msra.mxu1 %v1824_v0 }
  0x59   : > { %913 = vmatmul.mubr.bf16.vlgmr.msra.gmra.mrb[0].mxu0 %v1825_v1  ;;  %v419_v1 = vld [vmem:[#allocation2 + $0x18] sm:$0xff] }
  0x5a   : > { %1010 = vmatmul.mubr.bf16.vlgmr.msra.gmra.mrb[0].mxu1 %v1828_v3  ;;  %920 = vmatprep.mubr.bf16.mxu0 %v1831_v5 }
  0x5b   : > { %1017 = vmatprep.mubr.bf16.mxu1 %v1833_v6 }
  0x61   : > { %921 = vmatmul.mubr.bf16.gmra.mrb[4].mxu0 %v1835_v7 }
  0x62   : > { %1018 = vmatmul.mubr.bf16.gmra.mrb[4].mxu1 %v1836_v8  ;;  %928 = vmatprep.mubr.bf16.mxu0 %v1837_v9 }
  0x63   : > { %1025 = vmatprep.mubr.bf16.mxu1 %v1839_v10 }
  0x69   : > { %929 = vmatmul.mubr.bf16.gmra.mrb[8].mxu0 %v1841_v11 }
  0x6a   : > { %1026 = vmatmul.mubr.bf16.gmra.mrb[8].mxu1 %v1842_v12  ;;  %936 = vmatprep.mubr.bf16.mxu0 %v1843_v13 }
  0x6b   : > { %1033 = vmatprep.mubr.bf16.mxu1 %v1845_v14  ;;  %v420_v14 = vld [vmem:[#allocation2 + $0x20] sm:$0xff] }
  0x71   : > { %937 = vmatmul.mubr.bf16.gmra.mrb[12].mxu0 %v1847_v15 }
  0x72   : > { %1034 = vmatmul.mubr.bf16.gmra.mrb[12].mxu1 %v1848_v16  ;;  %944 = vmatprep.mubr.bf16.mxu0 %v1849_v17 }
  0x73   : > { %1041 = vmatprep.mubr.bf16.mxu1 %v1851_v18 }
  0x79   : > { %945 = vmatmul.mubr.bf16.gmra.mrb[16].mxu0 %v1853_v19  ;;  %v421_v19 = vld [vmem:[#allocation2 + $0x28] sm:$0xff] }
  0x7a   : > { %1042 = vmatmul.mubr.bf16.gmra.mrb[16].mxu1 %v1854_v20  ;;  %952 = vmatprep.mubr.bf16.mxu0 %v1855_v21 }
  0x7b   : > { %1049 = vmatprep.mubr.bf16.mxu1 %v1857_v22 }
  0x81   : > { %953 = vmatmul.mubr.bf16.gmra.mrb[20].mxu0 %v1859_v23 }
  0x82   : > { %1050 = vmatmul.mubr.bf16.gmra.mrb[20].mxu1 %v1860_v24  ;;  %960 = vmatprep.mubr.bf16.mxu0 %v1861_v25 }
  0x83   : > { %1057 = vmatprep.mubr.bf16.mxu1 %v1863_v26 }
  0x89   : > { %961 = vmatmul.mubr.bf16.gmra.mrb[24].mxu0 %v1865_v27 }
  0x8a   : > { %1058 = vmatmul.mubr.bf16.gmra.mrb[24].mxu1 %v1866_v28  ;;  %968 = vmatprep.mubr.bf16.mxu0 %v1867_v29 }
  0x8b   : > { %1065 = vmatprep.mubr.bf16.mxu1 %v1869_v30 }
  0x91   : > { %969 = vmatmul.mubr.bf16.gmra.mrb[28].mxu0 %v1871_v31 }
  0x92   : > { %1066 = vmatmul.mubr.bf16.gmra.mrb[28].mxu1 %v1872_v32  ;;  %v422_v32 = vld [vmem:[#allocation2 + $0x30] sm:$0xff] }
 0x12c   : > { %v1640_v33 = vpop.f32.mrb[0].mxu0 }
 0x12d   : > { %v1704_v34 = vpop.f32.mrb[0].mxu1  ;;  %v1641_v35 = vpop.f32.mrb[1].mxu0 }
 0x12e   : > { %v1642_v36 = vadd.f32 %v1641_v35, %v1640_v33  ;;  %v1705_v37 = vpop.f32.mrb[1].mxu1  ;;  %v1643_v38 = vpop.f32.mrb[2].mxu0 }
 0x12f   : > { %v1706_v39 = vadd.f32 %v1705_v37, %v1704_v34  ;;  %v1707_v40 = vpop.f32.mrb[2].mxu1  ;;  %v1644_v41 = vpop.f32.mrb[3].mxu0  ;;  %v423_v37 = vld [vmem:[#allocation2 + $0x38] sm:$0xff] }
 0x130   : > { %v1645_v43 = vadd.f32 %v1644_v41, %v1643_v38  ;;  %v1708_v44 = vpop.f32.mrb[3].mxu1 }
 0x131   : > { %v1012_v45 = vadd.f32 %v1706_v39, %v1642_v36  ;;  %v1709_v46 = vadd.f32 %v1708_v44, %v1707_v40 }
 0x133   : > { %v1074_v48 = vadd.f32 %v1012_v45, %v416_v42  ;;  %v1015_v49 = vadd.f32 %v1709_v46, %v1645_v43 }
 0x134   : > { %v1646_v50 = vpop.f32.mrb[4].mxu0 }
 0x135   : > { %1090 = vst [vmem:[#allocation2] sm:$0xff] %v1074_v48  ;;  %v1075_v51 = vadd.f32 %v1015_v49, %v417_v47  ;;  %v1710_v52 = vpop.f32.mrb[4].mxu1  ;;  %v1647_v53 = vpop.f32.mrb[5].mxu0 }
 0x136   : > { %v1648_v54 = vadd.f32 %v1647_v53, %v1646_v50  ;;  %v1711_v55 = vpop.f32.mrb[5].mxu1  ;;  %v1649_v56 = vpop.f32.mrb[6].mxu0  ;;  %v424_v50 = vld [vmem:[#allocation2 + $0x40] sm:$0xff] }
 0x137   : > { %1091 = vst [vmem:[#allocation2 + $0x8] sm:$0xff] %v1075_v51  ;;  %v1712_v57 = vadd.f32 %v1711_v55, %v1710_v52  ;;  %v1713_v58 = vpop.f32.mrb[6].mxu1  ;;  %v1650_v59 = vpop.f32.mrb[7].mxu0  ;;  %v425_v55 = vld [vmem:[#allocation2 + $0x48] sm:$0xff] }
 0x138   : > { %v1651_v61 = vadd.f32 %v1650_v59, %v1649_v56  ;;  %v1714_v62 = vpop.f32.mrb[7].mxu1 }
 0x139   : > { %v1020_v63 = vadd.f32 %v1712_v57, %v1648_v54  ;;  %v1715_v0 = vadd.f32 %v1714_v62, %v1713_v58 }
 0x13b   : > { %v1076_v2 = vadd.f32 %v1020_v63, %v418_v60  ;;  %v1023_v3 = vadd.f32 %v1715_v0, %v1651_v61 }
 0x13c   : > { %v1652_v4 = vpop.f32.mrb[8].mxu0 }
 0x13d   : > { %1092 = vst [vmem:[#allocation2 + $0x10] sm:$0xff] %v1076_v2  ;;  %v1077_v5 = vadd.f32 %v1023_v3, %v419_v1  ;;  %v1716_v6 = vpop.f32.mrb[8].mxu1  ;;  %v1653_v7 = vpop.f32.mrb[9].mxu0 }
 0x13e   : > { %v1654_v8 = vadd.f32 %v1653_v7, %v1652_v4  ;;  %v1717_v9 = vpop.f32.mrb[9].mxu1  ;;  %v1655_v10 = vpop.f32.mrb[10].mxu0  ;;  %v426_v4 = vld [vmem:[#allocation2 + $0x50] sm:$0xff] }
 0x13f   : > { %1093 = vst [vmem:[#allocation2 + $0x18] sm:$0xff] %v1077_v5  ;;  %v1718_v11 = vadd.f32 %v1717_v9, %v1716_v6  ;;  %v1719_v12 = vpop.f32.mrb[10].mxu1  ;;  %v1656_v13 = vpop.f32.mrb[11].mxu0  ;;  %v427_v9 = vld [vmem:[#allocation2 + $0x58] sm:$0xff] }
 0x140   : > { %v1657_v15 = vadd.f32 %v1656_v13, %v1655_v10  ;;  %v1720_v16 = vpop.f32.mrb[11].mxu1 }
 0x141   : > { %v1028_v17 = vadd.f32 %v1718_v11, %v1654_v8  ;;  %v1721_v18 = vadd.f32 %v1720_v16, %v1719_v12 }
 0x143   : > { %v1078_v20 = vadd.f32 %v1028_v17, %v420_v14  ;;  %v1031_v21 = vadd.f32 %v1721_v18, %v1657_v15 }
 0x144   : > { %v1658_v22 = vpop.f32.mrb[12].mxu0 }
 0x145   : > { %1094 = vst [vmem:[#allocation2 + $0x20] sm:$0xff] %v1078_v20  ;;  %v1079_v23 = vadd.f32 %v1031_v21, %v421_v19  ;;  %v1722_v24 = vpop.f32.mrb[12].mxu1  ;;  %v1659_v25 = vpop.f32.mrb[13].mxu0 }
 0x146   : > { %v1660_v26 = vadd.f32 %v1659_v25, %v1658_v22  ;;  %v1723_v27 = vpop.f32.mrb[13].mxu1  ;;  %v1661_v28 = vpop.f32.mrb[14].mxu0  ;;  %v428_v22 = vld [vmem:[#allocation2 + $0x60] sm:$0xff] }
 0x147   : > { %1095 = vst [vmem:[#allocation2 + $0x28] sm:$0xff] %v1079_v23  ;;  %v1724_v29 = vadd.f32 %v1723_v27, %v1722_v24  ;;  %v1725_v30 = vpop.f32.mrb[14].mxu1  ;;  %v1662_v31 = vpop.f32.mrb[15].mxu0  ;;  %v429_v27 = vld [vmem:[#allocation2 + $0x68] sm:$0xff] }
 0x148   : > { %v1663_v33 = vadd.f32 %v1662_v31, %v1661_v28  ;;  %v1726_v34 = vpop.f32.mrb[15].mxu1 }
 0x149   : > { %v1036_v35 = vadd.f32 %v1724_v29, %v1660_v26  ;;  %v1727_v36 = vadd.f32 %v1726_v34, %v1725_v30 }
 0x14b   : > { %v1080_v38 = vadd.f32 %v1036_v35, %v422_v32  ;;  %v1039_v39 = vadd.f32 %v1727_v36, %v1663_v33 }
 0x14c   : > { %v1664_v40 = vpop.f32.mrb[16].mxu0 }
 0x14d   : > { %1096 = vst [vmem:[#allocation2 + $0x30] sm:$0xff] %v1080_v38  ;;  %v1081_v41 = vadd.f32 %v1039_v39, %v423_v37  ;;  %v1728_v42 = vpop.f32.mrb[16].mxu1  ;;  %v1665_v43 = vpop.f32.mrb[17].mxu0 }
 0x14e   : > { %v1666_v44 = vadd.f32 %v1665_v43, %v1664_v40  ;;  %v1729_v45 = vpop.f32.mrb[17].mxu1  ;;  %v1667_v46 = vpop.f32.mrb[18].mxu0  ;;  %v430_v40 = vld [vmem:[#allocation2 + $0x70] sm:$0xff] }
 0x14f   : > { %1097 = vst [vmem:[#allocation2 + $0x38] sm:$0xff] %v1081_v41  ;;  %v1730_v47 = vadd.f32 %v1729_v45, %v1728_v42  ;;  %v1731_v48 = vpop.f32.mrb[18].mxu1  ;;  %v1668_v49 = vpop.f32.mrb[19].mxu0  ;;  %v431_v45 = vld [vmem:[#allocation2 + $0x78] sm:$0xff] }
 0x150   : > { %v1669_v51 = vadd.f32 %v1668_v49, %v1667_v46  ;;  %v1732_v52 = vpop.f32.mrb[19].mxu1  ;;  %v1110_v49 = vld [vmem:[#allocation2] sm:$0xff] (!%p1499_p11) }
 0x151   : > { %v1044_v53 = vadd.f32 %v1730_v47, %v1666_v44  ;;  %v1733_v54 = vadd.f32 %v1732_v52, %v1731_v48 }
 0x153   : > { %v1082_v56 = vadd.f32 %v1044_v53, %v424_v50  ;;  %v1047_v57 = vadd.f32 %v1733_v54, %v1669_v51  ;;  %v1111_v50 = vld [vmem:[#allocation2 + $0x8] sm:$0xff] (!%p1499_p11)  ;;  %v2130_v51 = vld [vmem:[%s2213_s2] ss:$0 sm:$0xff] (!%p1499_p11) }
 0x154   : > { %v1670_v58 = vpop.f32.mrb[20].mxu0  ;;  %v1133_v52 = vadd.f32 (!%p1499_p11), %v2130_v51, %v1110_v49  ;;  %v1134_v53 = vadd.f32 (!%p1499_p11), %v2130_v51, %v1111_v50  ;;  %v1539_v54 = vld [vmem:[%s2214_s3] sm:$0xff] (!%p1499_p11)  }
 0x155   : > { %1098 = vst [vmem:[#allocation2 + $0x40] sm:$0xff] %v1082_v56  ;;  %v1083_v59 = vadd.f32 %v1047_v57, %v425_v55  ;;  %v1734_v60 = vpop.f32.mrb[20].mxu1  ;;  %v1671_v61 = vpop.f32.mrb[21].mxu0  ;;  %v1112_v55 = vld [vmem:[#allocation2 + $0x10] sm:$0xff] (!%p1499_p11)  ;;  %v1113_v56 = vld [vmem:[#allocation2 + $0x18] sm:$0xff] (!%p1499_p11)  ;;  %v1540_v57 = vunpack.c.l.bf16 (!%p1499_p11), %v1539_v54 }
 0x156   : > { %v1672_v62 = vadd.f32 %v1671_v61, %v1670_v58  ;;  %v1735_v63 = vpop.f32.mrb[21].mxu1  ;;  %v1673_v0 = vpop.f32.mrb[22].mxu0  ;;  %v1541_v58 = vunpack.c.h.bf16 (!%p1499_p11), %v1539_v54  ;;  %v1610_v61 = vld [vmem:[%s2214_s3 + $0x8] sm:$0xff] (!%p1499_p11)  }
 0x157   : > { %1099 = vst [vmem:[#allocation2 + $0x48] sm:$0xff] %v1083_v59  ;;  %v1736_v1 = vadd.f32 %v1735_v63, %v1734_v60  ;;  %v1737_v2 = vpop.f32.mrb[22].mxu1  ;;  %v1674_v3 = vpop.f32.mrb[23].mxu0  ;;  %v1135_v59 = vadd.f32 (!%p1499_p11), %v2130_v51, %v1112_v55  ;;  %v1136_v60 = vadd.f32 (!%p1499_p11), %v2130_v51, %v1113_v56  ;;  %v1115_v63 = vld [vmem:[#allocation2 + $0x28] sm:$0xff] (!%p1499_p11) }
 0x158   : > { %v1675_v5 = vadd.f32 %v1674_v3, %v1673_v0  ;;  %v1738_v6 = vpop.f32.mrb[23].mxu1  ;;  %v1544_v0 = vunpack.c.l.bf16 (!%p1499_p11), %v1610_v61  ;;  %v1138_v3 = vadd.f32 (!%p1499_p11), %v2130_v51, %v1115_v63 }
 0x159   : > { %v1052_v7 = vadd.f32 %v1736_v1, %v1672_v62  ;;  %v1739_v8 = vadd.f32 %v1738_v6, %v1737_v2  ;;  %v1114_v62 = vld [vmem:[#allocation2 + $0x20] sm:$0xff] (!%p1499_p11)  ;;  %v1545_v1 = vunpack.c.h.bf16 (!%p1499_p11), %v1610_v61  ;;  %v1117_v6 = vld [vmem:[#allocation2 + $0x38] sm:$0xff] (!%p1499_p11) }
 0x15a   : > { %v1137_v2 = vadd.f32 (!%p1499_p11), %v2130_v51, %v1114_v62 }
 0x15b   : > { %v1084_v10 = vadd.f32 %v1052_v7, %v426_v4  ;;  %v1055_v11 = vadd.f32 %v1739_v8, %v1675_v5  ;;  %v1611_v4 = vld [vmem:[%s2214_s3 + $0x10] sm:$0xff] (!%p1499_p11)   ;;  %v1181_v7 = vadd.f32 (!%p1499_p11), %v1540_v57, %v1133_v52  ;;  %v1182_v8 = vadd.f32 (!%p1499_p11), %v1541_v58, %v1134_v53 }
 0x15c   : > { %v1676_v12 = vpop.f32.mrb[24].mxu0  ;;  %v1116_v5 = vld [vmem:[#allocation2 + $0x30] sm:$0xff] (!%p1499_p11) }
 0x15d   : > { %1100 = vst [vmem:[#allocation2 + $0x50] sm:$0xff] %v1084_v10  ;;  %v1085_v13 = vadd.f32 %v1055_v11, %v427_v9  ;;  %v1740_v14 = vpop.f32.mrb[24].mxu1  ;;  %v1677_v15 = vpop.f32.mrb[25].mxu0  ;;  %v1548_v9 = vunpack.c.l.bf16 (!%p1499_p11), %v1611_v4  ;;  %v1549_v10 = vunpack.c.h.bf16 (!%p1499_p11), %v1611_v4  ;;  %v1612_v11 = vld [vmem:[%s2214_s3 + $0x18] sm:$0xff] (!%p1499_p11)  }
 0x15e   : > { %v1678_v16 = vadd.f32 %v1677_v15, %v1676_v12  ;;  %v1741_v17 = vpop.f32.mrb[25].mxu1  ;;  %v1679_v18 = vpop.f32.mrb[26].mxu0  ;;  %v1183_v12 = vadd.f32 (!%p1499_p11), %v1544_v0, %v1135_v59  ;;  %v1140_v15 = vadd.f32 (!%p1499_p11), %v2130_v51, %v1117_v6 }
 0x15f   : > { %1101 = vst [vmem:[#allocation2 + $0x58] sm:$0xff] %v1085_v13  ;;  %v1742_v19 = vadd.f32 %v1741_v17, %v1740_v14  ;;  %v1743_v20 = vpop.f32.mrb[26].mxu1  ;;  %v1680_v21 = vpop.f32.mrb[27].mxu0  ;;  %v1184_v13 = vadd.f32 (!%p1499_p11), %v1545_v1, %v1136_v60  ;;  %v1139_v14 = vadd.f32 (!%p1499_p11), %v2130_v51, %v1116_v5  ;;  %v1197_v17 = vmax.f32 (!%p1499_p11), %v1181_v7, 0.0  ;;  %v1616_v60 = vld [vmem:[%s2214_s3 + $0x38] sm:$0xff] (!%p1499_p11)  }
 0x160   : > { %v1681_v23 = vadd.f32 %v1680_v21, %v1679_v18  ;;  %v1744_v24 = vpop.f32.mrb[27].mxu1  ;;  %v1198_v18 = vmax.f32 (!%p1499_p11), %v1182_v8, 0.0  ;;  %v1119_v21 = vld [vmem:[#allocation2 + $0x48] sm:$0xff] (!%p1499_p11)  ;;  %v1568_v8 = vunpack.c.l.bf16 (!%p1499_p11), %v1616_v60 }
 0x161   : > { %v1060_v25 = vadd.f32 %v1742_v19, %v1678_v16  ;;  %v1745_v26 = vadd.f32 %v1744_v24, %v1743_v20  ;;  %v1118_v16 = vld [vmem:[#allocation2 + $0x40] sm:$0xff] (!%p1499_p11)  ;;  %v1185_v19 = vadd.f32 (!%p1499_p11), %v1548_v9, %v1137_v2  ;;  %v1186_v20 = vadd.f32 (!%p1499_p11), %v1549_v10, %v1138_v3 }
 0x162   : > { %v1552_v24 = vunpack.c.l.bf16 (!%p1499_p11), %v1612_v11  ;;  %v1569_v10 = vunpack.c.h.bf16 (!%p1499_p11), %v1616_v60 }
 0x163   : > { %v1086_v28 = vadd.f32 %v1060_v25, %v428_v22  ;;  %v1063_v29 = vadd.f32 %v1745_v26, %v1681_v23  ;;  %v1199_v22 = vmax.f32 (!%p1499_p11), %v1183_v12, 0.0  ;;  %v1200_v23 = vmax.f32 (!%p1499_p11), %v1184_v13, 0.0  ;;  %v1613_v26 = vld [vmem:[%s2214_s3 + $0x20] sm:$0xff] (!%p1499_p11)  }
 0x164   : > { %v1682_v30 = vpop.f32.mrb[28].mxu0  ;;  %v1553_v25 = vunpack.c.h.bf16 (!%p1499_p11), %v1612_v11 }
 0x165   : > { %1102 = vst [vmem:[#allocation2 + $0x60] sm:$0xff] %v1086_v28  ;;  %v1087_v31 = vadd.f32 %v1063_v29, %v429_v27  ;;  %v1746_v32 = vpop.f32.mrb[28].mxu1  ;;  %v1683_v33 = vpop.f32.mrb[29].mxu0  ;;  %v1120_v27 = vld [vmem:[#allocation2 + $0x50] sm:$0xff] (!%p1499_p11)  ;;  %v1573_v28 = vpack.c.bf16 (!%p1499_p11), %v1198_v18, %v1197_v17  ;;  %v1201_v29 = vmax.f32 (!%p1499_p11), %v1185_v19, 0.0 }
 0x166   : > { %v1684_v34 = vadd.f32 %v1683_v33, %v1682_v30  ;;  %v1747_v35 = vpop.f32.mrb[29].mxu1  ;;  %v1685_v36 = vpop.f32.mrb[30].mxu0  ;;  %v1202_v30 = vmax.f32 (!%p1499_p11), %v1186_v20, 0.0  ;;  %v1614_v33 = vld [vmem:[%s2214_s3 + $0x28] sm:$0xff] (!%p1499_p11)  }
 0x167   : > { %1103 = vst [vmem:[#allocation2 + $0x68] sm:$0xff] %v1087_v31  ;;  %v1748_v37 = vadd.f32 %v1747_v35, %v1746_v32  ;;  %v1749_v38 = vpop.f32.mrb[30].mxu1  ;;  %v1686_v39 = vpop.f32.mrb[31].mxu0  ;;  %v1141_v31 = vadd.f32 (!%p1499_p11), %v2130_v51, %v1118_v16  ;;  %v1121_v32 = vld [vmem:[#allocation2 + $0x58] sm:$0xff] (!%p1499_p11)  ;;  %v1187_v35 = vadd.f32 (!%p1499_p11), %v1552_v24, %v1139_v14  ;;  %1574 = vst [vmem:[%s2215_s4] sm:$0xff] (!%p1499_p11), %v1573_v28   ;;  %v1561_v52 = vunpack.c.h.bf16 (!%p1499_p11), %v1614_v33 }
 0x168   : > { %v1687_v41 = vadd.f32 %v1686_v39, %v1685_v36  ;;  %v1750_v42 = vpop.f32.mrb[31].mxu1  ;;  %v1188_v36 = vadd.f32 (!%p1499_p11), %v1553_v25, %v1140_v15  ;;  %v1583_v39 = vpack.c.bf16 (!%p1499_p11), %v1202_v30, %v1201_v29 }
 0x169   : > { %v1068_v43 = vadd.f32 %v1748_v37, %v1684_v34  ;;  %v1751_v44 = vadd.f32 %v1750_v42, %v1749_v38  ;;  %1109 = sbr.rel (%p1499_p11) target bundleno = 384 (0x180), region = 67  ;;  %v1578_v34 = vpack.c.bf16 (!%p1499_p11), %v1200_v23, %v1199_v22  ;;  %v1142_v37 = vadd.f32 (!%p1499_p11), %v2130_v51, %v1119_v21 }
 0x16a   : > { %v1143_v42 = vadd.f32 (!%p1499_p11), %v2130_v51, %v1120_v27  ;;  %1618 = vst [vmem:[%s2215_s4 + $0x10] sm:$0xff] (!%p1499_p11), %v1583_v39  }
 0x16b   : > { %v1088_v46 = vadd.f32 %v1068_v43, %v430_v40  ;;  %v1071_v47 = vadd.f32 %v1751_v44, %v1687_v41  ;;  %v1556_v40 = vunpack.c.l.bf16 (!%p1499_p11), %v1613_v26  ;;  %v1557_v41 = vunpack.c.h.bf16 (!%p1499_p11), %v1613_v26  ;;  %v1615_v44 = vld [vmem:[%s2214_s3 + $0x30] sm:$0xff] (!%p1499_p11)   ;;  %1617 = vst [vmem:[%s2215_s4 + $0x8] sm:$0xff] (!%p1499_p11), %v1578_v34  }
 0x16c   : > { %v1122_v38 = vld [vmem:[#allocation2 + $0x60] sm:$0xff] (!%p1499_p11)  ;;  %v1564_v59 = vunpack.c.l.bf16 (!%p1499_p11), %v1615_v44  ;;  %v1565_v0 = vunpack.c.h.bf16 (!%p1499_p11), %v1615_v44 }
 0x16d   : > { %1104 = vst [vmem:[#allocation2 + $0x70] sm:$0xff] %v1088_v46  ;;  %v1089_v48 = vadd.f32 %v1071_v47, %v431_v45  ;;  %v1203_v45 = vmax.f32 (!%p1499_p11), %v1187_v35, 0.0  ;;  %v1204_v46 = vmax.f32 (!%p1499_p11), %v1188_v36, 0.0  ;;  %v1144_v47 = vadd.f32 (!%p1499_p11), %v2130_v51, %v1121_v32 }
 0x16e   : > { %v1123_v43 = vld [vmem:[#allocation2 + $0x68] sm:$0xff] (!%p1499_p11)  ;;  %v1189_v49 = vadd.f32 (!%p1499_p11), %v1556_v40, %v1141_v31  ;;  %v1190_v50 = vadd.f32 (!%p1499_p11), %v1557_v41, %v1142_v37  ;;  %v1145_v53 = vadd.f32 (!%p1499_p11), %v2130_v51, %v1122_v38 }
 0x16f   : > { %1105 = vst [vmem:[#allocation2 + $0x78] sm:$0xff] %v1089_v48  ;;  %v1560_v48 = vunpack.c.l.bf16 (!%p1499_p11), %v1614_v33  ;;  %v1588_v56 = vpack.c.bf16 (!%p1499_p11), %v1204_v46, %v1203_v45  ;;  %v1146_v58 = vadd.f32 (!%p1499_p11), %v2130_v51, %v1123_v43  ;;  %v1192_v63 = vadd.f32 (!%p1499_p11), %v1561_v52, %v1144_v47 }
 0x170   : > { %v1205_v61 = vmax.f32 %v1189_v49, 0.0  ;;  %v1206_v62 = vmax.f32 %v1190_v50, 0.0  ;;  %v1193_v2 = vadd.f32 %v1564_v59, %v1145_v53 }
 0x171   : > { %v1191_v57 = vadd.f32 %v1560_v48, %v1143_v42  ;;  %1619 = vst [vmem:[%s2215_s4 + $0x18] sm:$0xff] %v1588_v56   ;;  %v1208_v6 = vmax.f32 %v1192_v63, 0.0  ;;  %v1194_v7 = vadd.f32 %v1565_v0, %v1146_v58 }
 0x172   : > { %v1593_v5 = vpack.c.bf16 %v1206_v62, %v1205_v61  ;;  %v1209_v9 = vmax.f32 %v1193_v2, 0.0 }
 0x173   : > { %v1207_v1 = vmax.f32 %v1191_v57, 0.0  ;;  %v1210_v12 = vmax.f32 %v1194_v7, 0.0 }
 0x174   : > { %v1124_v54 = vld [vmem:[#allocation2 + $0x70] sm:$0xff]  ;;  %1620 = vst [vmem:[%s2215_s4 + $0x20] sm:$0xff] %v1593_v5  }
 0x175   : > { %v1147_v3 = vadd.f32 %v2130_v51, %v1124_v54  ;;  %v1598_v11 = vpack.c.bf16 %v1208_v6, %v1207_v1  ;;  %v1603_v15 = vpack.c.bf16 %v1210_v12, %v1209_v9 }
 0x176   : > { %v1125_v55 = vld [vmem:[#allocation2 + $0x78] sm:$0xff] }
 0x177   : > { %v1148_v4 = vadd.f32 %v2130_v51, %v1125_v55  ;;  %v1195_v13 = vadd.f32 %v1568_v8, %v1147_v3  ;;  %1621 = vst [vmem:[%s2215_s4 + $0x28] sm:$0xff] %v1598_v11   ;;  %1622 = vst [vmem:[%s2215_s4 + $0x30] sm:$0xff] %v1603_v15  }
 0x179   : > { %v1196_v14 = vadd.f32 %v1569_v10, %v1148_v4  ;;  %v1211_v51 = vmax.f32 %v1195_v13, 0.0 }
 0x17b   : > { %v1212_v16 = vmax.f32 %v1196_v14, 0.0 }
 0x17d   : > { %v1608_v17 = vpack.c.bf16 %v1212_v16, %v1211_v51 }
 0x17f   : > { %1623 = vst [vmem:[%s2215_s4 + $0x38] sm:$0xff] %v1608_v17  }
 0x180 PF: > { %s14_s19 = sadd.s32 1, %s1911_s19   ;;  %s2216_s15 = smov %s1899_s16 }
 0x181   : > { %p11_p12 = scmp.ge.s32.totalorder %s14_s19, 4   ;;  %s2217_s16 = smov %s1974_s23 }
 0x182   : > { %s2218_s17 = smov %s1907_s18  ;;  %s2219_s18 = smov %s2221_s20 }
 0x183   :  { %13 = sbr.rel (!%p11_p12) target bundleno = 3 (0x3), region = 111 }

// kernel: _lambda_.19
= control target key start
LH: loop header
LB: loop body
LE: loop exit
PB: predicated region body
PF: predicated region fallthrough
CT: control target
= control target key end

     0   :  { %s1144_s12 = smov 0   ;;  %s1146_s13 = smov 0   ;;  %s1264_s0 = inlined_call_operand.vmem [shape: bf16[32,1024], index: 0, kind: input, shape index: {}]   ;;  %s1265_s1 = inlined_call_operand.vmem [shape: bf16[1024,128], index: 1, kind: input, shape index: {}]   ;;  %s1266_s2 = inlined_call_operand.vmem [shape: f32[1,128], index: 2, kind: input, shape index: {}]   ;;  %s1267_s3 = inlined_call_operand.vmem [shape: bf16[32,128], index: 3, kind: output, shape index: {}]  }
   0x1   :  { %s1148_s14 = smov 0   ;;  %s1150_s15 = smov 0  }
   0x2   :  { %s1152_s16 = smov 0  }
   0x3 LB: > { %s25_s17 = sadd.s32 1, %s1117_s15  ;;  %p48_p1 = scmp.ne.s32.totalorder %s1109_s13, %s1105_s12  ;;  %s1121_s16 = sphi %s1152_s16, %s13_s16   ;;  %s1117_s15 = sphi %s1150_s15, %s1271_s15   ;;  %s1113_s14 = sphi %s1148_s14, %s1270_s14   ;;  %s1109_s13 = sphi %s1146_s13, %s1269_s13   ;;  %s1105_s12 = sphi %s1144_s12, %s1268_s12  }
   0x4   : > { %p26_p0 = scmp.ge.s32.totalorder %s25_s17, 2  ;;  %p49_p2 = scmp.eq.s32.totalorder %s1121_s16, 0 }
   0x5   : > { %s41_s19 = sadd.s32 1, %s1109_s13  ;;  %p867_p5 = scmp.ge.s32.totalorder %s1121_s16, 2 }
   0x6   : > { %s1273_s17 = smov (%p26_p0, %s25_s17), 0  ;;  %p50_p3 = por %p49_p2, %p48_p1 }
   0x7   : > { %s37_s18 = ssub.s32 %s1117_s15, %s1273_s17  ;;  %162 = sbr.rel (%p867_p5) target bundleno = 22 (0x16), region = 20 }
   0x8   : > { %p39_p4 = scmp.eq.s32.totalorder %s37_s18, 0 }
   0xa   : > { %s1179_s20 = scalar_select %p39_p4, %s1109_s13, %s41_s19  }
   0xe   : > { %165 = sbr.rel (!%p50_p3) target bundleno = 22 (0x16), region = 24  ;;  %s167_s21 = sand.u32 (%p50_p3), 1, %s1109_s13  }
   0xf   : > { %s926_s22 = sshll.u32 (%p50_p3), %s1117_s15, 4  ;;  %s868_s23 = sshll.u32 (%p50_p3), %s167_s21, 6 }
  0x10   : > { %s175_s26 = scalar_lea.vmem (%p50_p3), %s1264_s0, %s926_s22  ;;  %s169_s27 = scalar_lea.vmem (%p50_p3), [#allocation3], %s868_s23 }
  0x11   : > { %v188_v0 = vld [vmem:[%s175_s26] sm:$0xff] (%p50_p3)  ;;  %v190_v1 = vld [vmem:[%s175_s26 + $0x8] sm:$0xff] (%p50_p3) }
  0x12   : > { %v192_v2 = vld [vmem:[%s175_s26 + $0x20] sm:$0xff] (%p50_p3)  ;;  %189 = vst [vmem:[%s169_s27] sm:$0xff] (%p50_p3), %v188_v0  ;;  %191 = vst [vmem:[%s169_s27 + $0x8] sm:$0xff] (%p50_p3), %v190_v1  ;;  %v194_v3 = vld [vmem:[%s175_s26 + $0x28] sm:$0xff] (%p50_p3) }
  0x13   : > { %193 = vst [vmem:[%s169_s27 + $0x10] sm:$0xff] (%p50_p3), %v192_v2  ;;  %v196_v4 = vld [vmem:[%s175_s26 + $0x40] sm:$0xff] (%p50_p3)  ;;  %v198_v5 = vld [vmem:[%s175_s26 + $0x48] sm:$0xff] (%p50_p3)  ;;  %195 = vst [vmem:[%s169_s27 + $0x18] sm:$0xff] (%p50_p3), %v194_v3 }
  0x14   : > { %197 = vst [vmem:[%s169_s27 + $0x20] sm:$0xff] (%p50_p3), %v196_v4  ;;  %199 = vst [vmem:[%s169_s27 + $0x28] sm:$0xff] (%p50_p3), %v198_v5  ;;  %v200_v6 = vld [vmem:[%s175_s26 + $0x60] sm:$0xff] (%p50_p3)  ;;  %v202_v7 = vld [vmem:[%s175_s26 + $0x68] sm:$0xff] (%p50_p3) }
  0x15   : > { %201 = vst [vmem:[%s169_s27 + $0x30] sm:$0xff] %v200_v6  ;;  %203 = vst [vmem:[%s169_s27 + $0x38] sm:$0xff] %v202_v7 }
  0x16 PF: > { %p871_p6 = scmp.ge.s32.totalorder %s1121_s16, 1  ;;  %p220_p7 = scmp.lt.s32.totalorder %s1121_s16, 3 }
  0x18   : > { %p221_p8 = pnand %p871_p6, %p220_p7 }
  0x19   : > { %s227_s28 = sand.u32 (!%p221_p8), 1, %s1105_s12   ;;  %s873_s29 = sshll.u32 (!%p221_p8), %s1113_s14, 6 }
  0x1a   : > { %224 = sbr.rel (%p221_p8) target bundleno = 319 (0x13f), region = 51  ;;  %s872_s30 = sshll.u32 (!%p221_p8), %s227_s28, 6 }
  0x1b   : > { %p267_p9 = scmp.lt.s32.totalorder (!%p221_p8), %s873_s29, 127  ;;  %s1196_s8 = scalar_lea.vmem (!%p221_p8), [#allocation3], %s872_s30 }
  0x1c   : > { %p875_p10 = scmp.ne.s32.totalorder (!%p221_p8), %s1113_s14, 0 }
  0x21   : > { %s1275_s29 = smov (!%p267_p9, %s873_s29), 127  ;;  %291 = sbr.rel (%p875_p10) target bundleno = 40 (0x28), region = 59 }
  0x22   : > { %s874_s4 = sshll.u32 %s1275_s29, 2  ;;  %v1123_v8 = vmov (!%p875_p10), 0.0  }
  0x23   : > { %s1194_s7 = scalar_lea.vmem %s1265_s1, %s874_s4  ;;  %292 = vst [vmem:[#allocation2] sm:$0xff] (!%p875_p10), %v1123_v8  ;;  %293 = vst [vmem:[#allocation2 + $0x8] sm:$0xff] (!%p875_p10), %v1123_v8 }
  0x24   : > { %294 = vst [vmem:[#allocation2 + $0x10] sm:$0xff] (!%p875_p10), %v1123_v8  ;;  %295 = vst [vmem:[#allocation2 + $0x18] sm:$0xff] (!%p875_p10), %v1123_v8 }
  0x28 PF: > { %v1039_v9 = vld [vmem:[%s1194_s7 + $0x40] sm:$0xff]   ;;  %v1043_v13 = vld [vmem:[%s1194_s7 + $0x48] sm:$0xff]   ;;  %v1047_v17 = vld [vmem:[%s1194_s7 + $0x50] sm:$0xff]   ;;  %p916_p11 = scmp.ne.s32.totalorder %s1113_s14, 1 }
  0x29   : > { %v1040_v10 = vld [vmem:[%s1194_s7 + $0xc0] sm:$0xff]   ;;  %942 = vmatprep.subr.bf16.mxu0 %v1039_v9  ;;  %v1044_v14 = vld [vmem:[%s1194_s7 + $0xc8] sm:$0xff]   ;;  %v1048_v18 = vld [vmem:[%s1194_s7 + $0xd0] sm:$0xff]  }
  0x2a   : > { %v1041_v11 = vld [vmem:[%s1194_s7] sm:$0xff]   ;;  %970 = vmatprep.subr.bf16.mxu1 %v1040_v10  ;;  %v1045_v15 = vld [vmem:[%s1194_s7 + $0x8] sm:$0xff]   ;;  %v1049_v19 = vld [vmem:[%s1194_s7 + $0x10] sm:$0xff]  }
  0x2b   : > { %v1042_v12 = vld [vmem:[%s1194_s7 + $0x80] sm:$0xff]   ;;  %943 = vmatpush3.bf16.msra.mxu0 %v1041_v11  ;;  %v1046_v16 = vld [vmem:[%s1194_s7 + $0x88] sm:$0xff]   ;;  %v1050_v20 = vld [vmem:[%s1194_s7 + $0x90] sm:$0xff]  }
  0x2c   : > { %971 = vmatpush3.bf16.msra.mxu1 %v1042_v12  ;;  %944 = vmatprep.subr.bf16.mxu0 %v1043_v13  ;;  %v1051_v21 = vld [vmem:[%s1194_s7 + $0x58] sm:$0xff]   ;;  %v1055_v25 = vld [vmem:[%s1194_s7 + $0x60] sm:$0xff]   ;;  %v1059_v29 = vld [vmem:[%s1194_s7 + $0x68] sm:$0xff]  }
  0x2d   : > { %972 = vmatprep.subr.bf16.mxu1 %v1044_v14  ;;  %v1052_v22 = vld [vmem:[%s1194_s7 + $0xd8] sm:$0xff]   ;;  %v1056_v26 = vld [vmem:[%s1194_s7 + $0xe0] sm:$0xff]   ;;  %v1060_v30 = vld [vmem:[%s1194_s7 + $0xe8] sm:$0xff]  }
  0x2e   : > { %v1053_v23 = vld [vmem:[%s1194_s7 + $0x18] sm:$0xff]   ;;  %v1057_v27 = vld [vmem:[%s1194_s7 + $0x20] sm:$0xff]   ;;  %v1061_v31 = vld [vmem:[%s1194_s7 + $0x28] sm:$0xff]  }
  0x2f   : > { %945 = vmatpush3.bf16.msra.mxu0 %v1045_v15  ;;  %v1054_v24 = vld [vmem:[%s1194_s7 + $0x98] sm:$0xff]   ;;  %v1058_v28 = vld [vmem:[%s1194_s7 + $0xa0] sm:$0xff]   ;;  %v1062_v32 = vld [vmem:[%s1194_s7 + $0xa8] sm:$0xff]  }
  0x30   : > { %973 = vmatpush3.bf16.msra.mxu1 %v1046_v16  ;;  %946 = vmatprep.subr.bf16.mxu0 %v1047_v17  ;;  %v1063_v33 = vld [vmem:[%s1194_s7 + $0x70] sm:$0xff]   ;;  %v1067_v37 = vld [vmem:[%s1194_s7 + $0x78] sm:$0xff]   ;;  %v296_v58 = vld [vmem:[#allocation2] sm:$0xff] }
  0x31   : > { %974 = vmatprep.subr.bf16.mxu1 %v1048_v18  ;;  %v1064_v34 = vld [vmem:[%s1194_s7 + $0xf0] sm:$0xff]   ;;  %v1068_v38 = vld [vmem:[%s1194_s7 + $0xf8] sm:$0xff]   ;;  %v297_v63 = vld [vmem:[#allocation2 + $0x8] sm:$0xff] }
  0x32   : > { %v1065_v35 = vld [vmem:[%s1194_s7 + $0x30] sm:$0xff]   ;;  %v1069_v39 = vld [vmem:[%s1194_s7 + $0x38] sm:$0xff]  }
  0x33   : > { %947 = vmatpush3.bf16.msra.mxu0 %v1049_v19  ;;  %v1066_v36 = vld [vmem:[%s1194_s7 + $0xb0] sm:$0xff]   ;;  %v1070_v40 = vld [vmem:[%s1194_s7 + $0xb8] sm:$0xff]  }
  0x34   : > { %975 = vmatpush3.bf16.msra.mxu1 %v1050_v20  ;;  %948 = vmatprep.subr.bf16.mxu0 %v1051_v21  ;;  %v1071_v41 = vld [vmem:[%s1196_s8] ss:$16 sps:$4 sm:$0xff]   ;;  %v1073_v42 = vld [vmem:[%s1196_s8 + $0x4] ss:$16 sps:$4 sm:$0xff]   ;;  %v1074_v43 = vld [vmem:[%s1196_s8 + $0x8] ss:$16 sps:$4 sm:$0xff]  }
  0x35   : > { %976 = vmatprep.subr.bf16.mxu1 %v1052_v22  ;;  %v1076_v44 = vld [vmem:[%s1196_s8 + $0xc] ss:$16 sps:$4 sm:$0xff]   ;;  %636 = vmatprep.mubr.bf16.mxu0 %v1073_v42  ;;  %v1077_v45 = vld [vmem:[%s1196_s8 + $0x24] ss:$16 sps:$4 sm:$0xff]   ;;  %v1081_v47 = vld [vmem:[%s1196_s8 + $0x20] ss:$16 sps:$4 sm:$0xff]  }
  0x36   : > { %685 = vmatprep.mubr.bf16.mxu1 %v1076_v44  ;;  %v1079_v46 = vld [vmem:[%s1196_s8 + $0x2c] ss:$16 sps:$4 sm:$0xff]   ;;  %v1082_v48 = vld [vmem:[%s1196_s8 + $0x28] ss:$16 sps:$4 sm:$0xff]   ;;  %v298_v12 = vld [vmem:[#allocation2 + $0x10] sm:$0xff] }
  0x37   : > { %949 = vmatpush3.bf16.msra.mxu0 %v1053_v23  ;;  %v299_v17 = vld [vmem:[#allocation2 + $0x18] sm:$0xff]  ;;  %v917_v23 = vld [vmem:[%s1266_s2] ss:$0 sm:$0xff] (!%p916_p11) }
  0x38   : > { %977 = vmatpush3.bf16.msra.mxu1 %v1054_v24  ;;  %950 = vmatprep.subr.bf16.mxu0 %v1055_v25 }
  0x39   : > { %978 = vmatprep.subr.bf16.mxu1 %v1056_v26 }
  0x3b   : > { %951 = vmatpush3.bf16.msra.mxu0 %v1057_v27 }
  0x3c   : > { %979 = vmatpush3.bf16.msra.mxu1 %v1058_v28  ;;  %952 = vmatprep.subr.bf16.mxu0 %v1059_v29 }
  0x3d   : > { %980 = vmatprep.subr.bf16.mxu1 %v1060_v30 }
  0x3f   : > { %953 = vmatpush3.bf16.msra.mxu0 %v1061_v31 }
  0x40   : > { %981 = vmatpush3.bf16.msra.mxu1 %v1062_v32  ;;  %954 = vmatprep.subr.bf16.mxu0 %v1063_v33 }
  0x41   : > { %982 = vmatprep.subr.bf16.mxu1 %v1064_v34 }
  0x43   : > { %955 = vmatpush3.bf16.msra.mxu0 %v1065_v35 }
  0x44   : > { %983 = vmatpush3.bf16.msra.mxu1 %v1066_v36  ;;  %956 = vmatprep.subr.bf16.mxu0 %v1067_v37 }
  0x45   : > { %984 = vmatprep.subr.bf16.mxu1 %v1068_v38 }
  0x47   : > { %957 = vmatpush3.bf16.msra.mxu0 %v1069_v39 }
  0x48   : > { %985 = vmatpush3.bf16.msra.mxu1 %v1070_v40 }
  0x4a   : > { %637 = vmatmul.mubr.bf16.vlgmr.msra.gmra.mrb[0].mxu0 %v1071_v41 }
  0x4b   : > { %686 = vmatmul.mubr.bf16.vlgmr.msra.gmra.mrb[0].mxu1 %v1074_v43  ;;  %644 = vmatprep.mubr.bf16.mxu0 %v1077_v45 }
  0x4c   : > { %693 = vmatprep.mubr.bf16.mxu1 %v1079_v46 }
  0x52   : > { %645 = vmatmul.mubr.bf16.gmra.mrb[4].mxu0 %v1081_v47 }
  0x53   : > { %694 = vmatmul.mubr.bf16.gmra.mrb[4].mxu1 %v1082_v48 }
 0x11d   : > { %v958_v49 = vpop.f32.mrb[0].mxu0 }
 0x11e   : > { %v986_v50 = vpop.f32.mrb[0].mxu1  ;;  %v959_v51 = vpop.f32.mrb[1].mxu0 }
 0x11f   : > { %v960_v52 = vadd.f32 %v959_v51, %v958_v49  ;;  %v987_v53 = vpop.f32.mrb[1].mxu1  ;;  %v961_v54 = vpop.f32.mrb[2].mxu0 }
 0x120   : > { %v988_v55 = vadd.f32 %v987_v53, %v986_v50  ;;  %v989_v56 = vpop.f32.mrb[2].mxu1  ;;  %v962_v57 = vpop.f32.mrb[3].mxu0 }
 0x121   : > { %v963_v59 = vadd.f32 %v962_v57, %v961_v54  ;;  %v990_v60 = vpop.f32.mrb[3].mxu1 }
 0x122   : > { %v688_v61 = vadd.f32 %v988_v55, %v960_v52  ;;  %v991_v62 = vadd.f32 %v990_v60, %v989_v56 }
 0x124   : > { %v702_v0 = vadd.f32 %v688_v61, %v296_v58  ;;  %v691_v1 = vadd.f32 %v991_v62, %v963_v59 }
 0x125   : > { %v964_v2 = vpop.f32.mrb[4].mxu0 }
 0x126   : > { %706 = vst [vmem:[#allocation2] sm:$0xff] %v702_v0  ;;  %v703_v3 = vadd.f32 %v691_v1, %v297_v63  ;;  %v992_v4 = vpop.f32.mrb[4].mxu1  ;;  %v965_v5 = vpop.f32.mrb[5].mxu0 }
 0x127   : > { %v966_v6 = vadd.f32 %v965_v5, %v964_v2  ;;  %v993_v7 = vpop.f32.mrb[5].mxu1  ;;  %v967_v8 = vpop.f32.mrb[6].mxu0 }
 0x128   : > { %707 = vst [vmem:[#allocation2 + $0x8] sm:$0xff] %v703_v3  ;;  %v994_v9 = vadd.f32 %v993_v7, %v992_v4  ;;  %v995_v10 = vpop.f32.mrb[6].mxu1  ;;  %v968_v11 = vpop.f32.mrb[7].mxu0 }
 0x129   : > { %v969_v13 = vadd.f32 %v968_v11, %v967_v8  ;;  %v996_v14 = vpop.f32.mrb[7].mxu1 }
 0x12a   : > { %v696_v15 = vadd.f32 %v994_v9, %v966_v6  ;;  %v997_v16 = vadd.f32 %v996_v14, %v995_v10  ;;  %713 = sbr.rel (%p916_p11) target bundleno = 319 (0x13f), region = 63 }
 0x12c   : > { %v704_v18 = vadd.f32 %v696_v15, %v298_v12  ;;  %v699_v19 = vadd.f32 %v997_v16, %v969_v13 }
 0x12d   : > { %v714_v21 = vld [vmem:[#allocation2] sm:$0xff] (!%p916_p11) }
 0x12e   : > { %708 = vst [vmem:[#allocation2 + $0x10] sm:$0xff] %v704_v18  ;;  %v705_v20 = vadd.f32 %v699_v19, %v299_v17  ;;  %v725_v24 = vadd.f32 (!%p916_p11), %v917_v23, %v714_v21 }
 0x12f   : > { %v715_v22 = vld [vmem:[#allocation2 + $0x8] sm:$0xff] (!%p916_p11) }
 0x130   : > { %709 = vst [vmem:[#allocation2 + $0x18] sm:$0xff] %v705_v20  ;;  %v726_v25 = vadd.f32 (!%p916_p11), %v917_v23, %v715_v22  ;;  %v729_v30 = vmax.f32 (!%p916_p11), %v725_v24, 0.0 }
 0x132   : > { %v730_v31 = vmax.f32 %v726_v25, 0.0 }
 0x134   : > { %v934_v34 = vpack.c.bf16 %v730_v31, %v729_v30 }
 0x135   : > { %v716_v26 = vld [vmem:[#allocation2 + $0x10] sm:$0xff] }
 0x136   : > { %v727_v28 = vadd.f32 %v917_v23, %v716_v26  ;;  %935 = vst [vmem:[%s1267_s3] sm:$0xff] %v934_v34  }
 0x137   : > { %v717_v27 = vld [vmem:[#allocation2 + $0x18] sm:$0xff] }
 0x138   : > { %v728_v29 = vadd.f32 %v917_v23, %v717_v27  ;;  %v731_v32 = vmax.f32 %v727_v28, 0.0 }
 0x13a   : > { %v732_v33 = vmax.f32 %v728_v29, 0.0 }
 0x13c   : > { %v939_v35 = vpack.c.bf16 %v732_v33, %v731_v32 }
 0x13e   : > { %941 = vst [vmem:[%s1267_s3 + $0x8] sm:$0xff] %v939_v35  }
 0x13f PF: > { %s13_s16 = sadd.s32 1, %s1121_s16   ;;  %s1268_s12 = smov %s1109_s13 }
 0x140   : > { %p10_p12 = scmp.ge.s32.totalorder %s13_s16, 4   ;;  %s1269_s13 = smov %s1179_s20 }
 0x141   : > { %s1270_s14 = smov %s1117_s15  ;;  %s1271_s15 = smov %s1273_s17 }
 0x142   :  { %12 = sbr.rel (!%p10_p12) target bundleno = 3 (0x3), region = 104 }

// kernel: _lambda_.18
= control target key start
LH: loop header
LB: loop body
LE: loop exit
PB: predicated region body
PF: predicated region fallthrough
CT: control target
= control target key end

     0   :  { %s304_s1 = inlined_call_operand.vmem [shape: bf16[128,128], index: 1, kind: input, shape index: {}]   ;;  %s305_s0 = inlined_call_operand.vmem [shape: bf16[32,128], index: 0, kind: input, shape index: {}]   ;;  %s306_s2 = inlined_call_operand.vmem [shape: f32[1,128], index: 2, kind: input, shape index: {}]   ;;  %s307_s3 = inlined_call_operand.vmem [shape: bf16[32,128], index: 3, kind: output, shape index: {}]  }
   0x1   :  { %v235_v0 = vld [vmem:[%s304_s1] sm:$0xff]   ;;  %v236_v1 = vld [vmem:[%s304_s1 + $0x8] sm:$0xff]   ;;  %v237_v2 = vld [vmem:[%s304_s1 + $0x10] sm:$0xff]  }
   0x2   :  { %215 = vmatprep.subr.bf16.mxu0 %v235_v0  ;;  %v238_v3 = vld [vmem:[%s304_s1 + $0x18] sm:$0xff]   ;;  %v243_v4 = vld [vmem:[%s305_s0] sm:$0xff]   ;;  %v240_v6 = vld [vmem:[%s304_s1 + $0x28] sm:$0xff]  }
   0x3   :  { %216 = vmatpush3.bf16.msra.mxu0 %v235_v0  ;;  %231 = vmatprep.mubr.bf16.mxu0 %v243_v4  ;;  %v239_v5 = vld [vmem:[%s304_s1 + $0x20] sm:$0xff]   ;;  %v241_v7 = vld [vmem:[%s304_s1 + $0x30] sm:$0xff]   ;;  %v242_v8 = vld [vmem:[%s304_s1 + $0x38] sm:$0xff]  }
   0x4   :  { %217 = vmatprep.subr.bf16.mxu0 %v236_v1  ;;  %v244_v9 = vld [vmem:[%s305_s0 + $0x8] sm:$0xff]   ;;  %v175_v11 = vld [vmem:[%s306_s2] ss:$0 sm:$0xff] }
   0x7   :  { %218 = vmatpush3.bf16.msra.mxu0 %v236_v1 }
   0x8   :  { %219 = vmatprep.subr.bf16.mxu0 %v237_v2 }
   0xb   :  { %220 = vmatpush3.bf16.msra.mxu0 %v237_v2 }
   0xc   :  { %221 = vmatprep.subr.bf16.mxu0 %v238_v3 }
   0xf   :  { %222 = vmatpush3.bf16.msra.mxu0 %v238_v3 }
  0x10   :  { %223 = vmatprep.subr.bf16.mxu0 %v239_v5 }
  0x13   :  { %224 = vmatpush3.bf16.msra.mxu0 %v239_v5 }
  0x14   :  { %225 = vmatprep.subr.bf16.mxu0 %v240_v6 }
  0x17   :  { %226 = vmatpush3.bf16.msra.mxu0 %v240_v6 }
  0x18   :  { %227 = vmatprep.subr.bf16.mxu0 %v241_v7 }
  0x1b   :  { %228 = vmatpush3.bf16.msra.mxu0 %v241_v7 }
  0x1c   :  { %229 = vmatprep.subr.bf16.mxu0 %v242_v8 }
  0x1f   :  { %230 = vmatpush3.bf16.msra.mxu0 %v242_v8 }
  0x22   :  { %232 = vmatmul.mubr.bf16.vlgmr.msra.gmra.mrb[0].mxu0 %v244_v9 }
  0xf5   :  { %v233_v10 = vpop.f32.mrb[0].mxu0 }
  0xf6   :  { %v136_v12 = vpop.f32.mrb[1].mxu0  ;;  %v145_v14 = vadd.f32 %v233_v10, %v175_v11 }
  0xf7   :  { %v234_v13 = vpop.f32.mrb[2].mxu0  ;;  %v137_v17 = vadd.f32 %v175_v11, %v136_v12 }
  0xf8   :  { %v148_v15 = vadd.f32 %v234_v13, %v175_v11  ;;  %v139_v16 = vpop.f32.mrb[3].mxu0 }
  0xf9   :  { %v140_v18 = vadd.f32 %v175_v11, %v139_v16 }
  0xfa   :  { %v202_v19 = vpack.c.bf16 %v148_v15, %v145_v14 }
  0xfb   :  { %v197_v20 = vpack.c.bf16 %v140_v18, %v137_v17 }
  0xfc   :  { %204 = vst [vmem:[%s307_s3 + $0x8] sm:$0xff] %v202_v19  }
  0xfd   :  { %198 = vst [vmem:[%s307_s3] sm:$0xff] %v197_v20  }

// kernel: _lambda_.20
= control target key start
LH: loop header
LB: loop body
LE: loop exit
PB: predicated region body
PF: predicated region fallthrough
CT: control target
= control target key end

     0   :  { %s1249_s15 = smov 0   ;;  %s1251_s16 = smov 0   ;;  %s1375_s0 = inlined_call_operand.vmem [shape: bf16[32,1536], index: 0, kind: input, shape index: {}]   ;;  %s1376_s1 = inlined_call_operand.vmem [shape: bf16[1536,128], index: 1, kind: input, shape index: {}]   ;;  %s1377_s2 = inlined_call_operand.vmem [shape: f32[1,128], index: 2, kind: input, shape index: {}]   ;;  %s1378_s3 = inlined_call_operand.vmem [shape: bf16[32,128], index: 3, kind: input, shape index: {}]   ;;  %s1379_s4 = inlined_call_operand.vmem [shape: bf16[32,128], index: 4, kind: output, shape index: {}]  }
   0x1   :  { %s1253_s17 = smov 0   ;;  %s1255_s18 = smov 0  }
   0x2   :  { %s1257_s19 = smov 0  }
   0x3 LB: > { %s26_s20 = sadd.s32 1, %s1217_s18  ;;  %p49_p1 = scmp.ne.s32.totalorder %s1209_s16, %s1205_s15  ;;  %s1221_s19 = sphi %s1257_s19, %s14_s19   ;;  %s1217_s18 = sphi %s1255_s18, %s1383_s18   ;;  %s1213_s17 = sphi %s1253_s17, %s1382_s17   ;;  %s1209_s16 = sphi %s1251_s16, %s1381_s16   ;;  %s1205_s15 = sphi %s1249_s15, %s1380_s15  }
   0x4   : > { %p27_p0 = scmp.ge.s32.totalorder %s26_s20, 3  ;;  %p50_p2 = scmp.eq.s32.totalorder %s1221_s19, 0 }
   0x5   : > { %s42_s22 = sadd.s32 1, %s1209_s16  ;;  %p958_p5 = scmp.ge.s32.totalorder %s1221_s19, 3 }
   0x6   : > { %s1385_s20 = smov (%p27_p0, %s26_s20), 0  ;;  %p51_p3 = por %p50_p2, %p49_p1 }
   0x7   : > { %s38_s21 = ssub.s32 %s1217_s18, %s1385_s20  ;;  %203 = sbr.rel (%p958_p5) target bundleno = 22 (0x16), region = 24 }
   0x8   : > { %p40_p4 = scmp.eq.s32.totalorder %s38_s21, 0 }
   0xa   : > { %s1284_s23 = scalar_select %p40_p4, %s1209_s16, %s42_s22  }
   0xe   : > { %206 = sbr.rel (!%p51_p3) target bundleno = 22 (0x16), region = 28  ;;  %s208_s24 = sand.u32 (%p51_p3), 1, %s1209_s16  }
   0xf   : > { %s1017_s25 = sshll.u32 (%p51_p3), %s1217_s18, 4  ;;  %s959_s26 = sshll.u32 (%p51_p3), %s208_s24, 6 }
  0x10   : > { %s216_s29 = scalar_lea.vmem (%p51_p3), %s1375_s0, %s1017_s25  ;;  %s210_s30 = scalar_lea.vmem (%p51_p3), [#allocation3], %s959_s26 }
  0x11   : > { %v229_v0 = vld [vmem:[%s216_s29] sm:$0xff] (%p51_p3)  ;;  %v231_v1 = vld [vmem:[%s216_s29 + $0x8] sm:$0xff] (%p51_p3)  ;;  %v233_v2 = vld [vmem:[%s216_s29 + $0x30] sm:$0xff] (%p51_p3) }
  0x12   : > { %230 = vst [vmem:[%s210_s30] sm:$0xff] (%p51_p3), %v229_v0  ;;  %232 = vst [vmem:[%s210_s30 + $0x8] sm:$0xff] (%p51_p3), %v231_v1  ;;  %v235_v3 = vld [vmem:[%s216_s29 + $0x38] sm:$0xff] (%p51_p3)  ;;  %v237_v4 = vld [vmem:[%s216_s29 + $0x60] sm:$0xff] (%p51_p3) }
  0x13   : > { %234 = vst [vmem:[%s210_s30 + $0x10] sm:$0xff] (%p51_p3), %v233_v2  ;;  %v239_v5 = vld [vmem:[%s216_s29 + $0x68] sm:$0xff] (%p51_p3)  ;;  %236 = vst [vmem:[%s210_s30 + $0x18] sm:$0xff] (%p51_p3), %v235_v3  ;;  %v241_v6 = vld [vmem:[%s216_s29 + $0x90] sm:$0xff] (%p51_p3) }
  0x14   : > { %238 = vst [vmem:[%s210_s30 + $0x20] sm:$0xff] (%p51_p3), %v237_v4  ;;  %240 = vst [vmem:[%s210_s30 + $0x28] sm:$0xff] (%p51_p3), %v239_v5  ;;  %v243_v7 = vld [vmem:[%s216_s29 + $0x98] sm:$0xff] (%p51_p3) }
  0x15   : > { %242 = vst [vmem:[%s210_s30 + $0x30] sm:$0xff] %v241_v6  ;;  %244 = vst [vmem:[%s210_s30 + $0x38] sm:$0xff] %v243_v7 }
  0x16 PF: > { %p962_p6 = scmp.ge.s32.totalorder %s1221_s19, 1  ;;  %p261_p7 = scmp.lt.s32.totalorder %s1221_s19, 4 }
  0x18   : > { %p262_p8 = pnand %p962_p6, %p261_p7 }
  0x19   : > { %s268_s5 = sand.u32 (!%p262_p8), 1, %s1205_s15   ;;  %s964_s6 = sshll.u32 (!%p262_p8), %s1213_s17, 6 }
  0x1a   : > { %265 = sbr.rel (%p262_p8) target bundleno = 321 (0x141), region = 55  ;;  %s963_s7 = sshll.u32 (!%p262_p8), %s268_s5, 6 }
  0x1b   : > { %p318_p9 = scmp.lt.s32.totalorder (!%p262_p8), %s964_s6, 191  ;;  %s1301_s12 = scalar_lea.vmem (!%p262_p8), [#allocation3], %s963_s7 }
  0x1c   : > { %p966_p10 = scmp.ne.s32.totalorder (!%p262_p8), %s1213_s17, 0 }
  0x21   : > { %s1387_s6 = smov (!%p318_p9, %s964_s6), 191  ;;  %351 = sbr.rel (%p966_p10) target bundleno = 40 (0x28), region = 63 }
  0x22   : > { %s965_s8 = sshll.u32 %s1387_s6, 2  ;;  %v1223_v8 = vmov (!%p966_p10), 0.0  }
  0x23   : > { %s1299_s11 = scalar_lea.vmem %s1376_s1, %s965_s8  ;;  %352 = vst [vmem:[#allocation2] sm:$0xff] (!%p966_p10), %v1223_v8  ;;  %353 = vst [vmem:[#allocation2 + $0x8] sm:$0xff] (!%p966_p10), %v1223_v8 }
  0x24   : > { %354 = vst [vmem:[#allocation2 + $0x10] sm:$0xff] (!%p966_p10), %v1223_v8  ;;  %355 = vst [vmem:[#allocation2 + $0x18] sm:$0xff] (!%p966_p10), %v1223_v8 }
  0x28 PF: > { %v1139_v9 = vld [vmem:[%s1299_s11 + $0x40] sm:$0xff]   ;;  %v1143_v13 = vld [vmem:[%s1299_s11 + $0x48] sm:$0xff]   ;;  %v1147_v17 = vld [vmem:[%s1299_s11 + $0x50] sm:$0xff]   ;;  %p1007_p11 = scmp.ne.s32.totalorder %s1213_s17, 2 }
  0x29   : > { %v1140_v10 = vld [vmem:[%s1299_s11 + $0xc0] sm:$0xff]   ;;  %1042 = vmatprep.subr.bf16.mxu0 %v1139_v9  ;;  %v1144_v14 = vld [vmem:[%s1299_s11 + $0xc8] sm:$0xff]   ;;  %v1148_v18 = vld [vmem:[%s1299_s11 + $0xd0] sm:$0xff]  }
  0x2a   : > { %v1141_v11 = vld [vmem:[%s1299_s11] sm:$0xff]   ;;  %1070 = vmatprep.subr.bf16.mxu1 %v1140_v10  ;;  %v1145_v15 = vld [vmem:[%s1299_s11 + $0x8] sm:$0xff]   ;;  %v1149_v19 = vld [vmem:[%s1299_s11 + $0x10] sm:$0xff]  }
  0x2b   : > { %v1142_v12 = vld [vmem:[%s1299_s11 + $0x80] sm:$0xff]   ;;  %1043 = vmatpush3.bf16.msra.mxu0 %v1141_v11  ;;  %v1146_v16 = vld [vmem:[%s1299_s11 + $0x88] sm:$0xff]   ;;  %v1150_v20 = vld [vmem:[%s1299_s11 + $0x90] sm:$0xff]  }
  0x2c   : > { %1071 = vmatpush3.bf16.msra.mxu1 %v1142_v12  ;;  %1044 = vmatprep.subr.bf16.mxu0 %v1143_v13  ;;  %v1151_v21 = vld [vmem:[%s1299_s11 + $0x58] sm:$0xff]   ;;  %v1155_v25 = vld [vmem:[%s1299_s11 + $0x60] sm:$0xff]   ;;  %v1159_v29 = vld [vmem:[%s1299_s11 + $0x68] sm:$0xff]  }
  0x2d   : > { %1072 = vmatprep.subr.bf16.mxu1 %v1144_v14  ;;  %v1152_v22 = vld [vmem:[%s1299_s11 + $0xd8] sm:$0xff]   ;;  %v1156_v26 = vld [vmem:[%s1299_s11 + $0xe0] sm:$0xff]   ;;  %v1160_v30 = vld [vmem:[%s1299_s11 + $0xe8] sm:$0xff]  }
  0x2e   : > { %v1153_v23 = vld [vmem:[%s1299_s11 + $0x18] sm:$0xff]   ;;  %v1157_v27 = vld [vmem:[%s1299_s11 + $0x20] sm:$0xff]   ;;  %v1161_v31 = vld [vmem:[%s1299_s11 + $0x28] sm:$0xff]  }
  0x2f   : > { %1045 = vmatpush3.bf16.msra.mxu0 %v1145_v15  ;;  %v1154_v24 = vld [vmem:[%s1299_s11 + $0x98] sm:$0xff]   ;;  %v1158_v28 = vld [vmem:[%s1299_s11 + $0xa0] sm:$0xff]   ;;  %v1162_v32 = vld [vmem:[%s1299_s11 + $0xa8] sm:$0xff]  }
  0x30   : > { %1073 = vmatpush3.bf16.msra.mxu1 %v1146_v16  ;;  %1046 = vmatprep.subr.bf16.mxu0 %v1147_v17  ;;  %v1163_v33 = vld [vmem:[%s1299_s11 + $0x70] sm:$0xff]   ;;  %v1167_v37 = vld [vmem:[%s1299_s11 + $0x78] sm:$0xff]   ;;  %v356_v58 = vld [vmem:[#allocation2] sm:$0xff] }
  0x31   : > { %1074 = vmatprep.subr.bf16.mxu1 %v1148_v18  ;;  %v1164_v34 = vld [vmem:[%s1299_s11 + $0xf0] sm:$0xff]   ;;  %v1168_v38 = vld [vmem:[%s1299_s11 + $0xf8] sm:$0xff]   ;;  %v357_v63 = vld [vmem:[#allocation2 + $0x8] sm:$0xff] }
  0x32   : > { %v1165_v35 = vld [vmem:[%s1299_s11 + $0x30] sm:$0xff]   ;;  %v1169_v39 = vld [vmem:[%s1299_s11 + $0x38] sm:$0xff]  }
  0x33   : > { %1047 = vmatpush3.bf16.msra.mxu0 %v1149_v19  ;;  %v1166_v36 = vld [vmem:[%s1299_s11 + $0xb0] sm:$0xff]   ;;  %v1170_v40 = vld [vmem:[%s1299_s11 + $0xb8] sm:$0xff]  }
  0x34   : > { %1075 = vmatpush3.bf16.msra.mxu1 %v1150_v20  ;;  %1048 = vmatprep.subr.bf16.mxu0 %v1151_v21  ;;  %v1171_v41 = vld [vmem:[%s1301_s12] ss:$16 sps:$4 sm:$0xff]   ;;  %v1173_v42 = vld [vmem:[%s1301_s12 + $0x4] ss:$16 sps:$4 sm:$0xff]   ;;  %v1174_v43 = vld [vmem:[%s1301_s12 + $0x8] ss:$16 sps:$4 sm:$0xff]  }
  0x35   : > { %1076 = vmatprep.subr.bf16.mxu1 %v1152_v22  ;;  %v1176_v44 = vld [vmem:[%s1301_s12 + $0xc] ss:$16 sps:$4 sm:$0xff]   ;;  %696 = vmatprep.mubr.bf16.mxu0 %v1173_v42  ;;  %v1177_v45 = vld [vmem:[%s1301_s12 + $0x24] ss:$16 sps:$4 sm:$0xff]   ;;  %v1181_v47 = vld [vmem:[%s1301_s12 + $0x20] ss:$16 sps:$4 sm:$0xff]  }
  0x36   : > { %745 = vmatprep.mubr.bf16.mxu1 %v1176_v44  ;;  %v1179_v46 = vld [vmem:[%s1301_s12 + $0x2c] ss:$16 sps:$4 sm:$0xff]   ;;  %v1182_v48 = vld [vmem:[%s1301_s12 + $0x28] ss:$16 sps:$4 sm:$0xff]   ;;  %v358_v12 = vld [vmem:[#allocation2 + $0x10] sm:$0xff] }
  0x37   : > { %1049 = vmatpush3.bf16.msra.mxu0 %v1153_v23  ;;  %v359_v17 = vld [vmem:[#allocation2 + $0x18] sm:$0xff]  ;;  %v1008_v23 = vld [vmem:[%s1377_s2] ss:$0 sm:$0xff] (!%p1007_p11) }
  0x38   : > { %1077 = vmatpush3.bf16.msra.mxu1 %v1154_v24  ;;  %1050 = vmatprep.subr.bf16.mxu0 %v1155_v25 }
  0x39   : > { %1078 = vmatprep.subr.bf16.mxu1 %v1156_v26  ;;  %v1023_v26 = vld [vmem:[%s1378_s3] sm:$0xff] (!%p1007_p11)  }
  0x3b   : > { %1051 = vmatpush3.bf16.msra.mxu0 %v1157_v27 }
  0x3c   : > { %1079 = vmatpush3.bf16.msra.mxu1 %v1158_v28  ;;  %1052 = vmatprep.subr.bf16.mxu0 %v1159_v29  ;;  %v1024_v29 = vunpack.c.l.bf16 (!%p1007_p11), %v1023_v26 }
  0x3d   : > { %1080 = vmatprep.subr.bf16.mxu1 %v1160_v30  ;;  %v1025_v30 = vunpack.c.h.bf16 (!%p1007_p11), %v1023_v26 }
  0x3f   : > { %1053 = vmatpush3.bf16.msra.mxu0 %v1161_v31 }
  0x40   : > { %1081 = vmatpush3.bf16.msra.mxu1 %v1162_v32  ;;  %1054 = vmatprep.subr.bf16.mxu0 %v1163_v33  ;;  %v1040_v33 = vld [vmem:[%s1378_s3 + $0x8] sm:$0xff] (!%p1007_p11)  }
  0x41   : > { %1082 = vmatprep.subr.bf16.mxu1 %v1164_v34  ;;  %v1028_v34 = vunpack.c.l.bf16 (!%p1007_p11), %v1040_v33 }
  0x43   : > { %1055 = vmatpush3.bf16.msra.mxu0 %v1165_v35  ;;  %v1029_v35 = vunpack.c.h.bf16 (!%p1007_p11), %v1040_v33 }
  0x44   : > { %1083 = vmatpush3.bf16.msra.mxu1 %v1166_v36  ;;  %1056 = vmatprep.subr.bf16.mxu0 %v1167_v37 }
  0x45   : > { %1084 = vmatprep.subr.bf16.mxu1 %v1168_v38 }
  0x47   : > { %1057 = vmatpush3.bf16.msra.mxu0 %v1169_v39 }
  0x48   : > { %1085 = vmatpush3.bf16.msra.mxu1 %v1170_v40 }
  0x4a   : > { %697 = vmatmul.mubr.bf16.vlgmr.msra.gmra.mrb[0].mxu0 %v1171_v41 }
  0x4b   : > { %746 = vmatmul.mubr.bf16.vlgmr.msra.gmra.mrb[0].mxu1 %v1174_v43  ;;  %704 = vmatprep.mubr.bf16.mxu0 %v1177_v45 }
  0x4c   : > { %753 = vmatprep.mubr.bf16.mxu1 %v1179_v46 }
  0x52   : > { %705 = vmatmul.mubr.bf16.gmra.mrb[4].mxu0 %v1181_v47 }
  0x53   : > { %754 = vmatmul.mubr.bf16.gmra.mrb[4].mxu1 %v1182_v48 }
 0x11d   : > { %v1058_v49 = vpop.f32.mrb[0].mxu0 }
 0x11e   : > { %v1086_v50 = vpop.f32.mrb[0].mxu1  ;;  %v1059_v51 = vpop.f32.mrb[1].mxu0 }
 0x11f   : > { %v1060_v52 = vadd.f32 %v1059_v51, %v1058_v49  ;;  %v1087_v53 = vpop.f32.mrb[1].mxu1  ;;  %v1061_v54 = vpop.f32.mrb[2].mxu0 }
 0x120   : > { %v1088_v55 = vadd.f32 %v1087_v53, %v1086_v50  ;;  %v1089_v56 = vpop.f32.mrb[2].mxu1  ;;  %v1062_v57 = vpop.f32.mrb[3].mxu0 }
 0x121   : > { %v1063_v59 = vadd.f32 %v1062_v57, %v1061_v54  ;;  %v1090_v60 = vpop.f32.mrb[3].mxu1 }
 0x122   : > { %v748_v61 = vadd.f32 %v1088_v55, %v1060_v52  ;;  %v1091_v62 = vadd.f32 %v1090_v60, %v1089_v56 }
 0x124   : > { %v762_v0 = vadd.f32 %v748_v61, %v356_v58  ;;  %v751_v1 = vadd.f32 %v1091_v62, %v1063_v59 }
 0x125   : > { %v1064_v2 = vpop.f32.mrb[4].mxu0 }
 0x126   : > { %766 = vst [vmem:[#allocation2] sm:$0xff] %v762_v0  ;;  %v763_v3 = vadd.f32 %v751_v1, %v357_v63  ;;  %v1092_v4 = vpop.f32.mrb[4].mxu1  ;;  %v1065_v5 = vpop.f32.mrb[5].mxu0 }
 0x127   : > { %v1066_v6 = vadd.f32 %v1065_v5, %v1064_v2  ;;  %v1093_v7 = vpop.f32.mrb[5].mxu1  ;;  %v1067_v8 = vpop.f32.mrb[6].mxu0 }
 0x128   : > { %767 = vst [vmem:[#allocation2 + $0x8] sm:$0xff] %v763_v3  ;;  %v1094_v9 = vadd.f32 %v1093_v7, %v1092_v4  ;;  %v1095_v10 = vpop.f32.mrb[6].mxu1  ;;  %v1068_v11 = vpop.f32.mrb[7].mxu0 }
 0x129   : > { %v1069_v13 = vadd.f32 %v1068_v11, %v1067_v8  ;;  %v1096_v14 = vpop.f32.mrb[7].mxu1 }
 0x12a   : > { %v756_v15 = vadd.f32 %v1094_v9, %v1066_v6  ;;  %v1097_v16 = vadd.f32 %v1096_v14, %v1095_v10  ;;  %773 = sbr.rel (%p1007_p11) target bundleno = 321 (0x141), region = 67 }
 0x12c   : > { %v764_v18 = vadd.f32 %v756_v15, %v358_v12  ;;  %v759_v19 = vadd.f32 %v1097_v16, %v1069_v13 }
 0x12d   : > { %v774_v21 = vld [vmem:[#allocation2] sm:$0xff] (!%p1007_p11) }
 0x12e   : > { %768 = vst [vmem:[#allocation2 + $0x10] sm:$0xff] %v764_v18  ;;  %v765_v20 = vadd.f32 %v759_v19, %v359_v17  ;;  %v785_v24 = vadd.f32 (!%p1007_p11), %v1008_v23, %v774_v21 }
 0x12f   : > { %v775_v22 = vld [vmem:[#allocation2 + $0x8] sm:$0xff] (!%p1007_p11) }
 0x130   : > { %769 = vst [vmem:[#allocation2 + $0x18] sm:$0xff] %v765_v20  ;;  %v786_v25 = vadd.f32 (!%p1007_p11), %v1008_v23, %v775_v22  ;;  %v797_v36 = vadd.f32 (!%p1007_p11), %v1024_v29, %v785_v24 }
 0x132   : > { %v798_v37 = vadd.f32 %v1025_v30, %v786_v25  ;;  %v801_v40 = vmax.f32 %v797_v36, 0.0 }
 0x134   : > { %v802_v41 = vmax.f32 %v798_v37, 0.0 }
 0x135   : > { %v776_v27 = vld [vmem:[#allocation2 + $0x10] sm:$0xff] }
 0x136   : > { %v787_v31 = vadd.f32 %v1008_v23, %v776_v27  ;;  %v1033_v44 = vpack.c.bf16 %v802_v41, %v801_v40 }
 0x137   : > { %v777_v28 = vld [vmem:[#allocation2 + $0x18] sm:$0xff] }
 0x138   : > { %v788_v32 = vadd.f32 %v1008_v23, %v777_v28  ;;  %v799_v38 = vadd.f32 %v1028_v34, %v787_v31  ;;  %1034 = vst [vmem:[%s1379_s4] sm:$0xff] %v1033_v44  }
 0x13a   : > { %v800_v39 = vadd.f32 %v1029_v35, %v788_v32  ;;  %v803_v42 = vmax.f32 %v799_v38, 0.0 }
 0x13c   : > { %v804_v43 = vmax.f32 %v800_v39, 0.0 }
 0x13e   : > { %v1038_v45 = vpack.c.bf16 %v804_v43, %v803_v42 }
 0x140   : > { %1041 = vst [vmem:[%s1379_s4 + $0x8] sm:$0xff] %v1038_v45  }
 0x141 PF: > { %s14_s19 = sadd.s32 1, %s1221_s19   ;;  %s1380_s15 = smov %s1209_s16 }
 0x142   : > { %p11_p12 = scmp.ge.s32.totalorder %s14_s19, 5   ;;  %s1381_s16 = smov %s1284_s23 }
 0x143   : > { %s1382_s17 = smov %s1217_s18  ;;  %s1383_s18 = smov %s1385_s20 }
 0x144   :  { %13 = sbr.rel (!%p11_p12) target bundleno = 3 (0x3), region = 111 }

// kernel: _lambda_.22
= control target key start
LH: loop header
LB: loop body
LE: loop exit
PB: predicated region body
PF: predicated region fallthrough
CT: control target
= control target key end

     0   :  { %s1176_s12 = smov 0   ;;  %s1178_s13 = smov 0   ;;  %s1291_s0 = inlined_call_operand.vmem [shape: bf16[8,1536], index: 0, kind: input, shape index: {}]   ;;  %s1292_s1 = inlined_call_operand.vmem [shape: bf16[1536,256], index: 1, kind: input, shape index: {}]   ;;  %s1293_s2 = inlined_call_operand.vmem [shape: f32[1,256], index: 2, kind: input, shape index: {}]   ;;  %s1294_s3 = inlined_call_operand.vmem [shape: bf16[8,256], index: 3, kind: output, shape index: {}]  }
   0x1   :  { %s1180_s14 = smov 0  }
   0x2 LB: > { %s25_s15 = sadd.s32 1, %s1149_s13  ;;  %p923_p0 = scmp.ge.s32.totalorder %s1153_s14, 1  ;;  %s1153_s14 = sphi %s1180_s14, %s13_s14   ;;  %s1149_s13 = sphi %s1178_s13, %s1296_s13   ;;  %s1145_s12 = sphi %s1176_s12, %s1295_s12  }
   0x3   : > { %p26_p1 = scmp.ge.s32.totalorder %s25_s15, 3  ;;  %p194_p2 = scmp.lt.s32.totalorder %s1153_s14, 4 }
   0x5   : > { %s1298_s15 = smov (%p26_p1, %s25_s15), 0  ;;  %p195_p3 = pnand %p923_p0, %p194_p2 }
   0x6   : > { %s924_s16 = sshll.u32 (!%p195_p3), %s1145_s12, 2  ;;  %s926_s17 = sshll.u32 (!%p195_p3), %s1145_s12, 6 }
   0x7   : > { %198 = sbr.rel (%p195_p3) target bundleno = 322 (0x142), region = 32  ;;  %p243_p4 = scmp.lt.s32.totalorder (!%p195_p3), %s924_s16, 11 }
   0x8   : > { %p252_p5 = scmp.lt.s32.totalorder (!%p195_p3), %s926_s17, 191  ;;  %p929_p6 = scmp.ne.s32.totalorder (!%p195_p3), %s1145_s12, 0 }
   0xe   : > { %s1300_s16 = smov (!%p243_p4, %s924_s16), 11  ;;  %s1302_s17 = smov (!%p252_p5, %s926_s17), 191 }
   0xf   : > { %s925_s18 = sshll.u32 %s1300_s16, 2  ;;  %s1004_s22 = sshll.u32 %s1302_s17, 3  ;;  %v1155_v0 = vmov (!%p929_p6), 0.0  }
  0x10   : > { %s1201_s21 = scalar_lea.vmem %s1291_s0, %s925_s18  ;;  %s1206_s25 = scalar_lea.vmem %s1292_s1, %s1004_s22  ;;  %281 = vst [vmem:[#allocation2] sm:$0xff] (!%p929_p6), %v1155_v0  ;;  %282 = vst [vmem:[#allocation2 + $0x8] sm:$0xff] (!%p929_p6), %v1155_v0 }
  0x11   : > { %280 = sbr.rel (%p929_p6) target bundleno = 24 (0x18), region = 36 }
  0x18 PF: > { %v1031_v1 = vld [vmem:[%s1206_s25 + $0x4] ss:$8 sps:$4 sm:$0xff]   ;;  %v1035_v3 = vld [vmem:[%s1206_s25] ss:$8 sps:$4 sm:$0xff]   ;;  %v1037_v5 = vld [vmem:[%s1206_s25 + $0x14] ss:$8 sps:$4 sm:$0xff]  }
  0x19   : > { %v1033_v2 = vld [vmem:[%s1206_s25 + $0x104] ss:$8 sps:$4 sm:$0xff]   ;;  %685 = vmatprep.subr.bf16.mxu0 %v1031_v1  ;;  %v1036_v4 = vld [vmem:[%s1206_s25 + $0x100] ss:$8 sps:$4 sm:$0xff]   ;;  %v1039_v6 = vld [vmem:[%s1206_s25 + $0x114] ss:$8 sps:$4 sm:$0xff]  }
  0x1a   : > { %726 = vmatprep.subr.bf16.mxu1 %v1033_v2  ;;  %686 = vmatpush1.bf16.msra.mxu0 %v1035_v3  ;;  %v1041_v7 = vld [vmem:[%s1206_s25 + $0x10] ss:$8 sps:$4 sm:$0xff]   ;;  %v1043_v9 = vld [vmem:[%s1206_s25 + $0x24] ss:$8 sps:$4 sm:$0xff]   ;;  %v1047_v11 = vld [vmem:[%s1206_s25 + $0x20] ss:$8 sps:$4 sm:$0xff]  }
  0x1b   : > { %727 = vmatpush1.bf16.msra.mxu1 %v1036_v4  ;;  %687 = vmatprep.subr.bf16.mxu0 %v1037_v5  ;;  %v1042_v8 = vld [vmem:[%s1206_s25 + $0x110] ss:$8 sps:$4 sm:$0xff]   ;;  %v1045_v10 = vld [vmem:[%s1206_s25 + $0x124] ss:$8 sps:$4 sm:$0xff]   ;;  %v1048_v12 = vld [vmem:[%s1206_s25 + $0x120] ss:$8 sps:$4 sm:$0xff]  }
  0x1c   : > { %728 = vmatprep.subr.bf16.mxu1 %v1039_v6  ;;  %v1049_v13 = vld [vmem:[%s1206_s25 + $0x34] ss:$8 sps:$4 sm:$0xff]   ;;  %v1053_v15 = vld [vmem:[%s1206_s25 + $0x30] ss:$8 sps:$4 sm:$0xff]   ;;  %v1055_v17 = vld [vmem:[%s1206_s25 + $0x44] ss:$8 sps:$4 sm:$0xff]  }
  0x1d   : > { %v1051_v14 = vld [vmem:[%s1206_s25 + $0x134] ss:$8 sps:$4 sm:$0xff]   ;;  %v1054_v16 = vld [vmem:[%s1206_s25 + $0x130] ss:$8 sps:$4 sm:$0xff]   ;;  %v1057_v18 = vld [vmem:[%s1206_s25 + $0x144] ss:$8 sps:$4 sm:$0xff]  }
  0x1e   : > { %688 = vmatpush1.bf16.msra.mxu0 %v1041_v7  ;;  %v1059_v19 = vld [vmem:[%s1206_s25 + $0x40] ss:$8 sps:$4 sm:$0xff]   ;;  %v1061_v21 = vld [vmem:[%s1206_s25 + $0x54] ss:$8 sps:$4 sm:$0xff]   ;;  %v1065_v23 = vld [vmem:[%s1206_s25 + $0x50] ss:$8 sps:$4 sm:$0xff]  }
  0x1f   : > { %729 = vmatpush1.bf16.msra.mxu1 %v1042_v8  ;;  %689 = vmatprep.subr.bf16.mxu0 %v1043_v9  ;;  %v1060_v20 = vld [vmem:[%s1206_s25 + $0x140] ss:$8 sps:$4 sm:$0xff]   ;;  %v1063_v22 = vld [vmem:[%s1206_s25 + $0x154] ss:$8 sps:$4 sm:$0xff]   ;;  %v1066_v24 = vld [vmem:[%s1206_s25 + $0x150] ss:$8 sps:$4 sm:$0xff]  }
  0x20   : > { %730 = vmatprep.subr.bf16.mxu1 %v1045_v10  ;;  %v1067_v25 = vld [vmem:[%s1206_s25 + $0x64] ss:$8 sps:$4 sm:$0xff]   ;;  %v1071_v27 = vld [vmem:[%s1206_s25 + $0x60] ss:$8 sps:$4 sm:$0xff]   ;;  %v1073_v29 = vld [vmem:[%s1206_s25 + $0x74] ss:$8 sps:$4 sm:$0xff]  }
  0x21   : > { %v1069_v26 = vld [vmem:[%s1206_s25 + $0x164] ss:$8 sps:$4 sm:$0xff]   ;;  %v1072_v28 = vld [vmem:[%s1206_s25 + $0x160] ss:$8 sps:$4 sm:$0xff]   ;;  %v1075_v30 = vld [vmem:[%s1206_s25 + $0x174] ss:$8 sps:$4 sm:$0xff]  }
  0x22   : > { %690 = vmatpush1.bf16.msra.mxu0 %v1047_v11  ;;  %v1077_v31 = vld [vmem:[%s1206_s25 + $0x70] ss:$8 sps:$4 sm:$0xff]   ;;  %v1079_v33 = vld [vmem:[%s1206_s25 + $0x84] ss:$8 sps:$4 sm:$0xff]   ;;  %v1083_v35 = vld [vmem:[%s1206_s25 + $0x80] ss:$8 sps:$4 sm:$0xff]  }
  0x23   : > { %731 = vmatpush1.bf16.msra.mxu1 %v1048_v12  ;;  %691 = vmatprep.subr.bf16.mxu0 %v1049_v13  ;;  %v1078_v32 = vld [vmem:[%s1206_s25 + $0x170] ss:$8 sps:$4 sm:$0xff]   ;;  %v1081_v34 = vld [vmem:[%s1206_s25 + $0x184] ss:$8 sps:$4 sm:$0xff]   ;;  %v1084_v36 = vld [vmem:[%s1206_s25 + $0x180] ss:$8 sps:$4 sm:$0xff]  }
  0x24   : > { %732 = vmatprep.subr.bf16.mxu1 %v1051_v14  ;;  %v1085_v37 = vld [vmem:[%s1206_s25 + $0x94] ss:$8 sps:$4 sm:$0xff]   ;;  %v1089_v39 = vld [vmem:[%s1206_s25 + $0x90] ss:$8 sps:$4 sm:$0xff]   ;;  %v1091_v41 = vld [vmem:[%s1206_s25 + $0xa4] ss:$8 sps:$4 sm:$0xff]  }
  0x25   : > { %v1087_v38 = vld [vmem:[%s1206_s25 + $0x194] ss:$8 sps:$4 sm:$0xff]   ;;  %v1090_v40 = vld [vmem:[%s1206_s25 + $0x190] ss:$8 sps:$4 sm:$0xff]   ;;  %v1093_v42 = vld [vmem:[%s1206_s25 + $0x1a4] ss:$8 sps:$4 sm:$0xff]  }
  0x26   : > { %692 = vmatpush1.bf16.msra.mxu0 %v1053_v15  ;;  %v1095_v43 = vld [vmem:[%s1206_s25 + $0xa0] ss:$8 sps:$4 sm:$0xff]   ;;  %v1097_v45 = vld [vmem:[%s1206_s25 + $0xb4] ss:$8 sps:$4 sm:$0xff]   ;;  %v1101_v50 = vld [vmem:[%s1206_s25 + $0xb0] ss:$8 sps:$4 sm:$0xff]  }
  0x27   : > { %733 = vmatpush1.bf16.msra.mxu1 %v1054_v16  ;;  %693 = vmatprep.subr.bf16.mxu0 %v1055_v17  ;;  %v1096_v44 = vld [vmem:[%s1206_s25 + $0x1a0] ss:$8 sps:$4 sm:$0xff]   ;;  %v1099_v46 = vld [vmem:[%s1206_s25 + $0x1b4] ss:$8 sps:$4 sm:$0xff]   ;;  %v1102_v51 = vld [vmem:[%s1206_s25 + $0x1b0] ss:$8 sps:$4 sm:$0xff]  }
  0x28   : > { %734 = vmatprep.subr.bf16.mxu1 %v1057_v18  ;;  %v285_v47 = vld [vmem:[%s1201_s21] sm:$0xff]  ;;  %v286_v49 = vld [vmem:[%s1201_s21 + $0x8] sm:$0xff]  ;;  %v1109_v57 = vld [vmem:[%s1206_s25 + $0xd4] ss:$8 sps:$4 sm:$0xff]   ;;  %p998_p7 = scmp.ne.s32.totalorder %s1145_s12, 2 }
  0x29   : > { %v931_v48 = vcombine.high %v285_v47, %v285_v47  ;;  %v933_v52 = vcombine.high %v286_v49, %v286_v49  ;;  %v1103_v53 = vld [vmem:[%s1206_s25 + $0xc4] ss:$8 sps:$4 sm:$0xff]   ;;  %v1107_v55 = vld [vmem:[%s1206_s25 + $0xc0] ss:$8 sps:$4 sm:$0xff]   ;;  %v1111_v58 = vld [vmem:[%s1206_s25 + $0x1d4] ss:$8 sps:$4 sm:$0xff]   ;;  %v930_v5 = vcombine.low %v285_v47, %v285_v47  ;;  %v932_v6 = vcombine.low %v286_v49, %v286_v49 }
  0x2a   : > { %694 = vmatpush1.bf16.msra.mxu0 %v1059_v19  ;;  %v1105_v54 = vld [vmem:[%s1206_s25 + $0x1c4] ss:$8 sps:$4 sm:$0xff]   ;;  %v1108_v56 = vld [vmem:[%s1206_s25 + $0x1c0] ss:$8 sps:$4 sm:$0xff]   ;;  %v1113_v59 = vld [vmem:[%s1206_s25 + $0xd0] ss:$8 sps:$4 sm:$0xff]  }
  0x2b   : > { %735 = vmatpush1.bf16.msra.mxu1 %v1060_v20  ;;  %695 = vmatprep.subr.bf16.mxu0 %v1061_v21  ;;  %v1114_v60 = vld [vmem:[%s1206_s25 + $0x1d0] ss:$8 sps:$4 sm:$0xff]   ;;  %v1115_v61 = vld [vmem:[%s1206_s25 + $0xe4] ss:$8 sps:$4 sm:$0xff]   ;;  %v1119_v63 = vld [vmem:[%s1206_s25 + $0xe0] ss:$8 sps:$4 sm:$0xff]   ;;  %v779_v21 = vlaneseq (!%p998_p7) }
  0x2c   : > { %736 = vmatprep.subr.bf16.mxu1 %v1063_v22  ;;  %717 = vmatprep.mubr.bf16.mxu0 %v931_v48  ;;  %v1117_v62 = vld [vmem:[%s1206_s25 + $0x1e4] ss:$8 sps:$4 sm:$0xff]   ;;  %v1120_v0 = vld [vmem:[%s1206_s25 + $0x1e0] ss:$8 sps:$4 sm:$0xff]   ;;  %v1121_v1 = vld [vmem:[%s1206_s25 + $0xf4] ss:$8 sps:$4 sm:$0xff]  }
  0x2d   : > { %758 = vmatprep.mubr.bf16.mxu1 %v933_v52  ;;  %v1123_v2 = vld [vmem:[%s1206_s25 + $0x1f4] ss:$8 sps:$4 sm:$0xff]   ;;  %v1125_v3 = vld [vmem:[%s1206_s25 + $0xf0] ss:$8 sps:$4 sm:$0xff]   ;;  %v283_v8 = vld [vmem:[#allocation2] sm:$0xff]  ;;  %v780_v22 = vshrl.u32 (!%p998_p7), %v779_v21, 7 }
  0x2e   : > { %696 = vmatpush1.bf16.msra.mxu0 %v1065_v23  ;;  %v1126_v4 = vld [vmem:[%s1206_s25 + $0x1f0] ss:$8 sps:$4 sm:$0xff]   ;;  %v284_v12 = vld [vmem:[#allocation2 + $0x8] sm:$0xff]  ;;  %v777_v23 = vld [vmem:[%s1293_s2] sm:$0x3] (!%p998_p7) }
  0x2f   : > { %737 = vmatpush1.bf16.msra.mxu1 %v1066_v24  ;;  %697 = vmatprep.subr.bf16.mxu0 %v1067_v25  ;;  %v781_v24 = vsub.s32 (!%p998_p7), 0, %v780_v22  ;;  %v785_v25 = vsub.s32 (!%p998_p7), 1, %v780_v22 }
  0x30   : > { %738 = vmatprep.subr.bf16.mxu1 %v1069_v26 }
  0x32   : > { %698 = vmatpush1.bf16.msra.mxu0 %v1071_v27 }
  0x33   : > { %739 = vmatpush1.bf16.msra.mxu1 %v1072_v28  ;;  %699 = vmatprep.subr.bf16.mxu0 %v1073_v29  ;;  %v782_v28 = vrot.slane (!%p998_p7), %v777_v23, %v781_v24  ;;  %v786_v29 = vrot.slane (!%p998_p7), %v777_v23, %v785_v25 }
  0x34   : > { %740 = vmatprep.subr.bf16.mxu1 %v1075_v30 }
  0x36   : > { %700 = vmatpush1.bf16.msra.mxu0 %v1077_v31 }
  0x37   : > { %741 = vmatpush1.bf16.msra.mxu1 %v1078_v32  ;;  %701 = vmatprep.subr.bf16.mxu0 %v1079_v33 }
  0x38   : > { %742 = vmatprep.subr.bf16.mxu1 %v1081_v34 }
  0x3a   : > { %702 = vmatpush1.bf16.msra.mxu0 %v1083_v35 }
  0x3b   : > { %743 = vmatpush1.bf16.msra.mxu1 %v1084_v36  ;;  %703 = vmatprep.subr.bf16.mxu0 %v1085_v37 }
  0x3c   : > { %744 = vmatprep.subr.bf16.mxu1 %v1087_v38 }
  0x3e   : > { %704 = vmatpush1.bf16.msra.mxu0 %v1089_v39 }
  0x3f   : > { %745 = vmatpush1.bf16.msra.mxu1 %v1090_v40  ;;  %705 = vmatprep.subr.bf16.mxu0 %v1091_v41 }
  0x40   : > { %746 = vmatprep.subr.bf16.mxu1 %v1093_v42 }
  0x42   : > { %706 = vmatpush1.bf16.msra.mxu0 %v1095_v43 }
  0x43   : > { %747 = vmatpush1.bf16.msra.mxu1 %v1096_v44  ;;  %707 = vmatprep.subr.bf16.mxu0 %v1097_v45 }
  0x44   : > { %748 = vmatprep.subr.bf16.mxu1 %v1099_v46 }
  0x46   : > { %708 = vmatpush1.bf16.msra.mxu0 %v1101_v50 }
  0x47   : > { %749 = vmatpush1.bf16.msra.mxu1 %v1102_v51  ;;  %709 = vmatprep.subr.bf16.mxu0 %v1103_v53 }
  0x48   : > { %750 = vmatprep.subr.bf16.mxu1 %v1105_v54 }
  0x4a   : > { %710 = vmatpush1.bf16.msra.mxu0 %v1107_v55 }
  0x4b   : > { %751 = vmatpush1.bf16.msra.mxu1 %v1108_v56  ;;  %711 = vmatprep.subr.bf16.mxu0 %v1109_v57 }
  0x4c   : > { %752 = vmatprep.subr.bf16.mxu1 %v1111_v58 }
  0x4e   : > { %712 = vmatpush1.bf16.msra.mxu0 %v1113_v59 }
  0x4f   : > { %753 = vmatpush1.bf16.msra.mxu1 %v1114_v60  ;;  %713 = vmatprep.subr.bf16.mxu0 %v1115_v61 }
  0x50   : > { %754 = vmatprep.subr.bf16.mxu1 %v1117_v62 }
  0x52   : > { %714 = vmatpush1.bf16.msra.mxu0 %v1119_v63 }
  0x53   : > { %755 = vmatpush1.bf16.msra.mxu1 %v1120_v0  ;;  %715 = vmatprep.subr.bf16.mxu0 %v1121_v1 }
  0x54   : > { %756 = vmatprep.subr.bf16.mxu1 %v1123_v2 }
  0x56   : > { %716 = vmatpush1.bf16.msra.mxu0 %v1125_v3 }
  0x57   : > { %757 = vmatpush1.bf16.msra.mxu1 %v1126_v4 }
  0x59   : > { %718 = vmatmul.mubr.bf16.vlgmr.msra.gmra.mrb[0].mxu0 %v930_v5 }
  0x5a   : > { %759 = vmatmul.mubr.bf16.vlgmr.msra.gmra.mrb[0].mxu1 %v932_v6 }
 0x12c   : > { %v719_v7 = vpop.f32.mrb[0].mxu0 }
 0x12d   : > { %v760_v9 = vpop.f32.mrb[0].mxu1  ;;  %v721_v11 = vpop.f32.mrb[1].mxu0  ;;  %774 = sbr.rel (%p998_p7) target bundleno = 322 (0x142), region = 40 }
 0x12e   : > { %v761_v10 = vadd.f32 %v760_v9, %v719_v7  ;;  %v762_v13 = vpop.f32.mrb[1].mxu1  ;;  %v723_v15 = vpop.f32.mrb[2].mxu0 }
 0x12f   : > { %v763_v14 = vadd.f32 %v762_v13, %v721_v11  ;;  %v764_v16 = vpop.f32.mrb[2].mxu1  ;;  %v724_v18 = vpop.f32.mrb[3].mxu0 }
 0x130   : > { %v767_v17 = vadd.f32 %v761_v10, %v283_v8  ;;  %v765_v19 = vpop.f32.mrb[3].mxu1 }
 0x131   : > { %v768_v20 = vadd.f32 %v763_v14, %v284_v12 }
 0x132   : > { %769 = vst [vmem:[#allocation2] sm:$0xff] %v767_v17 }
 0x133   : > { %770 = vst [vmem:[#allocation2 + $0x8] sm:$0xff] %v768_v20 }
 0x139   : > { %v775_v26 = vld [vmem:[#allocation2] sm:$0xff] }
 0x13a   : > { %v776_v27 = vld [vmem:[#allocation2 + $0x8] sm:$0xff]  ;;  %v789_v30 = vadd.f32 %v782_v28, %v775_v26 }
 0x13b   : > { %v790_v31 = vadd.f32 %v786_v29, %v776_v27 }
 0x13c   : > { %v791_v32 = vmax.f32 %v789_v30, 0.0 }
 0x13d   : > { %v792_v33 = vmax.f32 %v790_v31, 0.0 }
 0x13f   : > { %v1005_v34 = vpack.c.bf16 %v792_v33, %v791_v32 }
 0x141   : > { %801 = vst [vmem:[%s1294_s3] sm:$0xff] %v1005_v34 }
 0x142 PF: > { %s13_s14 = sadd.s32 1, %s1153_s14   ;;  %s1295_s12 = smov %s1149_s13 }
 0x143   : > { %p10_p8 = scmp.ge.s32.totalorder %s13_s14, 5   ;;  %s1296_s13 = smov %s1298_s15 }
 0x145   :  { %12 = sbr.rel (!%p10_p8) target bundleno = 2 (0x2), region = 76 }

// kernel: _lambda_.21
= control target key start
LH: loop header
LB: loop body
LE: loop exit
PB: predicated region body
PF: predicated region fallthrough
CT: control target
= control target key end

     0   :  { %v221_v1 = vmov 0   ;;  %v34_v18 = vlaneseq  ;;  %s299_s1 = inlined_call_operand.vmem [shape: bf16[128,256], index: 1, kind: input, shape index: {}]   ;;  %s300_s0 = inlined_call_operand.vmem [shape: bf16[8,128], index: 0, kind: input, shape index: {}]   ;;  %s301_s2 = inlined_call_operand.vmem [shape: f32[1,256], index: 2, kind: input, shape index: {}]   ;;  %s302_s3 = inlined_call_operand.vmem [shape: bf16[8,256], index: 3, kind: output, shape index: {}]  }
   0x1   :  { %v197_v0 = vld [vmem:[%s299_s1 + $0x4] ss:$8 sps:$4 sm:$0xff]   ;;  %156 = vmatprep.mubr.bf16.mxu0 %v221_v1  ;;  %v199_v2 = vld [vmem:[%s299_s1] ss:$8 sps:$4 sm:$0xff]   ;;  %v200_v3 = vld [vmem:[%s299_s1 + $0x14] ss:$8 sps:$4 sm:$0xff]  }
   0x2   :  { %124 = vmatprep.subr.bf16.mxu0 %v197_v0  ;;  %v202_v4 = vld [vmem:[%s299_s1 + $0x10] ss:$8 sps:$4 sm:$0xff]   ;;  %v203_v5 = vld [vmem:[%s299_s1 + $0x24] ss:$8 sps:$4 sm:$0xff]   ;;  %v205_v6 = vld [vmem:[%s299_s1 + $0x20] ss:$8 sps:$4 sm:$0xff]  }
   0x3   :  { %125 = vmatpush1.bf16.msra.mxu0 %v199_v2  ;;  %v206_v7 = vld [vmem:[%s299_s1 + $0x34] ss:$8 sps:$4 sm:$0xff]   ;;  %v208_v8 = vld [vmem:[%s299_s1 + $0x30] ss:$8 sps:$4 sm:$0xff]   ;;  %v209_v9 = vld [vmem:[%s299_s1 + $0x44] ss:$8 sps:$4 sm:$0xff]  }
   0x4   :  { %126 = vmatprep.subr.bf16.mxu0 %v200_v3  ;;  %v211_v10 = vld [vmem:[%s299_s1 + $0x40] ss:$8 sps:$4 sm:$0xff]   ;;  %v212_v11 = vld [vmem:[%s299_s1 + $0x54] ss:$8 sps:$4 sm:$0xff]   ;;  %v214_v12 = vld [vmem:[%s299_s1 + $0x50] ss:$8 sps:$4 sm:$0xff]  }
   0x5   :  { %v215_v13 = vld [vmem:[%s299_s1 + $0x64] ss:$8 sps:$4 sm:$0xff]   ;;  %v217_v14 = vld [vmem:[%s299_s1 + $0x60] ss:$8 sps:$4 sm:$0xff]   ;;  %v218_v15 = vld [vmem:[%s299_s1 + $0x74] ss:$8 sps:$4 sm:$0xff]  }
   0x6   :  { %v220_v16 = vld [vmem:[%s299_s1 + $0x70] ss:$8 sps:$4 sm:$0xff]   ;;  %v15_v17 = vld [vmem:[%s300_s0] sm:$0xf]  ;;  %v35_v19 = vshrl.u32 %v34_v18, 7 }
   0x7   :  { %127 = vmatpush1.bf16.msra.mxu0 %v202_v4  ;;  %v32_v21 = vld [vmem:[%s301_s2] sm:$0x3] }
   0x8   :  { %128 = vmatprep.subr.bf16.mxu0 %v203_v5  ;;  %v36_v20 = vsub.s32 0, %v35_v19  ;;  %v40_v22 = vsub.s32 1, %v35_v19 }
   0xa   :  { %v37_v23 = vrot.slane %v32_v21, %v36_v20  ;;  %v41_v24 = vrot.slane %v32_v21, %v40_v22 }
   0xb   :  { %129 = vmatpush1.bf16.msra.mxu0 %v205_v6 }
   0xc   :  { %130 = vmatprep.subr.bf16.mxu0 %v206_v7 }
   0xf   :  { %131 = vmatpush1.bf16.msra.mxu0 %v208_v8 }
  0x10   :  { %132 = vmatprep.subr.bf16.mxu0 %v209_v9 }
  0x13   :  { %133 = vmatpush1.bf16.msra.mxu0 %v211_v10 }
  0x14   :  { %134 = vmatprep.subr.bf16.mxu0 %v212_v11 }
  0x17   :  { %135 = vmatpush1.bf16.msra.mxu0 %v214_v12 }
  0x18   :  { %136 = vmatprep.subr.bf16.mxu0 %v215_v13 }
  0x1b   :  { %137 = vmatpush1.bf16.msra.mxu0 %v217_v14 }
  0x1c   :  { %138 = vmatprep.subr.bf16.mxu0 %v218_v15 }
  0x1f   :  { %139 = vmatpush1.bf16.msra.mxu0 %v220_v16 }
  0x22   :  { %157 = vmatmul.mubr.bf16.vlgmr.msra.gmra.mrb[0].mxu0 %v15_v17 }
  0xf5   :  { %v158_v25 = vpop.f32.mrb[0].mxu0 }
  0xf6   :  { %v159_v26 = vadd.f32 %v158_v25, %v37_v23  ;;  %v160_v27 = vpop.f32.mrb[1].mxu0 }
  0xf7   :  { %v161_v28 = vadd.f32 %v160_v27, %v41_v24  ;;  %v162_v29 = vpop.f32.mrb[2].mxu0 }
  0xf8   :  { %v163_v30 = vpop.f32.mrb[3].mxu0 }
  0xf9   :  { %v195_v31 = vpack.c.bf16 %v161_v28, %v159_v26 }
  0xfb   :  { %173 = vst [vmem:[%s302_s3] sm:$0xff] %v195_v31 }

// kernel: _lambda_.23
= control target key start
LH: loop header
LB: loop body
LE: loop exit
PB: predicated region body
PF: predicated region fallthrough
CT: control target
= control target key end

     0   :  { %s1271_s15 = smov 0   ;;  %s1273_s16 = smov 0   ;;  %s1389_s0 = inlined_call_operand.vmem [shape: bf16[8,2560], index: 0, kind: input, shape index: {}]   ;;  %s1390_s1 = inlined_call_operand.vmem [shape: bf16[2560,256], index: 1, kind: input, shape index: {}]   ;;  %s1391_s2 = inlined_call_operand.vmem [shape: f32[1,256], index: 2, kind: input, shape index: {}]   ;;  %s1392_s3 = inlined_call_operand.vmem [shape: bf16[8,256], index: 3, kind: input, shape index: {}]   ;;  %s1393_s4 = inlined_call_operand.vmem [shape: bf16[8,256], index: 4, kind: output, shape index: {}]  }
   0x1   :  { %s1275_s17 = smov 0  }
   0x2 LB: > { %s26_s18 = sadd.s32 1, %s1239_s16  ;;  %p1013_p0 = scmp.ge.s32.totalorder %s1243_s17, 1  ;;  %s1243_s17 = sphi %s1275_s17, %s14_s17   ;;  %s1239_s16 = sphi %s1273_s16, %s1395_s16   ;;  %s1235_s15 = sphi %s1271_s15, %s1394_s15  }
   0x3   : > { %p27_p1 = scmp.ge.s32.totalorder %s26_s18, 5  ;;  %p236_p2 = scmp.lt.s32.totalorder %s1243_s17, 6 }
   0x5   : > { %s1397_s18 = smov (%p27_p1, %s26_s18), 0  ;;  %p237_p3 = pnand %p1013_p0, %p236_p2 }
   0x6   : > { %s1014_s19 = sshll.u32 (!%p237_p3), %s1235_s15, 2  ;;  %s1016_s20 = sshll.u32 (!%p237_p3), %s1235_s15, 6 }
   0x7   : > { %240 = sbr.rel (%p237_p3) target bundleno = 324 (0x144), region = 36  ;;  %p296_p4 = scmp.lt.s32.totalorder (!%p237_p3), %s1014_s19, 19 }
   0x8   : > { %p305_p5 = scmp.lt.s32.totalorder (!%p237_p3), %s1016_s20, 319  ;;  %p1019_p6 = scmp.ne.s32.totalorder (!%p237_p3), %s1235_s15, 0 }
   0xe   : > { %s1399_s19 = smov (!%p296_p4, %s1014_s19), 19  ;;  %s1401_s20 = smov (!%p305_p5, %s1016_s20), 319 }
   0xf   : > { %s1015_s21 = sshll.u32 %s1399_s19, 2  ;;  %s1094_s25 = sshll.u32 %s1401_s20, 3  ;;  %v1245_v0 = vmov (!%p1019_p6), 0.0  }
  0x10   : > { %s1296_s24 = scalar_lea.vmem %s1389_s0, %s1015_s21  ;;  %s1301_s28 = scalar_lea.vmem %s1390_s1, %s1094_s25  ;;  %344 = vst [vmem:[#allocation2] sm:$0xff] (!%p1019_p6), %v1245_v0  ;;  %345 = vst [vmem:[#allocation2 + $0x8] sm:$0xff] (!%p1019_p6), %v1245_v0 }
  0x11   : > { %343 = sbr.rel (%p1019_p6) target bundleno = 24 (0x18), region = 40 }
  0x18 PF: > { %v1121_v1 = vld [vmem:[%s1301_s28 + $0x4] ss:$8 sps:$4 sm:$0xff]   ;;  %v1125_v3 = vld [vmem:[%s1301_s28] ss:$8 sps:$4 sm:$0xff]   ;;  %v1127_v5 = vld [vmem:[%s1301_s28 + $0x14] ss:$8 sps:$4 sm:$0xff]  }
  0x19   : > { %v1123_v2 = vld [vmem:[%s1301_s28 + $0x104] ss:$8 sps:$4 sm:$0xff]   ;;  %748 = vmatprep.subr.bf16.mxu0 %v1121_v1  ;;  %v1126_v4 = vld [vmem:[%s1301_s28 + $0x100] ss:$8 sps:$4 sm:$0xff]   ;;  %v1129_v6 = vld [vmem:[%s1301_s28 + $0x114] ss:$8 sps:$4 sm:$0xff]  }
  0x1a   : > { %789 = vmatprep.subr.bf16.mxu1 %v1123_v2  ;;  %749 = vmatpush1.bf16.msra.mxu0 %v1125_v3  ;;  %v1131_v7 = vld [vmem:[%s1301_s28 + $0x10] ss:$8 sps:$4 sm:$0xff]   ;;  %v1133_v9 = vld [vmem:[%s1301_s28 + $0x24] ss:$8 sps:$4 sm:$0xff]   ;;  %v1137_v11 = vld [vmem:[%s1301_s28 + $0x20] ss:$8 sps:$4 sm:$0xff]  }
  0x1b   : > { %790 = vmatpush1.bf16.msra.mxu1 %v1126_v4  ;;  %750 = vmatprep.subr.bf16.mxu0 %v1127_v5  ;;  %v1132_v8 = vld [vmem:[%s1301_s28 + $0x110] ss:$8 sps:$4 sm:$0xff]   ;;  %v1135_v10 = vld [vmem:[%s1301_s28 + $0x124] ss:$8 sps:$4 sm:$0xff]   ;;  %v1138_v12 = vld [vmem:[%s1301_s28 + $0x120] ss:$8 sps:$4 sm:$0xff]  }
  0x1c   : > { %791 = vmatprep.subr.bf16.mxu1 %v1129_v6  ;;  %v1139_v13 = vld [vmem:[%s1301_s28 + $0x34] ss:$8 sps:$4 sm:$0xff]   ;;  %v1143_v15 = vld [vmem:[%s1301_s28 + $0x30] ss:$8 sps:$4 sm:$0xff]   ;;  %v1145_v17 = vld [vmem:[%s1301_s28 + $0x44] ss:$8 sps:$4 sm:$0xff]  }
  0x1d   : > { %v1141_v14 = vld [vmem:[%s1301_s28 + $0x134] ss:$8 sps:$4 sm:$0xff]   ;;  %v1144_v16 = vld [vmem:[%s1301_s28 + $0x130] ss:$8 sps:$4 sm:$0xff]   ;;  %v1147_v18 = vld [vmem:[%s1301_s28 + $0x144] ss:$8 sps:$4 sm:$0xff]  }
  0x1e   : > { %751 = vmatpush1.bf16.msra.mxu0 %v1131_v7  ;;  %v1149_v19 = vld [vmem:[%s1301_s28 + $0x40] ss:$8 sps:$4 sm:$0xff]   ;;  %v1151_v21 = vld [vmem:[%s1301_s28 + $0x54] ss:$8 sps:$4 sm:$0xff]   ;;  %v1155_v23 = vld [vmem:[%s1301_s28 + $0x50] ss:$8 sps:$4 sm:$0xff]  }
  0x1f   : > { %792 = vmatpush1.bf16.msra.mxu1 %v1132_v8  ;;  %752 = vmatprep.subr.bf16.mxu0 %v1133_v9  ;;  %v1150_v20 = vld [vmem:[%s1301_s28 + $0x140] ss:$8 sps:$4 sm:$0xff]   ;;  %v1153_v22 = vld [vmem:[%s1301_s28 + $0x154] ss:$8 sps:$4 sm:$0xff]   ;;  %v1156_v24 = vld [vmem:[%s1301_s28 + $0x150] ss:$8 sps:$4 sm:$0xff]  }
  0x20   : > { %793 = vmatprep.subr.bf16.mxu1 %v1135_v10  ;;  %v1157_v25 = vld [vmem:[%s1301_s28 + $0x64] ss:$8 sps:$4 sm:$0xff]   ;;  %v1161_v27 = vld [vmem:[%s1301_s28 + $0x60] ss:$8 sps:$4 sm:$0xff]   ;;  %v1163_v29 = vld [vmem:[%s1301_s28 + $0x74] ss:$8 sps:$4 sm:$0xff]  }
  0x21   : > { %v1159_v26 = vld [vmem:[%s1301_s28 + $0x164] ss:$8 sps:$4 sm:$0xff]   ;;  %v1162_v28 = vld [vmem:[%s1301_s28 + $0x160] ss:$8 sps:$4 sm:$0xff]   ;;  %v1165_v30 = vld [vmem:[%s1301_s28 + $0x174] ss:$8 sps:$4 sm:$0xff]  }
  0x22   : > { %753 = vmatpush1.bf16.msra.mxu0 %v1137_v11  ;;  %v1167_v31 = vld [vmem:[%s1301_s28 + $0x70] ss:$8 sps:$4 sm:$0xff]   ;;  %v1169_v33 = vld [vmem:[%s1301_s28 + $0x84] ss:$8 sps:$4 sm:$0xff]   ;;  %v1173_v35 = vld [vmem:[%s1301_s28 + $0x80] ss:$8 sps:$4 sm:$0xff]  }
  0x23   : > { %794 = vmatpush1.bf16.msra.mxu1 %v1138_v12  ;;  %754 = vmatprep.subr.bf16.mxu0 %v1139_v13  ;;  %v1168_v32 = vld [vmem:[%s1301_s28 + $0x170] ss:$8 sps:$4 sm:$0xff]   ;;  %v1171_v34 = vld [vmem:[%s1301_s28 + $0x184] ss:$8 sps:$4 sm:$0xff]   ;;  %v1174_v36 = vld [vmem:[%s1301_s28 + $0x180] ss:$8 sps:$4 sm:$0xff]  }
  0x24   : > { %795 = vmatprep.subr.bf16.mxu1 %v1141_v14  ;;  %v1175_v37 = vld [vmem:[%s1301_s28 + $0x94] ss:$8 sps:$4 sm:$0xff]   ;;  %v1179_v39 = vld [vmem:[%s1301_s28 + $0x90] ss:$8 sps:$4 sm:$0xff]   ;;  %v1181_v41 = vld [vmem:[%s1301_s28 + $0xa4] ss:$8 sps:$4 sm:$0xff]  }
  0x25   : > { %v1177_v38 = vld [vmem:[%s1301_s28 + $0x194] ss:$8 sps:$4 sm:$0xff]   ;;  %v1180_v40 = vld [vmem:[%s1301_s28 + $0x190] ss:$8 sps:$4 sm:$0xff]   ;;  %v1183_v42 = vld [vmem:[%s1301_s28 + $0x1a4] ss:$8 sps:$4 sm:$0xff]  }
  0x26   : > { %755 = vmatpush1.bf16.msra.mxu0 %v1143_v15  ;;  %v1185_v43 = vld [vmem:[%s1301_s28 + $0xa0] ss:$8 sps:$4 sm:$0xff]   ;;  %v1187_v45 = vld [vmem:[%s1301_s28 + $0xb4] ss:$8 sps:$4 sm:$0xff]   ;;  %v1191_v50 = vld [vmem:[%s1301_s28 + $0xb0] ss:$8 sps:$4 sm:$0xff]  }
  0x27   : > { %796 = vmatpush1.bf16.msra.mxu1 %v1144_v16  ;;  %756 = vmatprep.subr.bf16.mxu0 %v1145_v17  ;;  %v1186_v44 = vld [vmem:[%s1301_s28 + $0x1a0] ss:$8 sps:$4 sm:$0xff]   ;;  %v1189_v46 = vld [vmem:[%s1301_s28 + $0x1b4] ss:$8 sps:$4 sm:$0xff]   ;;  %v1192_v51 = vld [vmem:[%s1301_s28 + $0x1b0] ss:$8 sps:$4 sm:$0xff]  }
  0x28   : > { %797 = vmatprep.subr.bf16.mxu1 %v1147_v18  ;;  %v348_v47 = vld [vmem:[%s1296_s24] sm:$0xff]  ;;  %v349_v49 = vld [vmem:[%s1296_s24 + $0x8] sm:$0xff]  ;;  %v1199_v57 = vld [vmem:[%s1301_s28 + $0xd4] ss:$8 sps:$4 sm:$0xff]   ;;  %p1088_p7 = scmp.ne.s32.totalorder %s1235_s15, 4 }
  0x29   : > { %v1021_v48 = vcombine.high %v348_v47, %v348_v47  ;;  %v1023_v52 = vcombine.high %v349_v49, %v349_v49  ;;  %v1193_v53 = vld [vmem:[%s1301_s28 + $0xc4] ss:$8 sps:$4 sm:$0xff]   ;;  %v1197_v55 = vld [vmem:[%s1301_s28 + $0xc0] ss:$8 sps:$4 sm:$0xff]   ;;  %v1201_v58 = vld [vmem:[%s1301_s28 + $0x1d4] ss:$8 sps:$4 sm:$0xff]   ;;  %v1020_v5 = vcombine.low %v348_v47, %v348_v47  ;;  %v1022_v6 = vcombine.low %v349_v49, %v349_v49 }
  0x2a   : > { %757 = vmatpush1.bf16.msra.mxu0 %v1149_v19  ;;  %v1195_v54 = vld [vmem:[%s1301_s28 + $0x1c4] ss:$8 sps:$4 sm:$0xff]   ;;  %v1198_v56 = vld [vmem:[%s1301_s28 + $0x1c0] ss:$8 sps:$4 sm:$0xff]   ;;  %v1203_v59 = vld [vmem:[%s1301_s28 + $0xd0] ss:$8 sps:$4 sm:$0xff]  }
  0x2b   : > { %798 = vmatpush1.bf16.msra.mxu1 %v1150_v20  ;;  %758 = vmatprep.subr.bf16.mxu0 %v1151_v21  ;;  %v1204_v60 = vld [vmem:[%s1301_s28 + $0x1d0] ss:$8 sps:$4 sm:$0xff]   ;;  %v1205_v61 = vld [vmem:[%s1301_s28 + $0xe4] ss:$8 sps:$4 sm:$0xff]   ;;  %v1209_v63 = vld [vmem:[%s1301_s28 + $0xe0] ss:$8 sps:$4 sm:$0xff]   ;;  %v842_v21 = vlaneseq (!%p1088_p7) }
  0x2c   : > { %799 = vmatprep.subr.bf16.mxu1 %v1153_v22  ;;  %780 = vmatprep.mubr.bf16.mxu0 %v1021_v48  ;;  %v1207_v62 = vld [vmem:[%s1301_s28 + $0x1e4] ss:$8 sps:$4 sm:$0xff]   ;;  %v1210_v0 = vld [vmem:[%s1301_s28 + $0x1e0] ss:$8 sps:$4 sm:$0xff]   ;;  %v1211_v1 = vld [vmem:[%s1301_s28 + $0xf4] ss:$8 sps:$4 sm:$0xff]  }
  0x2d   : > { %821 = vmatprep.mubr.bf16.mxu1 %v1023_v52  ;;  %v1213_v2 = vld [vmem:[%s1301_s28 + $0x1f4] ss:$8 sps:$4 sm:$0xff]   ;;  %v1215_v3 = vld [vmem:[%s1301_s28 + $0xf0] ss:$8 sps:$4 sm:$0xff]   ;;  %v346_v8 = vld [vmem:[#allocation2] sm:$0xff]  ;;  %v843_v22 = vshrl.u32 (!%p1088_p7), %v842_v21, 7 }
  0x2e   : > { %759 = vmatpush1.bf16.msra.mxu0 %v1155_v23  ;;  %v1216_v4 = vld [vmem:[%s1301_s28 + $0x1f0] ss:$8 sps:$4 sm:$0xff]   ;;  %v347_v12 = vld [vmem:[#allocation2 + $0x8] sm:$0xff]  ;;  %v840_v23 = vld [vmem:[%s1391_s2] sm:$0x3] (!%p1088_p7) }
  0x2f   : > { %800 = vmatpush1.bf16.msra.mxu1 %v1156_v24  ;;  %760 = vmatprep.subr.bf16.mxu0 %v1157_v25  ;;  %v854_v24 = vld [vmem:[%s1392_s3] sm:$0xff] (!%p1088_p7)  ;;  %v844_v25 = vsub.s32 (!%p1088_p7), 0, %v843_v22 }
  0x30   : > { %801 = vmatprep.subr.bf16.mxu1 %v1159_v26  ;;  %v848_v26 = vsub.s32 (!%p1088_p7), 1, %v843_v22 }
  0x32   : > { %761 = vmatpush1.bf16.msra.mxu0 %v1161_v27 }
  0x33   : > { %802 = vmatpush1.bf16.msra.mxu1 %v1162_v28  ;;  %762 = vmatprep.subr.bf16.mxu0 %v1163_v29  ;;  %v845_v29 = vrot.slane (!%p1088_p7), %v840_v23, %v844_v25 }
  0x34   : > { %803 = vmatprep.subr.bf16.mxu1 %v1165_v30  ;;  %v849_v30 = vrot.slane (!%p1088_p7), %v840_v23, %v848_v26 }
  0x36   : > { %763 = vmatpush1.bf16.msra.mxu0 %v1167_v31  ;;  %v855_v31 = vunpack.c.l.bf16 (!%p1088_p7), %v854_v24 }
  0x37   : > { %804 = vmatpush1.bf16.msra.mxu1 %v1168_v32  ;;  %764 = vmatprep.subr.bf16.mxu0 %v1169_v33  ;;  %v856_v32 = vunpack.c.h.bf16 (!%p1088_p7), %v854_v24 }
  0x38   : > { %805 = vmatprep.subr.bf16.mxu1 %v1171_v34 }
  0x3a   : > { %765 = vmatpush1.bf16.msra.mxu0 %v1173_v35 }
  0x3b   : > { %806 = vmatpush1.bf16.msra.mxu1 %v1174_v36  ;;  %766 = vmatprep.subr.bf16.mxu0 %v1175_v37 }
  0x3c   : > { %807 = vmatprep.subr.bf16.mxu1 %v1177_v38 }
  0x3e   : > { %767 = vmatpush1.bf16.msra.mxu0 %v1179_v39 }
  0x3f   : > { %808 = vmatpush1.bf16.msra.mxu1 %v1180_v40  ;;  %768 = vmatprep.subr.bf16.mxu0 %v1181_v41 }
  0x40   : > { %809 = vmatprep.subr.bf16.mxu1 %v1183_v42 }
  0x42   : > { %769 = vmatpush1.bf16.msra.mxu0 %v1185_v43 }
  0x43   : > { %810 = vmatpush1.bf16.msra.mxu1 %v1186_v44  ;;  %770 = vmatprep.subr.bf16.mxu0 %v1187_v45 }
  0x44   : > { %811 = vmatprep.subr.bf16.mxu1 %v1189_v46 }
  0x46   : > { %771 = vmatpush1.bf16.msra.mxu0 %v1191_v50 }
  0x47   : > { %812 = vmatpush1.bf16.msra.mxu1 %v1192_v51  ;;  %772 = vmatprep.subr.bf16.mxu0 %v1193_v53 }
  0x48   : > { %813 = vmatprep.subr.bf16.mxu1 %v1195_v54 }
  0x4a   : > { %773 = vmatpush1.bf16.msra.mxu0 %v1197_v55 }
  0x4b   : > { %814 = vmatpush1.bf16.msra.mxu1 %v1198_v56  ;;  %774 = vmatprep.subr.bf16.mxu0 %v1199_v57 }
  0x4c   : > { %815 = vmatprep.subr.bf16.mxu1 %v1201_v58 }
  0x4e   : > { %775 = vmatpush1.bf16.msra.mxu0 %v1203_v59 }
  0x4f   : > { %816 = vmatpush1.bf16.msra.mxu1 %v1204_v60  ;;  %776 = vmatprep.subr.bf16.mxu0 %v1205_v61 }
  0x50   : > { %817 = vmatprep.subr.bf16.mxu1 %v1207_v62 }
  0x52   : > { %777 = vmatpush1.bf16.msra.mxu0 %v1209_v63 }
  0x53   : > { %818 = vmatpush1.bf16.msra.mxu1 %v1210_v0  ;;  %778 = vmatprep.subr.bf16.mxu0 %v1211_v1 }
  0x54   : > { %819 = vmatprep.subr.bf16.mxu1 %v1213_v2 }
  0x56   : > { %779 = vmatpush1.bf16.msra.mxu0 %v1215_v3 }
  0x57   : > { %820 = vmatpush1.bf16.msra.mxu1 %v1216_v4 }
  0x59   : > { %781 = vmatmul.mubr.bf16.vlgmr.msra.gmra.mrb[0].mxu0 %v1020_v5 }
  0x5a   : > { %822 = vmatmul.mubr.bf16.vlgmr.msra.gmra.mrb[0].mxu1 %v1022_v6 }
 0x12c   : > { %v782_v7 = vpop.f32.mrb[0].mxu0 }
 0x12d   : > { %v823_v9 = vpop.f32.mrb[0].mxu1  ;;  %v784_v11 = vpop.f32.mrb[1].mxu0  ;;  %837 = sbr.rel (%p1088_p7) target bundleno = 324 (0x144), region = 44 }
 0x12e   : > { %v824_v10 = vadd.f32 %v823_v9, %v782_v7  ;;  %v825_v13 = vpop.f32.mrb[1].mxu1  ;;  %v786_v15 = vpop.f32.mrb[2].mxu0 }
 0x12f   : > { %v826_v14 = vadd.f32 %v825_v13, %v784_v11  ;;  %v827_v16 = vpop.f32.mrb[2].mxu1  ;;  %v787_v18 = vpop.f32.mrb[3].mxu0 }
 0x130   : > { %v830_v17 = vadd.f32 %v824_v10, %v346_v8  ;;  %v828_v19 = vpop.f32.mrb[3].mxu1 }
 0x131   : > { %v831_v20 = vadd.f32 %v826_v14, %v347_v12 }
 0x132   : > { %832 = vst [vmem:[#allocation2] sm:$0xff] %v830_v17 }
 0x133   : > { %833 = vst [vmem:[#allocation2 + $0x8] sm:$0xff] %v831_v20 }
 0x139   : > { %v838_v27 = vld [vmem:[#allocation2] sm:$0xff] }
 0x13a   : > { %v839_v28 = vld [vmem:[#allocation2 + $0x8] sm:$0xff]  ;;  %v852_v33 = vadd.f32 %v845_v29, %v838_v27 }
 0x13b   : > { %v853_v34 = vadd.f32 %v849_v30, %v839_v28 }
 0x13c   : > { %v857_v35 = vadd.f32 %v855_v31, %v852_v33 }
 0x13d   : > { %v858_v36 = vadd.f32 %v856_v32, %v853_v34 }
 0x13e   : > { %v859_v37 = vmax.f32 %v857_v35, 0.0 }
 0x13f   : > { %v860_v38 = vmax.f32 %v858_v36, 0.0 }
 0x141   : > { %v1095_v39 = vpack.c.bf16 %v860_v38, %v859_v37 }
 0x143   : > { %869 = vst [vmem:[%s1393_s4] sm:$0xff] %v1095_v39 }
 0x144 PF: > { %s14_s17 = sadd.s32 1, %s1243_s17   ;;  %s1394_s15 = smov %s1239_s16 }
 0x145   : > { %p11_p8 = scmp.ge.s32.totalorder %s14_s17, 7   ;;  %s1395_s16 = smov %s1397_s18 }
 0x147   :  { %13 = sbr.rel (!%p11_p8) target bundleno = 2 (0x2), region = 83 }

// kernel: _lambda_.25
= control target key start
LH: loop header
LB: loop body
LE: loop exit
PB: predicated region body
PF: predicated region fallthrough
CT: control target
= control target key end

     0   :  { %s1523_s12 = smov 0   ;;  %s1525_s13 = smov 0   ;;  %s1834_s0 = inlined_call_operand.vmem [shape: bf16[8,2560], index: 0, kind: input, shape index: {}]   ;;  %s1835_s1 = inlined_call_operand.vmem [shape: bf16[2560,512], index: 1, kind: input, shape index: {}]   ;;  %s1836_s2 = inlined_call_operand.vmem [shape: f32[1,512], index: 2, kind: input, shape index: {}]   ;;  %s1837_s3 = inlined_call_operand.vmem [shape: bf16[8,512], index: 3, kind: output, shape index: {}]  }
   0x1   :  { %s1527_s14 = smov 0   ;;  %s1529_s15 = smov 0  }
   0x2   :  { %s1531_s16 = smov 0   ;;  %s1533_s17 = smov 0  }
   0x3   :  { %s1535_s18 = smov 0  }
   0x4 LB: > { %s25_s19 = sadd.s32 1, %s1492_s16  ;;  %s28_s20 = sadd.s32 1, %s1496_s17  ;;  %s1500_s18 = sphi %s1535_s18, %s13_s18   ;;  %s1496_s17 = sphi %s1533_s17, %s1843_s17   ;;  %s1492_s16 = sphi %s1531_s16, %s1842_s16   ;;  %s1488_s15 = sphi %s1529_s15, %s1841_s15   ;;  %s1484_s14 = sphi %s1527_s14, %s1840_s14   ;;  %s1480_s13 = sphi %s1525_s13, %s1839_s13   ;;  %s1476_s12 = sphi %s1523_s12, %s1838_s12  }
   0x5   : > { %p26_p0 = scmp.ge.s32.totalorder %s25_s19, 5  ;;  %p76_p1 = scmp.ne.s32.totalorder %s1480_s13, %s1476_s12 }
   0x6   : > { %p77_p2 = scmp.eq.s32.totalorder %s1500_s18, 0  ;;  %s69_s24 = sadd.s32 1, %s1480_s13 }
   0x7   : > { %s1845_s19 = smov (%p26_p0, %s25_s19), 0  ;;  %s1847_s20 = smov (!%p26_p0, %s28_s20), %s1496_s17 }
   0x8   : > { %p78_p3 = por %p77_p2, %p76_p1  ;;  %p30_p4 = scmp.ge.s32.totalorder %s1847_s20, 2 }
   0x9   : > { %s64_s21 = ssub.s32 %s1492_s16, %s1845_s19  ;;  %p1201_p6 = scmp.ge.s32.totalorder %s1500_s18, 10 }
   0xa   : > { %s1849_s20 = smov (%p30_p4, %s1847_s20), 0 }
   0xb   : > { %s65_s22 = ssub.s32 %s1496_s17, %s1849_s20  ;;  %156 = sbr.rel (%p1201_p6) target bundleno = 57 (0x39), region = 16 }
   0xc   : > { %s66_s23 = sor.u32 %s65_s22, %s64_s21 }
   0xd   : > { %p67_p5 = scmp.eq.s32.totalorder %s66_s23, 0 }
   0xf   : > { %s1574_s25 = scalar_select %p67_p5, %s1480_s13, %s69_s24  }
  0x12   : > { %172 = sbr.rel (!%p78_p3) target bundleno = 57 (0x39), region = 24  ;;  %s174_s26 = sand.u32 (%p78_p3), 1, %s1480_s13  }
  0x13   : > { %s1204_s27 = sshll.u32 (%p78_p3), %s1496_s17, 1  ;;  %s1202_s28 = sshll.u32 (%p78_p3), %s174_s26, 9 }
  0x14   : > { %s1287_s29 = sshll.u32 (%p78_p3), %s1492_s16, 8  ;;  %s1588_s8 = scalar_lea.vmem (%p78_p3), [#allocation3], %s1202_s28 }
  0x15   : > { %s180_s30 = sadd.s32 (%p78_p3), %s1287_s29, %s1204_s27 }
  0x16   : > { %s1206_s4 = sshll.u32 (%p78_p3), %s180_s30, 2 }
  0x17   : > { %s1583_s7 = scalar_lea.vmem (%p78_p3), %s1835_s1, %s1206_s4 }
  0x18   : > { %v336_v0 = vld [vmem:[%s1583_s7] sm:$0xff] (%p78_p3)  ;;  %v338_v1 = vld [vmem:[%s1583_s7 + $0x10] sm:$0xff] (%p78_p3) }
  0x19   : > { %v340_v2 = vld [vmem:[%s1583_s7 + $0x20] sm:$0xff]  ;;  %337 = vst [vmem:[%s1588_s8] sm:$0xff] %v336_v0  ;;  %339 = vst [vmem:[%s1588_s8 + $0x8] sm:$0xff] %v338_v1  ;;  %v342_v3 = vld [vmem:[%s1583_s7 + $0x30] sm:$0xff] }
  0x1a   : > { %341 = vst [vmem:[%s1588_s8 + $0x10] sm:$0xff] %v340_v2  ;;  %v344_v4 = vld [vmem:[%s1583_s7 + $0x40] sm:$0xff]  ;;  %v346_v5 = vld [vmem:[%s1583_s7 + $0x50] sm:$0xff]  ;;  %343 = vst [vmem:[%s1588_s8 + $0x18] sm:$0xff] %v342_v3 }
  0x1b   : > { %345 = vst [vmem:[%s1588_s8 + $0x20] sm:$0xff] %v344_v4  ;;  %347 = vst [vmem:[%s1588_s8 + $0x28] sm:$0xff] %v346_v5  ;;  %v348_v6 = vld [vmem:[%s1583_s7 + $0x60] sm:$0xff]  ;;  %v350_v7 = vld [vmem:[%s1583_s7 + $0x70] sm:$0xff] }
  0x1c   : > { %v352_v8 = vld [vmem:[%s1583_s7 + $0x80] sm:$0xff]  ;;  %349 = vst [vmem:[%s1588_s8 + $0x30] sm:$0xff] %v348_v6  ;;  %351 = vst [vmem:[%s1588_s8 + $0x38] sm:$0xff] %v350_v7  ;;  %v354_v9 = vld [vmem:[%s1583_s7 + $0x90] sm:$0xff] }
  0x1d   : > { %353 = vst [vmem:[%s1588_s8 + $0x40] sm:$0xff] %v352_v8  ;;  %v356_v10 = vld [vmem:[%s1583_s7 + $0xa0] sm:$0xff]  ;;  %v358_v11 = vld [vmem:[%s1583_s7 + $0xb0] sm:$0xff]  ;;  %355 = vst [vmem:[%s1588_s8 + $0x48] sm:$0xff] %v354_v9 }
  0x1e   : > { %357 = vst [vmem:[%s1588_s8 + $0x50] sm:$0xff] %v356_v10  ;;  %359 = vst [vmem:[%s1588_s8 + $0x58] sm:$0xff] %v358_v11  ;;  %v360_v12 = vld [vmem:[%s1583_s7 + $0xc0] sm:$0xff]  ;;  %v362_v13 = vld [vmem:[%s1583_s7 + $0xd0] sm:$0xff] }
  0x1f   : > { %v364_v14 = vld [vmem:[%s1583_s7 + $0xe0] sm:$0xff]  ;;  %361 = vst [vmem:[%s1588_s8 + $0x60] sm:$0xff] %v360_v12  ;;  %363 = vst [vmem:[%s1588_s8 + $0x68] sm:$0xff] %v362_v13  ;;  %v366_v15 = vld [vmem:[%s1583_s7 + $0xf0] sm:$0xff] }
  0x20   : > { %365 = vst [vmem:[%s1588_s8 + $0x70] sm:$0xff] %v364_v14  ;;  %v368_v16 = vld [vmem:[%s1583_s7 + $0x100] sm:$0xff]  ;;  %v370_v17 = vld [vmem:[%s1583_s7 + $0x110] sm:$0xff]  ;;  %367 = vst [vmem:[%s1588_s8 + $0x78] sm:$0xff] %v366_v15 }
  0x21   : > { %369 = vst [vmem:[%s1588_s8 + $0x80] sm:$0xff] %v368_v16  ;;  %371 = vst [vmem:[%s1588_s8 + $0x88] sm:$0xff] %v370_v17  ;;  %v372_v18 = vld [vmem:[%s1583_s7 + $0x120] sm:$0xff]  ;;  %v374_v19 = vld [vmem:[%s1583_s7 + $0x130] sm:$0xff] }
  0x22   : > { %v376_v20 = vld [vmem:[%s1583_s7 + $0x140] sm:$0xff]  ;;  %373 = vst [vmem:[%s1588_s8 + $0x90] sm:$0xff] %v372_v18  ;;  %375 = vst [vmem:[%s1588_s8 + $0x98] sm:$0xff] %v374_v19  ;;  %v378_v21 = vld [vmem:[%s1583_s7 + $0x150] sm:$0xff] }
  0x23   : > { %377 = vst [vmem:[%s1588_s8 + $0xa0] sm:$0xff] %v376_v20  ;;  %v380_v22 = vld [vmem:[%s1583_s7 + $0x160] sm:$0xff]  ;;  %v382_v23 = vld [vmem:[%s1583_s7 + $0x170] sm:$0xff]  ;;  %379 = vst [vmem:[%s1588_s8 + $0xa8] sm:$0xff] %v378_v21 }
  0x24   : > { %381 = vst [vmem:[%s1588_s8 + $0xb0] sm:$0xff] %v380_v22  ;;  %383 = vst [vmem:[%s1588_s8 + $0xb8] sm:$0xff] %v382_v23  ;;  %v384_v24 = vld [vmem:[%s1583_s7 + $0x180] sm:$0xff]  ;;  %v386_v25 = vld [vmem:[%s1583_s7 + $0x190] sm:$0xff] }
  0x25   : > { %v388_v26 = vld [vmem:[%s1583_s7 + $0x1a0] sm:$0xff]  ;;  %385 = vst [vmem:[%s1588_s8 + $0xc0] sm:$0xff] %v384_v24  ;;  %387 = vst [vmem:[%s1588_s8 + $0xc8] sm:$0xff] %v386_v25  ;;  %v390_v27 = vld [vmem:[%s1583_s7 + $0x1b0] sm:$0xff] }
  0x26   : > { %389 = vst [vmem:[%s1588_s8 + $0xd0] sm:$0xff] %v388_v26  ;;  %v392_v28 = vld [vmem:[%s1583_s7 + $0x1c0] sm:$0xff]  ;;  %v394_v29 = vld [vmem:[%s1583_s7 + $0x1d0] sm:$0xff]  ;;  %391 = vst [vmem:[%s1588_s8 + $0xd8] sm:$0xff] %v390_v27 }
  0x27   : > { %393 = vst [vmem:[%s1588_s8 + $0xe0] sm:$0xff] %v392_v28  ;;  %395 = vst [vmem:[%s1588_s8 + $0xe8] sm:$0xff] %v394_v29  ;;  %v396_v30 = vld [vmem:[%s1583_s7 + $0x1e0] sm:$0xff]  ;;  %v398_v31 = vld [vmem:[%s1583_s7 + $0x1f0] sm:$0xff] }
  0x28   : > { %v400_v32 = vld [vmem:[%s1583_s7 + $0x200] sm:$0xff]  ;;  %397 = vst [vmem:[%s1588_s8 + $0xf0] sm:$0xff] %v396_v30  ;;  %399 = vst [vmem:[%s1588_s8 + $0xf8] sm:$0xff] %v398_v31  ;;  %v402_v33 = vld [vmem:[%s1583_s7 + $0x210] sm:$0xff] }
  0x29   : > { %401 = vst [vmem:[%s1588_s8 + $0x100] sm:$0xff] %v400_v32  ;;  %v404_v34 = vld [vmem:[%s1583_s7 + $0x220] sm:$0xff]  ;;  %v406_v35 = vld [vmem:[%s1583_s7 + $0x230] sm:$0xff]  ;;  %403 = vst [vmem:[%s1588_s8 + $0x108] sm:$0xff] %v402_v33 }
  0x2a   : > { %405 = vst [vmem:[%s1588_s8 + $0x110] sm:$0xff] %v404_v34  ;;  %407 = vst [vmem:[%s1588_s8 + $0x118] sm:$0xff] %v406_v35  ;;  %v408_v36 = vld [vmem:[%s1583_s7 + $0x240] sm:$0xff]  ;;  %v410_v37 = vld [vmem:[%s1583_s7 + $0x250] sm:$0xff] }
  0x2b   : > { %v412_v38 = vld [vmem:[%s1583_s7 + $0x260] sm:$0xff]  ;;  %409 = vst [vmem:[%s1588_s8 + $0x120] sm:$0xff] %v408_v36  ;;  %411 = vst [vmem:[%s1588_s8 + $0x128] sm:$0xff] %v410_v37  ;;  %v414_v39 = vld [vmem:[%s1583_s7 + $0x270] sm:$0xff] }
  0x2c   : > { %413 = vst [vmem:[%s1588_s8 + $0x130] sm:$0xff] %v412_v38  ;;  %v416_v40 = vld [vmem:[%s1583_s7 + $0x280] sm:$0xff]  ;;  %v418_v41 = vld [vmem:[%s1583_s7 + $0x290] sm:$0xff]  ;;  %415 = vst [vmem:[%s1588_s8 + $0x138] sm:$0xff] %v414_v39 }
  0x2d   : > { %417 = vst [vmem:[%s1588_s8 + $0x140] sm:$0xff] %v416_v40  ;;  %419 = vst [vmem:[%s1588_s8 + $0x148] sm:$0xff] %v418_v41  ;;  %v420_v42 = vld [vmem:[%s1583_s7 + $0x2a0] sm:$0xff]  ;;  %v422_v43 = vld [vmem:[%s1583_s7 + $0x2b0] sm:$0xff] }
  0x2e   : > { %v424_v44 = vld [vmem:[%s1583_s7 + $0x2c0] sm:$0xff]  ;;  %421 = vst [vmem:[%s1588_s8 + $0x150] sm:$0xff] %v420_v42  ;;  %423 = vst [vmem:[%s1588_s8 + $0x158] sm:$0xff] %v422_v43  ;;  %v426_v45 = vld [vmem:[%s1583_s7 + $0x2d0] sm:$0xff] }
  0x2f   : > { %425 = vst [vmem:[%s1588_s8 + $0x160] sm:$0xff] %v424_v44  ;;  %v428_v46 = vld [vmem:[%s1583_s7 + $0x2e0] sm:$0xff]  ;;  %v430_v47 = vld [vmem:[%s1583_s7 + $0x2f0] sm:$0xff]  ;;  %427 = vst [vmem:[%s1588_s8 + $0x168] sm:$0xff] %v426_v45 }
  0x30   : > { %429 = vst [vmem:[%s1588_s8 + $0x170] sm:$0xff] %v428_v46  ;;  %431 = vst [vmem:[%s1588_s8 + $0x178] sm:$0xff] %v430_v47  ;;  %v432_v48 = vld [vmem:[%s1583_s7 + $0x300] sm:$0xff]  ;;  %v434_v49 = vld [vmem:[%s1583_s7 + $0x310] sm:$0xff] }
  0x31   : > { %v436_v50 = vld [vmem:[%s1583_s7 + $0x320] sm:$0xff]  ;;  %433 = vst [vmem:[%s1588_s8 + $0x180] sm:$0xff] %v432_v48  ;;  %435 = vst [vmem:[%s1588_s8 + $0x188] sm:$0xff] %v434_v49  ;;  %v438_v51 = vld [vmem:[%s1583_s7 + $0x330] sm:$0xff] }
  0x32   : > { %437 = vst [vmem:[%s1588_s8 + $0x190] sm:$0xff] %v436_v50  ;;  %v440_v52 = vld [vmem:[%s1583_s7 + $0x340] sm:$0xff]  ;;  %v442_v53 = vld [vmem:[%s1583_s7 + $0x350] sm:$0xff]  ;;  %439 = vst [vmem:[%s1588_s8 + $0x198] sm:$0xff] %v438_v51 }
  0x33   : > { %441 = vst [vmem:[%s1588_s8 + $0x1a0] sm:$0xff] %v440_v52  ;;  %443 = vst [vmem:[%s1588_s8 + $0x1a8] sm:$0xff] %v442_v53  ;;  %v444_v54 = vld [vmem:[%s1583_s7 + $0x360] sm:$0xff]  ;;  %v446_v55 = vld [vmem:[%s1583_s7 + $0x370] sm:$0xff] }
  0x34   : > { %v448_v56 = vld [vmem:[%s1583_s7 + $0x380] sm:$0xff]  ;;  %445 = vst [vmem:[%s1588_s8 + $0x1b0] sm:$0xff] %v444_v54  ;;  %447 = vst [vmem:[%s1588_s8 + $0x1b8] sm:$0xff] %v446_v55  ;;  %v450_v57 = vld [vmem:[%s1583_s7 + $0x390] sm:$0xff] }
  0x35   : > { %449 = vst [vmem:[%s1588_s8 + $0x1c0] sm:$0xff] %v448_v56  ;;  %v452_v58 = vld [vmem:[%s1583_s7 + $0x3a0] sm:$0xff]  ;;  %v454_v59 = vld [vmem:[%s1583_s7 + $0x3b0] sm:$0xff]  ;;  %451 = vst [vmem:[%s1588_s8 + $0x1c8] sm:$0xff] %v450_v57 }
  0x36   : > { %453 = vst [vmem:[%s1588_s8 + $0x1d0] sm:$0xff] %v452_v58  ;;  %455 = vst [vmem:[%s1588_s8 + $0x1d8] sm:$0xff] %v454_v59  ;;  %v456_v60 = vld [vmem:[%s1583_s7 + $0x3c0] sm:$0xff]  ;;  %v458_v61 = vld [vmem:[%s1583_s7 + $0x3d0] sm:$0xff] }
  0x37   : > { %v460_v62 = vld [vmem:[%s1583_s7 + $0x3e0] sm:$0xff]  ;;  %457 = vst [vmem:[%s1588_s8 + $0x1e0] sm:$0xff] %v456_v60  ;;  %459 = vst [vmem:[%s1588_s8 + $0x1e8] sm:$0xff] %v458_v61  ;;  %v462_v63 = vld [vmem:[%s1583_s7 + $0x3f0] sm:$0xff] }
  0x38   : > { %461 = vst [vmem:[%s1588_s8 + $0x1f0] sm:$0xff] %v460_v62  ;;  %463 = vst [vmem:[%s1588_s8 + $0x1f8] sm:$0xff] %v462_v63 }
  0x39 PF: > { %p1207_p7 = scmp.ge.s32.totalorder %s1500_s18, 1  ;;  %p476_p8 = scmp.lt.s32.totalorder %s1500_s18, 11 }
  0x3b   : > { %p477_p9 = pnand %p1207_p7, %p476_p8 }
  0x3c   : > { %s483_s9 = sand.u32 (!%p477_p9), 1, %s1476_s12   ;;  %s1209_s10 = sshll.u32 (!%p477_p9), %s1484_s14, 2 }
  0x3d   : > { %480 = sbr.rel (%p477_p9) target bundleno = 376 (0x178), region = 66  ;;  %s1208_s11 = sshll.u32 (!%p477_p9), %s483_s9, 9 }
  0x3e   : > { %p526_p10 = scmp.lt.s32.totalorder (!%p477_p9), %s1209_s10, 19  ;;  %s1211_s21 = sshll.u32 (!%p477_p9), %s1488_s15, 1 }
  0x3f   : > { %p536_p11 = scmp.lt.s32.totalorder (!%p477_p9), %s1211_s21, 3  ;;  %s1737_s5 = scalar_lea.vmem (!%p477_p9), [#allocation3], %s1208_s11 }
  0x40   : > { %p1214_p12 = scmp.ne.s32.totalorder (!%p477_p9), %s1484_s14, 0 }
  0x44   : > { %s1851_s10 = smov (!%p526_p10, %s1209_s10), 19  ;;  %s1853_s21 = smov (!%p536_p11, %s1211_s21), 3 }
  0x45   : > { %s1210_s22 = sshll.u32 %s1851_s10, 2  ;;  %s538_s12 = scalar_lea.vmem %s1836_s2, %s1853_s21  ;;  %v1502_v0 = vmov (!%p1214_p12), 0.0  }
  0x46   : > { %s1723_s26 = scalar_lea.vmem %s1834_s0, %s1210_s22  ;;  %s1213_s29 = sshll.u32 %s1853_s21, 2  ;;  %554 = vst [vmem:[#allocation2] sm:$0xff] (!%p1214_p12), %v1502_v0  ;;  %555 = vst [vmem:[#allocation2 + $0x8] sm:$0xff] (!%p1214_p12), %v1502_v0 }
  0x47   : > { %s1735_s15 = scalar_lea.vmem %s1837_s3, %s1213_s29  ;;  %553 = sbr.rel (%p1214_p12) target bundleno = 78 (0x4e), region = 74 }
  0x4e PF: > { %v1346_v1 = vld [vmem:[%s1737_s5 + $0x4] ss:$8 sps:$4 sm:$0xff]   ;;  %v1350_v3 = vld [vmem:[%s1737_s5] ss:$8 sps:$4 sm:$0xff]   ;;  %v1352_v5 = vld [vmem:[%s1737_s5 + $0x14] ss:$8 sps:$4 sm:$0xff]  }
  0x4f   : > { %v1348_v2 = vld [vmem:[%s1737_s5 + $0x104] ss:$8 sps:$4 sm:$0xff]   ;;  %958 = vmatprep.subr.bf16.mxu0 %v1346_v1  ;;  %v1351_v4 = vld [vmem:[%s1737_s5 + $0x100] ss:$8 sps:$4 sm:$0xff]   ;;  %v1354_v6 = vld [vmem:[%s1737_s5 + $0x114] ss:$8 sps:$4 sm:$0xff]  }
  0x50   : > { %999 = vmatprep.subr.bf16.mxu1 %v1348_v2  ;;  %959 = vmatpush1.bf16.msra.mxu0 %v1350_v3  ;;  %v1356_v7 = vld [vmem:[%s1737_s5 + $0x10] ss:$8 sps:$4 sm:$0xff]   ;;  %v1358_v9 = vld [vmem:[%s1737_s5 + $0x24] ss:$8 sps:$4 sm:$0xff]   ;;  %v1362_v11 = vld [vmem:[%s1737_s5 + $0x20] ss:$8 sps:$4 sm:$0xff]  }
  0x51   : > { %1000 = vmatpush1.bf16.msra.mxu1 %v1351_v4  ;;  %960 = vmatprep.subr.bf16.mxu0 %v1352_v5  ;;  %v1357_v8 = vld [vmem:[%s1737_s5 + $0x110] ss:$8 sps:$4 sm:$0xff]   ;;  %v1360_v10 = vld [vmem:[%s1737_s5 + $0x124] ss:$8 sps:$4 sm:$0xff]   ;;  %v1363_v12 = vld [vmem:[%s1737_s5 + $0x120] ss:$8 sps:$4 sm:$0xff]  }
  0x52   : > { %1001 = vmatprep.subr.bf16.mxu1 %v1354_v6  ;;  %v1364_v13 = vld [vmem:[%s1737_s5 + $0x34] ss:$8 sps:$4 sm:$0xff]   ;;  %v1368_v15 = vld [vmem:[%s1737_s5 + $0x30] ss:$8 sps:$4 sm:$0xff]   ;;  %v1370_v17 = vld [vmem:[%s1737_s5 + $0x44] ss:$8 sps:$4 sm:$0xff]  }
  0x53   : > { %v1366_v14 = vld [vmem:[%s1737_s5 + $0x134] ss:$8 sps:$4 sm:$0xff]   ;;  %v1369_v16 = vld [vmem:[%s1737_s5 + $0x130] ss:$8 sps:$4 sm:$0xff]   ;;  %v1372_v18 = vld [vmem:[%s1737_s5 + $0x144] ss:$8 sps:$4 sm:$0xff]  }
  0x54   : > { %961 = vmatpush1.bf16.msra.mxu0 %v1356_v7  ;;  %v1374_v19 = vld [vmem:[%s1737_s5 + $0x40] ss:$8 sps:$4 sm:$0xff]   ;;  %v1376_v21 = vld [vmem:[%s1737_s5 + $0x54] ss:$8 sps:$4 sm:$0xff]   ;;  %v1380_v23 = vld [vmem:[%s1737_s5 + $0x50] ss:$8 sps:$4 sm:$0xff]  }
  0x55   : > { %1002 = vmatpush1.bf16.msra.mxu1 %v1357_v8  ;;  %962 = vmatprep.subr.bf16.mxu0 %v1358_v9  ;;  %v1375_v20 = vld [vmem:[%s1737_s5 + $0x140] ss:$8 sps:$4 sm:$0xff]   ;;  %v1378_v22 = vld [vmem:[%s1737_s5 + $0x154] ss:$8 sps:$4 sm:$0xff]   ;;  %v1381_v24 = vld [vmem:[%s1737_s5 + $0x150] ss:$8 sps:$4 sm:$0xff]  }
  0x56   : > { %1003 = vmatprep.subr.bf16.mxu1 %v1360_v10  ;;  %v1382_v25 = vld [vmem:[%s1737_s5 + $0x64] ss:$8 sps:$4 sm:$0xff]   ;;  %v1386_v27 = vld [vmem:[%s1737_s5 + $0x60] ss:$8 sps:$4 sm:$0xff]   ;;  %v1388_v29 = vld [vmem:[%s1737_s5 + $0x74] ss:$8 sps:$4 sm:$0xff]  }
  0x57   : > { %v1384_v26 = vld [vmem:[%s1737_s5 + $0x164] ss:$8 sps:$4 sm:$0xff]   ;;  %v1387_v28 = vld [vmem:[%s1737_s5 + $0x160] ss:$8 sps:$4 sm:$0xff]   ;;  %v1390_v30 = vld [vmem:[%s1737_s5 + $0x174] ss:$8 sps:$4 sm:$0xff]  }
  0x58   : > { %963 = vmatpush1.bf16.msra.mxu0 %v1362_v11  ;;  %v1392_v31 = vld [vmem:[%s1737_s5 + $0x70] ss:$8 sps:$4 sm:$0xff]   ;;  %v1394_v33 = vld [vmem:[%s1737_s5 + $0x84] ss:$8 sps:$4 sm:$0xff]   ;;  %v1398_v35 = vld [vmem:[%s1737_s5 + $0x80] ss:$8 sps:$4 sm:$0xff]  }
  0x59   : > { %1004 = vmatpush1.bf16.msra.mxu1 %v1363_v12  ;;  %964 = vmatprep.subr.bf16.mxu0 %v1364_v13  ;;  %v1393_v32 = vld [vmem:[%s1737_s5 + $0x170] ss:$8 sps:$4 sm:$0xff]   ;;  %v1396_v34 = vld [vmem:[%s1737_s5 + $0x184] ss:$8 sps:$4 sm:$0xff]   ;;  %v1399_v36 = vld [vmem:[%s1737_s5 + $0x180] ss:$8 sps:$4 sm:$0xff]  }
  0x5a   : > { %1005 = vmatprep.subr.bf16.mxu1 %v1366_v14  ;;  %v1400_v37 = vld [vmem:[%s1737_s5 + $0x94] ss:$8 sps:$4 sm:$0xff]   ;;  %v1404_v39 = vld [vmem:[%s1737_s5 + $0x90] ss:$8 sps:$4 sm:$0xff]   ;;  %v1406_v41 = vld [vmem:[%s1737_s5 + $0xa4] ss:$8 sps:$4 sm:$0xff]  }
  0x5b   : > { %v1402_v38 = vld [vmem:[%s1737_s5 + $0x194] ss:$8 sps:$4 sm:$0xff]   ;;  %v1405_v40 = vld [vmem:[%s1737_s5 + $0x190] ss:$8 sps:$4 sm:$0xff]   ;;  %v1408_v42 = vld [vmem:[%s1737_s5 + $0x1a4] ss:$8 sps:$4 sm:$0xff]  }
  0x5c   : > { %965 = vmatpush1.bf16.msra.mxu0 %v1368_v15  ;;  %v1410_v43 = vld [vmem:[%s1737_s5 + $0xa0] ss:$8 sps:$4 sm:$0xff]   ;;  %v1412_v45 = vld [vmem:[%s1737_s5 + $0xb4] ss:$8 sps:$4 sm:$0xff]   ;;  %v1416_v50 = vld [vmem:[%s1737_s5 + $0xb0] ss:$8 sps:$4 sm:$0xff]  }
  0x5d   : > { %1006 = vmatpush1.bf16.msra.mxu1 %v1369_v16  ;;  %966 = vmatprep.subr.bf16.mxu0 %v1370_v17  ;;  %v1411_v44 = vld [vmem:[%s1737_s5 + $0x1a0] ss:$8 sps:$4 sm:$0xff]   ;;  %v1414_v46 = vld [vmem:[%s1737_s5 + $0x1b4] ss:$8 sps:$4 sm:$0xff]   ;;  %v1417_v51 = vld [vmem:[%s1737_s5 + $0x1b0] ss:$8 sps:$4 sm:$0xff]  }
  0x5e   : > { %1007 = vmatprep.subr.bf16.mxu1 %v1372_v18  ;;  %v558_v47 = vld [vmem:[%s1723_s26] sm:$0xff]  ;;  %v559_v49 = vld [vmem:[%s1723_s26 + $0x8] sm:$0xff]  ;;  %v1418_v53 = vld [vmem:[%s1737_s5 + $0xc4] ss:$8 sps:$4 sm:$0xff]   ;;  %p1283_p13 = scmp.ne.s32.totalorder %s1484_s14, 4 }
  0x5f   : > { %v1216_v48 = vcombine.high %v558_v47, %v558_v47  ;;  %v1218_v52 = vcombine.high %v559_v49, %v559_v49  ;;  %v1420_v54 = vld [vmem:[%s1737_s5 + $0x1c4] ss:$8 sps:$4 sm:$0xff]   ;;  %v1422_v55 = vld [vmem:[%s1737_s5 + $0xc0] ss:$8 sps:$4 sm:$0xff]   ;;  %v1424_v57 = vld [vmem:[%s1737_s5 + $0xd4] ss:$8 sps:$4 sm:$0xff]   ;;  %v1215_v5 = vcombine.low %v558_v47, %v558_v47  ;;  %v1217_v6 = vcombine.low %v559_v49, %v559_v49 }
  0x60   : > { %967 = vmatpush1.bf16.msra.mxu0 %v1374_v19  ;;  %v1423_v56 = vld [vmem:[%s1737_s5 + $0x1c0] ss:$8 sps:$4 sm:$0xff]   ;;  %v1426_v58 = vld [vmem:[%s1737_s5 + $0x1d4] ss:$8 sps:$4 sm:$0xff]   ;;  %v1428_v59 = vld [vmem:[%s1737_s5 + $0xd0] ss:$8 sps:$4 sm:$0xff]  }
  0x61   : > { %1008 = vmatpush1.bf16.msra.mxu1 %v1375_v20  ;;  %968 = vmatprep.subr.bf16.mxu0 %v1376_v21  ;;  %v1429_v60 = vld [vmem:[%s1737_s5 + $0x1d0] ss:$8 sps:$4 sm:$0xff]   ;;  %v1430_v61 = vld [vmem:[%s1737_s5 + $0xe4] ss:$8 sps:$4 sm:$0xff]   ;;  %v1434_v63 = vld [vmem:[%s1737_s5 + $0xe0] ss:$8 sps:$4 sm:$0xff]   ;;  %v1052_v21 = vlaneseq (!%p1283_p13) }
  0x62   : > { %1009 = vmatprep.subr.bf16.mxu1 %v1378_v22  ;;  %990 = vmatprep.mubr.bf16.mxu0 %v1216_v48  ;;  %v1432_v62 = vld [vmem:[%s1737_s5 + $0x1e4] ss:$8 sps:$4 sm:$0xff]   ;;  %v1435_v0 = vld [vmem:[%s1737_s5 + $0x1e0] ss:$8 sps:$4 sm:$0xff]   ;;  %v1436_v1 = vld [vmem:[%s1737_s5 + $0xf4] ss:$8 sps:$4 sm:$0xff]  }
  0x63   : > { %1031 = vmatprep.mubr.bf16.mxu1 %v1218_v52  ;;  %v1438_v2 = vld [vmem:[%s1737_s5 + $0x1f4] ss:$8 sps:$4 sm:$0xff]   ;;  %v1440_v3 = vld [vmem:[%s1737_s5 + $0xf0] ss:$8 sps:$4 sm:$0xff]   ;;  %v1053_v22 = vshrl.u32 (!%p1283_p13), %v1052_v21, 7 }
  0x64   : > { %969 = vmatpush1.bf16.msra.mxu0 %v1380_v23  ;;  %v1441_v4 = vld [vmem:[%s1737_s5 + $0x1f0] ss:$8 sps:$4 sm:$0xff]  }
  0x65   : > { %1010 = vmatpush1.bf16.msra.mxu1 %v1381_v24  ;;  %970 = vmatprep.subr.bf16.mxu0 %v1382_v25  ;;  %v556_v8 = vld [vmem:[#allocation2] sm:$0xff]  ;;  %v557_v12 = vld [vmem:[#allocation2 + $0x8] sm:$0xff]  ;;  %v1054_v24 = vsub.s32 (!%p1283_p13), 0, %v1053_v22  ;;  %v1058_v25 = vsub.s32 (!%p1283_p13), 1, %v1053_v22 }
  0x66   : > { %1011 = vmatprep.subr.bf16.mxu1 %v1384_v26  ;;  %v1050_v23 = vld [vmem:[%s538_s12] sm:$0x3] (!%p1283_p13) }
  0x68   : > { %971 = vmatpush1.bf16.msra.mxu0 %v1386_v27 }
  0x69   : > { %1012 = vmatpush1.bf16.msra.mxu1 %v1387_v28  ;;  %972 = vmatprep.subr.bf16.mxu0 %v1388_v29  ;;  %v1055_v28 = vrot.slane (!%p1283_p13), %v1050_v23, %v1054_v24  ;;  %v1059_v29 = vrot.slane (!%p1283_p13), %v1050_v23, %v1058_v25 }
  0x6a   : > { %1013 = vmatprep.subr.bf16.mxu1 %v1390_v30 }
  0x6c   : > { %973 = vmatpush1.bf16.msra.mxu0 %v1392_v31 }
  0x6d   : > { %1014 = vmatpush1.bf16.msra.mxu1 %v1393_v32  ;;  %974 = vmatprep.subr.bf16.mxu0 %v1394_v33 }
  0x6e   : > { %1015 = vmatprep.subr.bf16.mxu1 %v1396_v34 }
  0x70   : > { %975 = vmatpush1.bf16.msra.mxu0 %v1398_v35 }
  0x71   : > { %1016 = vmatpush1.bf16.msra.mxu1 %v1399_v36  ;;  %976 = vmatprep.subr.bf16.mxu0 %v1400_v37 }
  0x72   : > { %1017 = vmatprep.subr.bf16.mxu1 %v1402_v38 }
  0x74   : > { %977 = vmatpush1.bf16.msra.mxu0 %v1404_v39 }
  0x75   : > { %1018 = vmatpush1.bf16.msra.mxu1 %v1405_v40  ;;  %978 = vmatprep.subr.bf16.mxu0 %v1406_v41 }
  0x76   : > { %1019 = vmatprep.subr.bf16.mxu1 %v1408_v42 }
  0x78   : > { %979 = vmatpush1.bf16.msra.mxu0 %v1410_v43 }
  0x79   : > { %1020 = vmatpush1.bf16.msra.mxu1 %v1411_v44  ;;  %980 = vmatprep.subr.bf16.mxu0 %v1412_v45 }
  0x7a   : > { %1021 = vmatprep.subr.bf16.mxu1 %v1414_v46 }
  0x7c   : > { %981 = vmatpush1.bf16.msra.mxu0 %v1416_v50 }
  0x7d   : > { %1022 = vmatpush1.bf16.msra.mxu1 %v1417_v51  ;;  %982 = vmatprep.subr.bf16.mxu0 %v1418_v53 }
  0x7e   : > { %1023 = vmatprep.subr.bf16.mxu1 %v1420_v54 }
  0x80   : > { %983 = vmatpush1.bf16.msra.mxu0 %v1422_v55 }
  0x81   : > { %1024 = vmatpush1.bf16.msra.mxu1 %v1423_v56  ;;  %984 = vmatprep.subr.bf16.mxu0 %v1424_v57 }
  0x82   : > { %1025 = vmatprep.subr.bf16.mxu1 %v1426_v58 }
  0x84   : > { %985 = vmatpush1.bf16.msra.mxu0 %v1428_v59 }
  0x85   : > { %1026 = vmatpush1.bf16.msra.mxu1 %v1429_v60  ;;  %986 = vmatprep.subr.bf16.mxu0 %v1430_v61 }
  0x86   : > { %1027 = vmatprep.subr.bf16.mxu1 %v1432_v62 }
  0x88   : > { %987 = vmatpush1.bf16.msra.mxu0 %v1434_v63 }
  0x89   : > { %1028 = vmatpush1.bf16.msra.mxu1 %v1435_v0  ;;  %988 = vmatprep.subr.bf16.mxu0 %v1436_v1 }
  0x8a   : > { %1029 = vmatprep.subr.bf16.mxu1 %v1438_v2 }
  0x8c   : > { %989 = vmatpush1.bf16.msra.mxu0 %v1440_v3 }
  0x8d   : > { %1030 = vmatpush1.bf16.msra.mxu1 %v1441_v4 }
  0x8f   : > { %991 = vmatmul.mubr.bf16.vlgmr.msra.gmra.mrb[0].mxu0 %v1215_v5 }
  0x90   : > { %1032 = vmatmul.mubr.bf16.vlgmr.msra.gmra.mrb[0].mxu1 %v1217_v6 }
 0x162   : > { %v992_v7 = vpop.f32.mrb[0].mxu0 }
 0x163   : > { %v1033_v9 = vpop.f32.mrb[0].mxu1  ;;  %v994_v11 = vpop.f32.mrb[1].mxu0  ;;  %1047 = sbr.rel (%p1283_p13) target bundleno = 376 (0x178), region = 78 }
 0x164   : > { %v1034_v10 = vadd.f32 %v1033_v9, %v992_v7  ;;  %v1035_v13 = vpop.f32.mrb[1].mxu1  ;;  %v996_v15 = vpop.f32.mrb[2].mxu0 }
 0x165   : > { %v1036_v14 = vadd.f32 %v1035_v13, %v994_v11  ;;  %v1037_v16 = vpop.f32.mrb[2].mxu1  ;;  %v997_v18 = vpop.f32.mrb[3].mxu0 }
 0x166   : > { %v1040_v17 = vadd.f32 %v1034_v10, %v556_v8  ;;  %v1038_v19 = vpop.f32.mrb[3].mxu1 }
 0x167   : > { %v1041_v20 = vadd.f32 %v1036_v14, %v557_v12 }
 0x168   : > { %1042 = vst [vmem:[#allocation2] sm:$0xff] %v1040_v17 }
 0x169   : > { %1043 = vst [vmem:[#allocation2 + $0x8] sm:$0xff] %v1041_v20 }
 0x16f   : > { %v1048_v26 = vld [vmem:[#allocation2] sm:$0xff] }
 0x170   : > { %v1049_v27 = vld [vmem:[#allocation2 + $0x8] sm:$0xff]  ;;  %v1062_v30 = vadd.f32 %v1055_v28, %v1048_v26 }
 0x171   : > { %v1063_v31 = vadd.f32 %v1059_v29, %v1049_v27 }
 0x172   : > { %v1064_v32 = vmax.f32 %v1062_v30, 0.0 }
 0x173   : > { %v1065_v33 = vmax.f32 %v1063_v31, 0.0 }
 0x175   : > { %v1288_v34 = vpack.c.bf16 %v1065_v33, %v1064_v32 }
 0x177   : > { %1074 = vst [vmem:[%s1735_s15] sm:$0xff] %v1288_v34 }
 0x178 PF: > { %s13_s18 = sadd.s32 1, %s1500_s18   ;;  %s1838_s12 = smov %s1480_s13 }
 0x179   : > { %p10_p0 = scmp.ge.s32.totalorder %s13_s18, 12   ;;  %s1839_s13 = smov %s1574_s25 }
 0x17a   : > { %s1840_s14 = smov %s1492_s16  ;;  %s1841_s15 = smov %s1496_s17 }
 0x17b   : > { %s1842_s16 = smov %s1845_s19  ;;  %s1843_s17 = smov %s1849_s20 }
 0x17c   :  { %12 = sbr.rel (!%p10_p0) target bundleno = 4 (0x4), region = 119 }

// kernel: _lambda_.24
= control target key start
LH: loop header
LB: loop body
LE: loop exit
PB: predicated region body
PF: predicated region fallthrough
CT: control target
= control target key end

     0   :  { %s968_s12 = smov 0   ;;  %s970_s13 = smov 0   ;;  %s1147_s0 = inlined_call_operand.vmem [shape: bf16[8,256], index: 0, kind: input, shape index: {}]   ;;  %s1148_s1 = inlined_call_operand.vmem [shape: bf16[256,512], index: 1, kind: input, shape index: {}]   ;;  %s1149_s2 = inlined_call_operand.vmem [shape: f32[1,512], index: 2, kind: input, shape index: {}]   ;;  %s1150_s3 = inlined_call_operand.vmem [shape: bf16[8,512], index: 3, kind: output, shape index: {}]  }
   0x1   :  { %s972_s14 = smov 0   ;;  %s974_s15 = smov 0  }
   0x2   :  { %s976_s16 = smov 0  }
   0x3 LB: > { %s22_s17 = sadd.s32 1, %s942_s15  ;;  %p65_p1 = scmp.ne.s32.totalorder %s934_s13, %s930_s12  ;;  %s946_s16 = sphi %s976_s16, %s13_s16   ;;  %s942_s15 = sphi %s974_s15, %s1154_s15   ;;  %s938_s14 = sphi %s972_s14, %s1153_s14   ;;  %s934_s13 = sphi %s970_s13, %s1152_s13   ;;  %s930_s12 = sphi %s968_s12, %s1151_s12  }
   0x4   : > { %p23_p0 = scmp.ge.s32.totalorder %s22_s17, 2  ;;  %p66_p2 = scmp.eq.s32.totalorder %s946_s16, 0 }
   0x5   : > { %s58_s19 = sadd.s32 1, %s934_s13  ;;  %p770_p5 = scmp.ge.s32.totalorder %s946_s16, 2 }
   0x6   : > { %s1156_s17 = smov (%p23_p0, %s22_s17), 0  ;;  %p67_p3 = por %p66_p2, %p65_p1 }
   0x7   : > { %s55_s18 = ssub.s32 %s942_s15, %s1156_s17  ;;  %153 = sbr.rel (%p770_p5) target bundleno = 34 (0x22), region = 20 }
   0x8   : > { %p56_p4 = scmp.eq.s32.totalorder %s55_s18, 0 }
   0xa   : > { %s1003_s20 = scalar_select %p56_p4, %s934_s13, %s58_s19  }
   0xe   : > { %156 = sbr.rel (!%p67_p3) target bundleno = 34 (0x22), region = 24  ;;  %s158_s21 = sand.u32 (%p67_p3), 1, %s934_s13  }
   0xf   : > { %s816_s22 = sshll.u32 (%p67_p3), %s942_s15, 3  ;;  %s771_s23 = sshll.u32 (%p67_p3), %s158_s21, 8 }
  0x10   : > { %s1011_s26 = scalar_lea.vmem (%p67_p3), %s1148_s1, %s816_s22  ;;  %s1016_s27 = scalar_lea.vmem (%p67_p3), [#allocation2], %s771_s23 }
  0x11   : > { %v253_v0 = vld [vmem:[%s1011_s26] sm:$0xff] (%p67_p3)  ;;  %v255_v1 = vld [vmem:[%s1011_s26 + $0x10] sm:$0xff] (%p67_p3) }
  0x12   : > { %v257_v2 = vld [vmem:[%s1011_s26 + $0x20] sm:$0xff] (%p67_p3)  ;;  %254 = vst [vmem:[%s1016_s27] sm:$0xff] (%p67_p3), %v253_v0  ;;  %256 = vst [vmem:[%s1016_s27 + $0x8] sm:$0xff] (%p67_p3), %v255_v1  ;;  %v259_v3 = vld [vmem:[%s1011_s26 + $0x30] sm:$0xff] (%p67_p3) }
  0x13   : > { %258 = vst [vmem:[%s1016_s27 + $0x10] sm:$0xff] (%p67_p3), %v257_v2  ;;  %v261_v4 = vld [vmem:[%s1011_s26 + $0x40] sm:$0xff] (%p67_p3)  ;;  %v263_v5 = vld [vmem:[%s1011_s26 + $0x50] sm:$0xff] (%p67_p3)  ;;  %260 = vst [vmem:[%s1016_s27 + $0x18] sm:$0xff] (%p67_p3), %v259_v3 }
  0x14   : > { %262 = vst [vmem:[%s1016_s27 + $0x20] sm:$0xff] (%p67_p3), %v261_v4  ;;  %264 = vst [vmem:[%s1016_s27 + $0x28] sm:$0xff] (%p67_p3), %v263_v5  ;;  %v265_v6 = vld [vmem:[%s1011_s26 + $0x60] sm:$0xff] (%p67_p3)  ;;  %v267_v7 = vld [vmem:[%s1011_s26 + $0x70] sm:$0xff] (%p67_p3) }
  0x15   : > { %v269_v8 = vld [vmem:[%s1011_s26 + $0x80] sm:$0xff]  ;;  %266 = vst [vmem:[%s1016_s27 + $0x30] sm:$0xff] %v265_v6  ;;  %268 = vst [vmem:[%s1016_s27 + $0x38] sm:$0xff] %v267_v7  ;;  %v271_v9 = vld [vmem:[%s1011_s26 + $0x90] sm:$0xff] }
  0x16   : > { %270 = vst [vmem:[%s1016_s27 + $0x40] sm:$0xff] %v269_v8  ;;  %v273_v10 = vld [vmem:[%s1011_s26 + $0xa0] sm:$0xff]  ;;  %v275_v11 = vld [vmem:[%s1011_s26 + $0xb0] sm:$0xff]  ;;  %272 = vst [vmem:[%s1016_s27 + $0x48] sm:$0xff] %v271_v9 }
  0x17   : > { %274 = vst [vmem:[%s1016_s27 + $0x50] sm:$0xff] %v273_v10  ;;  %276 = vst [vmem:[%s1016_s27 + $0x58] sm:$0xff] %v275_v11  ;;  %v277_v12 = vld [vmem:[%s1011_s26 + $0xc0] sm:$0xff]  ;;  %v279_v13 = vld [vmem:[%s1011_s26 + $0xd0] sm:$0xff] }
  0x18   : > { %v281_v14 = vld [vmem:[%s1011_s26 + $0xe0] sm:$0xff]  ;;  %278 = vst [vmem:[%s1016_s27 + $0x60] sm:$0xff] %v277_v12  ;;  %280 = vst [vmem:[%s1016_s27 + $0x68] sm:$0xff] %v279_v13  ;;  %v283_v15 = vld [vmem:[%s1011_s26 + $0xf0] sm:$0xff] }
  0x19   : > { %282 = vst [vmem:[%s1016_s27 + $0x70] sm:$0xff] %v281_v14  ;;  %v285_v16 = vld [vmem:[%s1011_s26 + $0x100] sm:$0xff]  ;;  %v287_v17 = vld [vmem:[%s1011_s26 + $0x110] sm:$0xff]  ;;  %284 = vst [vmem:[%s1016_s27 + $0x78] sm:$0xff] %v283_v15 }
  0x1a   : > { %286 = vst [vmem:[%s1016_s27 + $0x80] sm:$0xff] %v285_v16  ;;  %288 = vst [vmem:[%s1016_s27 + $0x88] sm:$0xff] %v287_v17  ;;  %v289_v18 = vld [vmem:[%s1011_s26 + $0x120] sm:$0xff]  ;;  %v291_v19 = vld [vmem:[%s1011_s26 + $0x130] sm:$0xff] }
  0x1b   : > { %v293_v20 = vld [vmem:[%s1011_s26 + $0x140] sm:$0xff]  ;;  %290 = vst [vmem:[%s1016_s27 + $0x90] sm:$0xff] %v289_v18  ;;  %292 = vst [vmem:[%s1016_s27 + $0x98] sm:$0xff] %v291_v19  ;;  %v295_v21 = vld [vmem:[%s1011_s26 + $0x150] sm:$0xff] }
  0x1c   : > { %294 = vst [vmem:[%s1016_s27 + $0xa0] sm:$0xff] %v293_v20  ;;  %v297_v22 = vld [vmem:[%s1011_s26 + $0x160] sm:$0xff]  ;;  %v299_v23 = vld [vmem:[%s1011_s26 + $0x170] sm:$0xff]  ;;  %296 = vst [vmem:[%s1016_s27 + $0xa8] sm:$0xff] %v295_v21 }
  0x1d   : > { %298 = vst [vmem:[%s1016_s27 + $0xb0] sm:$0xff] %v297_v22  ;;  %300 = vst [vmem:[%s1016_s27 + $0xb8] sm:$0xff] %v299_v23  ;;  %v301_v24 = vld [vmem:[%s1011_s26 + $0x180] sm:$0xff]  ;;  %v303_v25 = vld [vmem:[%s1011_s26 + $0x190] sm:$0xff] }
  0x1e   : > { %v305_v26 = vld [vmem:[%s1011_s26 + $0x1a0] sm:$0xff]  ;;  %302 = vst [vmem:[%s1016_s27 + $0xc0] sm:$0xff] %v301_v24  ;;  %304 = vst [vmem:[%s1016_s27 + $0xc8] sm:$0xff] %v303_v25  ;;  %v307_v27 = vld [vmem:[%s1011_s26 + $0x1b0] sm:$0xff] }
  0x1f   : > { %306 = vst [vmem:[%s1016_s27 + $0xd0] sm:$0xff] %v305_v26  ;;  %v309_v28 = vld [vmem:[%s1011_s26 + $0x1c0] sm:$0xff]  ;;  %v311_v29 = vld [vmem:[%s1011_s26 + $0x1d0] sm:$0xff]  ;;  %308 = vst [vmem:[%s1016_s27 + $0xd8] sm:$0xff] %v307_v27 }
  0x20   : > { %310 = vst [vmem:[%s1016_s27 + $0xe0] sm:$0xff] %v309_v28  ;;  %312 = vst [vmem:[%s1016_s27 + $0xe8] sm:$0xff] %v311_v29  ;;  %v313_v30 = vld [vmem:[%s1011_s26 + $0x1e0] sm:$0xff]  ;;  %v315_v31 = vld [vmem:[%s1011_s26 + $0x1f0] sm:$0xff] }
  0x21   : > { %314 = vst [vmem:[%s1016_s27 + $0xf0] sm:$0xff] %v313_v30  ;;  %316 = vst [vmem:[%s1016_s27 + $0xf8] sm:$0xff] %v315_v31 }
  0x22 PF: > { %p774_p6 = scmp.ge.s32.totalorder %s946_s16, 1  ;;  %p329_p7 = scmp.lt.s32.totalorder %s946_s16, 3 }
  0x24   : > { %p330_p8 = pnand %p774_p6, %p329_p7 }
  0x25   : > { %s336_s28 = sand.u32 (!%p330_p8), 1, %s930_s12   ;;  %v1085_v32 = vld [vmem:[%s1147_s0] sm:$0xff] (!%p330_p8)  ;;  %s776_s6 = sshll.u32 (!%p330_p8), %s938_s14, 1  ;;  %v428_v3 = vlaneseq (!%p330_p8) }
  0x26   : > { %333 = sbr.rel (%p330_p8) target bundleno = 323 (0x143), region = 66  ;;  %s775_s4 = sshll.u32 (!%p330_p8), %s336_s28, 8  ;;  %v780_v33 = vcombine.high (!%p330_p8), %v1085_v32, %v1085_v32  ;;  %v779_v2 = vcombine.low (!%p330_p8), %v1085_v32, %v1085_v32 }
  0x27   : > { %s1089_s5 = scalar_lea.vmem (!%p330_p8), [#allocation2], %s775_s4  ;;  %p379_p9 = scmp.lt.s32.totalorder (!%p330_p8), %s776_s6, 3  ;;  %v429_v4 = vshrl.u32 (!%p330_p8), %v428_v3, 7 }
  0x28   : > { %v858_v34 = vld [vmem:[%s1089_s5 + $0x4] ss:$8 sps:$4 sm:$0xff] (!%p330_p8)   ;;  %637 = vmatprep.mubr.bf16.mxu0 (!%p330_p8), %v780_v33  ;;  %v860_v35 = vld [vmem:[%s1089_s5] ss:$8 sps:$4 sm:$0xff] (!%p330_p8)   ;;  %v861_v36 = vld [vmem:[%s1089_s5 + $0x14] ss:$8 sps:$4 sm:$0xff] (!%p330_p8)  }
  0x29   : > { %605 = vmatprep.subr.bf16.mxu0 (!%p330_p8), %v858_v34  ;;  %v863_v37 = vld [vmem:[%s1089_s5 + $0x10] ss:$8 sps:$4 sm:$0xff] (!%p330_p8)   ;;  %v864_v38 = vld [vmem:[%s1089_s5 + $0x24] ss:$8 sps:$4 sm:$0xff] (!%p330_p8)   ;;  %v866_v39 = vld [vmem:[%s1089_s5 + $0x20] ss:$8 sps:$4 sm:$0xff] (!%p330_p8)  }
  0x2a   : > { %606 = vmatpush1.bf16.msra.mxu0 (!%p330_p8), %v860_v35  ;;  %v867_v40 = vld [vmem:[%s1089_s5 + $0x34] ss:$8 sps:$4 sm:$0xff] (!%p330_p8)   ;;  %v869_v41 = vld [vmem:[%s1089_s5 + $0x30] ss:$8 sps:$4 sm:$0xff] (!%p330_p8)   ;;  %v870_v42 = vld [vmem:[%s1089_s5 + $0x44] ss:$8 sps:$4 sm:$0xff] (!%p330_p8)  }
  0x2b   : > { %607 = vmatprep.subr.bf16.mxu0 (!%p330_p8), %v861_v36  ;;  %v872_v43 = vld [vmem:[%s1089_s5 + $0x40] ss:$8 sps:$4 sm:$0xff] (!%p330_p8)   ;;  %v873_v44 = vld [vmem:[%s1089_s5 + $0x54] ss:$8 sps:$4 sm:$0xff] (!%p330_p8)   ;;  %v875_v45 = vld [vmem:[%s1089_s5 + $0x50] ss:$8 sps:$4 sm:$0xff] (!%p330_p8)  }
  0x2c   : > { %v876_v46 = vld [vmem:[%s1089_s5 + $0x64] ss:$8 sps:$4 sm:$0xff] (!%p330_p8)   ;;  %v878_v47 = vld [vmem:[%s1089_s5 + $0x60] ss:$8 sps:$4 sm:$0xff] (!%p330_p8)   ;;  %v879_v48 = vld [vmem:[%s1089_s5 + $0x74] ss:$8 sps:$4 sm:$0xff] (!%p330_p8)  }
  0x2d   : > { %v881_v49 = vld [vmem:[%s1089_s5 + $0x70] ss:$8 sps:$4 sm:$0xff]   ;;  %v882_v50 = vld [vmem:[%s1089_s5 + $0x84] ss:$8 sps:$4 sm:$0xff]   ;;  %v884_v51 = vld [vmem:[%s1089_s5 + $0x80] ss:$8 sps:$4 sm:$0xff]  }
  0x2e   : > { %608 = vmatpush1.bf16.msra.mxu0 %v863_v37  ;;  %v885_v52 = vld [vmem:[%s1089_s5 + $0x94] ss:$8 sps:$4 sm:$0xff]   ;;  %v887_v53 = vld [vmem:[%s1089_s5 + $0x90] ss:$8 sps:$4 sm:$0xff]   ;;  %v888_v54 = vld [vmem:[%s1089_s5 + $0xa4] ss:$8 sps:$4 sm:$0xff]  }
  0x2f   : > { %609 = vmatprep.subr.bf16.mxu0 %v864_v38  ;;  %v890_v55 = vld [vmem:[%s1089_s5 + $0xa0] ss:$8 sps:$4 sm:$0xff]   ;;  %v891_v56 = vld [vmem:[%s1089_s5 + $0xb4] ss:$8 sps:$4 sm:$0xff]   ;;  %v893_v57 = vld [vmem:[%s1089_s5 + $0xb0] ss:$8 sps:$4 sm:$0xff]  }
  0x30   : > { %v894_v58 = vld [vmem:[%s1089_s5 + $0xc4] ss:$8 sps:$4 sm:$0xff]   ;;  %v896_v59 = vld [vmem:[%s1089_s5 + $0xc0] ss:$8 sps:$4 sm:$0xff]   ;;  %v897_v60 = vld [vmem:[%s1089_s5 + $0xd4] ss:$8 sps:$4 sm:$0xff]  }
  0x31   : > { %v899_v61 = vld [vmem:[%s1089_s5 + $0xd0] ss:$8 sps:$4 sm:$0xff]   ;;  %v900_v62 = vld [vmem:[%s1089_s5 + $0xe4] ss:$8 sps:$4 sm:$0xff]   ;;  %v902_v63 = vld [vmem:[%s1089_s5 + $0xe0] ss:$8 sps:$4 sm:$0xff]  }
  0x32   : > { %610 = vmatpush1.bf16.msra.mxu0 %v866_v39  ;;  %v903_v0 = vld [vmem:[%s1089_s5 + $0xf4] ss:$8 sps:$4 sm:$0xff]   ;;  %v905_v1 = vld [vmem:[%s1089_s5 + $0xf0] ss:$8 sps:$4 sm:$0xff]   ;;  %s1158_s6 = smov (!%p379_p9, %s776_s6), 3  ;;  %v430_v5 = vsub.s32 0, %v429_v4 }
  0x33   : > { %611 = vmatprep.subr.bf16.mxu0 %v867_v40  ;;  %s381_s9 = scalar_lea.vmem %s1149_s2, %s1158_s6  ;;  %v434_v7 = vsub.s32 1, %v429_v4  ;;  %s778_s10 = sshll.u32 %s1158_s6, 2 }
  0x34   : > { %v426_v6 = vld [vmem:[%s381_s9] sm:$0x3]  ;;  %s391_s14 = scalar_lea.vmem %s1150_s3, %s778_s10 }
  0x35   : > { %v431_v8 = vrot.slane %v426_v6, %v430_v5  ;;  %v435_v9 = vrot.slane %v426_v6, %v434_v7 }
  0x36   : > { %612 = vmatpush1.bf16.msra.mxu0 %v869_v41 }
  0x37   : > { %613 = vmatprep.subr.bf16.mxu0 %v870_v42 }
  0x3a   : > { %614 = vmatpush1.bf16.msra.mxu0 %v872_v43 }
  0x3b   : > { %615 = vmatprep.subr.bf16.mxu0 %v873_v44 }
  0x3e   : > { %616 = vmatpush1.bf16.msra.mxu0 %v875_v45 }
  0x3f   : > { %617 = vmatprep.subr.bf16.mxu0 %v876_v46 }
  0x42   : > { %618 = vmatpush1.bf16.msra.mxu0 %v878_v47 }
  0x43   : > { %619 = vmatprep.subr.bf16.mxu0 %v879_v48 }
  0x46   : > { %620 = vmatpush1.bf16.msra.mxu0 %v881_v49 }
  0x47   : > { %621 = vmatprep.subr.bf16.mxu0 %v882_v50 }
  0x4a   : > { %622 = vmatpush1.bf16.msra.mxu0 %v884_v51 }
  0x4b   : > { %623 = vmatprep.subr.bf16.mxu0 %v885_v52 }
  0x4e   : > { %624 = vmatpush1.bf16.msra.mxu0 %v887_v53 }
  0x4f   : > { %625 = vmatprep.subr.bf16.mxu0 %v888_v54 }
  0x52   : > { %626 = vmatpush1.bf16.msra.mxu0 %v890_v55 }
  0x53   : > { %627 = vmatprep.subr.bf16.mxu0 %v891_v56 }
  0x56   : > { %628 = vmatpush1.bf16.msra.mxu0 %v893_v57 }
  0x57   : > { %629 = vmatprep.subr.bf16.mxu0 %v894_v58 }
  0x5a   : > { %630 = vmatpush1.bf16.msra.mxu0 %v896_v59 }
  0x5b   : > { %631 = vmatprep.subr.bf16.mxu0 %v897_v60 }
  0x5e   : > { %632 = vmatpush1.bf16.msra.mxu0 %v899_v61 }
  0x5f   : > { %633 = vmatprep.subr.bf16.mxu0 %v900_v62 }
  0x62   : > { %634 = vmatpush1.bf16.msra.mxu0 %v902_v63 }
  0x63   : > { %635 = vmatprep.subr.bf16.mxu0 %v903_v0 }
  0x66   : > { %636 = vmatpush1.bf16.msra.mxu0 %v905_v1 }
  0x69   : > { %638 = vmatmul.mubr.bf16.vlgmr.msra.gmra.mrb[0].mxu0 %v779_v2 }
 0x13c   : > { %v639_v10 = vpop.f32.mrb[0].mxu0 }
 0x13d   : > { %v640_v11 = vadd.f32 %v639_v10, %v431_v8  ;;  %v641_v12 = vpop.f32.mrb[1].mxu0 }
 0x13e   : > { %v642_v13 = vadd.f32 %v641_v12, %v435_v9  ;;  %v643_v14 = vpop.f32.mrb[2].mxu0 }
 0x13f   : > { %v644_v15 = vpop.f32.mrb[3].mxu0 }
 0x140   : > { %v817_v16 = vpack.c.bf16 %v642_v13, %v640_v11 }
 0x142   : > { %654 = vst [vmem:[%s391_s14] sm:$0xff] %v817_v16 }
 0x143 PF: > { %s13_s16 = sadd.s32 1, %s946_s16   ;;  %s1151_s12 = smov %s934_s13 }
 0x144   : > { %p10_p10 = scmp.ge.s32.totalorder %s13_s16, 4   ;;  %s1152_s13 = smov %s1003_s20 }
 0x145   : > { %s1153_s14 = smov %s942_s15  ;;  %s1154_s15 = smov %s1156_s17 }
 0x146   :  { %12 = sbr.rel (!%p10_p10) target bundleno = 3 (0x3), region = 111 }

// kernel: _lambda_.26
= control target key start
LH: loop header
LB: loop body
LE: loop exit
PB: predicated region body
PF: predicated region fallthrough
CT: control target
= control target key end

     0   :  { %s1616_s15 = smov 0   ;;  %s1618_s16 = smov 0   ;;  %s1933_s0 = inlined_call_operand.vmem [shape: bf16[8,4608], index: 0, kind: input, shape index: {}]   ;;  %s1934_s1 = inlined_call_operand.vmem [shape: bf16[4608,512], index: 1, kind: input, shape index: {}]   ;;  %s1935_s2 = inlined_call_operand.vmem [shape: f32[1,512], index: 2, kind: input, shape index: {}]   ;;  %s1936_s3 = inlined_call_operand.vmem [shape: bf16[8,512], index: 3, kind: input, shape index: {}]   ;;  %s1937_s4 = inlined_call_operand.vmem [shape: bf16[8,512], index: 4, kind: output, shape index: {}]  }
   0x1   :  { %s1620_s17 = smov 0   ;;  %s1622_s18 = smov 0  }
   0x2   :  { %s1624_s19 = smov 0   ;;  %s1626_s20 = smov 0  }
   0x3   :  { %s1628_s21 = smov 0  }
   0x4 LB: > { %s26_s22 = sadd.s32 1, %s1580_s19  ;;  %s29_s23 = sadd.s32 1, %s1584_s20  ;;  %s1588_s21 = sphi %s1628_s21, %s14_s21   ;;  %s1584_s20 = sphi %s1626_s20, %s1943_s20   ;;  %s1580_s19 = sphi %s1624_s19, %s1942_s19   ;;  %s1576_s18 = sphi %s1622_s18, %s1941_s18   ;;  %s1572_s17 = sphi %s1620_s17, %s1940_s17   ;;  %s1568_s16 = sphi %s1618_s16, %s1939_s16   ;;  %s1564_s15 = sphi %s1616_s15, %s1938_s15  }
   0x5   : > { %p27_p0 = scmp.ge.s32.totalorder %s26_s22, 9  ;;  %p77_p1 = scmp.ne.s32.totalorder %s1568_s16, %s1564_s15 }
   0x6   : > { %p78_p2 = scmp.eq.s32.totalorder %s1588_s21, 0  ;;  %s70_s27 = sadd.s32 1, %s1568_s16 }
   0x7   : > { %s1945_s22 = smov (%p27_p0, %s26_s22), 0  ;;  %s1947_s23 = smov (!%p27_p0, %s29_s23), %s1584_s20 }
   0x8   : > { %p79_p3 = por %p78_p2, %p77_p1  ;;  %p31_p4 = scmp.ge.s32.totalorder %s1947_s23, 2 }
   0x9   : > { %s65_s24 = ssub.s32 %s1580_s19, %s1945_s22  ;;  %p1287_p6 = scmp.ge.s32.totalorder %s1588_s21, 18 }
   0xa   : > { %s1949_s23 = smov (%p31_p4, %s1947_s23), 0 }
   0xb   : > { %s66_s25 = ssub.s32 %s1584_s20, %s1949_s23  ;;  %185 = sbr.rel (%p1287_p6) target bundleno = 57 (0x39), region = 16 }
   0xc   : > { %s67_s26 = sor.u32 %s66_s25, %s65_s24 }
   0xd   : > { %p68_p5 = scmp.eq.s32.totalorder %s67_s26, 0 }
   0xf   : > { %s1667_s28 = scalar_select %p68_p5, %s1568_s16, %s70_s27  }
  0x12   : > { %201 = sbr.rel (!%p79_p3) target bundleno = 57 (0x39), region = 24  ;;  %s203_s29 = sand.u32 (%p79_p3), 1, %s1568_s16  }
  0x13   : > { %s1290_s30 = sshll.u32 (%p79_p3), %s1584_s20, 1  ;;  %s1288_s5 = sshll.u32 (%p79_p3), %s203_s29, 9 }
  0x14   : > { %s1375_s6 = sshll.u32 (%p79_p3), %s1580_s19, 8  ;;  %s1681_s12 = scalar_lea.vmem (%p79_p3), [#allocation3], %s1288_s5 }
  0x15   : > { %s209_s7 = sadd.s32 (%p79_p3), %s1375_s6, %s1290_s30 }
  0x16   : > { %s1292_s8 = sshll.u32 (%p79_p3), %s209_s7, 2 }
  0x17   : > { %s1676_s11 = scalar_lea.vmem (%p79_p3), %s1934_s1, %s1292_s8 }
  0x18   : > { %v365_v0 = vld [vmem:[%s1676_s11] sm:$0xff] (%p79_p3)  ;;  %v367_v1 = vld [vmem:[%s1676_s11 + $0x10] sm:$0xff] (%p79_p3) }
  0x19   : > { %v369_v2 = vld [vmem:[%s1676_s11 + $0x20] sm:$0xff]  ;;  %366 = vst [vmem:[%s1681_s12] sm:$0xff] %v365_v0  ;;  %368 = vst [vmem:[%s1681_s12 + $0x8] sm:$0xff] %v367_v1  ;;  %v371_v3 = vld [vmem:[%s1676_s11 + $0x30] sm:$0xff] }
  0x1a   : > { %370 = vst [vmem:[%s1681_s12 + $0x10] sm:$0xff] %v369_v2  ;;  %v373_v4 = vld [vmem:[%s1676_s11 + $0x40] sm:$0xff]  ;;  %v375_v5 = vld [vmem:[%s1676_s11 + $0x50] sm:$0xff]  ;;  %372 = vst [vmem:[%s1681_s12 + $0x18] sm:$0xff] %v371_v3 }
  0x1b   : > { %374 = vst [vmem:[%s1681_s12 + $0x20] sm:$0xff] %v373_v4  ;;  %376 = vst [vmem:[%s1681_s12 + $0x28] sm:$0xff] %v375_v5  ;;  %v377_v6 = vld [vmem:[%s1676_s11 + $0x60] sm:$0xff]  ;;  %v379_v7 = vld [vmem:[%s1676_s11 + $0x70] sm:$0xff] }
  0x1c   : > { %v381_v8 = vld [vmem:[%s1676_s11 + $0x80] sm:$0xff]  ;;  %378 = vst [vmem:[%s1681_s12 + $0x30] sm:$0xff] %v377_v6  ;;  %380 = vst [vmem:[%s1681_s12 + $0x38] sm:$0xff] %v379_v7  ;;  %v383_v9 = vld [vmem:[%s1676_s11 + $0x90] sm:$0xff] }
  0x1d   : > { %382 = vst [vmem:[%s1681_s12 + $0x40] sm:$0xff] %v381_v8  ;;  %v385_v10 = vld [vmem:[%s1676_s11 + $0xa0] sm:$0xff]  ;;  %v387_v11 = vld [vmem:[%s1676_s11 + $0xb0] sm:$0xff]  ;;  %384 = vst [vmem:[%s1681_s12 + $0x48] sm:$0xff] %v383_v9 }
  0x1e   : > { %386 = vst [vmem:[%s1681_s12 + $0x50] sm:$0xff] %v385_v10  ;;  %388 = vst [vmem:[%s1681_s12 + $0x58] sm:$0xff] %v387_v11  ;;  %v389_v12 = vld [vmem:[%s1676_s11 + $0xc0] sm:$0xff]  ;;  %v391_v13 = vld [vmem:[%s1676_s11 + $0xd0] sm:$0xff] }
  0x1f   : > { %v393_v14 = vld [vmem:[%s1676_s11 + $0xe0] sm:$0xff]  ;;  %390 = vst [vmem:[%s1681_s12 + $0x60] sm:$0xff] %v389_v12  ;;  %392 = vst [vmem:[%s1681_s12 + $0x68] sm:$0xff] %v391_v13  ;;  %v395_v15 = vld [vmem:[%s1676_s11 + $0xf0] sm:$0xff] }
  0x20   : > { %394 = vst [vmem:[%s1681_s12 + $0x70] sm:$0xff] %v393_v14  ;;  %v397_v16 = vld [vmem:[%s1676_s11 + $0x100] sm:$0xff]  ;;  %v399_v17 = vld [vmem:[%s1676_s11 + $0x110] sm:$0xff]  ;;  %396 = vst [vmem:[%s1681_s12 + $0x78] sm:$0xff] %v395_v15 }
  0x21   : > { %398 = vst [vmem:[%s1681_s12 + $0x80] sm:$0xff] %v397_v16  ;;  %400 = vst [vmem:[%s1681_s12 + $0x88] sm:$0xff] %v399_v17  ;;  %v401_v18 = vld [vmem:[%s1676_s11 + $0x120] sm:$0xff]  ;;  %v403_v19 = vld [vmem:[%s1676_s11 + $0x130] sm:$0xff] }
  0x22   : > { %v405_v20 = vld [vmem:[%s1676_s11 + $0x140] sm:$0xff]  ;;  %402 = vst [vmem:[%s1681_s12 + $0x90] sm:$0xff] %v401_v18  ;;  %404 = vst [vmem:[%s1681_s12 + $0x98] sm:$0xff] %v403_v19  ;;  %v407_v21 = vld [vmem:[%s1676_s11 + $0x150] sm:$0xff] }
  0x23   : > { %406 = vst [vmem:[%s1681_s12 + $0xa0] sm:$0xff] %v405_v20  ;;  %v409_v22 = vld [vmem:[%s1676_s11 + $0x160] sm:$0xff]  ;;  %v411_v23 = vld [vmem:[%s1676_s11 + $0x170] sm:$0xff]  ;;  %408 = vst [vmem:[%s1681_s12 + $0xa8] sm:$0xff] %v407_v21 }
  0x24   : > { %410 = vst [vmem:[%s1681_s12 + $0xb0] sm:$0xff] %v409_v22  ;;  %412 = vst [vmem:[%s1681_s12 + $0xb8] sm:$0xff] %v411_v23  ;;  %v413_v24 = vld [vmem:[%s1676_s11 + $0x180] sm:$0xff]  ;;  %v415_v25 = vld [vmem:[%s1676_s11 + $0x190] sm:$0xff] }
  0x25   : > { %v417_v26 = vld [vmem:[%s1676_s11 + $0x1a0] sm:$0xff]  ;;  %414 = vst [vmem:[%s1681_s12 + $0xc0] sm:$0xff] %v413_v24  ;;  %416 = vst [vmem:[%s1681_s12 + $0xc8] sm:$0xff] %v415_v25  ;;  %v419_v27 = vld [vmem:[%s1676_s11 + $0x1b0] sm:$0xff] }
  0x26   : > { %418 = vst [vmem:[%s1681_s12 + $0xd0] sm:$0xff] %v417_v26  ;;  %v421_v28 = vld [vmem:[%s1676_s11 + $0x1c0] sm:$0xff]  ;;  %v423_v29 = vld [vmem:[%s1676_s11 + $0x1d0] sm:$0xff]  ;;  %420 = vst [vmem:[%s1681_s12 + $0xd8] sm:$0xff] %v419_v27 }
  0x27   : > { %422 = vst [vmem:[%s1681_s12 + $0xe0] sm:$0xff] %v421_v28  ;;  %424 = vst [vmem:[%s1681_s12 + $0xe8] sm:$0xff] %v423_v29  ;;  %v425_v30 = vld [vmem:[%s1676_s11 + $0x1e0] sm:$0xff]  ;;  %v427_v31 = vld [vmem:[%s1676_s11 + $0x1f0] sm:$0xff] }
  0x28   : > { %v429_v32 = vld [vmem:[%s1676_s11 + $0x200] sm:$0xff]  ;;  %426 = vst [vmem:[%s1681_s12 + $0xf0] sm:$0xff] %v425_v30  ;;  %428 = vst [vmem:[%s1681_s12 + $0xf8] sm:$0xff] %v427_v31  ;;  %v431_v33 = vld [vmem:[%s1676_s11 + $0x210] sm:$0xff] }
  0x29   : > { %430 = vst [vmem:[%s1681_s12 + $0x100] sm:$0xff] %v429_v32  ;;  %v433_v34 = vld [vmem:[%s1676_s11 + $0x220] sm:$0xff]  ;;  %v435_v35 = vld [vmem:[%s1676_s11 + $0x230] sm:$0xff]  ;;  %432 = vst [vmem:[%s1681_s12 + $0x108] sm:$0xff] %v431_v33 }
  0x2a   : > { %434 = vst [vmem:[%s1681_s12 + $0x110] sm:$0xff] %v433_v34  ;;  %436 = vst [vmem:[%s1681_s12 + $0x118] sm:$0xff] %v435_v35  ;;  %v437_v36 = vld [vmem:[%s1676_s11 + $0x240] sm:$0xff]  ;;  %v439_v37 = vld [vmem:[%s1676_s11 + $0x250] sm:$0xff] }
  0x2b   : > { %v441_v38 = vld [vmem:[%s1676_s11 + $0x260] sm:$0xff]  ;;  %438 = vst [vmem:[%s1681_s12 + $0x120] sm:$0xff] %v437_v36  ;;  %440 = vst [vmem:[%s1681_s12 + $0x128] sm:$0xff] %v439_v37  ;;  %v443_v39 = vld [vmem:[%s1676_s11 + $0x270] sm:$0xff] }
  0x2c   : > { %442 = vst [vmem:[%s1681_s12 + $0x130] sm:$0xff] %v441_v38  ;;  %v445_v40 = vld [vmem:[%s1676_s11 + $0x280] sm:$0xff]  ;;  %v447_v41 = vld [vmem:[%s1676_s11 + $0x290] sm:$0xff]  ;;  %444 = vst [vmem:[%s1681_s12 + $0x138] sm:$0xff] %v443_v39 }
  0x2d   : > { %446 = vst [vmem:[%s1681_s12 + $0x140] sm:$0xff] %v445_v40  ;;  %448 = vst [vmem:[%s1681_s12 + $0x148] sm:$0xff] %v447_v41  ;;  %v449_v42 = vld [vmem:[%s1676_s11 + $0x2a0] sm:$0xff]  ;;  %v451_v43 = vld [vmem:[%s1676_s11 + $0x2b0] sm:$0xff] }
  0x2e   : > { %v453_v44 = vld [vmem:[%s1676_s11 + $0x2c0] sm:$0xff]  ;;  %450 = vst [vmem:[%s1681_s12 + $0x150] sm:$0xff] %v449_v42  ;;  %452 = vst [vmem:[%s1681_s12 + $0x158] sm:$0xff] %v451_v43  ;;  %v455_v45 = vld [vmem:[%s1676_s11 + $0x2d0] sm:$0xff] }
  0x2f   : > { %454 = vst [vmem:[%s1681_s12 + $0x160] sm:$0xff] %v453_v44  ;;  %v457_v46 = vld [vmem:[%s1676_s11 + $0x2e0] sm:$0xff]  ;;  %v459_v47 = vld [vmem:[%s1676_s11 + $0x2f0] sm:$0xff]  ;;  %456 = vst [vmem:[%s1681_s12 + $0x168] sm:$0xff] %v455_v45 }
  0x30   : > { %458 = vst [vmem:[%s1681_s12 + $0x170] sm:$0xff] %v457_v46  ;;  %460 = vst [vmem:[%s1681_s12 + $0x178] sm:$0xff] %v459_v47  ;;  %v461_v48 = vld [vmem:[%s1676_s11 + $0x300] sm:$0xff]  ;;  %v463_v49 = vld [vmem:[%s1676_s11 + $0x310] sm:$0xff] }
  0x31   : > { %v465_v50 = vld [vmem:[%s1676_s11 + $0x320] sm:$0xff]  ;;  %462 = vst [vmem:[%s1681_s12 + $0x180] sm:$0xff] %v461_v48  ;;  %464 = vst [vmem:[%s1681_s12 + $0x188] sm:$0xff] %v463_v49  ;;  %v467_v51 = vld [vmem:[%s1676_s11 + $0x330] sm:$0xff] }
  0x32   : > { %466 = vst [vmem:[%s1681_s12 + $0x190] sm:$0xff] %v465_v50  ;;  %v469_v52 = vld [vmem:[%s1676_s11 + $0x340] sm:$0xff]  ;;  %v471_v53 = vld [vmem:[%s1676_s11 + $0x350] sm:$0xff]  ;;  %468 = vst [vmem:[%s1681_s12 + $0x198] sm:$0xff] %v467_v51 }
  0x33   : > { %470 = vst [vmem:[%s1681_s12 + $0x1a0] sm:$0xff] %v469_v52  ;;  %472 = vst [vmem:[%s1681_s12 + $0x1a8] sm:$0xff] %v471_v53  ;;  %v473_v54 = vld [vmem:[%s1676_s11 + $0x360] sm:$0xff]  ;;  %v475_v55 = vld [vmem:[%s1676_s11 + $0x370] sm:$0xff] }
  0x34   : > { %v477_v56 = vld [vmem:[%s1676_s11 + $0x380] sm:$0xff]  ;;  %474 = vst [vmem:[%s1681_s12 + $0x1b0] sm:$0xff] %v473_v54  ;;  %476 = vst [vmem:[%s1681_s12 + $0x1b8] sm:$0xff] %v475_v55  ;;  %v479_v57 = vld [vmem:[%s1676_s11 + $0x390] sm:$0xff] }
  0x35   : > { %478 = vst [vmem:[%s1681_s12 + $0x1c0] sm:$0xff] %v477_v56  ;;  %v481_v58 = vld [vmem:[%s1676_s11 + $0x3a0] sm:$0xff]  ;;  %v483_v59 = vld [vmem:[%s1676_s11 + $0x3b0] sm:$0xff]  ;;  %480 = vst [vmem:[%s1681_s12 + $0x1c8] sm:$0xff] %v479_v57 }
  0x36   : > { %482 = vst [vmem:[%s1681_s12 + $0x1d0] sm:$0xff] %v481_v58  ;;  %484 = vst [vmem:[%s1681_s12 + $0x1d8] sm:$0xff] %v483_v59  ;;  %v485_v60 = vld [vmem:[%s1676_s11 + $0x3c0] sm:$0xff]  ;;  %v487_v61 = vld [vmem:[%s1676_s11 + $0x3d0] sm:$0xff] }
  0x37   : > { %v489_v62 = vld [vmem:[%s1676_s11 + $0x3e0] sm:$0xff]  ;;  %486 = vst [vmem:[%s1681_s12 + $0x1e0] sm:$0xff] %v485_v60  ;;  %488 = vst [vmem:[%s1681_s12 + $0x1e8] sm:$0xff] %v487_v61  ;;  %v491_v63 = vld [vmem:[%s1676_s11 + $0x3f0] sm:$0xff] }
  0x38   : > { %490 = vst [vmem:[%s1681_s12 + $0x1f0] sm:$0xff] %v489_v62  ;;  %492 = vst [vmem:[%s1681_s12 + $0x1f8] sm:$0xff] %v491_v63 }
  0x39 PF: > { %p1293_p7 = scmp.ge.s32.totalorder %s1588_s21, 1  ;;  %p518_p8 = scmp.lt.s32.totalorder %s1588_s21, 19 }
  0x3b   : > { %p519_p9 = pnand %p1293_p7, %p518_p8 }
  0x3c   : > { %s525_s13 = sand.u32 (!%p519_p9), 1, %s1564_s15   ;;  %s1295_s14 = sshll.u32 (!%p519_p9), %s1572_s17, 2 }
  0x3d   : > { %522 = sbr.rel (%p519_p9) target bundleno = 379 (0x17b), region = 70  ;;  %s1294_s24 = sshll.u32 (!%p519_p9), %s525_s13, 9 }
  0x3e   : > { %p579_p10 = scmp.lt.s32.totalorder (!%p519_p9), %s1295_s14, 35  ;;  %s1297_s25 = sshll.u32 (!%p519_p9), %s1576_s18, 1 }
  0x3f   : > { %p589_p11 = scmp.lt.s32.totalorder (!%p519_p9), %s1297_s25, 3  ;;  %s1835_s13 = scalar_lea.vmem (!%p519_p9), [#allocation3], %s1294_s24 }
  0x40   : > { %p1302_p12 = scmp.ne.s32.totalorder (!%p519_p9), %s1572_s17, 0 }
  0x44   : > { %s1951_s14 = smov (!%p579_p10, %s1295_s14), 35  ;;  %s1953_s25 = smov (!%p589_p11, %s1297_s25), 3 }
  0x45   : > { %s1296_s26 = sshll.u32 %s1951_s14, 2  ;;  %s591_s15 = scalar_lea.vmem %s1935_s2, %s1953_s25  ;;  %v1590_v0 = vmov (!%p1302_p12), 0.0  }
  0x46   : > { %s1816_s30 = scalar_lea.vmem %s1933_s0, %s1296_s26  ;;  %s1299_s7 = sshll.u32 %s1953_s25, 2  ;;  %617 = vst [vmem:[#allocation2] sm:$0xff] (!%p1302_p12), %v1590_v0  ;;  %618 = vst [vmem:[#allocation2 + $0x8] sm:$0xff] (!%p1302_p12), %v1590_v0 }
  0x47   : > { %s1828_s18 = scalar_lea.vmem %s1936_s3, %s1299_s7  ;;  %s1833_s12 = scalar_lea.vmem %s1937_s4, %s1299_s7 }
  0x48   : > { %616 = sbr.rel (%p1302_p12) target bundleno = 79 (0x4f), region = 78 }
  0x4f PF: > { %v1434_v1 = vld [vmem:[%s1835_s13 + $0x4] ss:$8 sps:$4 sm:$0xff]   ;;  %v1438_v3 = vld [vmem:[%s1835_s13] ss:$8 sps:$4 sm:$0xff]   ;;  %v1440_v5 = vld [vmem:[%s1835_s13 + $0x14] ss:$8 sps:$4 sm:$0xff]  }
  0x50   : > { %v1436_v2 = vld [vmem:[%s1835_s13 + $0x104] ss:$8 sps:$4 sm:$0xff]   ;;  %1021 = vmatprep.subr.bf16.mxu0 %v1434_v1  ;;  %v1439_v4 = vld [vmem:[%s1835_s13 + $0x100] ss:$8 sps:$4 sm:$0xff]   ;;  %v1442_v6 = vld [vmem:[%s1835_s13 + $0x114] ss:$8 sps:$4 sm:$0xff]  }
  0x51   : > { %1062 = vmatprep.subr.bf16.mxu1 %v1436_v2  ;;  %1022 = vmatpush1.bf16.msra.mxu0 %v1438_v3  ;;  %v1444_v7 = vld [vmem:[%s1835_s13 + $0x10] ss:$8 sps:$4 sm:$0xff]   ;;  %v1446_v9 = vld [vmem:[%s1835_s13 + $0x24] ss:$8 sps:$4 sm:$0xff]   ;;  %v1450_v11 = vld [vmem:[%s1835_s13 + $0x20] ss:$8 sps:$4 sm:$0xff]  }
  0x52   : > { %1063 = vmatpush1.bf16.msra.mxu1 %v1439_v4  ;;  %1023 = vmatprep.subr.bf16.mxu0 %v1440_v5  ;;  %v1445_v8 = vld [vmem:[%s1835_s13 + $0x110] ss:$8 sps:$4 sm:$0xff]   ;;  %v1448_v10 = vld [vmem:[%s1835_s13 + $0x124] ss:$8 sps:$4 sm:$0xff]   ;;  %v1451_v12 = vld [vmem:[%s1835_s13 + $0x120] ss:$8 sps:$4 sm:$0xff]  }
  0x53   : > { %1064 = vmatprep.subr.bf16.mxu1 %v1442_v6  ;;  %v1452_v13 = vld [vmem:[%s1835_s13 + $0x34] ss:$8 sps:$4 sm:$0xff]   ;;  %v1456_v15 = vld [vmem:[%s1835_s13 + $0x30] ss:$8 sps:$4 sm:$0xff]   ;;  %v1458_v17 = vld [vmem:[%s1835_s13 + $0x44] ss:$8 sps:$4 sm:$0xff]  }
  0x54   : > { %v1454_v14 = vld [vmem:[%s1835_s13 + $0x134] ss:$8 sps:$4 sm:$0xff]   ;;  %v1457_v16 = vld [vmem:[%s1835_s13 + $0x130] ss:$8 sps:$4 sm:$0xff]   ;;  %v1460_v18 = vld [vmem:[%s1835_s13 + $0x144] ss:$8 sps:$4 sm:$0xff]  }
  0x55   : > { %1024 = vmatpush1.bf16.msra.mxu0 %v1444_v7  ;;  %v1462_v19 = vld [vmem:[%s1835_s13 + $0x40] ss:$8 sps:$4 sm:$0xff]   ;;  %v1464_v21 = vld [vmem:[%s1835_s13 + $0x54] ss:$8 sps:$4 sm:$0xff]   ;;  %v1468_v23 = vld [vmem:[%s1835_s13 + $0x50] ss:$8 sps:$4 sm:$0xff]  }
  0x56   : > { %1065 = vmatpush1.bf16.msra.mxu1 %v1445_v8  ;;  %1025 = vmatprep.subr.bf16.mxu0 %v1446_v9  ;;  %v1463_v20 = vld [vmem:[%s1835_s13 + $0x140] ss:$8 sps:$4 sm:$0xff]   ;;  %v1466_v22 = vld [vmem:[%s1835_s13 + $0x154] ss:$8 sps:$4 sm:$0xff]   ;;  %v1469_v24 = vld [vmem:[%s1835_s13 + $0x150] ss:$8 sps:$4 sm:$0xff]  }
  0x57   : > { %1066 = vmatprep.subr.bf16.mxu1 %v1448_v10  ;;  %v1470_v25 = vld [vmem:[%s1835_s13 + $0x64] ss:$8 sps:$4 sm:$0xff]   ;;  %v1474_v27 = vld [vmem:[%s1835_s13 + $0x60] ss:$8 sps:$4 sm:$0xff]   ;;  %v1476_v29 = vld [vmem:[%s1835_s13 + $0x74] ss:$8 sps:$4 sm:$0xff]  }
  0x58   : > { %v1472_v26 = vld [vmem:[%s1835_s13 + $0x164] ss:$8 sps:$4 sm:$0xff]   ;;  %v1475_v28 = vld [vmem:[%s1835_s13 + $0x160] ss:$8 sps:$4 sm:$0xff]   ;;  %v1478_v30 = vld [vmem:[%s1835_s13 + $0x174] ss:$8 sps:$4 sm:$0xff]  }
  0x59   : > { %1026 = vmatpush1.bf16.msra.mxu0 %v1450_v11  ;;  %v1480_v31 = vld [vmem:[%s1835_s13 + $0x70] ss:$8 sps:$4 sm:$0xff]   ;;  %v1482_v33 = vld [vmem:[%s1835_s13 + $0x84] ss:$8 sps:$4 sm:$0xff]   ;;  %v1486_v35 = vld [vmem:[%s1835_s13 + $0x80] ss:$8 sps:$4 sm:$0xff]  }
  0x5a   : > { %1067 = vmatpush1.bf16.msra.mxu1 %v1451_v12  ;;  %1027 = vmatprep.subr.bf16.mxu0 %v1452_v13  ;;  %v1481_v32 = vld [vmem:[%s1835_s13 + $0x170] ss:$8 sps:$4 sm:$0xff]   ;;  %v1484_v34 = vld [vmem:[%s1835_s13 + $0x184] ss:$8 sps:$4 sm:$0xff]   ;;  %v1487_v36 = vld [vmem:[%s1835_s13 + $0x180] ss:$8 sps:$4 sm:$0xff]  }
  0x5b   : > { %1068 = vmatprep.subr.bf16.mxu1 %v1454_v14  ;;  %v1488_v37 = vld [vmem:[%s1835_s13 + $0x94] ss:$8 sps:$4 sm:$0xff]   ;;  %v1492_v39 = vld [vmem:[%s1835_s13 + $0x90] ss:$8 sps:$4 sm:$0xff]   ;;  %v1494_v41 = vld [vmem:[%s1835_s13 + $0xa4] ss:$8 sps:$4 sm:$0xff]  }
  0x5c   : > { %v1490_v38 = vld [vmem:[%s1835_s13 + $0x194] ss:$8 sps:$4 sm:$0xff]   ;;  %v1493_v40 = vld [vmem:[%s1835_s13 + $0x190] ss:$8 sps:$4 sm:$0xff]   ;;  %v1496_v42 = vld [vmem:[%s1835_s13 + $0x1a4] ss:$8 sps:$4 sm:$0xff]  }
  0x5d   : > { %1028 = vmatpush1.bf16.msra.mxu0 %v1456_v15  ;;  %v1498_v43 = vld [vmem:[%s1835_s13 + $0xa0] ss:$8 sps:$4 sm:$0xff]   ;;  %v1500_v45 = vld [vmem:[%s1835_s13 + $0xb4] ss:$8 sps:$4 sm:$0xff]   ;;  %v1504_v50 = vld [vmem:[%s1835_s13 + $0xb0] ss:$8 sps:$4 sm:$0xff]  }
  0x5e   : > { %1069 = vmatpush1.bf16.msra.mxu1 %v1457_v16  ;;  %1029 = vmatprep.subr.bf16.mxu0 %v1458_v17  ;;  %v1499_v44 = vld [vmem:[%s1835_s13 + $0x1a0] ss:$8 sps:$4 sm:$0xff]   ;;  %v1502_v46 = vld [vmem:[%s1835_s13 + $0x1b4] ss:$8 sps:$4 sm:$0xff]   ;;  %v1505_v51 = vld [vmem:[%s1835_s13 + $0x1b0] ss:$8 sps:$4 sm:$0xff]  }
  0x5f   : > { %1070 = vmatprep.subr.bf16.mxu1 %v1460_v18  ;;  %v621_v47 = vld [vmem:[%s1816_s30] sm:$0xff]  ;;  %v622_v49 = vld [vmem:[%s1816_s30 + $0x8] sm:$0xff]  ;;  %v1506_v53 = vld [vmem:[%s1835_s13 + $0xc4] ss:$8 sps:$4 sm:$0xff]   ;;  %p1371_p13 = scmp.ne.s32.totalorder %s1572_s17, 8 }
  0x60   : > { %v1304_v48 = vcombine.high %v621_v47, %v621_v47  ;;  %v1306_v52 = vcombine.high %v622_v49, %v622_v49  ;;  %v1508_v54 = vld [vmem:[%s1835_s13 + $0x1c4] ss:$8 sps:$4 sm:$0xff]   ;;  %v1510_v55 = vld [vmem:[%s1835_s13 + $0xc0] ss:$8 sps:$4 sm:$0xff]   ;;  %v1512_v57 = vld [vmem:[%s1835_s13 + $0xd4] ss:$8 sps:$4 sm:$0xff]   ;;  %v1303_v5 = vcombine.low %v621_v47, %v621_v47  ;;  %v1305_v6 = vcombine.low %v622_v49, %v622_v49 }
  0x61   : > { %1030 = vmatpush1.bf16.msra.mxu0 %v1462_v19  ;;  %v1511_v56 = vld [vmem:[%s1835_s13 + $0x1c0] ss:$8 sps:$4 sm:$0xff]   ;;  %v1514_v58 = vld [vmem:[%s1835_s13 + $0x1d4] ss:$8 sps:$4 sm:$0xff]   ;;  %v1516_v59 = vld [vmem:[%s1835_s13 + $0xd0] ss:$8 sps:$4 sm:$0xff]  }
  0x62   : > { %1071 = vmatpush1.bf16.msra.mxu1 %v1463_v20  ;;  %1031 = vmatprep.subr.bf16.mxu0 %v1464_v21  ;;  %v1517_v60 = vld [vmem:[%s1835_s13 + $0x1d0] ss:$8 sps:$4 sm:$0xff]   ;;  %v1518_v61 = vld [vmem:[%s1835_s13 + $0xe4] ss:$8 sps:$4 sm:$0xff]   ;;  %v1522_v63 = vld [vmem:[%s1835_s13 + $0xe0] ss:$8 sps:$4 sm:$0xff]   ;;  %v1115_v21 = vlaneseq (!%p1371_p13) }
  0x63   : > { %1072 = vmatprep.subr.bf16.mxu1 %v1466_v22  ;;  %1053 = vmatprep.mubr.bf16.mxu0 %v1304_v48  ;;  %v1520_v62 = vld [vmem:[%s1835_s13 + $0x1e4] ss:$8 sps:$4 sm:$0xff]   ;;  %v1523_v0 = vld [vmem:[%s1835_s13 + $0x1e0] ss:$8 sps:$4 sm:$0xff]   ;;  %v1524_v1 = vld [vmem:[%s1835_s13 + $0xf4] ss:$8 sps:$4 sm:$0xff]  }
  0x64   : > { %1094 = vmatprep.mubr.bf16.mxu1 %v1306_v52  ;;  %v1526_v2 = vld [vmem:[%s1835_s13 + $0x1f4] ss:$8 sps:$4 sm:$0xff]   ;;  %v1528_v3 = vld [vmem:[%s1835_s13 + $0xf0] ss:$8 sps:$4 sm:$0xff]   ;;  %v1116_v22 = vshrl.u32 (!%p1371_p13), %v1115_v21, 7 }
  0x65   : > { %1032 = vmatpush1.bf16.msra.mxu0 %v1468_v23  ;;  %v1529_v4 = vld [vmem:[%s1835_s13 + $0x1f0] ss:$8 sps:$4 sm:$0xff]  }
  0x66   : > { %1073 = vmatpush1.bf16.msra.mxu1 %v1469_v24  ;;  %1033 = vmatprep.subr.bf16.mxu0 %v1470_v25  ;;  %v619_v8 = vld [vmem:[#allocation2] sm:$0xff]  ;;  %v620_v12 = vld [vmem:[#allocation2 + $0x8] sm:$0xff]  ;;  %v1117_v25 = vsub.s32 (!%p1371_p13), 0, %v1116_v22 }
  0x67   : > { %1074 = vmatprep.subr.bf16.mxu1 %v1472_v26  ;;  %v1113_v23 = vld [vmem:[%s591_s15] sm:$0x3] (!%p1371_p13)  ;;  %v1121_v26 = vsub.s32 (!%p1371_p13), 1, %v1116_v22 }
  0x68   : > { %v1127_v24 = vld [vmem:[%s1828_s18] sm:$0xff] (!%p1371_p13) }
  0x69   : > { %1034 = vmatpush1.bf16.msra.mxu0 %v1474_v27 }
  0x6a   : > { %1075 = vmatpush1.bf16.msra.mxu1 %v1475_v28  ;;  %1035 = vmatprep.subr.bf16.mxu0 %v1476_v29  ;;  %v1118_v29 = vrot.slane (!%p1371_p13), %v1113_v23, %v1117_v25 }
  0x6b   : > { %1076 = vmatprep.subr.bf16.mxu1 %v1478_v30  ;;  %v1122_v30 = vrot.slane (!%p1371_p13), %v1113_v23, %v1121_v26 }
  0x6d   : > { %1036 = vmatpush1.bf16.msra.mxu0 %v1480_v31  ;;  %v1128_v31 = vunpack.c.l.bf16 (!%p1371_p13), %v1127_v24 }
  0x6e   : > { %1077 = vmatpush1.bf16.msra.mxu1 %v1481_v32  ;;  %1037 = vmatprep.subr.bf16.mxu0 %v1482_v33  ;;  %v1129_v32 = vunpack.c.h.bf16 (!%p1371_p13), %v1127_v24 }
  0x6f   : > { %1078 = vmatprep.subr.bf16.mxu1 %v1484_v34 }
  0x71   : > { %1038 = vmatpush1.bf16.msra.mxu0 %v1486_v35 }
  0x72   : > { %1079 = vmatpush1.bf16.msra.mxu1 %v1487_v36  ;;  %1039 = vmatprep.subr.bf16.mxu0 %v1488_v37 }
  0x73   : > { %1080 = vmatprep.subr.bf16.mxu1 %v1490_v38 }
  0x75   : > { %1040 = vmatpush1.bf16.msra.mxu0 %v1492_v39 }
  0x76   : > { %1081 = vmatpush1.bf16.msra.mxu1 %v1493_v40  ;;  %1041 = vmatprep.subr.bf16.mxu0 %v1494_v41 }
  0x77   : > { %1082 = vmatprep.subr.bf16.mxu1 %v1496_v42 }
  0x79   : > { %1042 = vmatpush1.bf16.msra.mxu0 %v1498_v43 }
  0x7a   : > { %1083 = vmatpush1.bf16.msra.mxu1 %v1499_v44  ;;  %1043 = vmatprep.subr.bf16.mxu0 %v1500_v45 }
  0x7b   : > { %1084 = vmatprep.subr.bf16.mxu1 %v1502_v46 }
  0x7d   : > { %1044 = vmatpush1.bf16.msra.mxu0 %v1504_v50 }
  0x7e   : > { %1085 = vmatpush1.bf16.msra.mxu1 %v1505_v51  ;;  %1045 = vmatprep.subr.bf16.mxu0 %v1506_v53 }
  0x7f   : > { %1086 = vmatprep.subr.bf16.mxu1 %v1508_v54 }
  0x81   : > { %1046 = vmatpush1.bf16.msra.mxu0 %v1510_v55 }
  0x82   : > { %1087 = vmatpush1.bf16.msra.mxu1 %v1511_v56  ;;  %1047 = vmatprep.subr.bf16.mxu0 %v1512_v57 }
  0x83   : > { %1088 = vmatprep.subr.bf16.mxu1 %v1514_v58 }
  0x85   : > { %1048 = vmatpush1.bf16.msra.mxu0 %v1516_v59 }
  0x86   : > { %1089 = vmatpush1.bf16.msra.mxu1 %v1517_v60  ;;  %1049 = vmatprep.subr.bf16.mxu0 %v1518_v61 }
  0x87   : > { %1090 = vmatprep.subr.bf16.mxu1 %v1520_v62 }
  0x89   : > { %1050 = vmatpush1.bf16.msra.mxu0 %v1522_v63 }
  0x8a   : > { %1091 = vmatpush1.bf16.msra.mxu1 %v1523_v0  ;;  %1051 = vmatprep.subr.bf16.mxu0 %v1524_v1 }
  0x8b   : > { %1092 = vmatprep.subr.bf16.mxu1 %v1526_v2 }
  0x8d   : > { %1052 = vmatpush1.bf16.msra.mxu0 %v1528_v3 }
  0x8e   : > { %1093 = vmatpush1.bf16.msra.mxu1 %v1529_v4 }
  0x90   : > { %1054 = vmatmul.mubr.bf16.vlgmr.msra.gmra.mrb[0].mxu0 %v1303_v5 }
  0x91   : > { %1095 = vmatmul.mubr.bf16.vlgmr.msra.gmra.mrb[0].mxu1 %v1305_v6 }
 0x163   : > { %v1055_v7 = vpop.f32.mrb[0].mxu0 }
 0x164   : > { %v1096_v9 = vpop.f32.mrb[0].mxu1  ;;  %v1057_v11 = vpop.f32.mrb[1].mxu0  ;;  %1110 = sbr.rel (%p1371_p13) target bundleno = 379 (0x17b), region = 82 }
 0x165   : > { %v1097_v10 = vadd.f32 %v1096_v9, %v1055_v7  ;;  %v1098_v13 = vpop.f32.mrb[1].mxu1  ;;  %v1059_v15 = vpop.f32.mrb[2].mxu0 }
 0x166   : > { %v1099_v14 = vadd.f32 %v1098_v13, %v1057_v11  ;;  %v1100_v16 = vpop.f32.mrb[2].mxu1  ;;  %v1060_v18 = vpop.f32.mrb[3].mxu0 }
 0x167   : > { %v1103_v17 = vadd.f32 %v1097_v10, %v619_v8  ;;  %v1101_v19 = vpop.f32.mrb[3].mxu1 }
 0x168   : > { %v1104_v20 = vadd.f32 %v1099_v14, %v620_v12 }
 0x169   : > { %1105 = vst [vmem:[#allocation2] sm:$0xff] %v1103_v17 }
 0x16a   : > { %1106 = vst [vmem:[#allocation2 + $0x8] sm:$0xff] %v1104_v20 }
 0x170   : > { %v1111_v27 = vld [vmem:[#allocation2] sm:$0xff] }
 0x171   : > { %v1112_v28 = vld [vmem:[#allocation2 + $0x8] sm:$0xff]  ;;  %v1125_v33 = vadd.f32 %v1118_v29, %v1111_v27 }
 0x172   : > { %v1126_v34 = vadd.f32 %v1122_v30, %v1112_v28 }
 0x173   : > { %v1130_v35 = vadd.f32 %v1128_v31, %v1125_v33 }
 0x174   : > { %v1131_v36 = vadd.f32 %v1129_v32, %v1126_v34 }
 0x175   : > { %v1132_v37 = vmax.f32 %v1130_v35, 0.0 }
 0x176   : > { %v1133_v38 = vmax.f32 %v1131_v36, 0.0 }
 0x178   : > { %v1376_v39 = vpack.c.bf16 %v1133_v38, %v1132_v37 }
 0x17a   : > { %1142 = vst [vmem:[%s1833_s12] sm:$0xff] %v1376_v39 }
 0x17b PF: > { %s14_s21 = sadd.s32 1, %s1588_s21   ;;  %s1938_s15 = smov %s1568_s16 }
 0x17c   : > { %p11_p0 = scmp.ge.s32.totalorder %s14_s21, 20   ;;  %s1939_s16 = smov %s1667_s28 }
 0x17d   : > { %s1940_s17 = smov %s1580_s19  ;;  %s1941_s18 = smov %s1584_s20 }
 0x17e   : > { %s1942_s19 = smov %s1945_s22  ;;  %s1943_s20 = smov %s1949_s23 }
 0x17f   :  { %13 = sbr.rel (!%p11_p0) target bundleno = 4 (0x4), region = 126 }

// kernel: _lambda_.27
= control target key start
LH: loop header
LB: loop body
LE: loop exit
PB: predicated region body
PF: predicated region fallthrough
CT: control target
= control target key end

     0   :  { %v47_v24 = vlaneseq  ;;  %vm375_vm0 = vcmask 1041409   ;;  %vm378_vm1 = vcmask 1042434   ;;  %vm381_vm2 = vcmask 1043459   ;;  %s1080_s1 = inlined_call_operand.vmem [shape: bf16[512,128], index: 1, kind: input, shape index: {}]   ;;  %s1081_s0 = inlined_call_operand.vmem [shape: bf16[8,1,512], index: 0, kind: input, shape index: {}]   ;;  %s1082_s2 = inlined_call_operand.vmem [shape: f32[1,128], index: 2, kind: input, shape index: {}]   ;;  %s1083_s3 = inlined_call_operand.vmem [shape: f32[8,128], index: 3, kind: output, shape index: {}]  }
   0x1   :  { %v818_v0 = vld [vmem:[%s1080_s1 + $0x40] sm:$0xff]   ;;  %v822_v4 = vld [vmem:[%s1080_s1 + $0x48] sm:$0xff]   ;;  %v826_v8 = vld [vmem:[%s1080_s1 + $0x50] sm:$0xff]   ;;  %vm384_vm3 = vcmask 1044484   ;;  %vm387_vm4 = vcmask 1045509   ;;  %vm390_vm5 = vcmask 1046534  }
   0x2   :  { %v819_v1 = vld [vmem:[%s1080_s1 + $0xc0] sm:$0xff]   ;;  %774 = vmatprep.subr.bf16.mxu0 %v818_v0  ;;  %v823_v5 = vld [vmem:[%s1080_s1 + $0xc8] sm:$0xff]   ;;  %v827_v9 = vld [vmem:[%s1080_s1 + $0xd0] sm:$0xff]   ;;  %v48_v29 = vshrl.u32 %v47_v24, 7  ;;  %vm393_vm6 = vcmask 1047559  }
   0x3   :  { %v820_v2 = vld [vmem:[%s1080_s1] sm:$0xff]   ;;  %796 = vmatprep.subr.bf16.mxu1 %v819_v1  ;;  %v824_v6 = vld [vmem:[%s1080_s1 + $0x8] sm:$0xff]   ;;  %v828_v10 = vld [vmem:[%s1080_s1 + $0x10] sm:$0xff]  }
   0x4   :  { %v821_v3 = vld [vmem:[%s1080_s1 + $0x80] sm:$0xff]   ;;  %775 = vmatpush3.bf16.msra.mxu0 %v820_v2  ;;  %v825_v7 = vld [vmem:[%s1080_s1 + $0x88] sm:$0xff]   ;;  %v829_v11 = vld [vmem:[%s1080_s1 + $0x90] sm:$0xff]   ;;  %v53_v34 = vsub.s32 2, %v48_v29  ;;  %v61_v38 = vsub.s32 6, %v48_v29  ;;  %v975_v39 = vsub.s32 0, %v48_v29 }
   0x5   :  { %797 = vmatpush3.bf16.msra.mxu1 %v821_v3  ;;  %776 = vmatprep.subr.bf16.mxu0 %v822_v4  ;;  %v830_v12 = vld [vmem:[%s1080_s1 + $0x58] sm:$0xff]   ;;  %v834_v16 = vld [vmem:[%s1080_s1 + $0x60] sm:$0xff]   ;;  %v838_v20 = vld [vmem:[%s1080_s1 + $0x68] sm:$0xff]   ;;  %v977_v40 = vsub.s32 4, %v48_v29 }
   0x6   :  { %798 = vmatprep.subr.bf16.mxu1 %v823_v5  ;;  %v831_v13 = vld [vmem:[%s1080_s1 + $0xd8] sm:$0xff]   ;;  %v835_v17 = vld [vmem:[%s1080_s1 + $0xe0] sm:$0xff]   ;;  %v839_v21 = vld [vmem:[%s1080_s1 + $0xe8] sm:$0xff]  }
   0x7   :  { %v832_v14 = vld [vmem:[%s1080_s1 + $0x18] sm:$0xff]   ;;  %v836_v18 = vld [vmem:[%s1080_s1 + $0x20] sm:$0xff]   ;;  %v840_v22 = vld [vmem:[%s1080_s1 + $0x28] sm:$0xff]  }
   0x8   :  { %777 = vmatpush3.bf16.msra.mxu0 %v824_v6  ;;  %v833_v15 = vld [vmem:[%s1080_s1 + $0x98] sm:$0xff]   ;;  %v837_v19 = vld [vmem:[%s1080_s1 + $0xa0] sm:$0xff]   ;;  %v841_v23 = vld [vmem:[%s1080_s1 + $0xa8] sm:$0xff]  }
   0x9   :  { %799 = vmatpush3.bf16.msra.mxu1 %v825_v7  ;;  %778 = vmatprep.subr.bf16.mxu0 %v826_v8  ;;  %v842_v25 = vld [vmem:[%s1080_s1 + $0x70] sm:$0xff]   ;;  %v846_v30 = vld [vmem:[%s1080_s1 + $0x78] sm:$0xff]   ;;  %v756_v35 = vld [vmem:[%s1081_s0] sm:$0xff]  }
   0xa   :  { %800 = vmatprep.subr.bf16.mxu1 %v827_v9  ;;  %v843_v26 = vld [vmem:[%s1080_s1 + $0xf0] sm:$0xff]   ;;  %v847_v31 = vld [vmem:[%s1080_s1 + $0xf8] sm:$0xff]   ;;  %v771_v36 = vld [vmem:[%s1081_s0 + $0x8] sm:$0xff]   ;;  %v979_v41 = vunpack.c.l.bf16 %v756_v35  ;;  %v981_v42 = vunpack.c.h.bf16 %v756_v35 }
   0xb   :  { %v844_v27 = vld [vmem:[%s1080_s1 + $0x30] sm:$0xff]   ;;  %v848_v32 = vld [vmem:[%s1080_s1 + $0x38] sm:$0xff]   ;;  %v983_v43 = vunpack.c.l.bf16 %v771_v36  ;;  %v985_v44 = vunpack.c.h.bf16 %v771_v36 }
   0xc   :  { %779 = vmatpush3.bf16.msra.mxu0 %v828_v10  ;;  %v845_v28 = vld [vmem:[%s1080_s1 + $0xb0] sm:$0xff]   ;;  %v849_v33 = vld [vmem:[%s1080_s1 + $0xb8] sm:$0xff]   ;;  %v54_v50 = vrot.slane %v979_v41, %v53_v34  ;;  %v70_v51 = vrot.slane %v981_v42, %v53_v34 }
   0xd   :  { %801 = vmatpush3.bf16.msra.mxu1 %v829_v11  ;;  %780 = vmatprep.subr.bf16.mxu0 %v830_v12  ;;  %v772_v37 = vld [vmem:[%s1081_s0 + $0x10] sm:$0xff]   ;;  %v773_v45 = vld [vmem:[%s1081_s0 + $0x18] sm:$0xff]   ;;  %v86_v52 = vrot.slane %v983_v43, %v53_v34  ;;  %v102_v53 = vrot.slane %v985_v44, %v53_v34 }
   0xe   :  { %802 = vmatprep.subr.bf16.mxu1 %v831_v13  ;;  %v990_v46 = vunpack.c.l.bf16 %v772_v37  ;;  %v992_v47 = vunpack.c.h.bf16 %v772_v37  ;;  %v994_v48 = vunpack.c.l.bf16 %v773_v45  ;;  %v996_v49 = vunpack.c.h.bf16 %v773_v45 }
   0xf   :  { %v208_v58 = vpack.c.bf16 %v54_v50, %v54_v50  ;;  %v212_v59 = vpack.c.bf16 %v70_v51, %v70_v51  ;;  %v216_v60 = vpack.c.bf16 %v86_v52, %v86_v52  ;;  %v220_v61 = vpack.c.bf16 %v102_v53, %v102_v53 }
  0x10   :  { %781 = vmatpush3.bf16.msra.mxu0 %v832_v14  ;;  %v118_v54 = vrot.slane %v990_v46, %v53_v34  ;;  %v134_v55 = vrot.slane %v992_v47, %v53_v34  ;;  %v150_v56 = vrot.slane %v994_v48, %v53_v34  ;;  %v166_v57 = vrot.slane %v996_v49, %v53_v34 }
  0x11   :  { %803 = vmatpush3.bf16.msra.mxu1 %v833_v15  ;;  %782 = vmatprep.subr.bf16.mxu0 %v834_v16  ;;  %v343_v2 = vunpack.c.l.b16 %v208_v58  ;;  %v347_v3 = vunpack.c.l.b16 %v212_v59  ;;  %v351_v4 = vunpack.c.l.b16 %v216_v60  ;;  %v355_v5 = vunpack.c.l.b16 %v220_v61 }
  0x12   :  { %804 = vmatprep.subr.bf16.mxu1 %v835_v17  ;;  %v224_v62 = vpack.c.bf16 %v118_v54, %v118_v54  ;;  %v228_v63 = vpack.c.bf16 %v134_v55, %v134_v55  ;;  %v232_v0 = vpack.c.bf16 %v150_v56, %v150_v56  ;;  %v236_v1 = vpack.c.bf16 %v166_v57, %v166_v57 }
  0x13   :  { %v395_v10 = vrot.slane %v347_v3, 7  ;;  %v397_v11 = vrot.slane %v351_v4, 6  ;;  %v399_v12 = vrot.slane %v355_v5, 5  ;;  %v62_v13 = vrot.slane %v979_v41, %v61_v38 }
  0x14   :  { %783 = vmatpush3.bf16.msra.mxu0 %v836_v18  ;;  %v359_v6 = vunpack.c.l.b16 %v224_v62  ;;  %v363_v7 = vunpack.c.l.b16 %v228_v63  ;;  %v367_v8 = vunpack.c.l.b16 %v232_v0  ;;  %v371_v9 = vunpack.c.l.b16 %v236_v1 }
  0x15   :  { %805 = vmatpush3.bf16.msra.mxu1 %v837_v19  ;;  %784 = vmatprep.subr.bf16.mxu0 %v838_v20  ;;  %v396_v18 = vsel %vm375_vm0, %v395_v10, %v343_v2  ;;  %v78_v19 = vrot.slane %v981_v42, %v61_v38  ;;  %v94_v20 = vrot.slane %v983_v43, %v61_v38 }
  0x16   :  { %806 = vmatprep.subr.bf16.mxu1 %v839_v21  ;;  %v401_v14 = vrot.slane %v359_v6, 4  ;;  %v403_v15 = vrot.slane %v363_v7, 3  ;;  %v405_v16 = vrot.slane %v367_v8, 2  ;;  %v407_v17 = vrot.slane %v371_v9, 1 }
  0x17   :  { %v110_v21 = vrot.slane %v985_v44, %v61_v38  ;;  %v142_v24 = vrot.slane %v992_v47, %v61_v38  ;;  %v214_v29 = vpack.c.bf16 %v78_v19, %v78_v19  ;;  %v50_v3 = vrot.slane %v979_v41, %v975_v39 }
  0x18   :  { %785 = vmatpush3.bf16.msra.mxu0 %v840_v22  ;;  %v398_v22 = vsel %vm378_vm1, %v397_v11, %v396_v18  ;;  %v66_v5 = vrot.slane %v981_v42, %v975_v39  ;;  %v82_v6 = vrot.slane %v983_v43, %v975_v39  ;;  %v98_v7 = vrot.slane %v985_v44, %v975_v39 }
  0x19   :  { %807 = vmatpush3.bf16.msra.mxu1 %v841_v23  ;;  %786 = vmatprep.subr.bf16.mxu0 %v842_v25  ;;  %v126_v23 = vrot.slane %v990_v46, %v61_v38  ;;  %v158_v25 = vrot.slane %v994_v48, %v61_v38  ;;  %v230_v35 = vpack.c.bf16 %v142_v24, %v142_v24  ;;  %v349_v51 = vunpack.c.l.b16 %v214_v29 }
  0x1a   :  { %808 = vmatprep.subr.bf16.mxu1 %v843_v26  ;;  %v400_v26 = vsel %vm381_vm2, %v399_v12, %v398_v22  ;;  %v114_v9 = vrot.slane %v990_v46, %v975_v39  ;;  %v130_v10 = vrot.slane %v992_v47, %v975_v39  ;;  %v146_v11 = vrot.slane %v994_v48, %v975_v39 }
  0x1b   :  { %v234_v36 = vpack.c.bf16 %v158_v25, %v158_v25  ;;  %v365_v55 = vunpack.c.l.b16 %v230_v35  ;;  %v423_v59 = vrot.slane %v349_v51, 7  ;;  %v219_v18 = vpack.c.bf16 %v98_v7, %v98_v7 }
  0x1c   :  { %787 = vmatpush3.bf16.msra.mxu0 %v844_v27  ;;  %v174_v27 = vrot.slane %v996_v49, %v61_v38  ;;  %v223_v19 = vpack.c.bf16 %v114_v9, %v114_v9  ;;  %v231_v22 = vpack.c.bf16 %v146_v11, %v146_v11 }
  0x1d   :  { %809 = vmatpush3.bf16.msra.mxu1 %v845_v28  ;;  %788 = vmatprep.subr.bf16.mxu0 %v846_v30  ;;  %v210_v28 = vpack.c.bf16 %v62_v13, %v62_v13  ;;  %v402_v30 = vsel %vm384_vm3, %v401_v14, %v400_v26  ;;  %v369_v57 = vunpack.c.l.b16 %v234_v36  ;;  %v431_v63 = vrot.slane %v365_v55, 3 }
  0x1e   :  { %810 = vmatprep.subr.bf16.mxu1 %v847_v31  ;;  %v218_v31 = vpack.c.bf16 %v94_v20, %v94_v20  ;;  %v404_v34 = vsel %vm387_vm4, %v403_v15, %v402_v30  ;;  %v238_v37 = vpack.c.bf16 %v174_v27, %v174_v27  ;;  %v162_v13 = vrot.slane %v996_v49, %v975_v39 }
  0x1f   :  { %v406_v45 = vsel %vm390_vm5, %v405_v16, %v404_v34  ;;  %v345_v50 = vunpack.c.l.b16 %v210_v28  ;;  %v433_v1 = vrot.slane %v369_v57, 2  ;;  %v207_v14 = vpack.c.bf16 %v50_v3, %v50_v3 }
  0x20   :  { %789 = vmatpush3.bf16.msra.mxu0 %v848_v32  ;;  %v222_v32 = vpack.c.bf16 %v110_v21, %v110_v21  ;;  %v353_v52 = vunpack.c.l.b16 %v218_v31  ;;  %v408_v53 = vsel %vm393_vm6, %v407_v17, %v406_v45  ;;  %v373_v58 = vunpack.c.l.b16 %v238_v37 }
  0x21   :  { %811 = vmatpush3.bf16.msra.mxu1 %v849_v33  ;;  %v226_v33 = vpack.c.bf16 %v126_v23, %v126_v23  ;;  %v438_v56 = vpack.c.b16 %v408_v53, %v408_v53  ;;  %v424_v0 = vsel %vm375_vm0, %v423_v59, %v345_v50  ;;  %v211_v15 = vpack.c.bf16 %v66_v5, %v66_v5 }
  0x22   :  { %v357_v38 = vunpack.c.l.b16 %v222_v32  ;;  %v425_v60 = vrot.slane %v353_v52, 6  ;;  %v435_v2 = vrot.slane %v373_v58, 1  ;;  %v215_v17 = vpack.c.bf16 %v82_v6, %v82_v6 }
  0x23   :  { %v361_v54 = vunpack.c.l.b16 %v226_v33  ;;  %669 = vmatprep.mubr.bf16.mxu0 %v438_v56  ;;  %v227_v21 = vpack.c.bf16 %v130_v10, %v130_v10  ;;  %v235_v23 = vpack.c.bf16 %v162_v13, %v162_v13  ;;  %v342_v25 = vunpack.c.l.b16 %v207_v14 }
  0x24   :  { %v427_v61 = vrot.slane %v357_v38, 5  ;;  %v426_v4 = vsel %vm378_vm1, %v425_v60, %v424_v0  ;;  %v346_v26 = vunpack.c.l.b16 %v211_v15  ;;  %v350_v27 = vunpack.c.l.b16 %v215_v17 }
  0x25   :  { %v429_v62 = vrot.slane %v361_v54, 4  ;;  %v354_v29 = vunpack.c.l.b16 %v219_v18  ;;  %v358_v39 = vunpack.c.l.b16 %v223_v19  ;;  %v362_v30 = vunpack.c.l.b16 %v227_v21 }
  0x26   :  { %v428_v8 = vsel %vm381_vm2, %v427_v61, %v426_v4  ;;  %v366_v31 = vunpack.c.l.b16 %v231_v22  ;;  %v370_v32 = vunpack.c.l.b16 %v235_v23  ;;  %v374_v33 = vrot.slane %v346_v26, 7 }
  0x27   :  { %v430_v12 = vsel %vm384_vm3, %v429_v62, %v428_v8  ;;  %v377_v34 = vrot.slane %v350_v27, 6  ;;  %v380_v35 = vrot.slane %v354_v29, 5  ;;  %v383_v36 = vrot.slane %v358_v39, 4  ;;  %v722_v29 = vld [vmem:[%s1082_s2] ss:$0 sm:$0xff] }
  0x28   :  { %v432_v16 = vsel %vm387_vm4, %v431_v63, %v430_v12  ;;  %v386_v37 = vrot.slane %v362_v30, 3  ;;  %v58_v45 = vrot.slane %v979_v41, %v977_v40  ;;  %v376_v50 = vsel %vm375_vm0, %v374_v33, %v342_v25 }
  0x29   :  { %v434_v20 = vsel %vm390_vm5, %v433_v1, %v432_v16  ;;  %v389_v51 = vrot.slane %v366_v31, 2  ;;  %v392_v52 = vrot.slane %v370_v32, 1  ;;  %v74_v53 = vrot.slane %v981_v42, %v977_v40 }
  0x2a   :  { %v436_v24 = vsel %vm393_vm6, %v435_v2, %v434_v20  ;;  %v379_v38 = vsel %vm378_vm1, %v377_v34, %v376_v50  ;;  %v90_v54 = vrot.slane %v983_v43, %v977_v40  ;;  %v106_v55 = vrot.slane %v985_v44, %v977_v40 }
  0x2b   :  { %v440_v28 = vpack.c.b16 %v436_v24, %v436_v24  ;;  %v122_v56 = vrot.slane %v990_v46, %v977_v40  ;;  %v382_v41 = vsel %vm381_vm2, %v380_v35, %v379_v38  ;;  %v138_v57 = vrot.slane %v992_v47, %v977_v40 }
  0x2c   :  { %v154_v58 = vrot.slane %v994_v48, %v977_v40  ;;  %v170_v42 = vrot.slane %v996_v49, %v977_v40  ;;  %v385_v59 = vsel %vm384_vm3, %v383_v36, %v382_v41  ;;  %v209_v43 = vpack.c.bf16 %v58_v45, %v58_v45 }
  0x2d   :  { %709 = vmatprep.mubr.bf16.mxu1 %v440_v28  ;;  %v213_v60 = vpack.c.bf16 %v74_v53, %v74_v53  ;;  %v217_v61 = vpack.c.bf16 %v90_v54, %v90_v54  ;;  %v388_v44 = vsel %vm387_vm4, %v386_v37, %v385_v59  ;;  %v221_v62 = vpack.c.bf16 %v106_v55, %v106_v55 }
  0x2e   :  { %v225_v46 = vpack.c.bf16 %v122_v56, %v122_v56  ;;  %v229_v63 = vpack.c.bf16 %v138_v57, %v138_v57  ;;  %v391_v0 = vsel %vm390_vm5, %v389_v51, %v388_v44  ;;  %v233_v1 = vpack.c.bf16 %v154_v58, %v154_v58 }
  0x2f   :  { %v237_v47 = vpack.c.bf16 %v170_v42, %v170_v42  ;;  %v344_v2 = vunpack.c.l.b16 %v209_v43  ;;  %v394_v48 = vsel %vm393_vm6, %v392_v52, %v391_v0  ;;  %v348_v3 = vunpack.c.l.b16 %v213_v60 }
  0x30   :  { %v352_v4 = vunpack.c.l.b16 %v217_v61  ;;  %v356_v40 = vunpack.c.l.b16 %v221_v62  ;;  %v437_v49 = vpack.c.b16 %v394_v48, %v394_v48  ;;  %v360_v5 = vunpack.c.l.b16 %v225_v46 }
  0x31   :  { %v364_v6 = vunpack.c.l.b16 %v229_v63  ;;  %v368_v7 = vunpack.c.l.b16 %v233_v1  ;;  %v372_v8 = vunpack.c.l.b16 %v237_v47  ;;  %v409_v9 = vrot.slane %v348_v3, 7 }
  0x32   :  { %v411_v10 = vrot.slane %v352_v4, 6  ;;  %v413_v11 = vrot.slane %v356_v40, 5  ;;  %670 = vmatmul.mubr.bf16.vlgmr.msra.gmra.mrb[0].mxu0 %v437_v49  ;;  %v415_v12 = vrot.slane %v360_v5, 4 }
  0x33   :  { %v410_v13 = vsel %vm375_vm0, %v409_v9, %v344_v2  ;;  %v417_v14 = vrot.slane %v364_v6, 3  ;;  %v419_v16 = vrot.slane %v368_v7, 2  ;;  %v421_v18 = vrot.slane %v372_v8, 1 }
  0x34   :  { %v412_v15 = vsel %vm378_vm1, %v411_v10, %v410_v13 }
  0x35   :  { %v414_v17 = vsel %vm381_vm2, %v413_v11, %v412_v15 }
  0x36   :  { %v416_v19 = vsel %vm384_vm3, %v415_v12, %v414_v17 }
  0x37   :  { %v418_v20 = vsel %vm387_vm4, %v417_v14, %v416_v19 }
  0x38   :  { %v420_v21 = vsel %vm390_vm5, %v419_v16, %v418_v20 }
  0x39   :  { %v422_v22 = vsel %vm393_vm6, %v421_v18, %v420_v21 }
  0x3a   :  { %v439_v23 = vpack.c.b16 %v422_v22, %v422_v22 }
  0x3c   :  { %710 = vmatmul.mubr.bf16.vlgmr.msra.gmra.mrb[0].mxu1 %v439_v23 }
 0x105   :  { %v790_v24 = vpop.f32.mrb[0].mxu0 }
 0x106   :  { %v791_v25 = vpop.f32.mrb[1].mxu0 }
 0x107   :  { %v792_v26 = vadd.f32 %v791_v25, %v790_v24  ;;  %v793_v27 = vpop.f32.mrb[2].mxu0 }
 0x108   :  { %v794_v28 = vpop.f32.mrb[3].mxu0 }
 0x109   :  { %v672_v30 = vadd.f32 %v792_v26, %v722_v29 }
 0x10f   :  { %v812_v39 = vpop.f32.mrb[0].mxu1 }
 0x110   :  { %v813_v31 = vpop.f32.mrb[1].mxu1 }
 0x111   :  { %v814_v32 = vadd.f32 %v813_v31, %v812_v39  ;;  %v815_v33 = vpop.f32.mrb[2].mxu1 }
 0x112   :  { %v816_v34 = vpop.f32.mrb[3].mxu1 }
 0x113   :  { %v712_v35 = vadd.f32 %v814_v32, %v672_v30 }
 0x115   :  { %717 = vst [vmem:[%s1083_s3] sm:$0xff] %v712_v35 }

</bundles_post_ra>
